<compile_context>
chip_gen: v7x
topology: tpu7x:2x2x1
jax: 0.10.0
libtpu: 0.0.40
codegen_flags: <defaults>
</compile_context>

<pallas_src>
import functools

import jax
import jax.numpy as jnp
from jax.experimental import pallas as pl
from jax.experimental.pallas import tpu as pltpu

HIDDEN = 1024
LANE = 128
SUBLANE = 8


def _round_up(n, m):
    return ((n + m - 1) // m) * m


# --------------------------------- kernel -----------------------------------

def dqn_kernel(x_ref, w1_ref, b1_ref, w2_ref, b2_ref, w3_ref, b3_ref, o_ref):
    # layer1 + ReLU  (bf16 operands -> MXU, f32 accumulate / bias / ReLU)
    h1 = jnp.dot(x_ref[...], w1_ref[...], preferred_element_type=jnp.float32)
    h1 = jnp.maximum(h1 + b1_ref[...], 0.0).astype(jnp.bfloat16)
    # layer2 + ReLU
    h2 = jnp.dot(h1, w2_ref[...], preferred_element_type=jnp.float32)
    h2 = jnp.maximum(h2 + b2_ref[...], 0.0).astype(jnp.bfloat16)
    # layer3 (no activation)
    out = jnp.dot(h2, w3_ref[...], preferred_element_type=jnp.float32) + b3_ref[...]
    o_ref[...] = out.astype(o_ref.dtype)


# ------------------------ one-time parameter preparation --------------------

def prepare_params(params):
    """One-time, OUT of the hot path: pad K/N dims to 128 lanes, cast weights
    to bf16, normalize biases to (1, N) f32.  Returns (prepared_dict, n_act).
    """
    w1, w2, w3 = params["w1"], params["w2"], params["w3"]
    n_obs = w1.shape[0]
    n_act = w3.shape[1]
    K1 = _round_up(n_obs, LANE)
    N3 = _round_up(n_act, LANE)

    def as_row(b, n):  # accept PyTorch-style (n,) or (1, n)
        return jnp.asarray(b, jnp.float32).reshape(1, n)

    # TODO(synk): optional int8 quantization of w2 for v5e/v6e (not portable to
    # v7x MXU, which has no int path) -- keep bf16 for portability.
    prep = {
        "w1": jnp.zeros((K1, HIDDEN), jnp.bfloat16).at[:n_obs, :].set(
            w1.astype(jnp.bfloat16)),
        "b1": as_row(params["b1"], HIDDEN),
        "w2": w2.astype(jnp.bfloat16),
        "b2": as_row(params["b2"], HIDDEN),
        "w3": jnp.zeros((HIDDEN, N3), jnp.bfloat16).at[:, :n_act].set(
            w3.astype(jnp.bfloat16)),
        "b3": jnp.zeros((1, N3), jnp.float32).at[:, :n_act].set(
            as_row(params["b3"], n_act)),
    }
    return prep, n_act


# ------------------------------- forward pass -------------------------------

def _choose_tile_b(B):
    """Tiny batch: one grid step (weight-DMA bound anyway).  Mid batch: exactly
    two steps so v7x's two TensorCores both work.  Large batch: 512-row tiles."""
    if B <= 128:
        return _round_up(max(B, SUBLANE), SUBLANE)
    if B <= 1024:
        return _round_up((B + 1) // 2, LANE)
    return 512


def _vmem_limit_bytes():
    """Half of physical VMEM, capped at 64 MiB: 32 MiB on v7x, 64 MiB on v5e/v6e."""
    try:
        cap = pltpu.get_tpu_info().vmem_capacity_bytes
        return min(cap // 2, 64 << 20)
    except Exception:
        return 32 << 20


@functools.partial(
    jax.jit, static_argnames=("n_act", "single_buffer_weights", "out_dtype"))
def _dqn_forward_impl(x, prep, *, n_act, single_buffer_weights, out_dtype):
    B, n_obs = x.shape
    K1 = prep["w1"].shape[0]
    N3 = prep["w3"].shape[1]

    tile_b = _choose_tile_b(B)
    Bp = _round_up(B, tile_b)

    # Only x gets padded per call (weights were prepared once).
    x_p = jnp.pad(x.astype(jnp.bfloat16), ((0, Bp - B), (0, K1 - n_obs)))

    # Constant-index weight/bias blocks: nothing to double-buffer.
    w_kw = dict(pipeline_mode=pl.Buffered(1)) if single_buffer_weights else {}

    in_specs = [
        pl.BlockSpec((tile_b, K1), lambda i: (i, 0)),              # x (batch tile)
        pl.BlockSpec((K1, HIDDEN), lambda i: (0, 0), **w_kw),      # w1
        pl.BlockSpec((1, HIDDEN), lambda i: (0, 0), **w_kw),       # b1
        pl.BlockSpec((HIDDEN, HIDDEN), lambda i: (0, 0), **w_kw),  # w2
        pl.BlockSpec((1, HIDDEN), lambda i: (0, 0), **w_kw),       # b2
        pl.BlockSpec((HIDDEN, N3), lambda i: (0, 0), **w_kw),      # w3
        pl.BlockSpec((1, N3), lambda i: (0, 0), **w_kw),           # b3
    ]
    out_spec = pl.BlockSpec((tile_b, N3), lambda i: (i, 0))

    out_bytes = jnp.dtype(out_dtype).itemsize
    flops = 2 * Bp * (K1 * HIDDEN + HIDDEN * HIDDEN + HIDDEN * N3)
    bytes_accessed = (
        Bp * K1 * 2                                           # x (bf16)
        + (K1 * HIDDEN + HIDDEN * HIDDEN + HIDDEN * N3) * 2   # weights (bf16)
        + (2 * HIDDEN + N3) * 4                               # biases (f32)
        + Bp * N3 * out_bytes                                 # output
    )

    out = pl.pallas_call(
        dqn_kernel,
        out_shape=jax.ShapeDtypeStruct((Bp, N3), out_dtype),
        grid_spec=pltpu.PrefetchScalarGridSpec(
            num_scalar_prefetch=0,
            grid=(Bp // tile_b,),
            in_specs=in_specs,
            out_specs=out_spec,
        ),
        compiler_params=pltpu.CompilerParams(
            dimension_semantics=("parallel",),
            vmem_limit_bytes=_vmem_limit_bytes(),
        ),
        cost_estimate=pl.CostEstimate(
            flops=flops, transcendentals=0, bytes_accessed=bytes_accessed),
    )(x_p, prep["w1"], prep["b1"], prep["w2"], prep["b2"],
      prep["w3"], prep["b3"])

    # strip batch / lane padding
    return out[:B, :n_act]


def dqn_forward(x, prep, n_act, out_dtype=jnp.float32):
    """x: (B, n_observations) f32. prep: output of prepare_params()."""
    try:
        return _dqn_forward_impl(x, prep, n_act=n_act,
                                 single_buffer_weights=True, out_dtype=out_dtype)
    except Exception:
        # Fallback for jax versions without single-buffered BlockSpec support.
        return _dqn_forward_impl(x, prep, n_act=n_act,
                                 single_buffer_weights=False, out_dtype=out_dtype)


# --------------------------- init & reference -------------------------------

def init_params(key, n_observations, n_actions):
    """Deterministic init mirroring nn.Linear: U(-1/sqrt(fan_in), 1/sqrt(fan_in))."""
    keys = jax.random.split(key, 6)

    def linear(kw, kb, fan_in, fan_out):
        bound = 1.0 / jnp.sqrt(float(fan_in))
        w = jax.random.uniform(kw, (fan_in, fan_out), jnp.float32, -bound, bound)
        b = jax.random.uniform(kb, (1, fan_out), jnp.float32, -bound, bound)
        return w, b

    w1, b1 = linear(keys[0], keys[1], n_observations, HIDDEN)
    w2, b2 = linear(keys[2], keys[3], HIDDEN, HIDDEN)
    w3, b3 = linear(keys[4], keys[5], HIDDEN, n_actions)
    return {"w1": w1, "b1": b1, "w2": w2, "b2": b2, "w3": w3, "b3": b3}


def dqn_reference_bf16(x, p):
    """Reference matching the kernel's mixed precision (bf16 operands, f32 acc)."""
    xb = x.astype(jnp.bfloat16)
    w1 = p["w1"].astype(jnp.bfloat16)
    w2 = p["w2"].astype(jnp.bfloat16)
    w3 = p["w3"].astype(jnp.bfloat16)
    h1 = jnp.maximum(jnp.dot(xb, w1, preferred_element_type=jnp.float32)
                     + p["b1"], 0.0).astype(jnp.bfloat16)
    h2 = jnp.maximum(jnp.dot(h1, w2, preferred_element_type=jnp.float32)
                     + p["b2"], 0.0).astype(jnp.bfloat16)
    return jnp.dot(h2, w3, preferred_element_type=jnp.float32) + p["b3"]


if __name__ == "__main__":
    key = jax.random.PRNGKey(0)
    k_param, k_x = jax.random.split(key)

    batch = 8
    n_observations = 32
    n_actions = 8

    params = init_params(k_param, n_observations, n_actions)
    prep, n_act = prepare_params(params)          # one-time, out of hot path
    prep = jax.block_until_ready(prep)

    x = jax.random.normal(k_x, (batch, n_observations), jnp.float32)

    out = dqn_forward(x, prep, n_act)
    out = jax.block_until_ready(out)

    ref = dqn_reference_bf16(x, params)
    assert out.shape == (batch, n_actions)
    assert jnp.allclose(out, ref, atol=1e-2, rtol=1e-2), "mismatch vs reference"

    print("KERNEL_OK")
</pallas_src>

<mosaic_0001>
module attributes {stable_mosaic.version = 11 : i64} {
  func.func @dqn_kernel(%arg0: i32, %arg1: memref<8x128xbf16, #tpu.memory_space<vmem>>, %arg2: memref<128x1024xbf16, #tpu.memory_space<vmem>>, %arg3: memref<1x1024xf32, #tpu.memory_space<vmem>>, %arg4: memref<1024x1024xbf16, #tpu.memory_space<vmem>>, %arg5: memref<1x1024xf32, #tpu.memory_space<vmem>>, %arg6: memref<1024x128xbf16, #tpu.memory_space<vmem>>, %arg7: memref<1x128xf32, #tpu.memory_space<vmem>>, %arg8: memref<8x128xf32, #tpu.memory_space<vmem>>) attributes {dimension_semantics = [#tpu.dimension_semantics<parallel>], iteration_bounds = array<i64: 1>, scalar_prefetch = 0 : i64, scratch_operands = 0 : i64, tpu.core_type = #tpu.core_type<tc>, window_params = [{transform_indices = @transform_0, window_bounds = array<i64: 8, 128>}, {pipeline_mode = #tpu.pipeline_mode<synchronous>, transform_indices = @transform_1, window_bounds = array<i64: 128, 1024>}, {pipeline_mode = #tpu.pipeline_mode<synchronous>, transform_indices = @transform_2, window_bounds = array<i64: 1, 1024>}, {pipeline_mode = #tpu.pipeline_mode<synchronous>, transform_indices = @transform_3, window_bounds = array<i64: 1024, 1024>}, {pipeline_mode = #tpu.pipeline_mode<synchronous>, transform_indices = @transform_4, window_bounds = array<i64: 1, 1024>}, {pipeline_mode = #tpu.pipeline_mode<synchronous>, transform_indices = @transform_5, window_bounds = array<i64: 1024, 128>}, {pipeline_mode = #tpu.pipeline_mode<synchronous>, transform_indices = @transform_6, window_bounds = array<i64: 1, 128>}, {transform_indices = @transform_7, window_bounds = array<i64: 8, 128>}]} {
    %c0 = arith.constant 0 : index
    %c0_0 = arith.constant 0 : index
    %0 = vector.load %arg1[%c0, %c0_0] : memref<8x128xbf16, #tpu.memory_space<vmem>>, vector<8x128xbf16>
    %c0_1 = arith.constant 0 : index
    %c0_2 = arith.constant 0 : index
    %1 = vector.load %arg2[%c0_1, %c0_2] : memref<128x1024xbf16, #tpu.memory_space<vmem>>, vector<128x1024xbf16>
    %cst = arith.constant dense<0.000000e+00> : vector<8x1024xf32>
    %2 = tpu.matmul %0, %1, %cst {dimension_numbers = #tpu.dot_dimension_numbers<[1], [0], [0], [1], [0, 0, 1, 1], [], []>} : vector<8x128xbf16>, vector<128x1024xbf16>, vector<8x1024xf32> -> vector<8x1024xf32>
    %c0_3 = arith.constant 0 : index
    %c0_4 = arith.constant 0 : index
    %3 = vector.load %arg3[%c0_3, %c0_4] : memref<1x1024xf32, #tpu.memory_space<vmem>>, vector<1x1024xf32>
    %4 = vector.broadcast %3 : vector<1x1024xf32> to vector<8x1024xf32>
    %5 = arith.addf %2, %4 : vector<8x1024xf32>
    %cst_5 = arith.constant 0.000000e+00 : f32
    %6 = vector.broadcast %cst_5 : f32 to vector<8x1024xf32>
    %7 = arith.maximumf %5, %6 : vector<8x1024xf32>
    %8 = arith.truncf %7 : vector<8x1024xf32> to vector<8x1024xbf16>
    %c0_6 = arith.constant 0 : index
    %c0_7 = arith.constant 0 : index
    %9 = vector.load %arg4[%c0_6, %c0_7] : memref<1024x1024xbf16, #tpu.memory_space<vmem>>, vector<1024x1024xbf16>
    %cst_8 = arith.constant dense<0.000000e+00> : vector<8x1024xf32>
    %10 = tpu.matmul %8, %9, %cst_8 {dimension_numbers = #tpu.dot_dimension_numbers<[1], [0], [0], [1], [0, 0, 1, 1], [], []>} : vector<8x1024xbf16>, vector<1024x1024xbf16>, vector<8x1024xf32> -> vector<8x1024xf32>
    %c0_9 = arith.constant 0 : index
    %c0_10 = arith.constant 0 : index
    %11 = vector.load %arg5[%c0_9, %c0_10] : memref<1x1024xf32, #tpu.memory_space<vmem>>, vector<1x1024xf32>
    %12 = vector.broadcast %11 : vector<1x1024xf32> to vector<8x1024xf32>
    %13 = arith.addf %10, %12 : vector<8x1024xf32>
    %cst_11 = arith.constant 0.000000e+00 : f32
    %14 = vector.broadcast %cst_11 : f32 to vector<8x1024xf32>
    %15 = arith.maximumf %13, %14 : vector<8x1024xf32>
    %16 = arith.truncf %15 : vector<8x1024xf32> to vector<8x1024xbf16>
    %c0_12 = arith.constant 0 : index
    %c0_13 = arith.constant 0 : index
    %17 = vector.load %arg6[%c0_12, %c0_13] : memref<1024x128xbf16, #tpu.memory_space<vmem>>, vector<1024x128xbf16>
    %cst_14 = arith.constant dense<0.000000e+00> : vector<8x128xf32>
    %18 = tpu.matmul %16, %17, %cst_14 {dimension_numbers = #tpu.dot_dimension_numbers<[1], [0], [0], [1], [0, 0, 1, 1], [], []>} : vector<8x1024xbf16>, vector<1024x128xbf16>, vector<8x128xf32> -> vector<8x128xf32>
    %c0_15 = arith.constant 0 : index
    %c0_16 = arith.constant 0 : index
    %19 = vector.load %arg7[%c0_15, %c0_16] : memref<1x128xf32, #tpu.memory_space<vmem>>, vector<1x128xf32>
    %20 = vector.broadcast %19 : vector<1x128xf32> to vector<8x128xf32>
    %21 = arith.addf %18, %20 : vector<8x128xf32>
    %c0_17 = arith.constant 0 : index
    %c0_18 = arith.constant 0 : index
    %22 = vector.load %arg8[%c0_17, %c0_18] : memref<8x128xf32, #tpu.memory_space<vmem>>, vector<8x128xf32>
    tpu.vector_store %arg8[%c0_17, %c0_18], %21 {strides = array<i32>} : memref<8x128xf32, #tpu.memory_space<vmem>>, vector<8x128xf32>,
    return
  }
  func.func @transform_0(%arg0: i32) -> (i32, i32) {
    %c0_i32 = arith.constant 0 : i32
    %c0_i32_0 = arith.constant 0 : i32
    return %arg0, %c0_i32 : i32, i32
  }
  func.func @transform_1(%arg0: i32) -> (i32, i32) {
    %c0_i32 = arith.constant 0 : i32
    %c0_i32_0 = arith.constant 0 : i32
    %c0_i32_1 = arith.constant 0 : i32
    return %c0_i32, %c0_i32_0 : i32, i32
  }
  func.func @transform_2(%arg0: i32) -> (i32, i32) {
    %c0_i32 = arith.constant 0 : i32
    %c0_i32_0 = arith.constant 0 : i32
    %c0_i32_1 = arith.constant 0 : i32
    return %c0_i32, %c0_i32_0 : i32, i32
  }
  func.func @transform_3(%arg0: i32) -> (i32, i32) {
    %c0_i32 = arith.constant 0 : i32
    %c0_i32_0 = arith.constant 0 : i32
    %c0_i32_1 = arith.constant 0 : i32
    return %c0_i32, %c0_i32_0 : i32, i32
  }
  func.func @transform_4(%arg0: i32) -> (i32, i32) {
    %c0_i32 = arith.constant 0 : i32
    %c0_i32_0 = arith.constant 0 : i32
    %c0_i32_1 = arith.constant 0 : i32
    return %c0_i32, %c0_i32_0 : i32, i32
  }
  func.func @transform_5(%arg0: i32) -> (i32, i32) {
    %c0_i32 = arith.constant 0 : i32
    %c0_i32_0 = arith.constant 0 : i32
    %c0_i32_1 = arith.constant 0 : i32
    return %c0_i32, %c0_i32_0 : i32, i32
  }
  func.func @transform_6(%arg0: i32) -> (i32, i32) {
    %c0_i32 = arith.constant 0 : i32
    %c0_i32_0 = arith.constant 0 : i32
    %c0_i32_1 = arith.constant 0 : i32
    return %c0_i32, %c0_i32_0 : i32, i32
  }
  func.func @transform_7(%arg0: i32) -> (i32, i32) {
    %c0_i32 = arith.constant 0 : i32
    %c0_i32_0 = arith.constant 0 : i32
    return %arg0, %c0_i32 : i32, i32
  }
}

module attributes {stable_mosaic.version = 11 : i64} {
  func.func @dqn_kernel(%arg0: i32, %arg1: memref<8x128xbf16, #tpu.memory_space<vmem>>, %arg2: memref<128x1024xbf16, #tpu.memory_space<vmem>>, %arg3: memref<1x1024xf32, #tpu.memory_space<vmem>>, %arg4: memref<1024x1024xbf16, #tpu.memory_space<vmem>>, %arg5: memref<1x1024xf32, #tpu.memory_space<vmem>>, %arg6: memref<1024x128xbf16, #tpu.memory_space<vmem>>, %arg7: memref<1x128xf32, #tpu.memory_space<vmem>>, %arg8: memref<8x128xf32, #tpu.memory_space<vmem>>) attributes {dimension_semantics = [#tpu.dimension_semantics<parallel>], iteration_bounds = array<i64: 1>, scalar_prefetch = 0 : i64, scratch_operands = 0 : i64, tpu.core_type = #tpu.core_type<tc>, window_params = [{transform_indices = @transform_0, window_bounds = array<i64: 8, 128>}, {pipeline_mode = #tpu.pipeline_mode<synchronous>, transform_indices = @transform_1, window_bounds = array<i64: 128, 1024>}, {pipeline_mode = #tpu.pipeline_mode<synchronous>, transform_indices = @transform_2, window_bounds = array<i64: 1, 1024>}, {pipeline_mode = #tpu.pipeline_mode<synchronous>, transform_indices = @transform_3, window_bounds = array<i64: 1024, 1024>}, {pipeline_mode = #tpu.pipeline_mode<synchronous>, transform_indices = @transform_4, window_bounds = array<i64: 1, 1024>}, {pipeline_mode = #tpu.pipeline_mode<synchronous>, transform_indices = @transform_5, window_bounds = array<i64: 1024, 128>}, {pipeline_mode = #tpu.pipeline_mode<synchronous>, transform_indices = @transform_6, window_bounds = array<i64: 1, 128>}, {transform_indices = @transform_7, window_bounds = array<i64: 8, 128>}]} {
    %c0 = arith.constant 0 : index
    %c0_0 = arith.constant 0 : index
    %0 = vector.load %arg1[%c0, %c0_0] : memref<8x128xbf16, #tpu.memory_space<vmem>>, vector<8x128xbf16>
    %c0_1 = arith.constant 0 : index
    %c0_2 = arith.constant 0 : index
    %1 = vector.load %arg2[%c0_1, %c0_2] : memref<128x1024xbf16, #tpu.memory_space<vmem>>, vector<128x1024xbf16>
    %cst = arith.constant dense<0.000000e+00> : vector<8x1024xf32>
    %2 = tpu.matmul %0, %1, %cst {dimension_numbers = #tpu.dot_dimension_numbers<[1], [0], [0], [1], [0, 0, 1, 1], [], []>} : vector<8x128xbf16>, vector<128x1024xbf16>, vector<8x1024xf32> -> vector<8x1024xf32>
    %c0_3 = arith.constant 0 : index
    %c0_4 = arith.constant 0 : index
    %3 = vector.load %arg3[%c0_3, %c0_4] : memref<1x1024xf32, #tpu.memory_space<vmem>>, vector<1x1024xf32>
    %4 = vector.broadcast %3 : vector<1x1024xf32> to vector<8x1024xf32>
    %5 = arith.addf %2, %4 : vector<8x1024xf32>
    %cst_5 = arith.constant 0.000000e+00 : f32
    %6 = vector.broadcast %cst_5 : f32 to vector<8x1024xf32>
    %7 = arith.maximumf %5, %6 : vector<8x1024xf32>
    %8 = arith.truncf %7 : vector<8x1024xf32> to vector<8x1024xbf16>
    %c0_6 = arith.constant 0 : index
    %c0_7 = arith.constant 0 : index
    %9 = vector.load %arg4[%c0_6, %c0_7] : memref<1024x1024xbf16, #tpu.memory_space<vmem>>, vector<1024x1024xbf16>
    %cst_8 = arith.constant dense<0.000000e+00> : vector<8x1024xf32>
    %10 = tpu.matmul %8, %9, %cst_8 {dimension_numbers = #tpu.dot_dimension_numbers<[1], [0], [0], [1], [0, 0, 1, 1], [], []>} : vector<8x1024xbf16>, vector<1024x1024xbf16>, vector<8x1024xf32> -> vector<8x1024xf32>
    %c0_9 = arith.constant 0 : index
    %c0_10 = arith.constant 0 : index
    %11 = vector.load %arg5[%c0_9, %c0_10] : memref<1x1024xf32, #tpu.memory_space<vmem>>, vector<1x1024xf32>
    %12 = vector.broadcast %11 : vector<1x1024xf32> to vector<8x1024xf32>
    %13 = arith.addf %10, %12 : vector<8x1024xf32>
    %cst_11 = arith.constant 0.000000e+00 : f32
    %14 = vector.broadcast %cst_11 : f32 to vector<8x1024xf32>
    %15 = arith.maximumf %13, %14 : vector<8x1024xf32>
    %16 = arith.truncf %15 : vector<8x1024xf32> to vector<8x1024xbf16>
    %c0_12 = arith.constant 0 : index
    %c0_13 = arith.constant 0 : index
    %17 = vector.load %arg6[%c0_12, %c0_13] : memref<1024x128xbf16, #tpu.memory_space<vmem>>, vector<1024x128xbf16>
    %cst_14 = arith.constant dense<0.000000e+00> : vector<8x128xf32>
    %18 = tpu.matmul %16, %17, %cst_14 {dimension_numbers = #tpu.dot_dimension_numbers<[1], [0], [0], [1], [0, 0, 1, 1], [], []>} : vector<8x1024xbf16>, vector<1024x128xbf16>, vector<8x128xf32> -> vector<8x128xf32>
    %c0_15 = arith.constant 0 : index
    %c0_16 = arith.constant 0 : index
    %19 = vector.load %arg7[%c0_15, %c0_16] : memref<1x128xf32, #tpu.memory_space<vmem>>, vector<1x128xf32>
    %20 = vector.broadcast %19 : vector<1x128xf32> to vector<8x128xf32>
    %21 = arith.addf %18, %20 : vector<8x128xf32>
    %c0_17 = arith.constant 0 : index
    %c0_18 = arith.constant 0 : index
    %22 = vector.load %arg8[%c0_17, %c0_18] : memref<8x128xf32, #tpu.memory_space<vmem>>, vector<8x128xf32>
    tpu.vector_store %arg8[%c0_17, %c0_18], %21 {strides = array<i32>} : memref<8x128xf32, #tpu.memory_space<vmem>>, vector<8x128xf32>,
    return
  }
  func.func @transform_0(%arg0: i32) -> (i32, i32) {
    %c0_i32 = arith.constant 0 : i32
    %c0_i32_0 = arith.constant 0 : i32
    return %arg0, %c0_i32 : i32, i32
  }
  func.func @transform_1(%arg0: i32) -> (i32, i32) {
    %c0_i32 = arith.constant 0 : i32
    %c0_i32_0 = arith.constant 0 : i32
    %c0_i32_1 = arith.constant 0 : i32
    return %c0_i32, %c0_i32_0 : i32, i32
  }
  func.func @transform_2(%arg0: i32) -> (i32, i32) {
    %c0_i32 = arith.constant 0 : i32
    %c0_i32_0 = arith.constant 0 : i32
    %c0_i32_1 = arith.constant 0 : i32
    return %c0_i32, %c0_i32_0 : i32, i32
  }
  func.func @transform_3(%arg0: i32) -> (i32, i32) {
    %c0_i32 = arith.constant 0 : i32
    %c0_i32_0 = arith.constant 0 : i32
    %c0_i32_1 = arith.constant 0 : i32
    return %c0_i32, %c0_i32_0 : i32, i32
  }
  func.func @transform_4(%arg0: i32) -> (i32, i32) {
    %c0_i32 = arith.constant 0 : i32
    %c0_i32_0 = arith.constant 0 : i32
    %c0_i32_1 = arith.constant 0 : i32
    return %c0_i32, %c0_i32_0 : i32, i32
  }
  func.func @transform_5(%arg0: i32) -> (i32, i32) {
    %c0_i32 = arith.constant 0 : i32
    %c0_i32_0 = arith.constant 0 : i32
    %c0_i32_1 = arith.constant 0 : i32
    return %c0_i32, %c0_i32_0 : i32, i32
  }
  func.func @transform_6(%arg0: i32) -> (i32, i32) {
    %c0_i32 = arith.constant 0 : i32
    %c0_i32_0 = arith.constant 0 : i32
    %c0_i32_1 = arith.constant 0 : i32
    return %c0_i32, %c0_i32_0 : i32, i32
  }
  func.func @transform_7(%arg0: i32) -> (i32, i32) {
    %c0_i32 = arith.constant 0 : i32
    %c0_i32_0 = arith.constant 0 : i32
    return %arg0, %c0_i32 : i32, i32
  }
}

</mosaic_0001>

<bundles_post_ra>
// kernel: _dqn_forward_impl.1
= control target key start
LH: loop header
LB: loop body
LE: loop exit
PB: predicated region body
PF: predicated region fallthrough
CT: control target
= control target key end

     0   :  { %12 = vsyncpa [#allocation3], 0  ;;  %s6506_s0 = inlined_call_operand.vmem [shape: bf16[8,128], index: 0, kind: input, shape index: {}]   ;;  %s6507_s1 = inlined_call_operand.hbm [shape: bf16[128,1024], index: 1, kind: input, shape index: {}]   ;;  %s6508_s2 = inlined_call_operand.hbm [shape: f32[1,1024], index: 2, kind: input, shape index: {}]   ;;  %s6509_s3 = inlined_call_operand.hbm [shape: bf16[1024,1024], index: 3, kind: input, shape index: {}]   ;;  %s6510_s4 = inlined_call_operand.hbm [shape: f32[1,1024], index: 4, kind: input, shape index: {}]   ;;  %s6511_s5 = inlined_call_operand.hbm [shape: bf16[1024,128], index: 5, kind: input, shape index: {}]   ;;  %s6512_s6 = inlined_call_operand.hbm [shape: f32[1,128], index: 6, kind: input, shape index: {}]   ;;  %s6513_s7 = inlined_call_operand.hbm [shape: f32[8,128], index: 7, kind: output, shape index: {}]  }
   0x1   :  { %13 = vsyncpa [#allocation6], 0 }
   0x2   :  { %14 = vsyncpa [#allocation9], 0 }
   0x3   :  { %15 = vsyncpa [#allocation12], 0 }
   0x4   :  { %16 = vsyncpa [#allocation4], 0  ;;  %s6221_s24 = smov [#allocation5]   ;;  %s6222_s26 = smov [#allocation8]  }
   0x5   :  { %s37_s25 = sshll.u32 %s6221_s24, 4  ;;  %s59_s27 = sshll.u32 %s6222_s26, 4  ;;  %s38_s25 = int_to_ptr.vmem [resolvable:$true] %s37_s25  ;;  %s60_s27 = int_to_ptr.vmem [resolvable:$true] %s59_s27 }
   0x6   :  { %s6057_s30 = scalar_lea.hbm %s6508_s2, 128 }
   0x7   :  { %p6058_p0 = scmp.ne.s32.totalorder %s6508_s2, %s6057_s30  ;;  %p6061_p1 = scmp.lt.u32.totalorder %s6057_s30, %s6508_s2 }
   0x9   :  { %p6063_p2 = pnand %p6061_p1, %p6058_p0 }
   0xb   :  { %6066 = shalt.err (!%p6063_p2)
}
   0xc   :  { %s6067_s12 = scalar_lea.vmem %s38_s25, 128  ;;  %p6072_p4 = scmp.lt.s32.totalorder %s38_s25, %s38_s25 }
   0xd   :  { %p6068_p3 = scmp.ne.s32.totalorder %s38_s25, %s6067_s12  ;;  %p6073_p5 = scmp.lt.s32.totalorder %s6067_s12, %s6067_s12 }
   0xf   :  { %p6074_p6 = por %p6073_p5, %p6072_p4 }
  0x11   :  { %p6075_p7 = pnand %p6074_p6, %p6068_p3 }
  0x13   :  { %6078 = shalt.err (!%p6075_p7)
}
  0x14   :  { %40 = dma.hbm_to_vmem [thread:$0]  %s6508_s2, 128, %s38_s25, [#allocation6]  }
  0x15   :  { %s6079_s17 = scalar_lea.hbm %s6510_s4, 128 }
  0x16   :  { %p6080_p8 = scmp.ne.s32.totalorder %s6510_s4, %s6079_s17  ;;  %p6083_p9 = scmp.lt.u32.totalorder %s6079_s17, %s6510_s4 }
  0x18   :  { %p6085_p10 = pnand %p6083_p9, %p6080_p8 }
  0x1a   :  { %6088 = shalt.err (!%p6085_p10)
}
  0x1b   :  { %s6089_s22 = scalar_lea.vmem %s60_s27, 128  ;;  %p6094_p12 = scmp.lt.s32.totalorder %s60_s27, %s60_s27 }
  0x1c   :  { %p6090_p11 = scmp.ne.s32.totalorder %s60_s27, %s6089_s22  ;;  %p6095_p13 = scmp.lt.s32.totalorder %s6089_s22, %s6089_s22 }
  0x1e   :  { %p6096_p0 = por %p6095_p13, %p6094_p12 }
  0x20   :  { %p6097_p1 = pnand %p6096_p0, %p6090_p11 }
  0x22   :  { %6100 = shalt.err (!%p6097_p1)
}
  0x23   :  { %62 = dma.hbm_to_vmem [thread:$0]  %s6510_s4, 128, %s60_s27, [#allocation9]  }
  0x24   :  { %s6223_s24 = smov [#allocation2]   ;;  %s6101_s29 = scalar_lea.hbm %s6507_s1, 8192 }
  0x25   :  { %s24_s25 = sshll.u32 %s6223_s24, 4  ;;  %p6102_p2 = scmp.ne.s32.totalorder %s6507_s1, %s6101_s29  ;;  %s25_s25 = int_to_ptr.vmem [resolvable:$true] %s24_s25 }
  0x26   :  { %p6105_p3 = scmp.lt.u32.totalorder %s6101_s29, %s6507_s1 }
  0x28   :  { %p6107_p4 = pnand %p6105_p3, %p6102_p2 }
  0x2a   :  { %6110 = shalt.err (!%p6107_p4)
}
  0x2b   :  { %s6111_s11 = scalar_lea.vmem %s25_s25, 8192  ;;  %p6116_p6 = scmp.lt.s32.totalorder %s25_s25, %s25_s25 }
  0x2c   :  { %p6112_p5 = scmp.ne.s32.totalorder %s25_s25, %s6111_s11  ;;  %p6117_p7 = scmp.lt.s32.totalorder %s6111_s11, %s6111_s11 }
  0x2e   :  { %p6118_p8 = por %p6117_p7, %p6116_p6 }
  0x30   :  { %p6119_p9 = pnand %p6118_p8, %p6112_p5 }
  0x32   :  { %6122 = shalt.err (!%p6119_p9)
}
  0x33   :  { %s6224_s4 = smov 512   ;;  %s6225_s27 = smov 32  }
  0x34   :  { %30 = dma.hbm_to_vmem [thread:$0]  %s6507_s1, 8192, %s25_s25, [#allocation3], %s6224_s4, %s6224_s4, %s6225_s27  }
  0x35   :  { %s6226_s14 = smov [#allocation7]   ;;  %s6227_s16 = smov [#allocation10]  }
  0x36   :  { %s46_s15 = sshll.u32 %s6226_s14, 4  ;;  %s68_s17 = sshll.u32 %s6227_s16, 4  ;;  %s47_s15 = int_to_ptr.vmem [resolvable:$true] %s46_s15  ;;  %s69_s17 = int_to_ptr.vmem [resolvable:$true] %s68_s17 }
  0x37   :  { %s6123_s20 = scalar_lea.hbm %s6509_s3, 65536 }
  0x38   :  { %p6124_p10 = scmp.ne.s32.totalorder %s6509_s3, %s6123_s20  ;;  %p6127_p11 = scmp.lt.u32.totalorder %s6123_s20, %s6509_s3 }
  0x3a   :  { %p6129_p12 = pnand %p6127_p11, %p6124_p10 }
  0x3c   :  { %6132 = shalt.err (!%p6129_p12)
}
  0x3d   :  { %s6133_s1 = scalar_lea.vmem %s47_s15, 65536  ;;  %p6138_p0 = scmp.lt.s32.totalorder %s47_s15, %s47_s15 }
  0x3e   :  { %p6134_p13 = scmp.ne.s32.totalorder %s47_s15, %s6133_s1  ;;  %p6139_p1 = scmp.lt.s32.totalorder %s6133_s1, %s6133_s1 }
  0x40   :  { %p6140_p2 = por %p6139_p1, %p6138_p0 }
  0x42   :  { %p6141_p3 = pnand %p6140_p2, %p6134_p13 }
  0x44   :  { %6144 = shalt.err (!%p6141_p3)
}
  0x45   :  { %52 = dma.hbm_to_vmem [thread:$0]  %s6509_s3, 65536, %s47_s15, [#allocation6], %s6224_s4, %s6224_s4, %s6225_s27  }
  0x46   :  { %s6145_s29 = scalar_lea.hbm %s6511_s5, 8192 }
  0x47   :  { %p6146_p4 = scmp.ne.s32.totalorder %s6511_s5, %s6145_s29  ;;  %p6149_p5 = scmp.lt.u32.totalorder %s6145_s29, %s6511_s5 }
  0x49   :  { %p6151_p6 = pnand %p6149_p5, %p6146_p4 }
  0x4b   :  { %6154 = shalt.err (!%p6151_p6)
}
  0x4c   :  { %s6155_s11 = scalar_lea.vmem %s69_s17, 8192  ;;  %p6160_p8 = scmp.lt.s32.totalorder %s69_s17, %s69_s17 }
  0x4d   :  { %p6156_p7 = scmp.ne.s32.totalorder %s69_s17, %s6155_s11  ;;  %p6161_p9 = scmp.lt.s32.totalorder %s6155_s11, %s6155_s11 }
  0x4f   :  { %p6162_p10 = por %p6161_p9, %p6160_p8 }
  0x51   :  { %p6163_p11 = pnand %p6162_p10, %p6156_p7 }
  0x53   :  { %6166 = shalt.err (!%p6163_p11)
}
  0x54   :  { %s6228_s3 = smov 64   ;;  %s6229_s4 = smov 4  }
  0x55   :  { %74 = dma.hbm_to_vmem [thread:$0]  %s6511_s5, 8192, %s69_s17, [#allocation9], %s6228_s3, %s6228_s3, %s6229_s4  }
  0x56   :  { %s6230_s13 = smov [#allocation11]   ;;  %s6167_s18 = scalar_lea.hbm %s6512_s6, 16 }
  0x57   :  { %s81_s14 = sshll.u32 %s6230_s13, 4  ;;  %p6168_p12 = scmp.ne.s32.totalorder %s6512_s6, %s6167_s18  ;;  %s82_s14 = int_to_ptr.vmem [resolvable:$true] %s81_s14 }
  0x58   :  { %p6171_p13 = scmp.lt.u32.totalorder %s6167_s18, %s6512_s6 }
  0x5a   :  { %p6173_p0 = pnand %p6171_p13, %p6168_p12 }
  0x5c   :  { %6176 = shalt.err (!%p6173_p0)
}
  0x5d   :  { %s6177_s2 = scalar_lea.vmem %s82_s14, 16  ;;  %s6181_s5 = scalar_lea.vmem %s82_s14, 32 }
  0x5e   :  { %p6178_p1 = scmp.ne.s32.totalorder %s82_s14, %s6177_s2  ;;  %p6182_p2 = scmp.lt.s32.totalorder %s82_s14, %s82_s14 }
  0x5f   :  { %p6183_p3 = scmp.lt.s32.totalorder %s6181_s5, %s6177_s2 }
  0x61   :  { %p6184_p4 = por %p6183_p3, %p6182_p2 }
  0x63   :  { %p6185_p5 = pnand %p6184_p4, %p6178_p1 }
  0x65   :  { %6188 = shalt.err (!%p6185_p5)
}
  0x66   :  { %84 = dma.hbm_to_vmem [thread:$0]  %s6512_s6, 16, %s82_s14, [#allocation12]  }
  0x67   :  { %6211 = dma.done.wait [#allocation3], 8192  }
  0x68   :  { %6212 = vsyncadd [#allocation3], 4294959104 }
  0x69   :  { %6213 = dma.done.wait [#allocation6], 65664  }
  0x6a   :  { %6214 = vsyncadd [#allocation6], 4294901632 }
  0x6b   :  { %6215 = dma.done.wait [#allocation9], 8320  }
  0x6c   :  { %6216 = vsyncadd [#allocation9], 4294958976 }
  0x6d   :  { %6217 = dma.done.wait [#allocation12], 16  }
  0x6e   :  { %6218 = vsyncadd [#allocation12], 4294967280  ;;  %v6231_v0 = vmov 0   ;;  %v105_v1 = vld [vmem:[#allocation2] sm:$0xff]  ;;  %v106_v14 = vld [vmem:[#allocation2 + $0x8] sm:$0xff] }
  0x6f   :  { %563 = vmatprep.mubr.bf16.mxu0 %v6231_v0  ;;  %604 = vmatprep.mubr.bf16.mxu1 %v6231_v0  ;;  %v109_v2 = vld [vmem:[#allocation2 + $0x20] sm:$0xff]  ;;  %v110_v15 = vld [vmem:[#allocation2 + $0x28] sm:$0xff]  ;;  %v107_v58 = vld [vmem:[#allocation2 + $0x10] sm:$0xff] }
  0x70   :  { %v113_v3 = vld [vmem:[#allocation2 + $0x40] sm:$0xff]  ;;  %v5196_v4 = vcombine.high %v105_v1, %v109_v2  ;;  %v5195_v5 = vcombine.low %v105_v1, %v109_v2  ;;  %v114_v16 = vld [vmem:[#allocation2 + $0x48] sm:$0xff]  ;;  %v5198_v18 = vcombine.high %v106_v14, %v110_v15  ;;  %v5197_v19 = vcombine.low %v106_v14, %v110_v15  ;;  %v111_v59 = vld [vmem:[#allocation2 + $0x30] sm:$0xff] }
  0x71   :  { %v117_v6 = vld [vmem:[#allocation2 + $0x60] sm:$0xff]  ;;  %v118_v17 = vld [vmem:[#allocation2 + $0x68] sm:$0xff]  ;;  %v5200_v1 = vcombine.high %v107_v58, %v111_v59 }
  0x72   :  { %v5204_v7 = vcombine.high %v113_v3, %v117_v6  ;;  %v121_v8 = vld [vmem:[#allocation2 + $0x80] sm:$0xff]  ;;  %531 = vmatprep.subr.bf16.mxu0 %v5196_v4  ;;  %v5203_v10 = vcombine.low %v113_v3, %v117_v6  ;;  %v5206_v20 = vcombine.high %v114_v16, %v118_v17  ;;  %v122_v22 = vld [vmem:[#allocation2 + $0x88] sm:$0xff]  ;;  %572 = vmatprep.subr.bf16.mxu1 %v5198_v18  ;;  %v115_v3 = vld [vmem:[#allocation2 + $0x50] sm:$0xff] }
  0x73   :  { %v125_v9 = vld [vmem:[#allocation2 + $0xa0] sm:$0xff]  ;;  %532 = vmatpush1.bf16.msra.mxu0 %v5195_v5  ;;  %v126_v23 = vld [vmem:[#allocation2 + $0xa8] sm:$0xff]  ;;  %573 = vmatpush1.bf16.msra.mxu1 %v5197_v19  ;;  %v5205_v27 = vcombine.low %v114_v16, %v118_v17  ;;  %v119_v4 = vld [vmem:[#allocation2 + $0x70] sm:$0xff] }
  0x74   :  { %533 = vmatprep.subr.bf16.mxu0 %v5204_v7  ;;  %v5212_v11 = vcombine.high %v121_v8, %v125_v9  ;;  %v129_v12 = vld [vmem:[#allocation2 + $0xc0] sm:$0xff]  ;;  %v5211_v21 = vcombine.low %v121_v8, %v125_v9  ;;  %574 = vmatprep.subr.bf16.mxu1 %v5206_v20  ;;  %v5214_v28 = vcombine.high %v122_v22, %v126_v23  ;;  %v130_v30 = vld [vmem:[#allocation2 + $0xc8] sm:$0xff]  ;;  %v108_v8 = vld [vmem:[#allocation2 + $0x18] sm:$0xff] }
  0x75   :  { %v133_v13 = vld [vmem:[#allocation2 + $0xe0] sm:$0xff]  ;;  %v134_v31 = vld [vmem:[#allocation2 + $0xe8] sm:$0xff]  ;;  %v5213_v35 = vcombine.low %v122_v22, %v126_v23  ;;  %v5199_v7 = vcombine.low %v107_v58, %v111_v59  ;;  %v112_v9 = vld [vmem:[#allocation2 + $0x38] sm:$0xff]  ;;  %v5207_v15 = vcombine.low %v115_v3, %v119_v4 }
  0x76   :  { %v5220_v24 = vcombine.high %v129_v12, %v133_v13  ;;  %v137_v25 = vld [vmem:[#allocation2 + $0x100] sm:$0xff]  ;;  %v5219_v29 = vcombine.low %v129_v12, %v133_v13  ;;  %v5222_v36 = vcombine.high %v130_v30, %v134_v31  ;;  %v138_v38 = vld [vmem:[#allocation2 + $0x108] sm:$0xff]  ;;  %v5221_v43 = vcombine.low %v130_v30, %v134_v31  ;;  %v123_v12 = vld [vmem:[#allocation2 + $0x90] sm:$0xff] }
  0x77   :  { %534 = vmatpush1.bf16.msra.mxu0 %v5203_v10  ;;  %v141_v26 = vld [vmem:[#allocation2 + $0x120] sm:$0xff]  ;;  %575 = vmatpush1.bf16.msra.mxu1 %v5205_v27  ;;  %v142_v39 = vld [vmem:[#allocation2 + $0x128] sm:$0xff]  ;;  %v5208_v10 = vcombine.high %v115_v3, %v119_v4  ;;  %v127_v13 = vld [vmem:[#allocation2 + $0xb0] sm:$0xff]  ;;  %v5202_v14 = vcombine.high %v108_v8, %v112_v9 }
  0x78   :  { %535 = vmatprep.subr.bf16.mxu0 %v5212_v11  ;;  %v5228_v32 = vcombine.high %v137_v25, %v141_v26  ;;  %v145_v33 = vld [vmem:[#allocation2 + $0x140] sm:$0xff]  ;;  %576 = vmatprep.subr.bf16.mxu1 %v5214_v28  ;;  %v5227_v37 = vcombine.low %v137_v25, %v141_v26  ;;  %v5230_v44 = vcombine.high %v138_v38, %v142_v39  ;;  %v146_v46 = vld [vmem:[#allocation2 + $0x148] sm:$0xff]  ;;  %v116_v16 = vld [vmem:[#allocation2 + $0x58] sm:$0xff] }
  0x79   :  { %v149_v34 = vld [vmem:[#allocation2 + $0x160] sm:$0xff]  ;;  %v150_v47 = vld [vmem:[#allocation2 + $0x168] sm:$0xff]  ;;  %v5229_v51 = vcombine.low %v138_v38, %v142_v39  ;;  %v120_v17 = vld [vmem:[#allocation2 + $0x78] sm:$0xff]  ;;  %v5216_v18 = vcombine.high %v123_v12, %v127_v13  ;;  %v5215_v23 = vcombine.low %v123_v12, %v127_v13 }
  0x7a   :  { %v5236_v40 = vcombine.high %v145_v33, %v149_v34  ;;  %v153_v41 = vld [vmem:[#allocation2 + $0x180] sm:$0xff]  ;;  %v5235_v45 = vcombine.low %v145_v33, %v149_v34  ;;  %v5238_v52 = vcombine.high %v146_v46, %v150_v47  ;;  %v154_v54 = vld [vmem:[#allocation2 + $0x188] sm:$0xff]  ;;  %v5237_v57 = vcombine.low %v146_v46, %v150_v47  ;;  %v131_v19 = vld [vmem:[#allocation2 + $0xd0] sm:$0xff] }
  0x7b   :  { %536 = vmatpush1.bf16.msra.mxu0 %v5211_v21  ;;  %v157_v42 = vld [vmem:[#allocation2 + $0x1a0] sm:$0xff]  ;;  %577 = vmatpush1.bf16.msra.mxu1 %v5213_v35  ;;  %v158_v55 = vld [vmem:[#allocation2 + $0x1a8] sm:$0xff]  ;;  %v135_v20 = vld [vmem:[#allocation2 + $0xf0] sm:$0xff]  ;;  %v5201_v21 = vcombine.low %v108_v8, %v112_v9  ;;  %v5210_v22 = vcombine.high %v116_v16, %v120_v17 }
  0x7c   :  { %537 = vmatprep.subr.bf16.mxu0 %v5220_v24  ;;  %578 = vmatprep.subr.bf16.mxu1 %v5222_v36  ;;  %v5244_v48 = vcombine.high %v153_v41, %v157_v42  ;;  %v161_v49 = vld [vmem:[#allocation2 + $0x1c0] sm:$0xff]  ;;  %v5243_v53 = vcombine.low %v153_v41, %v157_v42  ;;  %v5246_v60 = vcombine.high %v154_v54, %v158_v55  ;;  %v162_v62 = vld [vmem:[#allocation2 + $0x1c8] sm:$0xff]  ;;  %v139_v24 = vld [vmem:[#allocation2 + $0x110] sm:$0xff] }
  0x7d   :  { %v165_v50 = vld [vmem:[#allocation2 + $0x1e0] sm:$0xff]  ;;  %v166_v63 = vld [vmem:[#allocation2 + $0x1e8] sm:$0xff]  ;;  %v5245_v2 = vcombine.low %v154_v54, %v158_v55  ;;  %v143_v25 = vld [vmem:[#allocation2 + $0x130] sm:$0xff]  ;;  %v5224_v28 = vcombine.high %v131_v19, %v135_v20  ;;  %v5223_v33 = vcombine.low %v131_v19, %v135_v20 }
  0x7e   :  { %v5252_v56 = vcombine.high %v161_v49, %v165_v50  ;;  %v5251_v61 = vcombine.low %v161_v49, %v165_v50  ;;  %v5254_v5 = vcombine.high %v162_v62, %v166_v63  ;;  %v6350_v6 = vld [vmem:[%s6506_s0] sm:$0xf]  ;;  %v5253_v11 = vcombine.low %v162_v62, %v166_v63  ;;  %v124_v26 = vld [vmem:[#allocation2 + $0x98] sm:$0xff]  ;;  %v147_v34 = vld [vmem:[#allocation2 + $0x150] sm:$0xff]  ;;  %s6232_s0 = smov [#allocation13]  }
  0x7f   :  { %538 = vmatpush1.bf16.msra.mxu0 %v5219_v29  ;;  %579 = vmatpush1.bf16.msra.mxu1 %v5221_v43  ;;  %v128_v27 = vld [vmem:[#allocation2 + $0xb8] sm:$0xff]  ;;  %v5209_v29 = vcombine.low %v116_v16, %v120_v17  ;;  %v151_v35 = vld [vmem:[#allocation2 + $0x170] sm:$0xff]  ;;  %v5232_v36 = vcombine.high %v139_v24, %v143_v25  ;;  %v5231_v41 = vcombine.low %v139_v24, %v143_v25  ;;  %v715_v58 = vld [vmem:[#allocation7 + $0x20] sm:$0xff]  ;;  %s5183_s24 = sshll.u32 %s6232_s0, 4  ;;  %s5184_s24 = int_to_ptr.vmem [resolvable:$true] %s5183_s24 }
  0x80   :  { %539 = vmatprep.subr.bf16.mxu0 %v5228_v32  ;;  %580 = vmatprep.subr.bf16.mxu1 %v5230_v44  ;;  %v132_v30 = vld [vmem:[#allocation2 + $0xd8] sm:$0xff]  ;;  %v5218_v32 = vcombine.high %v124_v26, %v128_v27  ;;  %v155_v42 = vld [vmem:[#allocation2 + $0x190] sm:$0xff]  ;;  %v723_v3 = vld [vmem:[#allocation7 + $0x60] sm:$0xff]  ;;  %s6189_s25 = scalar_lea.vmem %s5184_s24, 128  ;;  %p6194_p7 = scmp.lt.s32.totalorder %s5184_s24, %s5184_s24 }
  0x81   :  { %v136_v31 = vld [vmem:[#allocation2 + $0xf8] sm:$0xff]  ;;  %v159_v43 = vld [vmem:[#allocation2 + $0x1b0] sm:$0xff]  ;;  %v731_v12 = vld [vmem:[#allocation7 + $0xa0] sm:$0xff]  ;;  %p6190_p6 = scmp.ne.s32.totalorder %s5184_s24, %s6189_s25  ;;  %p6195_p8 = scmp.lt.s32.totalorder %s6189_s25, %s6189_s25 }
  0x82   :  { %v140_v38 = vld [vmem:[#allocation2 + $0x118] sm:$0xff]  ;;  %v5225_v44 = vcombine.low %v132_v30, %v136_v31  ;;  %v163_v49 = vld [vmem:[#allocation2 + $0x1d0] sm:$0xff]  ;;  %v735_v19 = vld [vmem:[#allocation7 + $0xc0] sm:$0xff] }
  0x83   :  { %540 = vmatpush1.bf16.msra.mxu0 %v5227_v37  ;;  %581 = vmatpush1.bf16.msra.mxu1 %v5229_v51  ;;  %v5217_v37 = vcombine.low %v124_v26, %v128_v27  ;;  %v144_v39 = vld [vmem:[#allocation2 + $0x138] sm:$0xff]  ;;  %v167_v50 = vld [vmem:[#allocation2 + $0x1f0] sm:$0xff]  ;;  %v5248_v51 = vcombine.high %v155_v42, %v159_v43  ;;  %v739_v20 = vld [vmem:[#allocation7 + $0xe0] sm:$0xff]  ;;  %p6196_p9 = por %p6195_p8, %p6194_p7 }
  0x84   :  { %541 = vmatprep.subr.bf16.mxu0 %v5236_v40  ;;  %582 = vmatprep.subr.bf16.mxu1 %v5238_v52  ;;  %v5226_v40 = vcombine.high %v132_v30, %v136_v31  ;;  %v152_v46 = vld [vmem:[#allocation2 + $0x178] sm:$0xff]  ;;  %v5234_v47 = vcombine.high %v140_v38, %v144_v39  ;;  %v5233_v52 = vcombine.low %v140_v38, %v144_v39  ;;  %v716_v8 = vld [vmem:[#allocation7 + $0x28] sm:$0xff]  ;;  %v743_v27 = vld [vmem:[#allocation7 + $0x100] sm:$0xff] }
  0x85   :  { %v160_v54 = vld [vmem:[#allocation2 + $0x1b8] sm:$0xff]  ;;  %v5256_v59 = vcombine.high %v163_v49, %v167_v50  ;;  %v724_v16 = vld [vmem:[#allocation7 + $0x68] sm:$0xff]  ;;  %p6197_p10 = pnand %p6196_p9, %p6190_p6 }
  0x86   :  { %v168_v62 = vld [vmem:[#allocation2 + $0x1f8] sm:$0xff]  ;;  %v732_v24 = vld [vmem:[#allocation7 + $0xa8] sm:$0xff] }
  0x87   :  { %542 = vmatpush1.bf16.msra.mxu0 %v5235_v45  ;;  %583 = vmatpush1.bf16.msra.mxu1 %v5237_v57  ;;  %v148_v45 = vld [vmem:[#allocation2 + $0x158] sm:$0xff]  ;;  %v711_v57 = vld [vmem:[#allocation7] sm:$0xff]  ;;  %v736_v31 = vld [vmem:[#allocation7 + $0xc8] sm:$0xff] }
  0x88   :  { %543 = vmatprep.subr.bf16.mxu0 %v5244_v48  ;;  %584 = vmatprep.subr.bf16.mxu1 %v5246_v60  ;;  %v5239_v48 = vcombine.low %v147_v34, %v151_v35  ;;  %v5242_v55 = vcombine.high %v148_v45, %v152_v46  ;;  %v5241_v60 = vcombine.low %v148_v45, %v152_v46  ;;  %v744_v39 = vld [vmem:[#allocation7 + $0x108] sm:$0xff] }
  0x89   :  { %v5260_v4 = vcombine.high %v711_v57, %v715_v58 }
  0x8b   :  { %544 = vmatpush1.bf16.msra.mxu0 %v5243_v53  ;;  %585 = vmatpush1.bf16.msra.mxu1 %v5245_v2  ;;  %v156_v53 = vld [vmem:[#allocation2 + $0x198] sm:$0xff]  ;;  %v719_v2 = vld [vmem:[#allocation7 + $0x40] sm:$0xff] }
  0x8c   :  { %545 = vmatprep.subr.bf16.mxu0 %v5252_v56  ;;  %586 = vmatprep.subr.bf16.mxu1 %v5254_v5  ;;  %v5247_v56 = vcombine.low %v155_v42, %v159_v43  ;;  %v5250_v63 = vcombine.high %v156_v53, %v160_v54  ;;  %v5249_v5 = vcombine.low %v156_v53, %v160_v54  ;;  %v759_v42 = vld [vmem:[#allocation7 + $0x180] sm:$0xff] }
  0x8d   :  { %v5268_v13 = vcombine.high %v719_v2, %v723_v3  ;;  %v763_v43 = vld [vmem:[#allocation7 + $0x1a0] sm:$0xff] }
  0x8e   :  { %v5307_v54 = vcombine.low %v759_v42, %v763_v43 }
  0x8f   :  { %546 = vmatpush1.bf16.msra.mxu0 %v5251_v61  ;;  %587 = vmatpush1.bf16.msra.mxu1 %v5253_v11  ;;  %v164_v61 = vld [vmem:[#allocation2 + $0x1d8] sm:$0xff]  ;;  %v727_v11 = vld [vmem:[#allocation7 + $0x80] sm:$0xff] }
  0x90   :  { %613 = vmatprep.subr.bf16.mxu0 %v5200_v1  ;;  %654 = vmatprep.subr.bf16.mxu1 %v5202_v14  ;;  %v5255_v1 = vcombine.low %v163_v49, %v167_v50  ;;  %v5258_v9 = vcombine.high %v164_v61, %v168_v62  ;;  %v5257_v14 = vcombine.low %v164_v61, %v168_v62 }
  0x91   :  { %v5275_v26 = vcombine.low %v727_v11, %v731_v12  ;;  %v5308_v49 = vcombine.high %v759_v42, %v763_v43 }
  0x92   :  { %564 = vmatmul.mubr.bf16.vlgmr.msra.gmra.mrb[0].mxu0 %v6350_v6  ;;  %605 = vmatmul.mubr.bf16.vlgmr.msra.gmra.mrb[0].mxu1 %v6350_v6 }
  0x93   :  { %614 = vmatpush1.bf16.msra.mxu0 %v5199_v7  ;;  %645 = vmatprep.mubr.bf16.mxu0 %v6231_v0  ;;  %v712_v7 = vld [vmem:[#allocation7 + $0x8] sm:$0xff] }
  0x94   :  { %615 = vmatprep.subr.bf16.mxu0 %v5208_v10  ;;  %655 = vmatpush1.bf16.msra.mxu1 %v5201_v21  ;;  %v5259_v10 = vcombine.low %v711_v57, %v715_v58  ;;  %v5262_v17 = vcombine.high %v712_v7, %v716_v8  ;;  %v5276_v21 = vcombine.high %v727_v11, %v731_v12 }
  0x95   :  { %686 = vmatprep.mubr.bf16.mxu1 %v6231_v0  ;;  %656 = vmatprep.subr.bf16.mxu1 %v5210_v22  ;;  %v5240_v0 = vcombine.high %v147_v34, %v151_v35  ;;  %v5261_v22 = vcombine.low %v712_v7, %v716_v8  ;;  %v5283_v34 = vcombine.low %v735_v19, %v739_v20  ;;  %v751_v35 = vld [vmem:[#allocation7 + $0x140] sm:$0xff] }
  0x97   :  { %616 = vmatpush1.bf16.msra.mxu0 %v5207_v15  ;;  %v720_v15 = vld [vmem:[#allocation7 + $0x48] sm:$0xff] }
  0x98   :  { %617 = vmatprep.subr.bf16.mxu0 %v5216_v18  ;;  %657 = vmatpush1.bf16.msra.mxu1 %v5209_v29  ;;  %v5267_v18 = vcombine.low %v719_v2, %v723_v3  ;;  %v5270_v25 = vcombine.high %v720_v15, %v724_v16  ;;  %v5284_v29 = vcombine.high %v735_v19, %v739_v20 }
  0x99   :  { %658 = vmatprep.subr.bf16.mxu1 %v5218_v32  ;;  %v5269_v30 = vcombine.low %v720_v15, %v724_v16  ;;  %v740_v32 = vld [vmem:[#allocation7 + $0xe8] sm:$0xff] }
  0x9b   :  { %618 = vmatpush1.bf16.msra.mxu0 %v5215_v23  ;;  %v728_v23 = vld [vmem:[#allocation7 + $0x88] sm:$0xff] }
  0x9c   :  { %619 = vmatprep.subr.bf16.mxu0 %v5224_v28  ;;  %659 = vmatpush1.bf16.msra.mxu1 %v5217_v37  ;;  %v747_v28 = vld [vmem:[#allocation7 + $0x120] sm:$0xff]  ;;  %v5277_v38 = vcombine.low %v728_v23, %v732_v24 }
  0x9d   :  { %660 = vmatprep.subr.bf16.mxu1 %v5226_v40  ;;  %v5292_v37 = vcombine.high %v743_v27, %v747_v28  ;;  %v748_v40 = vld [vmem:[#allocation7 + $0x128] sm:$0xff] }
  0x9e   :  { %v5294_v45 = vcombine.high %v744_v39, %v748_v40  ;;  %v5293_v50 = vcombine.low %v744_v39, %v748_v40 }
  0x9f   :  { %620 = vmatpush1.bf16.msra.mxu0 %v5223_v33  ;;  %v5278_v33 = vcombine.high %v728_v23, %v732_v24 }
  0xa0   :  { %621 = vmatprep.subr.bf16.mxu0 %v5232_v36  ;;  %661 = vmatpush1.bf16.msra.mxu1 %v5225_v44  ;;  %v755_v36 = vld [vmem:[#allocation7 + $0x160] sm:$0xff]  ;;  %v5285_v44 = vcombine.low %v736_v31, %v740_v32 }
  0xa1   :  { %662 = vmatprep.subr.bf16.mxu1 %v5234_v47  ;;  %v5299_v46 = vcombine.low %v751_v35, %v755_v36  ;;  %v752_v47 = vld [vmem:[#allocation7 + $0x148] sm:$0xff] }
  0xa3   :  { %622 = vmatpush1.bf16.msra.mxu0 %v5231_v41  ;;  %v5291_v41 = vcombine.low %v743_v27, %v747_v28 }
  0xa4   :  { %623 = vmatprep.subr.bf16.mxu0 %v5240_v0  ;;  %663 = vmatpush1.bf16.msra.mxu1 %v5233_v52  ;;  %v5300_v0 = vcombine.high %v751_v35, %v755_v36  ;;  %v771_v52 = vld [vmem:[#allocation7 + $0x1e0] sm:$0xff] }
  0xa5   :  { %664 = vmatprep.subr.bf16.mxu1 %v5242_v55  ;;  %v760_v55 = vld [vmem:[#allocation7 + $0x188] sm:$0xff] }
  0xa7   :  { %624 = vmatpush1.bf16.msra.mxu0 %v5239_v48  ;;  %v756_v48 = vld [vmem:[#allocation7 + $0x168] sm:$0xff] }
  0xa8   :  { %625 = vmatprep.subr.bf16.mxu0 %v5248_v51  ;;  %665 = vmatpush1.bf16.msra.mxu1 %v5241_v60  ;;  %v767_v51 = vld [vmem:[#allocation7 + $0x1c0] sm:$0xff]  ;;  %v5302_v53 = vcombine.high %v752_v47, %v756_v48  ;;  %v5301_v58 = vcombine.low %v752_v47, %v756_v48  ;;  %v816_v47 = vld [vmem:[#allocation7 + $0x348] sm:$0xff] }
  0xa9   :  { %666 = vmatprep.subr.bf16.mxu1 %v5250_v63  ;;  %v5316_v57 = vcombine.high %v767_v51, %v771_v52  ;;  %v779_v60 = vld [vmem:[#allocation7 + $0x220] sm:$0xff]  ;;  %v5315_v62 = vcombine.low %v767_v51, %v771_v52  ;;  %v768_v63 = vld [vmem:[#allocation7 + $0x1c8] sm:$0xff] }
  0xaa   :  { %v820_v48 = vld [vmem:[#allocation7 + $0x368] sm:$0xff]  ;;  %v831_v52 = vld [vmem:[#allocation7 + $0x3c0] sm:$0xff] }
  0xab   :  { %626 = vmatpush1.bf16.msra.mxu0 %v5247_v56  ;;  %v764_v56 = vld [vmem:[#allocation7 + $0x1a8] sm:$0xff]  ;;  %v5366_v51 = vcombine.high %v816_v47, %v820_v48 }
  0xac   :  { %627 = vmatprep.subr.bf16.mxu0 %v5256_v59  ;;  %667 = vmatpush1.bf16.msra.mxu1 %v5249_v5  ;;  %v775_v59 = vld [vmem:[#allocation7 + $0x200] sm:$0xff]  ;;  %v5310_v61 = vcombine.high %v760_v55, %v764_v56  ;;  %v5309_v3 = vcombine.low %v760_v55, %v764_v56  ;;  %v824_v55 = vld [vmem:[#allocation7 + $0x388] sm:$0xff] }
  0xad   :  { %668 = vmatprep.subr.bf16.mxu1 %v5258_v9  ;;  %v5324_v2 = vcombine.high %v775_v59, %v779_v60  ;;  %v787_v5 = vld [vmem:[#allocation7 + $0x260] sm:$0xff]  ;;  %v5323_v8 = vcombine.low %v775_v59, %v779_v60  ;;  %v776_v9 = vld [vmem:[#allocation7 + $0x208] sm:$0xff] }
  0xae   :  { %v828_v56 = vld [vmem:[#allocation7 + $0x3a8] sm:$0xff]  ;;  %v839_v60 = vld [vmem:[#allocation7 + $0x400] sm:$0xff] }
  0xaf   :  { %628 = vmatpush1.bf16.msra.mxu0 %v5255_v1  ;;  %v772_v1 = vld [vmem:[#allocation7 + $0x1e8] sm:$0xff]  ;;  %v5374_v59 = vcombine.high %v824_v55, %v828_v56 }
  0xb0   :  { %3825 = vmatprep.subr.bf16.mxu0 %v5260_v4  ;;  %669 = vmatpush1.bf16.msra.mxu1 %v5257_v14  ;;  %v783_v4 = vld [vmem:[#allocation7 + $0x240] sm:$0xff]  ;;  %v5318_v7 = vcombine.high %v768_v63, %v772_v1  ;;  %v5317_v12 = vcombine.low %v768_v63, %v772_v1  ;;  %v832_v1 = vld [vmem:[#allocation7 + $0x3c8] sm:$0xff] }
  0xb1   :  { %3989 = vmatprep.subr.bf16.mxu1 %v5262_v17  ;;  %v5332_v11 = vcombine.high %v783_v4, %v787_v5  ;;  %v795_v14 = vld [vmem:[#allocation7 + $0x2a0] sm:$0xff]  ;;  %v5331_v16 = vcombine.low %v783_v4, %v787_v5  ;;  %v784_v17 = vld [vmem:[#allocation7 + $0x248] sm:$0xff] }
  0xb2   :  { %646 = vmatmul.mubr.bf16.vlgmr.msra.gmra.mrb[4].mxu0 %v6350_v6 }
  0xb3   :  { %3826 = vmatpush1.bf16.msra.mxu0 %v5259_v10  ;;  %687 = vmatmul.mubr.bf16.vlgmr.msra.gmra.mrb[4].mxu1 %v6350_v6  ;;  %v5286_v6 = vcombine.high %v736_v31, %v740_v32  ;;  %v780_v10 = vld [vmem:[#allocation7 + $0x228] sm:$0xff] }
  0xb4   :  { %3827 = vmatprep.subr.bf16.mxu0 %v5268_v13  ;;  %3990 = vmatpush1.bf16.msra.mxu1 %v5261_v22  ;;  %v791_v13 = vld [vmem:[#allocation7 + $0x280] sm:$0xff]  ;;  %v5326_v15 = vcombine.high %v776_v9, %v780_v10  ;;  %v5325_v20 = vcombine.low %v776_v9, %v780_v10 }
  0xb5   :  { %3991 = vmatprep.subr.bf16.mxu1 %v5270_v25  ;;  %v5340_v19 = vcombine.high %v791_v13, %v795_v14  ;;  %v803_v22 = vld [vmem:[#allocation7 + $0x2e0] sm:$0xff]  ;;  %v5339_v24 = vcombine.low %v791_v13, %v795_v14  ;;  %v792_v25 = vld [vmem:[#allocation7 + $0x288] sm:$0xff] }
  0xb7   :  { %3828 = vmatpush1.bf16.msra.mxu0 %v5267_v18  ;;  %v788_v18 = vld [vmem:[#allocation7 + $0x268] sm:$0xff] }
  0xb8   :  { %3829 = vmatprep.subr.bf16.mxu0 %v5276_v21  ;;  %3992 = vmatpush1.bf16.msra.mxu1 %v5269_v30  ;;  %v799_v21 = vld [vmem:[#allocation7 + $0x2c0] sm:$0xff]  ;;  %v5334_v23 = vcombine.high %v784_v17, %v788_v18  ;;  %v5333_v28 = vcombine.low %v784_v17, %v788_v18 }
  0xb9   :  { %3993 = vmatprep.subr.bf16.mxu1 %v5278_v33  ;;  %v5348_v27 = vcombine.high %v799_v21, %v803_v22  ;;  %v811_v30 = vld [vmem:[#allocation7 + $0x320] sm:$0xff]  ;;  %v5347_v32 = vcombine.low %v799_v21, %v803_v22  ;;  %v800_v33 = vld [vmem:[#allocation7 + $0x2c8] sm:$0xff] }
  0xbb   :  { %3830 = vmatpush1.bf16.msra.mxu0 %v5275_v26  ;;  %v796_v26 = vld [vmem:[#allocation7 + $0x2a8] sm:$0xff] }
  0xbc   :  { %3831 = vmatprep.subr.bf16.mxu0 %v5284_v29  ;;  %3994 = vmatpush1.bf16.msra.mxu1 %v5277_v38  ;;  %v807_v29 = vld [vmem:[#allocation7 + $0x300] sm:$0xff]  ;;  %v5342_v31 = vcombine.high %v792_v25, %v796_v26  ;;  %v5341_v36 = vcombine.low %v792_v25, %v796_v26 }
  0xbd   :  { %3995 = vmatprep.subr.bf16.mxu1 %v5286_v6  ;;  %v5356_v35 = vcombine.high %v807_v29, %v811_v30  ;;  %v819_v38 = vld [vmem:[#allocation7 + $0x360] sm:$0xff]  ;;  %v5355_v40 = vcombine.low %v807_v29, %v811_v30  ;;  %v808_v6 = vld [vmem:[#allocation7 + $0x308] sm:$0xff] }
  0xbe   :  { %v851_v29 = vld [vmem:[#allocation7 + $0x460] sm:$0xff]  ;;  %v848_v30 = vld [vmem:[#allocation7 + $0x448] sm:$0xff] }
  0xbf   :  { %3832 = vmatpush1.bf16.msra.mxu0 %v5283_v34  ;;  %v804_v34 = vld [vmem:[#allocation7 + $0x2e8] sm:$0xff] }
  0xc0   :  { %3833 = vmatprep.subr.bf16.mxu0 %v5292_v37  ;;  %3996 = vmatpush1.bf16.msra.mxu1 %v5285_v44  ;;  %v815_v37 = vld [vmem:[#allocation7 + $0x340] sm:$0xff]  ;;  %v5350_v39 = vcombine.high %v800_v33, %v804_v34  ;;  %v5349_v43 = vcombine.low %v800_v33, %v804_v34 }
  0xc1   :  { %3997 = vmatprep.subr.bf16.mxu1 %v5294_v45  ;;  %v5364_v42 = vcombine.high %v815_v37, %v819_v38  ;;  %v823_v44 = vld [vmem:[#allocation7 + $0x380] sm:$0xff] }
  0xc2   :  { %v827_v45 = vld [vmem:[#allocation7 + $0x3a0] sm:$0xff] }
  0xc3   :  { %3834 = vmatpush1.bf16.msra.mxu0 %v5291_v41  ;;  %v812_v41 = vld [vmem:[#allocation7 + $0x328] sm:$0xff] }
  0xc4   :  { %3835 = vmatprep.subr.bf16.mxu0 %v5300_v0  ;;  %3998 = vmatpush1.bf16.msra.mxu1 %v5293_v50  ;;  %v5358_v0 = vcombine.high %v808_v6, %v812_v41  ;;  %v5357_v50 = vcombine.low %v808_v6, %v812_v41  ;;  %v856_v6 = vld [vmem:[#allocation7 + $0x488] sm:$0xff] }
  0xc5   :  { %3999 = vmatprep.subr.bf16.mxu1 %v5302_v53  ;;  %v835_v53 = vld [vmem:[#allocation7 + $0x3e0] sm:$0xff]  ;;  %v860_v41 = vld [vmem:[#allocation7 + $0x4a8] sm:$0xff] }
  0xc6   :  { %v5379_v63 = vcombine.low %v831_v52, %v835_v53 }
  0xc7   :  { %3836 = vmatpush1.bf16.msra.mxu0 %v5299_v46  ;;  %v5363_v46 = vcombine.low %v815_v37, %v819_v38  ;;  %v855_v38 = vld [vmem:[#allocation7 + $0x480] sm:$0xff] }
  0xc8   :  { %3837 = vmatprep.subr.bf16.mxu0 %v5308_v49  ;;  %4000 = vmatpush1.bf16.msra.mxu1 %v5301_v58  ;;  %v5372_v49 = vcombine.high %v823_v44, %v827_v45  ;;  %v5365_v58 = vcombine.low %v816_v47, %v820_v48  ;;  %v5406_v48 = vcombine.high %v856_v6, %v860_v41 }
  0xc9   :  { %4001 = vmatprep.subr.bf16.mxu1 %v5310_v61  ;;  %v843_v61 = vld [vmem:[#allocation7 + $0x420] sm:$0xff] }
  0xca   :  { %v5387_v4 = vcombine.low %v839_v60, %v843_v61  ;;  %v5388_v5 = vcombine.high %v839_v60, %v843_v61  ;;  %v872_v60 = vld [vmem:[#allocation7 + $0x508] sm:$0xff] }
  0xcb   :  { %3838 = vmatpush1.bf16.msra.mxu0 %v5307_v54  ;;  %v5371_v54 = vcombine.low %v823_v44, %v827_v45  ;;  %v876_v61 = vld [vmem:[#allocation7 + $0x528] sm:$0xff] }
  0xcc   :  { %3839 = vmatprep.subr.bf16.mxu0 %v5316_v57  ;;  %4002 = vmatpush1.bf16.msra.mxu1 %v5309_v3  ;;  %v5380_v57 = vcombine.high %v831_v52, %v835_v53  ;;  %v844_v3 = vld [vmem:[#allocation7 + $0x428] sm:$0xff] }
  0xcd   :  { %4003 = vmatprep.subr.bf16.mxu1 %v5318_v7  ;;  %v868_v52 = vld [vmem:[#allocation7 + $0x4e8] sm:$0xff] }
  0xcf   :  { %3840 = vmatpush1.bf16.msra.mxu0 %v5315_v62  ;;  %v840_v62 = vld [vmem:[#allocation7 + $0x408] sm:$0xff] }
  0xd0   :  { %3841 = vmatprep.subr.bf16.mxu0 %v5324_v2  ;;  %4004 = vmatpush1.bf16.msra.mxu1 %v5317_v12  ;;  %v836_v2 = vld [vmem:[#allocation7 + $0x3e8] sm:$0xff]  ;;  %v5389_v7 = vcombine.low %v840_v62, %v844_v3  ;;  %v171_v12 = vlaneseq }
  0xd1   :  { %4005 = vmatprep.subr.bf16.mxu1 %v5326_v15  ;;  %v5382_v9 = vcombine.high %v832_v1, %v836_v2  ;;  %v5381_v10 = vcombine.low %v832_v1, %v836_v2  ;;  %v6361_v15 = vld [vmem:[#allocation5] sm:$0xff]  ;;  %v5422_v2 = vcombine.high %v872_v60, %v876_v61 }
  0xd2   :  { %v6358_v13 = vshrl.u32 %v171_v12, 7  ;;  %v887_v12 = vld [vmem:[#allocation7 + $0x580] sm:$0xff] }
  0xd3   :  { %3842 = vmatpush1.bf16.msra.mxu0 %v5323_v8  ;;  %v5373_v8 = vcombine.low %v824_v55, %v828_v56  ;;  %v5405_v55 = vcombine.low %v856_v6, %v860_v41 }
  0xd4   :  { %3843 = vmatprep.subr.bf16.mxu0 %v5332_v11  ;;  %4006 = vmatpush1.bf16.msra.mxu1 %v5325_v20  ;;  %v5390_v11 = vcombine.high %v840_v62, %v844_v3  ;;  %v173_v14 = vsub.s32 0, %v6358_v13  ;;  %v185_v20 = vsub.s32 3, %v6358_v13  ;;  %v879_v3 = vld [vmem:[#allocation7 + $0x540] sm:$0xff] }
  0xd5   :  { %4007 = vmatprep.subr.bf16.mxu1 %v5334_v23 }
  0xd6   :  { %v174_v17 = vrot.slane %v6361_v15, %v173_v14 }
  0xd7   :  { %3844 = vmatpush1.bf16.msra.mxu0 %v5331_v16  ;;  %v177_v16 = vsub.s32 1, %v6358_v13 }
  0xd8   :  { %3845 = vmatprep.subr.bf16.mxu0 %v5340_v19  ;;  %4008 = vmatpush1.bf16.msra.mxu1 %v5333_v28 }
  0xd9   :  { %4009 = vmatprep.subr.bf16.mxu1 %v5342_v31  ;;  %v178_v18 = vrot.slane %v6361_v15, %v177_v16  ;;  %v852_v31 = vld [vmem:[#allocation7 + $0x468] sm:$0xff] }
  0xda   :  { %v5398_v37 = vcombine.high %v848_v30, %v852_v31  ;;  %v5397_v45 = vcombine.low %v848_v30, %v852_v31 }
  0xdb   :  { %3846 = vmatpush1.bf16.msra.mxu0 %v5339_v24 }
  0xdc   :  { %3847 = vmatprep.subr.bf16.mxu0 %v5348_v27  ;;  %4010 = vmatpush1.bf16.msra.mxu1 %v5341_v36  ;;  %v847_v27 = vld [vmem:[#allocation7 + $0x440] sm:$0xff] }
  0xdd   :  { %4011 = vmatprep.subr.bf16.mxu1 %v5350_v39  ;;  %v5396_v36 = vcombine.high %v847_v27, %v851_v29  ;;  %v5395_v44 = vcombine.low %v847_v27, %v851_v29  ;;  %v896_v27 = vld [vmem:[#allocation7 + $0x5c8] sm:$0xff] }
  0xdf   :  { %3848 = vmatpush1.bf16.msra.mxu0 %v5347_v32  ;;  %v186_v32 = vrot.slane %v6361_v15, %v185_v20 }
  0xe0   :  { %3849 = vmatprep.subr.bf16.mxu0 %v5356_v35  ;;  %4012 = vmatpush1.bf16.msra.mxu1 %v5349_v43 }
  0xe1   :  { %4013 = vmatprep.subr.bf16.mxu1 %v5358_v0 }
  0xe3   :  { %3850 = vmatpush1.bf16.msra.mxu0 %v5355_v40  ;;  %v859_v40 = vld [vmem:[#allocation7 + $0x4a0] sm:$0xff] }
  0xe4   :  { %3851 = vmatprep.subr.bf16.mxu0 %v5364_v42  ;;  %4014 = vmatpush1.bf16.msra.mxu1 %v5357_v50  ;;  %v5404_v47 = vcombine.high %v855_v38, %v859_v40  ;;  %v867_v50 = vld [vmem:[#allocation7 + $0x4e0] sm:$0xff] }
  0xe5   :  { %4015 = vmatprep.subr.bf16.mxu1 %v5366_v51  ;;  %v864_v51 = vld [vmem:[#allocation7 + $0x4c8] sm:$0xff] }
  0xe7   :  { %3852 = vmatpush1.bf16.msra.mxu0 %v5363_v46 }
  0xe8   :  { %3853 = vmatprep.subr.bf16.mxu0 %v5372_v49  ;;  %4016 = vmatpush1.bf16.msra.mxu1 %v5365_v58  ;;  %v863_v49 = vld [vmem:[#allocation7 + $0x4c0] sm:$0xff] }
  0xe9   :  { %4017 = vmatprep.subr.bf16.mxu1 %v5374_v59  ;;  %v5412_v56 = vcombine.high %v863_v49, %v867_v50  ;;  %v871_v58 = vld [vmem:[#allocation7 + $0x500] sm:$0xff]  ;;  %v5411_v62 = vcombine.low %v863_v49, %v867_v50  ;;  %v916_v49 = vld [vmem:[#allocation7 + $0x668] sm:$0xff] }
  0xea   :  { %v875_v59 = vld [vmem:[#allocation7 + $0x520] sm:$0xff] }
  0xeb   :  { %3854 = vmatpush1.bf16.msra.mxu0 %v5371_v54  ;;  %v5403_v54 = vcombine.low %v855_v38, %v859_v40  ;;  %v5420_v1 = vcombine.high %v871_v58, %v875_v59  ;;  %v904_v38 = vld [vmem:[#allocation7 + $0x608] sm:$0xff] }
  0xec   :  { %3855 = vmatprep.subr.bf16.mxu0 %v5380_v57  ;;  %4018 = vmatpush1.bf16.msra.mxu1 %v5373_v8  ;;  %v5414_v57 = vcombine.high %v864_v51, %v868_v52  ;;  %v5419_v8 = vcombine.low %v871_v58, %v875_v59  ;;  %v923_v58 = vld [vmem:[#allocation7 + $0x6a0] sm:$0xff]  ;;  %v920_v59 = vld [vmem:[#allocation7 + $0x688] sm:$0xff] }
  0xed   :  { %4019 = vmatprep.subr.bf16.mxu1 %v5382_v9  ;;  %v5421_v9 = vcombine.low %v872_v60, %v876_v61  ;;  %v924_v60 = vld [vmem:[#allocation7 + $0x6a8] sm:$0xff] }
  0xef   :  { %3856 = vmatpush1.bf16.msra.mxu0 %v5379_v63  ;;  %v5413_v63 = vcombine.low %v864_v51, %v868_v52 }
  0xf0   :  { %3866 = vmatprep.subr.bf16.mxu0 %v5388_v5  ;;  %4020 = vmatpush1.bf16.msra.mxu1 %v5381_v10  ;;  %v880_v5 = vld [vmem:[#allocation7 + $0x548] sm:$0xff] }
  0xf1   :  { %4030 = vmatprep.subr.bf16.mxu1 %v5390_v11 }
 0x165   :  { %v565_v19 = vpop.f32.mrb[0].mxu0  ;;  %v6376_v34 = vpop.f32.mrb[0].mxu1 }
 0x166   :  { %v566_v21 = vadd.f32 %v565_v19, %v174_v17  ;;  %v567_v22 = vpop.f32.mrb[1].mxu0  ;;  %v608_v39 = vpop.f32.mrb[1].mxu1  ;;  %v891_v17 = vld [vmem:[#allocation7 + $0x5a0] sm:$0xff]  ;;  %v892_v19 = vld [vmem:[#allocation7 + $0x5a8] sm:$0xff] }
 0x167   :  { %v568_v23 = vadd.f32 %v567_v22, %v178_v18  ;;  %v569_v24 = vpop.f32.mrb[2].mxu0  ;;  %v609_v42 = vadd.f32 %v608_v39, %v186_v32  ;;  %v610_v43 = vpop.f32.mrb[2].mxu1  ;;  %v888_v18 = vld [vmem:[#allocation7 + $0x588] sm:$0xff]  ;;  %v5435_v29 = vcombine.low %v887_v12, %v891_v17 }
 0x168   :  { %v695_v25 = vmax.f32 %v566_v21, 0.0  ;;  %v570_v26 = vpop.f32.mrb[3].mxu0  ;;  %v611_v0 = vpop.f32.mrb[3].mxu1  ;;  %v5438_v24 = vcombine.high %v888_v18, %v892_v19  ;;  %v5437_v30 = vcombine.low %v888_v18, %v892_v19  ;;  %v908_v39 = vld [vmem:[#allocation7 + $0x628] sm:$0xff]  ;;  %v939_v18 = vld [vmem:[#allocation7 + $0x720] sm:$0xff] }
 0x169   :  { %v696_v28 = vmax.f32 %v568_v23, 0.0  ;;  %v698_v46 = vmax.f32 %v609_v42, 0.0  ;;  %v5436_v23 = vcombine.high %v887_v12, %v891_v17  ;;  %v899_v26 = vld [vmem:[#allocation7 + $0x5e0] sm:$0xff]  ;;  %v5453_v51 = vcombine.low %v904_v38, %v908_v39  ;;  %v936_v19 = vld [vmem:[#allocation7 + $0x708] sm:$0xff] }
 0x16a   :  { %v6378_v35 = vpack.c.bf16 %v695_v25, %v695_v25  ;;  %v895_v25 = vld [vmem:[#allocation7 + $0x5c0] sm:$0xff] }
 0x16b   :  { %v6374_v33 = vpack.c.bf16 %v696_v28, %v696_v28  ;;  %v6384_v53 = vpack.c.bf16 %v698_v46, %v698_v46  ;;  %v900_v28 = vld [vmem:[#allocation7 + $0x5e8] sm:$0xff]  ;;  %v5444_v31 = vcombine.high %v895_v25, %v899_v26  ;;  %v5443_v41 = vcombine.low %v895_v25, %v899_v26  ;;  %v935_v17 = vld [vmem:[#allocation7 + $0x700] sm:$0xff] }
 0x16c   :  { %v5446_v32 = vcombine.high %v896_v27, %v900_v28  ;;  %v5445_v42 = vcombine.low %v896_v27, %v900_v28  ;;  %v943_v26 = vld [vmem:[#allocation7 + $0x740] sm:$0xff]  ;;  %v944_v28 = vld [vmem:[#allocation7 + $0x748] sm:$0xff] }
 0x16d   :  { %3857 = vmatprep.mubr.bf16.mxu0 %v6374_v33  ;;  %4021 = vmatprep.mubr.bf16.mxu1 %v6374_v33  ;;  %v947_v27 = vld [vmem:[#allocation7 + $0x760] sm:$0xff] }
 0x16e   :  { %3858 = vmatmul.mubr.bf16.vlgmr.msra.gmra.mrb[8].mxu0 %v6378_v35  ;;  %4022 = vmatmul.mubr.bf16.vlgmr.msra.gmra.mrb[8].mxu1 %v6378_v35 }
 0x16f   :  { %3867 = vmatpush1.bf16.msra.mxu0 %v5387_v4  ;;  %4031 = vmatpush1.bf16.msra.mxu1 %v5389_v7  ;;  %v883_v4 = vld [vmem:[#allocation7 + $0x560] sm:$0xff]  ;;  %v884_v7 = vld [vmem:[#allocation7 + $0x568] sm:$0xff] }
 0x170   :  { %3868 = vmatprep.subr.bf16.mxu0 %v5396_v36  ;;  %4032 = vmatprep.subr.bf16.mxu1 %v5398_v37  ;;  %v5428_v10 = vcombine.high %v879_v3, %v883_v4  ;;  %v5430_v11 = vcombine.high %v880_v5, %v884_v7  ;;  %v5427_v21 = vcombine.low %v879_v3, %v883_v4  ;;  %v903_v36 = vld [vmem:[#allocation7 + $0x600] sm:$0xff] }
 0x171   :  { %3898 = vmatprep.mubr.bf16.mxu0 %v6384_v53  ;;  %4062 = vmatprep.mubr.bf16.mxu1 %v6384_v53  ;;  %v5429_v22 = vcombine.low %v880_v5, %v884_v7  ;;  %v907_v37 = vld [vmem:[#allocation7 + $0x620] sm:$0xff]  ;;  %v5470_v3 = vcombine.high %v920_v59, %v924_v60  ;;  %v928_v7 = vld [vmem:[#allocation7 + $0x6c8] sm:$0xff] }
 0x172   :  { %v5452_v0 = vcombine.high %v903_v36, %v907_v37  ;;  %v5451_v50 = vcombine.low %v903_v36, %v907_v37  ;;  %v927_v4 = vld [vmem:[#allocation7 + $0x6c0] sm:$0xff]  ;;  %v5492_v36 = vcombine.high %v943_v26, %v947_v27 }
 0x173   :  { %3869 = vmatpush1.bf16.msra.mxu0 %v5395_v44  ;;  %4033 = vmatpush1.bf16.msra.mxu1 %v5397_v45  ;;  %v5454_v44 = vcombine.high %v904_v38, %v908_v39  ;;  %v911_v45 = vld [vmem:[#allocation7 + $0x640] sm:$0xff] }
 0x174   :  { %3870 = vmatprep.subr.bf16.mxu0 %v5404_v47  ;;  %4034 = vmatprep.subr.bf16.mxu1 %v5406_v48  ;;  %v915_v47 = vld [vmem:[#allocation7 + $0x660] sm:$0xff]  ;;  %v912_v48 = vld [vmem:[#allocation7 + $0x648] sm:$0xff] }
 0x175   :  { %v931_v5 = vld [vmem:[#allocation7 + $0x6e0] sm:$0xff] }
 0x176   :  { %v951_v38 = vld [vmem:[#allocation7 + $0x780] sm:$0xff] }
 0x177   :  { %3871 = vmatpush1.bf16.msra.mxu0 %v5403_v54  ;;  %4035 = vmatpush1.bf16.msra.mxu1 %v5405_v55  ;;  %v5460_v54 = vcombine.high %v911_v45, %v915_v47  ;;  %v5462_v55 = vcombine.high %v912_v48, %v916_v49  ;;  %v955_v39 = vld [vmem:[#allocation7 + $0x7a0] sm:$0xff] }
 0x178   :  { %3872 = vmatprep.subr.bf16.mxu0 %v5412_v56  ;;  %4036 = vmatprep.subr.bf16.mxu1 %v5414_v57  ;;  %v919_v56 = vld [vmem:[#allocation7 + $0x680] sm:$0xff] }
 0x17b   :  { %3873 = vmatpush1.bf16.msra.mxu0 %v5411_v62  ;;  %4037 = vmatpush1.bf16.msra.mxu1 %v5413_v63  ;;  %v5459_v63 = vcombine.low %v911_v45, %v915_v47 }
 0x17c   :  { %3874 = vmatprep.subr.bf16.mxu0 %v5420_v1  ;;  %4038 = vmatprep.subr.bf16.mxu1 %v5422_v2  ;;  %v5461_v1 = vcombine.low %v912_v48, %v916_v49  ;;  %v5468_v2 = vcombine.high %v919_v56, %v923_v58  ;;  %v959_v48 = vld [vmem:[#allocation7 + $0x7c0] sm:$0xff] }
 0x17d   :  { %v963_v49 = vld [vmem:[#allocation7 + $0x7e0] sm:$0xff] }
 0x17f   :  { %3875 = vmatpush1.bf16.msra.mxu0 %v5419_v8  ;;  %4039 = vmatpush1.bf16.msra.mxu1 %v5421_v9  ;;  %v932_v8 = vld [vmem:[#allocation7 + $0x6e8] sm:$0xff]  ;;  %v5467_v9 = vcombine.low %v919_v56, %v923_v58  ;;  %v5499_v56 = vcombine.low %v951_v38, %v955_v39 }
 0x180   :  { %3876 = vmatprep.subr.bf16.mxu0 %v5428_v10  ;;  %4040 = vmatprep.subr.bf16.mxu1 %v5430_v11  ;;  %v5469_v10 = vcombine.low %v920_v59, %v924_v60  ;;  %v5476_v11 = vcombine.high %v927_v4, %v931_v5  ;;  %v5478_v12 = vcombine.high %v928_v7, %v932_v8 }
 0x181   :  { %v5508_v59 = vcombine.high %v959_v48, %v963_v49 }
 0x183   :  { %3877 = vmatpush1.bf16.msra.mxu0 %v5427_v21  ;;  %4041 = vmatpush1.bf16.msra.mxu1 %v5429_v22  ;;  %v940_v21 = vld [vmem:[#allocation7 + $0x728] sm:$0xff]  ;;  %v5475_v22 = vcombine.low %v927_v4, %v931_v5  ;;  %v5507_v4 = vcombine.low %v959_v48, %v963_v49 }
 0x184   :  { %3878 = vmatprep.subr.bf16.mxu0 %v5436_v23  ;;  %4042 = vmatprep.subr.bf16.mxu1 %v5438_v24  ;;  %v5477_v23 = vcombine.low %v928_v7, %v932_v8  ;;  %v5484_v24 = vcombine.high %v935_v17, %v939_v18  ;;  %v5486_v25 = vcombine.high %v936_v19, %v940_v21  ;;  %v975_v8 = vld [vmem:[#allocation7 + $0x840] sm:$0xff] }
 0x185   :  { %v6388_v40 = vpop.f32.mrb[4].mxu0 }
 0x186   :  { %v6390_v6 = vpop.f32.mrb[5].mxu0  ;;  %v6392_v52 = vpop.f32.mrb[4].mxu1 }
 0x187   :  { %3879 = vmatpush1.bf16.msra.mxu0 %v5435_v29  ;;  %4043 = vmatpush1.bf16.msra.mxu1 %v5437_v30  ;;  %v651_v43 = vpop.f32.mrb[6].mxu0  ;;  %v6394_v57 = vpop.f32.mrb[5].mxu1  ;;  %v948_v29 = vld [vmem:[#allocation7 + $0x768] sm:$0xff]  ;;  %v181_v30 = vsub.s32 2, %v6358_v13 }
 0x188   :  { %3880 = vmatprep.subr.bf16.mxu0 %v5444_v31  ;;  %4044 = vmatprep.subr.bf16.mxu1 %v5446_v32  ;;  %v652_v46 = vpop.f32.mrb[7].mxu0  ;;  %v692_v61 = vpop.f32.mrb[6].mxu1  ;;  %v5483_v31 = vcombine.low %v935_v17, %v939_v18  ;;  %v5485_v32 = vcombine.low %v936_v19, %v940_v21  ;;  %v5494_v37 = vcombine.high %v944_v28, %v948_v29  ;;  %v193_v43 = vsub.s32 5, %v6358_v13 }
 0x189   :  { %v693_v62 = vpop.f32.mrb[7].mxu1  ;;  %v5493_v45 = vcombine.low %v944_v28, %v948_v29  ;;  %v5500_v46 = vcombine.high %v951_v38, %v955_v39  ;;  %v967_v61 = vld [vmem:[#allocation7 + $0x800] sm:$0xff]  ;;  %v996_v38 = vld [vmem:[#allocation7 + $0x8e8] sm:$0xff] }
 0x18a   :  { %v971_v62 = vld [vmem:[#allocation7 + $0x820] sm:$0xff] }
 0x18b   :  { %3881 = vmatpush1.bf16.msra.mxu0 %v5443_v41  ;;  %4045 = vmatpush1.bf16.msra.mxu1 %v5445_v42  ;;  %v952_v41 = vld [vmem:[#allocation7 + $0x788] sm:$0xff]  ;;  %v5515_v18 = vcombine.low %v967_v61, %v971_v62 }
 0x18c   :  { %3882 = vmatprep.subr.bf16.mxu0 %v5452_v0  ;;  %4046 = vmatprep.subr.bf16.mxu1 %v5454_v44  ;;  %v956_v42 = vld [vmem:[#allocation7 + $0x7a8] sm:$0xff]  ;;  %v182_v0 = vrot.slane %v6361_v15, %v181_v30  ;;  %v5491_v44 = vcombine.low %v943_v26, %v947_v27 }
 0x18d   :  { %v5502_v47 = vcombine.high %v952_v41, %v956_v42  ;;  %v5501_v58 = vcombine.low %v952_v41, %v956_v42 }
 0x18f   :  { %3883 = vmatpush1.bf16.msra.mxu0 %v5451_v50  ;;  %4047 = vmatpush1.bf16.msra.mxu1 %v5453_v51  ;;  %v960_v50 = vld [vmem:[#allocation7 + $0x7c8] sm:$0xff] }
 0x190   :  { %3884 = vmatprep.subr.bf16.mxu0 %v5460_v54  ;;  %4048 = vmatprep.subr.bf16.mxu1 %v5462_v55  ;;  %v964_v51 = vld [vmem:[#allocation7 + $0x7e8] sm:$0xff]  ;;  %v194_v54 = vrot.slane %v6361_v15, %v193_v43  ;;  %v607_v55 = vadd.f32 %v6376_v34, %v182_v0  ;;  %v5516_v34 = vcombine.high %v967_v61, %v971_v62 }
 0x191   :  { %v5510_v60 = vcombine.high %v960_v50, %v964_v51  ;;  %v5509_v5 = vcombine.low %v960_v50, %v964_v51 }
 0x193   :  { %3885 = vmatpush1.bf16.msra.mxu0 %v5459_v63  ;;  %4049 = vmatpush1.bf16.msra.mxu1 %v5461_v1  ;;  %v968_v63 = vld [vmem:[#allocation7 + $0x808] sm:$0xff] }
 0x194   :  { %3886 = vmatprep.subr.bf16.mxu0 %v5468_v2  ;;  %4050 = vmatprep.subr.bf16.mxu1 %v5470_v3  ;;  %v972_v1 = vld [vmem:[#allocation7 + $0x828] sm:$0xff]  ;;  %v650_v2 = vadd.f32 %v6390_v6, %v194_v54  ;;  %v697_v3 = vmax.f32 %v607_v55, 0.0  ;;  %v1007_v54 = vld [vmem:[#allocation7 + $0x940] sm:$0xff] }
 0x195   :  { %v5518_v7 = vcombine.high %v968_v63, %v972_v1  ;;  %v5517_v6 = vcombine.low %v968_v63, %v972_v1  ;;  %v1011_v55 = vld [vmem:[#allocation7 + $0x960] sm:$0xff] }
 0x196   :  { %v6406_v17 = vpack.c.bf16 %v697_v3, %v697_v3  ;;  %v5556_v61 = vcombine.high %v1007_v54, %v1011_v55  ;;  %v1015_v63 = vld [vmem:[#allocation7 + $0x980] sm:$0xff]  ;;  %v1020_v3 = vld [vmem:[#allocation7 + $0x9a8] sm:$0xff] }
 0x197   :  { %3887 = vmatpush1.bf16.msra.mxu0 %v5467_v9  ;;  %4051 = vmatpush1.bf16.msra.mxu1 %v5469_v10  ;;  %v979_v9 = vld [vmem:[#allocation7 + $0x860] sm:$0xff]  ;;  %v976_v10 = vld [vmem:[#allocation7 + $0x848] sm:$0xff] }
 0x198   :  { %3888 = vmatprep.subr.bf16.mxu0 %v5476_v11  ;;  %4052 = vmatprep.subr.bf16.mxu1 %v5478_v12  ;;  %v980_v11 = vld [vmem:[#allocation7 + $0x868] sm:$0xff]  ;;  %v700_v12 = vmax.f32 %v650_v2, 0.0  ;;  %v5524_v19 = vcombine.high %v975_v8, %v979_v9  ;;  %v5523_v27 = vcombine.low %v975_v8, %v979_v9  ;;  %v1019_v1 = vld [vmem:[#allocation7 + $0x9a0] sm:$0xff] }
 0x199   :  { %v5526_v21 = vcombine.high %v976_v10, %v980_v11  ;;  %v5525_v28 = vcombine.low %v976_v10, %v980_v11  ;;  %v1016_v2 = vld [vmem:[#allocation7 + $0x988] sm:$0xff]  ;;  %v1023_v8 = vld [vmem:[#allocation7 + $0x9c0] sm:$0xff] }
 0x19a   :  { %v6408_v26 = vpack.c.bf16 %v700_v12, %v700_v12  ;;  %v1027_v9 = vld [vmem:[#allocation7 + $0x9e0] sm:$0xff]  ;;  %v1024_v10 = vld [vmem:[#allocation7 + $0x9c8] sm:$0xff]  ;;  %v5563_v12 = vcombine.low %v1015_v63, %v1019_v1 }
 0x19b   :  { %3889 = vmatpush1.bf16.msra.mxu0 %v5475_v22  ;;  %4053 = vmatpush1.bf16.msra.mxu1 %v5477_v23  ;;  %v983_v22 = vld [vmem:[#allocation7 + $0x880] sm:$0xff]  ;;  %v1028_v11 = vld [vmem:[#allocation7 + $0x9e8] sm:$0xff] }
 0x19c   :  { %3890 = vmatprep.subr.bf16.mxu0 %v5484_v24  ;;  %4054 = vmatprep.subr.bf16.mxu1 %v5486_v25  ;;  %v987_v23 = vld [vmem:[#allocation7 + $0x8a0] sm:$0xff]  ;;  %v984_v24 = vld [vmem:[#allocation7 + $0x888] sm:$0xff] }
 0x19d   :  { %v988_v25 = vld [vmem:[#allocation7 + $0x8a8] sm:$0xff]  ;;  %v5532_v29 = vcombine.high %v983_v22, %v987_v23  ;;  %v5531_v39 = vcombine.low %v983_v22, %v987_v23  ;;  %v1035_v22 = vld [vmem:[#allocation7 + $0xa20] sm:$0xff] }
 0x19e   :  { %v5533_v41 = vcombine.low %v984_v24, %v988_v25  ;;  %v1032_v23 = vld [vmem:[#allocation7 + $0xa08] sm:$0xff] }
 0x19f   :  { %3891 = vmatpush1.bf16.msra.mxu0 %v5483_v31  ;;  %4055 = vmatpush1.bf16.msra.mxu1 %v5485_v32  ;;  %v5534_v31 = vcombine.high %v984_v24, %v988_v25  ;;  %v991_v32 = vld [vmem:[#allocation7 + $0x8c0] sm:$0xff]  ;;  %v1036_v24 = vld [vmem:[#allocation7 + $0xa28] sm:$0xff]  ;;  %v5571_v25 = vcombine.low %v1023_v8, %v1027_v9 }
 0x1a0   :  { %3892 = vmatprep.subr.bf16.mxu0 %v5492_v36  ;;  %4056 = vmatprep.subr.bf16.mxu1 %v5494_v37  ;;  %v995_v36 = vld [vmem:[#allocation7 + $0x8e0] sm:$0xff]  ;;  %v992_v37 = vld [vmem:[#allocation7 + $0x8c8] sm:$0xff] }
 0x1a1   :  { %v5540_v42 = vcombine.high %v991_v32, %v995_v36  ;;  %v5542_v0 = vcombine.high %v992_v37, %v996_v38  ;;  %v5539_v48 = vcombine.low %v991_v32, %v995_v36  ;;  %v5541_v49 = vcombine.low %v992_v37, %v996_v38  ;;  %v1043_v32 = vld [vmem:[#allocation7 + $0xa60] sm:$0xff]  ;;  %v1040_v36 = vld [vmem:[#allocation7 + $0xa48] sm:$0xff] }
 0x1a2   :  { %v1044_v37 = vld [vmem:[#allocation7 + $0xa68] sm:$0xff] }
 0x1a3   :  { %3893 = vmatpush1.bf16.msra.mxu0 %v5491_v44  ;;  %4057 = vmatpush1.bf16.msra.mxu1 %v5493_v45  ;;  %v999_v44 = vld [vmem:[#allocation7 + $0x900] sm:$0xff] }
 0x1a4   :  { %3894 = vmatprep.subr.bf16.mxu0 %v5500_v46  ;;  %4058 = vmatprep.subr.bf16.mxu1 %v5502_v47  ;;  %v1003_v45 = vld [vmem:[#allocation7 + $0x920] sm:$0xff]  ;;  %v1000_v46 = vld [vmem:[#allocation7 + $0x908] sm:$0xff] }
 0x1a5   :  { %v1004_v47 = vld [vmem:[#allocation7 + $0x928] sm:$0xff]  ;;  %v5548_v50 = vcombine.high %v999_v44, %v1003_v45 }
 0x1a6   :  { %v5550_v51 = vcombine.high %v1000_v46, %v1004_v47 }
 0x1a7   :  { %3895 = vmatpush1.bf16.msra.mxu0 %v5499_v56  ;;  %4059 = vmatpush1.bf16.msra.mxu1 %v5501_v58  ;;  %v1008_v56 = vld [vmem:[#allocation7 + $0x948] sm:$0xff] }
 0x1a8   :  { %3896 = vmatprep.subr.bf16.mxu0 %v5508_v59  ;;  %4060 = vmatprep.subr.bf16.mxu1 %v5510_v60  ;;  %v1012_v58 = vld [vmem:[#allocation7 + $0x968] sm:$0xff]  ;;  %v5547_v59 = vcombine.low %v999_v44, %v1003_v45  ;;  %v5549_v60 = vcombine.low %v1000_v46, %v1004_v47  ;;  %v1051_v44 = vld [vmem:[#allocation7 + $0xaa0] sm:$0xff] }
 0x1a9   :  { %v5558_v62 = vcombine.high %v1008_v56, %v1012_v58  ;;  %v1048_v45 = vld [vmem:[#allocation7 + $0xa88] sm:$0xff] }
 0x1aa   :  { %v1052_v46 = vld [vmem:[#allocation7 + $0xaa8] sm:$0xff] }
 0x1ab   :  { %3897 = vmatpush1.bf16.msra.mxu0 %v5507_v4  ;;  %4061 = vmatpush1.bf16.msra.mxu1 %v5509_v5  ;;  %v5555_v4 = vcombine.low %v1007_v54, %v1011_v55  ;;  %v5557_v5 = vcombine.low %v1008_v56, %v1012_v58  ;;  %v1059_v54 = vld [vmem:[#allocation7 + $0xae0] sm:$0xff]  ;;  %v1056_v55 = vld [vmem:[#allocation7 + $0xac8] sm:$0xff] }
 0x1ac   :  { %3907 = vmatprep.subr.bf16.mxu0 %v5516_v34  ;;  %4071 = vmatprep.subr.bf16.mxu1 %v5518_v7  ;;  %v5564_v34 = vcombine.high %v1015_v63, %v1019_v1  ;;  %v5566_v7 = vcombine.high %v1016_v2, %v1020_v3  ;;  %v1060_v56 = vld [vmem:[#allocation7 + $0xae8] sm:$0xff]  ;;  %v1067_v63 = vld [vmem:[#allocation7 + $0xb20] sm:$0xff] }
 0x1ad   :  { %v1064_v1 = vld [vmem:[#allocation7 + $0xb08] sm:$0xff] }
 0x1ae   :  { %3899 = vmatmul.mubr.bf16.vlgmr.msra.gmra.mrb[8].mxu0 %v6406_v17  ;;  %4063 = vmatmul.mubr.bf16.vlgmr.msra.gmra.mrb[8].mxu1 %v6406_v17 }
 0x1af   :  { %3908 = vmatpush1.bf16.msra.mxu0 %v5515_v18  ;;  %4072 = vmatpush1.bf16.msra.mxu1 %v5517_v6  ;;  %v5565_v18 = vcombine.low %v1016_v2, %v1020_v3  ;;  %v5572_v6 = vcombine.high %v1023_v8, %v1027_v9  ;;  %v1068_v2 = vld [vmem:[#allocation7 + $0xb28] sm:$0xff]  ;;  %v1075_v8 = vld [vmem:[#allocation7 + $0xb60] sm:$0xff] }
 0x1b0   :  { %3909 = vmatprep.subr.bf16.mxu0 %v5524_v19  ;;  %4073 = vmatprep.subr.bf16.mxu1 %v5526_v21  ;;  %v5574_v19 = vcombine.high %v1024_v10, %v1028_v11  ;;  %v1031_v21 = vld [vmem:[#allocation7 + $0xa00] sm:$0xff]  ;;  %v1072_v9 = vld [vmem:[#allocation7 + $0xb48] sm:$0xff] }
 0x1b1   :  { %3939 = vmatprep.mubr.bf16.mxu0 %v6408_v26  ;;  %4103 = vmatprep.mubr.bf16.mxu1 %v6408_v26  ;;  %v5579_v38 = vcombine.low %v1031_v21, %v1035_v22 }
 0x1b3   :  { %3910 = vmatpush1.bf16.msra.mxu0 %v5523_v27  ;;  %4074 = vmatpush1.bf16.msra.mxu1 %v5525_v28  ;;  %v5573_v27 = vcombine.low %v1024_v10, %v1028_v11  ;;  %v5580_v28 = vcombine.high %v1031_v21, %v1035_v22  ;;  %v1076_v10 = vld [vmem:[#allocation7 + $0xb68] sm:$0xff]  ;;  %v189_v11 = vsub.s32 4, %v6358_v13  ;;  %v1079_v21 = vld [vmem:[#allocation7 + $0xb80] sm:$0xff] }
 0x1b4   :  { %3911 = vmatprep.subr.bf16.mxu0 %v5532_v29  ;;  %4075 = vmatprep.subr.bf16.mxu1 %v5534_v31  ;;  %v5582_v29 = vcombine.high %v1032_v23, %v1036_v24  ;;  %v1039_v31 = vld [vmem:[#allocation7 + $0xa40] sm:$0xff] }
 0x1b5   :  { %v5587_v47 = vcombine.low %v1039_v31, %v1043_v32  ;;  %v1083_v22 = vld [vmem:[#allocation7 + $0xba0] sm:$0xff] }
 0x1b7   :  { %3912 = vmatpush1.bf16.msra.mxu0 %v5531_v39  ;;  %4076 = vmatpush1.bf16.msra.mxu1 %v5533_v41  ;;  %v5581_v39 = vcombine.low %v1032_v23, %v1036_v24  ;;  %v5588_v41 = vcombine.high %v1039_v31, %v1043_v32  ;;  %v1080_v23 = vld [vmem:[#allocation7 + $0xb88] sm:$0xff]  ;;  %v5628_v31 = vcombine.high %v1079_v21, %v1083_v22 }
 0x1b8   :  { %3913 = vmatprep.subr.bf16.mxu0 %v5540_v42  ;;  %4077 = vmatprep.subr.bf16.mxu1 %v5542_v0  ;;  %v5590_v42 = vcombine.high %v1040_v36, %v1044_v37  ;;  %v1047_v0 = vld [vmem:[#allocation7 + $0xa80] sm:$0xff]  ;;  %v1084_v24 = vld [vmem:[#allocation7 + $0xba8] sm:$0xff] }
 0x1b9   :  { %v5595_v58 = vcombine.low %v1047_v0, %v1051_v44  ;;  %v5630_v32 = vcombine.high %v1080_v23, %v1084_v24 }
 0x1bb   :  { %3914 = vmatpush1.bf16.msra.mxu0 %v5539_v48  ;;  %4078 = vmatpush1.bf16.msra.mxu1 %v5541_v49  ;;  %v5589_v48 = vcombine.low %v1040_v36, %v1044_v37  ;;  %v5596_v49 = vcombine.high %v1047_v0, %v1051_v44  ;;  %v1087_v36 = vld [vmem:[#allocation7 + $0xbc0] sm:$0xff]  ;;  %v5627_v0 = vcombine.low %v1079_v21, %v1083_v22  ;;  %v1120_v21 = vld [vmem:[#allocation7 + $0xcc8] sm:$0xff] }
 0x1bc   :  { %3915 = vmatprep.subr.bf16.mxu0 %v5548_v50  ;;  %4079 = vmatprep.subr.bf16.mxu1 %v5550_v51  ;;  %v5598_v50 = vcombine.high %v1048_v45, %v1052_v46  ;;  %v1055_v51 = vld [vmem:[#allocation7 + $0xac0] sm:$0xff]  ;;  %v5629_v44 = vcombine.low %v1080_v23, %v1084_v24  ;;  %v1124_v22 = vld [vmem:[#allocation7 + $0xce8] sm:$0xff] }
 0x1bd   :  { %v5603_v3 = vcombine.low %v1055_v51, %v1059_v54  ;;  %v1091_v37 = vld [vmem:[#allocation7 + $0xbe0] sm:$0xff] }
 0x1bf   :  { %3916 = vmatpush1.bf16.msra.mxu0 %v5547_v59  ;;  %4080 = vmatpush1.bf16.msra.mxu1 %v5549_v60  ;;  %v5597_v59 = vcombine.low %v1048_v45, %v1052_v46  ;;  %v5604_v60 = vcombine.high %v1055_v51, %v1059_v54  ;;  %v5636_v45 = vcombine.high %v1087_v36, %v1091_v37 }
 0x1c0   :  { %3917 = vmatprep.subr.bf16.mxu0 %v5556_v61  ;;  %4081 = vmatprep.subr.bf16.mxu1 %v5558_v62  ;;  %v5606_v61 = vcombine.high %v1056_v55, %v1060_v56  ;;  %v1063_v62 = vld [vmem:[#allocation7 + $0xb00] sm:$0xff] }
 0x1c3   :  { %3918 = vmatpush1.bf16.msra.mxu0 %v5555_v4  ;;  %4082 = vmatpush1.bf16.msra.mxu1 %v5557_v5  ;;  %v5605_v4 = vcombine.low %v1056_v55, %v1060_v56  ;;  %v5612_v5 = vcombine.high %v1063_v62, %v1067_v63 }
 0x1c4   :  { %3919 = vmatprep.subr.bf16.mxu0 %v5564_v34  ;;  %4083 = vmatprep.subr.bf16.mxu1 %v5566_v7  ;;  %v5614_v34 = vcombine.high %v1064_v1, %v1068_v2  ;;  %v1071_v7 = vld [vmem:[#allocation7 + $0xb40] sm:$0xff] }
 0x1c7   :  { %3920 = vmatpush1.bf16.msra.mxu0 %v5563_v12  ;;  %4084 = vmatpush1.bf16.msra.mxu1 %v5565_v18  ;;  %v5611_v12 = vcombine.low %v1063_v62, %v1067_v63  ;;  %v5613_v18 = vcombine.low %v1064_v1, %v1068_v2 }
 0x1c8   :  { %3921 = vmatprep.subr.bf16.mxu0 %v5572_v6  ;;  %4085 = vmatprep.subr.bf16.mxu1 %v5574_v19  ;;  %v5620_v6 = vcombine.high %v1071_v7, %v1075_v8  ;;  %v5622_v19 = vcombine.high %v1072_v9, %v1076_v10 }
 0x1cb   :  { %3922 = vmatpush1.bf16.msra.mxu0 %v5571_v25  ;;  %4086 = vmatpush1.bf16.msra.mxu1 %v5573_v27  ;;  %v201_v25 = vsub.s32 7, %v6358_v13  ;;  %v190_v27 = vrot.slane %v6361_v15, %v189_v11 }
 0x1cc   :  { %3923 = vmatprep.subr.bf16.mxu0 %v5580_v28  ;;  %4087 = vmatprep.subr.bf16.mxu1 %v5582_v29  ;;  %v5619_v28 = vcombine.low %v1071_v7, %v1075_v8  ;;  %v5621_v29 = vcombine.low %v1072_v9, %v1076_v10  ;;  %v1116_v7 = vld [vmem:[#allocation7 + $0xca8] sm:$0xff] }
 0x1cf   :  { %3924 = vmatpush1.bf16.msra.mxu0 %v5579_v38  ;;  %4088 = vmatpush1.bf16.msra.mxu1 %v5581_v39  ;;  %v1088_v38 = vld [vmem:[#allocation7 + $0xbc8] sm:$0xff] }
 0x1d0   :  { %3925 = vmatprep.subr.bf16.mxu0 %v5588_v41  ;;  %4089 = vmatprep.subr.bf16.mxu1 %v5590_v42  ;;  %v1092_v39 = vld [vmem:[#allocation7 + $0xbe8] sm:$0xff]  ;;  %v202_v41 = vrot.slane %v6361_v15, %v201_v25  ;;  %v648_v42 = vadd.f32 %v6388_v40, %v190_v27  ;;  %v5635_v15 = vcombine.low %v1087_v36, %v1091_v37 }
 0x1d1   :  { %v5638_v46 = vcombine.high %v1088_v38, %v1092_v39  ;;  %v5637_v55 = vcombine.low %v1088_v38, %v1092_v39  ;;  %v1132_v36 = vld [vmem:[#allocation7 + $0xd28] sm:$0xff]  ;;  %v5669_v38 = vcombine.low %v1120_v21, %v1124_v22 }
 0x1d2   :  { %v691_v51 = vadd.f32 %v6394_v57, %v202_v41  ;;  %v699_v54 = vmax.f32 %v648_v42, 0.0  ;;  %v1135_v42 = vld [vmem:[#allocation7 + $0xd40] sm:$0xff] }
 0x1d3   :  { %3926 = vmatpush1.bf16.msra.mxu0 %v5587_v47  ;;  %4090 = vmatpush1.bf16.msra.mxu1 %v5589_v48  ;;  %v1095_v47 = vld [vmem:[#allocation7 + $0xc00] sm:$0xff] }
 0x1d4   :  { %3927 = vmatprep.subr.bf16.mxu0 %v5596_v49  ;;  %4091 = vmatprep.subr.bf16.mxu1 %v5598_v50  ;;  %v1099_v48 = vld [vmem:[#allocation7 + $0xc20] sm:$0xff]  ;;  %v1096_v49 = vld [vmem:[#allocation7 + $0xc08] sm:$0xff]  ;;  %v702_v62 = vmax.f32 %v691_v51, 0.0  ;;  %v6424_v63 = vpack.c.bf16 %v699_v54, %v699_v54 }
 0x1d5   :  { %v1100_v50 = vld [vmem:[#allocation7 + $0xc28] sm:$0xff]  ;;  %v5644_v40 = vcombine.high %v1095_v47, %v1099_v48  ;;  %v5643_v1 = vcombine.low %v1095_v47, %v1099_v48  ;;  %v1147_v51 = vld [vmem:[#allocation7 + $0xda0] sm:$0xff] }
 0x1d6   :  { %v5646_v56 = vcombine.high %v1096_v49, %v1100_v50  ;;  %v5645_v57 = vcombine.low %v1096_v49, %v1100_v50  ;;  %v6426_v8 = vpack.c.bf16 %v702_v62, %v702_v62  ;;  %v1143_v50 = vld [vmem:[#allocation7 + $0xd80] sm:$0xff]  ;;  %v1144_v54 = vld [vmem:[#allocation7 + $0xd88] sm:$0xff] }
 0x1d7   :  { %3928 = vmatpush1.bf16.msra.mxu0 %v5595_v58  ;;  %4092 = vmatpush1.bf16.msra.mxu1 %v5597_v59  ;;  %v1103_v58 = vld [vmem:[#allocation7 + $0xc40] sm:$0xff]  ;;  %v1156_v62 = vld [vmem:[#allocation7 + $0xde8] sm:$0xff] }
 0x1d8   :  { %3929 = vmatprep.subr.bf16.mxu0 %v5604_v60  ;;  %4093 = vmatprep.subr.bf16.mxu1 %v5606_v61  ;;  %v1107_v59 = vld [vmem:[#allocation7 + $0xc60] sm:$0xff]  ;;  %v1104_v60 = vld [vmem:[#allocation7 + $0xc48] sm:$0xff] }
 0x1d9   :  { %v1108_v61 = vld [vmem:[#allocation7 + $0xc68] sm:$0xff]  ;;  %v5652_v2 = vcombine.high %v1103_v58, %v1107_v59  ;;  %v5651_v9 = vcombine.low %v1103_v58, %v1107_v59  ;;  %v1151_v59 = vld [vmem:[#allocation7 + $0xdc0] sm:$0xff] }
 0x1da   :  { %v5653_v10 = vcombine.low %v1104_v60, %v1108_v61 }
 0x1db   :  { %3930 = vmatpush1.bf16.msra.mxu0 %v5603_v3  ;;  %4094 = vmatpush1.bf16.msra.mxu1 %v5605_v4  ;;  %v5654_v3 = vcombine.high %v1104_v60, %v1108_v61  ;;  %v1111_v4 = vld [vmem:[#allocation7 + $0xc80] sm:$0xff]  ;;  %v1152_v61 = vld [vmem:[#allocation7 + $0xdc8] sm:$0xff] }
 0x1dc   :  { %3931 = vmatprep.subr.bf16.mxu0 %v5612_v5  ;;  %4095 = vmatprep.subr.bf16.mxu1 %v5614_v34  ;;  %v1115_v5 = vld [vmem:[#allocation7 + $0xca0] sm:$0xff]  ;;  %v1112_v34 = vld [vmem:[#allocation7 + $0xc88] sm:$0xff] }
 0x1dd   :  { %v5659_v23 = vcombine.low %v1111_v4, %v1115_v5  ;;  %v5661_v24 = vcombine.low %v1112_v34, %v1116_v7  ;;  %v1155_v60 = vld [vmem:[#allocation7 + $0xde0] sm:$0xff] }
 0x1df   :  { %3932 = vmatpush1.bf16.msra.mxu0 %v5611_v12  ;;  %4096 = vmatpush1.bf16.msra.mxu1 %v5613_v18  ;;  %v5660_v12 = vcombine.high %v1111_v4, %v1115_v5  ;;  %v5662_v18 = vcombine.high %v1112_v34, %v1116_v7  ;;  %v1159_v4 = vld [vmem:[#allocation7 + $0xe00] sm:$0xff]  ;;  %v1160_v34 = vld [vmem:[#allocation7 + $0xe08] sm:$0xff] }
 0x1e0   :  { %3933 = vmatprep.subr.bf16.mxu0 %v5620_v6  ;;  %4097 = vmatprep.subr.bf16.mxu1 %v5622_v19  ;;  %v1119_v6 = vld [vmem:[#allocation7 + $0xcc0] sm:$0xff]  ;;  %v1164_v7 = vld [vmem:[#allocation7 + $0xe28] sm:$0xff] }
 0x1e1   :  { %v1123_v19 = vld [vmem:[#allocation7 + $0xce0] sm:$0xff] }
 0x1e2   :  { %v5668_v27 = vcombine.high %v1119_v6, %v1123_v19  ;;  %v5667_v37 = vcombine.low %v1119_v6, %v1123_v19  ;;  %v1163_v5 = vld [vmem:[#allocation7 + $0xe20] sm:$0xff] }
 0x1e3   :  { %3934 = vmatpush1.bf16.msra.mxu0 %v5619_v28  ;;  %4098 = vmatpush1.bf16.msra.mxu1 %v5621_v29  ;;  %v5670_v28 = vcombine.high %v1120_v21, %v1124_v22  ;;  %v1127_v29 = vld [vmem:[#allocation7 + $0xd00] sm:$0xff]  ;;  %v1168_v21 = vld [vmem:[#allocation7 + $0xe48] sm:$0xff] }
 0x1e4   :  { %3935 = vmatprep.subr.bf16.mxu0 %v5628_v31  ;;  %4099 = vmatprep.subr.bf16.mxu1 %v5630_v32  ;;  %v1131_v31 = vld [vmem:[#allocation7 + $0xd20] sm:$0xff]  ;;  %v1128_v32 = vld [vmem:[#allocation7 + $0xd08] sm:$0xff] }
 0x1e5   :  { %v5676_v39 = vcombine.high %v1127_v29, %v1131_v31  ;;  %v5678_v41 = vcombine.high %v1128_v32, %v1132_v36  ;;  %v5677_v47 = vcombine.low %v1128_v32, %v1132_v36  ;;  %v1167_v6 = vld [vmem:[#allocation7 + $0xe40] sm:$0xff]  ;;  %v1172_v22 = vld [vmem:[#allocation7 + $0xe68] sm:$0xff] }
 0x1e6   :  { %v1171_v19 = vld [vmem:[#allocation7 + $0xe60] sm:$0xff]  ;;  %v1176_v32 = vld [vmem:[#allocation7 + $0xe88] sm:$0xff] }
 0x1e7   :  { %3936 = vmatpush1.bf16.msra.mxu0 %v5627_v0  ;;  %4100 = vmatpush1.bf16.msra.mxu1 %v5629_v44  ;;  %v1139_v0 = vld [vmem:[#allocation7 + $0xd60] sm:$0xff]  ;;  %v1136_v44 = vld [vmem:[#allocation7 + $0xd48] sm:$0xff] }
 0x1e8   :  { %3937 = vmatprep.subr.bf16.mxu0 %v5636_v45  ;;  %4101 = vmatprep.subr.bf16.mxu1 %v5638_v46  ;;  %v1140_v45 = vld [vmem:[#allocation7 + $0xd68] sm:$0xff]  ;;  %v5675_v46 = vcombine.low %v1127_v29, %v1131_v31  ;;  %v5684_v48 = vcombine.high %v1135_v42, %v1139_v0  ;;  %v1175_v29 = vld [vmem:[#allocation7 + $0xe80] sm:$0xff] }
 0x1e9   :  { %v5686_v49 = vcombine.high %v1136_v44, %v1140_v45  ;;  %v1179_v31 = vld [vmem:[#allocation7 + $0xea0] sm:$0xff]  ;;  %v1180_v36 = vld [vmem:[#allocation7 + $0xea8] sm:$0xff] }
 0x1eb   :  { %3938 = vmatpush1.bf16.msra.mxu0 %v5635_v15  ;;  %4102 = vmatpush1.bf16.msra.mxu1 %v5637_v55  ;;  %v1148_v15 = vld [vmem:[#allocation7 + $0xda8] sm:$0xff]  ;;  %v5683_v55 = vcombine.low %v1135_v42, %v1139_v0  ;;  %v1183_v42 = vld [vmem:[#allocation7 + $0xec0] sm:$0xff] }
 0x1ec   :  { %3948 = vmatprep.subr.bf16.mxu0 %v5644_v40  ;;  %4112 = vmatprep.subr.bf16.mxu1 %v5646_v56  ;;  %v5685_v40 = vcombine.low %v1136_v44, %v1140_v45  ;;  %v5692_v56 = vcombine.high %v1143_v50, %v1147_v51  ;;  %v5694_v58 = vcombine.high %v1144_v54, %v1148_v15  ;;  %v1187_v0 = vld [vmem:[#allocation7 + $0xee0] sm:$0xff]  ;;  %v1184_v44 = vld [vmem:[#allocation7 + $0xec8] sm:$0xff] }
 0x1ed   :  { %v1188_v45 = vld [vmem:[#allocation7 + $0xee8] sm:$0xff] }
 0x1ee   :  { %3940 = vmatmul.mubr.bf16.vlgmr.msra.gmra.mrb[8].mxu0 %v6424_v63  ;;  %4104 = vmatmul.mubr.bf16.vlgmr.msra.gmra.mrb[8].mxu1 %v6424_v63 }
 0x1ef   :  { %3949 = vmatpush1.bf16.msra.mxu0 %v5643_v1  ;;  %4113 = vmatpush1.bf16.msra.mxu1 %v5645_v57  ;;  %v5691_v1 = vcombine.low %v1143_v50, %v1147_v51  ;;  %v5693_v57 = vcombine.low %v1144_v54, %v1148_v15  ;;  %v1191_v50 = vld [vmem:[#allocation7 + $0xf00] sm:$0xff]  ;;  %v1192_v54 = vld [vmem:[#allocation7 + $0xf08] sm:$0xff] }
 0x1f0   :  { %3950 = vmatprep.subr.bf16.mxu0 %v5652_v2  ;;  %4114 = vmatprep.subr.bf16.mxu1 %v5654_v3  ;;  %v5700_v2 = vcombine.high %v1151_v59, %v1155_v60  ;;  %v5702_v3 = vcombine.high %v1152_v61, %v1156_v62  ;;  %v1195_v51 = vld [vmem:[#allocation7 + $0xf20] sm:$0xff]  ;;  %v1196_v15 = vld [vmem:[#allocation7 + $0xf28] sm:$0xff] }
 0x1f1   :  { %3980 = vmatprep.mubr.bf16.mxu0 %v6426_v8  ;;  %4144 = vmatprep.mubr.bf16.mxu1 %v6426_v8 }
 0x1f3   :  { %3951 = vmatpush1.bf16.msra.mxu0 %v5651_v9  ;;  %4115 = vmatpush1.bf16.msra.mxu1 %v5653_v10  ;;  %v5699_v9 = vcombine.low %v1151_v59, %v1155_v60  ;;  %v5701_v10 = vcombine.low %v1152_v61, %v1156_v62  ;;  %v1199_v59 = vld [vmem:[#allocation7 + $0xf40] sm:$0xff]  ;;  %v1200_v61 = vld [vmem:[#allocation7 + $0xf48] sm:$0xff] }
 0x1f4   :  { %3952 = vmatprep.subr.bf16.mxu0 %v5660_v12  ;;  %4116 = vmatprep.subr.bf16.mxu1 %v5662_v18  ;;  %v5708_v12 = vcombine.high %v1159_v4, %v1163_v5  ;;  %v5710_v18 = vcombine.high %v1160_v34, %v1164_v7  ;;  %v1203_v60 = vld [vmem:[#allocation7 + $0xf60] sm:$0xff]  ;;  %v1204_v62 = vld [vmem:[#allocation7 + $0xf68] sm:$0xff] }
 0x1f7   :  { %3953 = vmatpush1.bf16.msra.mxu0 %v5659_v23  ;;  %4117 = vmatpush1.bf16.msra.mxu1 %v5661_v24  ;;  %v5707_v23 = vcombine.low %v1159_v4, %v1163_v5  ;;  %v5709_v24 = vcombine.low %v1160_v34, %v1164_v7  ;;  %v5750_v4 = vcombine.high %v1200_v61, %v1204_v62  ;;  %v1207_v5 = vld [vmem:[#allocation7 + $0xf80] sm:$0xff]  ;;  %v1208_v7 = vld [vmem:[#allocation7 + $0xf88] sm:$0xff] }
 0x1f8   :  { %3954 = vmatprep.subr.bf16.mxu0 %v5668_v27  ;;  %4118 = vmatprep.subr.bf16.mxu1 %v5670_v28  ;;  %v5716_v27 = vcombine.high %v1167_v6, %v1171_v19  ;;  %v5718_v28 = vcombine.high %v1168_v21, %v1172_v22  ;;  %v1211_v34 = vld [vmem:[#allocation7 + $0xfa0] sm:$0xff] }
 0x1fb   :  { %3955 = vmatpush1.bf16.msra.mxu0 %v5667_v37  ;;  %4119 = vmatpush1.bf16.msra.mxu1 %v5669_v38  ;;  %v5715_v37 = vcombine.low %v1167_v6, %v1171_v19  ;;  %v5717_v38 = vcombine.low %v1168_v21, %v1172_v22  ;;  %v5756_v19 = vcombine.high %v1207_v5, %v1211_v34  ;;  %v1215_v22 = vld [vmem:[#allocation7 + $0xfc0] sm:$0xff] }
 0x1fc   :  { %3956 = vmatprep.subr.bf16.mxu0 %v5676_v39  ;;  %4120 = vmatprep.subr.bf16.mxu1 %v5678_v41  ;;  %v5724_v39 = vcombine.high %v1175_v29, %v1179_v31  ;;  %v5726_v41 = vcombine.high %v1176_v32, %v1180_v36 }
 0x1ff   :  { %3957 = vmatpush1.bf16.msra.mxu0 %v5675_v46  ;;  %4121 = vmatpush1.bf16.msra.mxu1 %v5677_v47  ;;  %v5723_v46 = vcombine.low %v1175_v29, %v1179_v31  ;;  %v5725_v47 = vcombine.low %v1176_v32, %v1180_v36 }
 0x200   :  { %3958 = vmatprep.subr.bf16.mxu0 %v5684_v48  ;;  %4122 = vmatprep.subr.bf16.mxu1 %v5686_v49  ;;  %v5732_v48 = vcombine.high %v1183_v42, %v1187_v0  ;;  %v5734_v49 = vcombine.high %v1184_v44, %v1188_v45 }
 0x203   :  { %3959 = vmatpush1.bf16.msra.mxu0 %v5683_v55  ;;  %4123 = vmatpush1.bf16.msra.mxu1 %v5685_v40  ;;  %v5731_v55 = vcombine.low %v1183_v42, %v1187_v0  ;;  %v5733_v40 = vcombine.low %v1184_v44, %v1188_v45 }
 0x204   :  { %3960 = vmatprep.subr.bf16.mxu0 %v5692_v56  ;;  %4124 = vmatprep.subr.bf16.mxu1 %v5694_v58  ;;  %v5740_v56 = vcombine.high %v1191_v50, %v1195_v51  ;;  %v5742_v58 = vcombine.high %v1192_v54, %v1196_v15 }
 0x207   :  { %3961 = vmatpush1.bf16.msra.mxu0 %v5691_v1  ;;  %4125 = vmatpush1.bf16.msra.mxu1 %v5693_v57  ;;  %v5739_v1 = vcombine.low %v1191_v50, %v1195_v51  ;;  %v5741_v57 = vcombine.low %v1192_v54, %v1196_v15 }
 0x208   :  { %3962 = vmatprep.subr.bf16.mxu0 %v5700_v2  ;;  %4126 = vmatprep.subr.bf16.mxu1 %v5702_v3  ;;  %v197_v2 = vsub.s32 6, %v6358_v13  ;;  %v5748_v3 = vcombine.high %v1199_v59, %v1203_v60 }
 0x20b   :  { %3963 = vmatpush1.bf16.msra.mxu0 %v5699_v9  ;;  %4127 = vmatpush1.bf16.msra.mxu1 %v5701_v10  ;;  %v1212_v9 = vld [vmem:[#allocation7 + $0xfa8] sm:$0xff]  ;;  %v5747_v10 = vcombine.low %v1199_v59, %v1203_v60  ;;  %v734_v59 = vld [vmem:[#allocation7 + $0xb8] sm:$0xff] }
 0x20c   :  { %3964 = vmatprep.subr.bf16.mxu0 %v5708_v12  ;;  %4128 = vmatprep.subr.bf16.mxu1 %v5710_v18  ;;  %v5749_v12 = vcombine.low %v1200_v61, %v1204_v62  ;;  %v6056_v18 = vld [vmem:[#allocation5] sm:$0xff]  ;;  %v5758_v21 = vcombine.high %v1208_v7, %v1212_v9  ;;  %v5757_v29 = vcombine.low %v1208_v7, %v1212_v9 }
 0x20d   :  { %v198_v6 = vrot.slane %v6056_v18, %v197_v2  ;;  %v749_v18 = vld [vmem:[#allocation7 + $0x130] sm:$0xff] }
 0x20f   :  { %3965 = vmatpush1.bf16.msra.mxu0 %v5707_v23  ;;  %4129 = vmatpush1.bf16.msra.mxu1 %v5709_v24  ;;  %v1219_v23 = vld [vmem:[#allocation7 + $0xfe0] sm:$0xff]  ;;  %v1216_v24 = vld [vmem:[#allocation7 + $0xfc8] sm:$0xff]  ;;  %v689_v31 = vadd.f32 %v6392_v52, %v198_v6  ;;  %v722_v52 = vld [vmem:[#allocation7 + $0x58] sm:$0xff] }
 0x210   :  { %3966 = vmatprep.subr.bf16.mxu0 %v5716_v27  ;;  %4130 = vmatprep.subr.bf16.mxu1 %v5718_v28  ;;  %v1220_v27 = vld [vmem:[#allocation7 + $0xfe8] sm:$0xff]  ;;  %v5755_v28 = vcombine.low %v1207_v5, %v1211_v34  ;;  %v5764_v32 = vcombine.high %v1215_v22, %v1219_v23  ;;  %v5763_v42 = vcombine.low %v1215_v22, %v1219_v23  ;;  %v742_v5 = vld [vmem:[#allocation7 + $0xf8] sm:$0xff] }
 0x211   :  { %v5766_v36 = vcombine.high %v1216_v24, %v1220_v27  ;;  %v5765_v0 = vcombine.low %v1216_v24, %v1220_v27  ;;  %v701_v44 = vmax.f32 %v689_v31, 0.0  ;;  %v750_v6 = vld [vmem:[#allocation7 + $0x138] sm:$0xff]  ;;  %v753_v24 = vld [vmem:[#allocation7 + $0x150] sm:$0xff] }
 0x212   :  { %v757_v27 = vld [vmem:[#allocation7 + $0x170] sm:$0xff] }
 0x213   :  { %3967 = vmatpush1.bf16.msra.mxu0 %v5715_v37  ;;  %4131 = vmatpush1.bf16.msra.mxu1 %v5717_v38  ;;  %v713_v37 = vld [vmem:[#allocation7 + $0x10] sm:$0xff]  ;;  %v6436_v51 = vpack.c.bf16 %v701_v44, %v701_v44 }
 0x214   :  { %3968 = vmatprep.subr.bf16.mxu0 %v5724_v39  ;;  %4132 = vmatprep.subr.bf16.mxu1 %v5726_v41  ;;  %v717_v38 = vld [vmem:[#allocation7 + $0x30] sm:$0xff]  ;;  %v714_v39 = vld [vmem:[#allocation7 + $0x18] sm:$0xff] }
 0x215   :  { %v718_v41 = vld [vmem:[#allocation7 + $0x38] sm:$0xff]  ;;  %v5264_v45 = vcombine.high %v713_v37, %v717_v38  ;;  %v5263_v50 = vcombine.low %v713_v37, %v717_v38  ;;  %v761_v38 = vld [vmem:[#allocation7 + $0x190] sm:$0xff] }
 0x216   :  { %v5265_v54 = vcombine.low %v714_v39, %v718_v41 }
 0x217   :  { %3969 = vmatpush1.bf16.msra.mxu0 %v5723_v46  ;;  %4133 = vmatpush1.bf16.msra.mxu1 %v5725_v47  ;;  %v5266_v46 = vcombine.high %v714_v39, %v718_v41  ;;  %v721_v47 = vld [vmem:[#allocation7 + $0x50] sm:$0xff]  ;;  %v762_v41 = vld [vmem:[#allocation7 + $0x198] sm:$0xff] }
 0x218   :  { %3970 = vmatprep.subr.bf16.mxu0 %v5732_v48  ;;  %4134 = vmatprep.subr.bf16.mxu1 %v5734_v49  ;;  %v725_v48 = vld [vmem:[#allocation7 + $0x70] sm:$0xff]  ;;  %v726_v49 = vld [vmem:[#allocation7 + $0x78] sm:$0xff] }
 0x219   :  { %v5272_v15 = vcombine.high %v721_v47, %v725_v48  ;;  %v5271_v60 = vcombine.low %v721_v47, %v725_v48  ;;  %v5273_v61 = vcombine.low %v722_v52, %v726_v49  ;;  %v765_v39 = vld [vmem:[#allocation7 + $0x1b0] sm:$0xff] }
 0x21a   :  { %v769_v47 = vld [vmem:[#allocation7 + $0x1d0] sm:$0xff] }
 0x21b   :  { %3971 = vmatpush1.bf16.msra.mxu0 %v5731_v55  ;;  %4135 = vmatpush1.bf16.msra.mxu1 %v5733_v40  ;;  %v5274_v55 = vcombine.high %v722_v52, %v726_v49  ;;  %v729_v40 = vld [vmem:[#allocation7 + $0x90] sm:$0xff]  ;;  %v770_v52 = vld [vmem:[#allocation7 + $0x1d8] sm:$0xff] }
 0x21c   :  { %3972 = vmatprep.subr.bf16.mxu0 %v5740_v56  ;;  %4136 = vmatprep.subr.bf16.mxu1 %v5742_v58  ;;  %v733_v56 = vld [vmem:[#allocation7 + $0xb0] sm:$0xff]  ;;  %v730_v58 = vld [vmem:[#allocation7 + $0x98] sm:$0xff] }
 0x21d   :  { %v5280_v62 = vcombine.high %v729_v40, %v733_v56  ;;  %v5279_v34 = vcombine.low %v729_v40, %v733_v56  ;;  %v5281_v7 = vcombine.low %v730_v58, %v734_v59  ;;  %v773_v48 = vld [vmem:[#allocation7 + $0x1f0] sm:$0xff]  ;;  %v774_v49 = vld [vmem:[#allocation7 + $0x1f8] sm:$0xff] }
 0x21e   :  { %v777_v40 = vld [vmem:[#allocation7 + $0x210] sm:$0xff] }
 0x21f   :  { %3973 = vmatpush1.bf16.msra.mxu0 %v5739_v1  ;;  %4137 = vmatpush1.bf16.msra.mxu1 %v5741_v57  ;;  %v5282_v1 = vcombine.high %v730_v58, %v734_v59  ;;  %v737_v57 = vld [vmem:[#allocation7 + $0xd0] sm:$0xff]  ;;  %v778_v58 = vld [vmem:[#allocation7 + $0x218] sm:$0xff] }
 0x220   :  { %3974 = vmatprep.subr.bf16.mxu0 %v5748_v3  ;;  %4138 = vmatprep.subr.bf16.mxu1 %v5750_v4  ;;  %v741_v3 = vld [vmem:[#allocation7 + $0xf0] sm:$0xff]  ;;  %v738_v4 = vld [vmem:[#allocation7 + $0xd8] sm:$0xff] }
 0x221   :  { %v5288_v9 = vcombine.high %v737_v57, %v741_v3  ;;  %v781_v56 = vld [vmem:[#allocation7 + $0x230] sm:$0xff]  ;;  %v782_v59 = vld [vmem:[#allocation7 + $0x238] sm:$0xff] }
 0x223   :  { %3975 = vmatpush1.bf16.msra.mxu0 %v5747_v10  ;;  %4139 = vmatpush1.bf16.msra.mxu1 %v5749_v12  ;;  %v5290_v10 = vcombine.high %v738_v4, %v742_v5  ;;  %v745_v12 = vld [vmem:[#allocation7 + $0x110] sm:$0xff] }
 0x224   :  { %3976 = vmatprep.subr.bf16.mxu0 %v5756_v19  ;;  %4140 = vmatprep.subr.bf16.mxu1 %v5758_v21  ;;  %v5287_v19 = vcombine.low %v737_v57, %v741_v3  ;;  %v5289_v21 = vcombine.low %v738_v4, %v742_v5  ;;  %v5296_v22 = vcombine.high %v745_v12, %v749_v18  ;;  %v785_v57 = vld [vmem:[#allocation7 + $0x250] sm:$0xff]  ;;  %v786_v4 = vld [vmem:[#allocation7 + $0x258] sm:$0xff] }
 0x225   :  { %v5295_v31 = vcombine.low %v745_v12, %v749_v18  ;;  %v789_v3 = vld [vmem:[#allocation7 + $0x270] sm:$0xff]  ;;  %v790_v5 = vld [vmem:[#allocation7 + $0x278] sm:$0xff] }
 0x226   :  { %v793_v12 = vld [vmem:[#allocation7 + $0x290] sm:$0xff] }
 0x227   :  { %3977 = vmatpush1.bf16.msra.mxu0 %v5755_v28  ;;  %4141 = vmatpush1.bf16.msra.mxu1 %v5757_v29  ;;  %v754_v28 = vld [vmem:[#allocation7 + $0x158] sm:$0xff]  ;;  %v797_v18 = vld [vmem:[#allocation7 + $0x2b0] sm:$0xff] }
 0x228   :  { %3978 = vmatprep.subr.bf16.mxu0 %v5764_v32  ;;  %4142 = vmatprep.subr.bf16.mxu1 %v5766_v36  ;;  %v758_v29 = vld [vmem:[#allocation7 + $0x178] sm:$0xff]  ;;  %v5304_v36 = vcombine.high %v753_v24, %v757_v27 }
 0x229   :  { %v5306_v37 = vcombine.high %v754_v28, %v758_v29  ;;  %v5305_v44 = vcombine.low %v754_v28, %v758_v29  ;;  %v802_v28 = vld [vmem:[#allocation7 + $0x2d8] sm:$0xff] }
 0x22a   :  { %v806_v29 = vld [vmem:[#allocation7 + $0x2f8] sm:$0xff] }
 0x22b   :  { %3979 = vmatpush1.bf16.msra.mxu0 %v5763_v42  ;;  %4143 = vmatpush1.bf16.msra.mxu1 %v5765_v0  ;;  %v766_v42 = vld [vmem:[#allocation7 + $0x1b8] sm:$0xff]  ;;  %v5303_v0 = vcombine.low %v753_v24, %v757_v27  ;;  %v801_v24 = vld [vmem:[#allocation7 + $0x2d0] sm:$0xff] }
 0x22c   :  { %4153 = vmatprep.subr.bf16.mxu0 %v5264_v45  ;;  %4317 = vmatprep.subr.bf16.mxu1 %v5266_v46  ;;  %v5312_v45 = vcombine.high %v761_v38, %v765_v39  ;;  %v5314_v46 = vcombine.high %v762_v41, %v766_v42  ;;  %v805_v27 = vld [vmem:[#allocation7 + $0x2f0] sm:$0xff] }
 0x22e   :  { %3981 = vmatmul.mubr.bf16.vlgmr.msra.gmra.mrb[8].mxu0 %v6436_v51  ;;  %4145 = vmatmul.mubr.bf16.vlgmr.msra.gmra.mrb[8].mxu1 %v6436_v51 }
 0x22f   :  { %4154 = vmatpush1.bf16.msra.mxu0 %v5263_v50  ;;  %4185 = vmatprep.mubr.bf16.mxu0 %v6374_v33  ;;  %v5311_v50 = vcombine.low %v761_v38, %v765_v39  ;;  %v809_v38 = vld [vmem:[#allocation7 + $0x310] sm:$0xff] }
 0x230   :  { %4318 = vmatpush1.bf16.msra.mxu1 %v5265_v54  ;;  %4349 = vmatprep.mubr.bf16.mxu1 %v6374_v33  ;;  %v746_v33 = vld [vmem:[#allocation7 + $0x118] sm:$0xff]  ;;  %v5313_v54 = vcombine.low %v762_v41, %v766_v42  ;;  %v813_v39 = vld [vmem:[#allocation7 + $0x330] sm:$0xff] }
 0x231   :  { %4155 = vmatprep.subr.bf16.mxu0 %v5272_v15  ;;  %4319 = vmatprep.subr.bf16.mxu1 %v5274_v55  ;;  %v5298_v23 = vcombine.high %v746_v33, %v750_v6  ;;  %v5297_v32 = vcombine.low %v746_v33, %v750_v6  ;;  %v5320_v15 = vcombine.high %v769_v47, %v773_v48  ;;  %v794_v33 = vld [vmem:[#allocation7 + $0x298] sm:$0xff] }
 0x232   :  { %v5322_v55 = vcombine.high %v770_v52, %v774_v49  ;;  %v798_v6 = vld [vmem:[#allocation7 + $0x2b8] sm:$0xff] }
 0x233   :  { %4156 = vmatpush1.bf16.msra.mxu0 %v5271_v60  ;;  %v5319_v60 = vcombine.low %v769_v47, %v773_v48  ;;  %v810_v41 = vld [vmem:[#allocation7 + $0x318] sm:$0xff]  ;;  %v817_v47 = vld [vmem:[#allocation7 + $0x350] sm:$0xff] }
 0x234   :  { %4320 = vmatpush1.bf16.msra.mxu1 %v5273_v61  ;;  %4157 = vmatprep.subr.bf16.mxu0 %v5280_v62  ;;  %v5321_v61 = vcombine.low %v770_v52, %v774_v49  ;;  %v5328_v62 = vcombine.high %v777_v40, %v781_v56  ;;  %v814_v42 = vld [vmem:[#allocation7 + $0x338] sm:$0xff]  ;;  %v821_v48 = vld [vmem:[#allocation7 + $0x370] sm:$0xff] }
 0x235   :  { %4321 = vmatprep.subr.bf16.mxu1 %v5282_v1  ;;  %v5330_v1 = vcombine.high %v778_v58, %v782_v59  ;;  %v818_v52 = vld [vmem:[#allocation7 + $0x358] sm:$0xff] }
 0x236   :  { %v822_v49 = vld [vmem:[#allocation7 + $0x378] sm:$0xff] }
 0x237   :  { %4158 = vmatpush1.bf16.msra.mxu0 %v5279_v34  ;;  %v5327_v34 = vcombine.low %v777_v40, %v781_v56  ;;  %v825_v40 = vld [vmem:[#allocation7 + $0x390] sm:$0xff] }
 0x238   :  { %4322 = vmatpush1.bf16.msra.mxu1 %v5281_v7  ;;  %4159 = vmatprep.subr.bf16.mxu0 %v5288_v9  ;;  %v5329_v7 = vcombine.low %v778_v58, %v782_v59  ;;  %v5336_v9 = vcombine.high %v785_v57, %v789_v3  ;;  %v829_v56 = vld [vmem:[#allocation7 + $0x3b0] sm:$0xff]  ;;  %v826_v58 = vld [vmem:[#allocation7 + $0x398] sm:$0xff] }
 0x239   :  { %4323 = vmatprep.subr.bf16.mxu1 %v5290_v10  ;;  %v5338_v10 = vcombine.high %v786_v4, %v790_v5  ;;  %v830_v59 = vld [vmem:[#allocation7 + $0x3b8] sm:$0xff] }
 0x23b   :  { %4160 = vmatpush1.bf16.msra.mxu0 %v5287_v19  ;;  %v5335_v19 = vcombine.low %v785_v57, %v789_v3  ;;  %v833_v57 = vld [vmem:[#allocation7 + $0x3d0] sm:$0xff] }
 0x23c   :  { %4324 = vmatpush1.bf16.msra.mxu1 %v5289_v21  ;;  %4161 = vmatprep.subr.bf16.mxu0 %v5296_v22  ;;  %v5337_v21 = vcombine.low %v786_v4, %v790_v5  ;;  %v5344_v22 = vcombine.high %v793_v12, %v797_v18  ;;  %v837_v3 = vld [vmem:[#allocation7 + $0x3f0] sm:$0xff]  ;;  %v834_v4 = vld [vmem:[#allocation7 + $0x3d8] sm:$0xff] }
 0x23d   :  { %4325 = vmatprep.subr.bf16.mxu1 %v5298_v23  ;;  %v5346_v23 = vcombine.high %v794_v33, %v798_v6  ;;  %v838_v5 = vld [vmem:[#allocation7 + $0x3f8] sm:$0xff] }
 0x23f   :  { %4162 = vmatpush1.bf16.msra.mxu0 %v5295_v31  ;;  %v5343_v31 = vcombine.low %v793_v12, %v797_v18  ;;  %v841_v12 = vld [vmem:[#allocation7 + $0x410] sm:$0xff] }
 0x240   :  { %4326 = vmatpush1.bf16.msra.mxu1 %v5297_v32  ;;  %4163 = vmatprep.subr.bf16.mxu0 %v5304_v36  ;;  %v5345_v32 = vcombine.low %v794_v33, %v798_v6  ;;  %v5352_v36 = vcombine.high %v801_v24, %v805_v27  ;;  %v845_v18 = vld [vmem:[#allocation7 + $0x430] sm:$0xff]  ;;  %v842_v33 = vld [vmem:[#allocation7 + $0x418] sm:$0xff] }
 0x241   :  { %4327 = vmatprep.subr.bf16.mxu1 %v5306_v37  ;;  %v5354_v37 = vcombine.high %v802_v28, %v806_v29  ;;  %v846_v6 = vld [vmem:[#allocation7 + $0x438] sm:$0xff] }
 0x243   :  { %4164 = vmatpush1.bf16.msra.mxu0 %v5303_v0  ;;  %v5351_v0 = vcombine.low %v801_v24, %v805_v27  ;;  %v849_v24 = vld [vmem:[#allocation7 + $0x450] sm:$0xff] }
 0x244   :  { %4328 = vmatpush1.bf16.msra.mxu1 %v5305_v44  ;;  %4165 = vmatprep.subr.bf16.mxu0 %v5312_v45  ;;  %v5353_v44 = vcombine.low %v802_v28, %v806_v29  ;;  %v5360_v45 = vcombine.high %v809_v38, %v813_v39  ;;  %v853_v27 = vld [vmem:[#allocation7 + $0x470] sm:$0xff]  ;;  %v5391_v28 = vcombine.low %v841_v12, %v845_v18  ;;  %v850_v29 = vld [vmem:[#allocation7 + $0x458] sm:$0xff] }
 0x245   :  { %4329 = vmatprep.subr.bf16.mxu1 %v5314_v46  ;;  %v5362_v46 = vcombine.high %v810_v41, %v814_v42 }
 0x247   :  { %4166 = vmatpush1.bf16.msra.mxu0 %v5311_v50  ;;  %v5359_v50 = vcombine.low %v809_v38, %v813_v39  ;;  %v861_v38 = vld [vmem:[#allocation7 + $0x4b0] sm:$0xff] }
 0x248   :  { %4330 = vmatpush1.bf16.msra.mxu1 %v5313_v54  ;;  %4167 = vmatprep.subr.bf16.mxu0 %v5320_v15  ;;  %v5361_v54 = vcombine.low %v810_v41, %v814_v42  ;;  %v5368_v15 = vcombine.high %v817_v47, %v821_v48  ;;  %v858_v41 = vld [vmem:[#allocation7 + $0x498] sm:$0xff] }
 0x249   :  { %4331 = vmatprep.subr.bf16.mxu1 %v5322_v55  ;;  %v5370_v55 = vcombine.high %v818_v52, %v822_v49  ;;  %v862_v42 = vld [vmem:[#allocation7 + $0x4b8] sm:$0xff] }
 0x24b   :  { %4168 = vmatpush1.bf16.msra.mxu0 %v5319_v60  ;;  %v5367_v60 = vcombine.low %v817_v47, %v821_v48  ;;  %v865_v47 = vld [vmem:[#allocation7 + $0x4d0] sm:$0xff] }
 0x24c   :  { %4332 = vmatpush1.bf16.msra.mxu1 %v5321_v61  ;;  %4169 = vmatprep.subr.bf16.mxu0 %v5328_v62  ;;  %v5369_v61 = vcombine.low %v818_v52, %v822_v49  ;;  %v5376_v62 = vcombine.high %v825_v40, %v829_v56  ;;  %v869_v48 = vld [vmem:[#allocation7 + $0x4f0] sm:$0xff]  ;;  %v866_v52 = vld [vmem:[#allocation7 + $0x4d8] sm:$0xff] }
 0x24d   :  { %4333 = vmatprep.subr.bf16.mxu1 %v5330_v1  ;;  %v5378_v1 = vcombine.high %v826_v58, %v830_v59  ;;  %v870_v49 = vld [vmem:[#allocation7 + $0x4f8] sm:$0xff] }
 0x24f   :  { %4170 = vmatpush1.bf16.msra.mxu0 %v5327_v34  ;;  %v5375_v34 = vcombine.low %v825_v40, %v829_v56  ;;  %v877_v40 = vld [vmem:[#allocation7 + $0x530] sm:$0xff]  ;;  %v874_v56 = vld [vmem:[#allocation7 + $0x518] sm:$0xff] }
 0x250   :  { %4334 = vmatpush1.bf16.msra.mxu1 %v5329_v7  ;;  %4171 = vmatprep.subr.bf16.mxu0 %v5336_v9  ;;  %v5377_v7 = vcombine.low %v826_v58, %v830_v59  ;;  %v5384_v9 = vcombine.high %v833_v57, %v837_v3  ;;  %v878_v58 = vld [vmem:[#allocation7 + $0x538] sm:$0xff]  ;;  %v5417_v59 = vcombine.low %v866_v52, %v870_v49 }
 0x251   :  { %4335 = vmatprep.subr.bf16.mxu1 %v5338_v10  ;;  %v5386_v10 = vcombine.high %v834_v4, %v838_v5 }
 0x253   :  { %4172 = vmatpush1.bf16.msra.mxu0 %v5335_v19  ;;  %v5383_v19 = vcombine.low %v833_v57, %v837_v3  ;;  %v882_v57 = vld [vmem:[#allocation7 + $0x558] sm:$0xff] }
 0x254   :  { %4336 = vmatpush1.bf16.msra.mxu1 %v5337_v21  ;;  %4173 = vmatprep.subr.bf16.mxu0 %v5344_v22  ;;  %v5385_v21 = vcombine.low %v834_v4, %v838_v5  ;;  %v5392_v22 = vcombine.high %v841_v12, %v845_v18  ;;  %v886_v3 = vld [vmem:[#allocation7 + $0x578] sm:$0xff]  ;;  %v5425_v5 = vcombine.low %v874_v56, %v878_v58 }
 0x255   :  { %4337 = vmatprep.subr.bf16.mxu1 %v5346_v23  ;;  %v5394_v23 = vcombine.high %v842_v33, %v846_v6  ;;  %v890_v12 = vld [vmem:[#allocation7 + $0x598] sm:$0xff] }
 0x256   :  { %v894_v18 = vld [vmem:[#allocation7 + $0x5b8] sm:$0xff] }
 0x257   :  { %4174 = vmatpush1.bf16.msra.mxu0 %v5343_v31  ;;  %v854_v31 = vld [vmem:[#allocation7 + $0x478] sm:$0xff] }
 0x258   :  { %4338 = vmatpush1.bf16.msra.mxu1 %v5345_v32  ;;  %4175 = vmatprep.subr.bf16.mxu0 %v5352_v36  ;;  %v5393_v32 = vcombine.low %v842_v33, %v846_v6  ;;  %v5400_v36 = vcombine.high %v849_v24, %v853_v27  ;;  %v5402_v39 = vcombine.high %v850_v29, %v854_v31 }
 0x259   :  { %4339 = vmatprep.subr.bf16.mxu1 %v5354_v37  ;;  %v857_v37 = vld [vmem:[#allocation7 + $0x490] sm:$0xff]  ;;  %v5433_v6 = vcombine.low %v882_v57, %v886_v3 }
 0x25b   :  { %4176 = vmatpush1.bf16.msra.mxu0 %v5351_v0  ;;  %v5399_v0 = vcombine.low %v849_v24, %v853_v27  ;;  %v898_v24 = vld [vmem:[#allocation7 + $0x5d8] sm:$0xff] }
 0x25c   :  { %4340 = vmatpush1.bf16.msra.mxu1 %v5353_v44  ;;  %4177 = vmatprep.subr.bf16.mxu0 %v5360_v45  ;;  %v5401_v44 = vcombine.low %v850_v29, %v854_v31  ;;  %v5408_v45 = vcombine.high %v857_v37, %v861_v38  ;;  %v902_v27 = vld [vmem:[#allocation7 + $0x5f8] sm:$0xff]  ;;  %v5441_v29 = vcombine.low %v890_v12, %v894_v18 }
 0x25d   :  { %4341 = vmatprep.subr.bf16.mxu1 %v5362_v46  ;;  %v5410_v46 = vcombine.high %v858_v41, %v862_v42 }
 0x25f   :  { %4178 = vmatpush1.bf16.msra.mxu0 %v5359_v50  ;;  %v5407_v50 = vcombine.low %v857_v37, %v861_v38  ;;  %v909_v37 = vld [vmem:[#allocation7 + $0x630] sm:$0xff]  ;;  %v906_v38 = vld [vmem:[#allocation7 + $0x618] sm:$0xff] }
 0x260   :  { %4342 = vmatpush1.bf16.msra.mxu1 %v5361_v54  ;;  %4179 = vmatprep.subr.bf16.mxu0 %v5368_v15  ;;  %v5416_v54 = vcombine.high %v865_v47, %v869_v48  ;;  %v5418_v15 = vcombine.high %v866_v52, %v870_v49 }
 0x261   :  { %4343 = vmatprep.subr.bf16.mxu1 %v5370_v55  ;;  %v873_v55 = vld [vmem:[#allocation7 + $0x510] sm:$0xff] }
 0x262   :  { %v5423_v4 = vcombine.low %v873_v55, %v877_v40 }
 0x263   :  { %4180 = vmatpush1.bf16.msra.mxu0 %v5367_v60  ;;  %v5424_v60 = vcombine.high %v873_v55, %v877_v40  ;;  %v922_v55 = vld [vmem:[#allocation7 + $0x698] sm:$0xff] }
 0x264   :  { %4344 = vmatpush1.bf16.msra.mxu1 %v5369_v61  ;;  %4181 = vmatprep.subr.bf16.mxu0 %v5376_v62  ;;  %v5426_v61 = vcombine.high %v874_v56, %v878_v58  ;;  %v881_v62 = vld [vmem:[#allocation7 + $0x550] sm:$0xff]  ;;  %v926_v40 = vld [vmem:[#allocation7 + $0x6b8] sm:$0xff] }
 0x265   :  { %4345 = vmatprep.subr.bf16.mxu1 %v5378_v1  ;;  %v885_v1 = vld [vmem:[#allocation7 + $0x570] sm:$0xff] }
 0x266   :  { %v5431_v33 = vcombine.low %v881_v62, %v885_v1 }
 0x267   :  { %4182 = vmatpush1.bf16.msra.mxu0 %v5375_v34  ;;  %v5432_v34 = vcombine.high %v881_v62, %v885_v1  ;;  %v930_v62 = vld [vmem:[#allocation7 + $0x6d8] sm:$0xff] }
 0x268   :  { %4346 = vmatpush1.bf16.msra.mxu1 %v5377_v7  ;;  %4183 = vmatprep.subr.bf16.mxu0 %v5384_v9  ;;  %v5434_v7 = vcombine.high %v882_v57, %v886_v3  ;;  %v889_v9 = vld [vmem:[#allocation7 + $0x590] sm:$0xff]  ;;  %v934_v1 = vld [vmem:[#allocation7 + $0x6f8] sm:$0xff]  ;;  %v5473_v3 = vcombine.low %v922_v55, %v926_v40 }
 0x269   :  { %4347 = vmatprep.subr.bf16.mxu1 %v5386_v10  ;;  %v893_v10 = vld [vmem:[#allocation7 + $0x5b0] sm:$0xff] }
 0x26b   :  { %4184 = vmatpush1.bf16.msra.mxu0 %v5383_v19  ;;  %v5440_v19 = vcombine.high %v889_v9, %v893_v10 }
 0x26c   :  { %4348 = vmatpush1.bf16.msra.mxu1 %v5385_v21  ;;  %4194 = vmatprep.subr.bf16.mxu0 %v5392_v22  ;;  %v5442_v21 = vcombine.high %v890_v12, %v894_v18  ;;  %v897_v22 = vld [vmem:[#allocation7 + $0x5d0] sm:$0xff]  ;;  %v5481_v18 = vcombine.low %v930_v62, %v934_v1 }
 0x26d   :  { %4358 = vmatprep.subr.bf16.mxu1 %v5394_v23  ;;  %v901_v23 = vld [vmem:[#allocation7 + $0x5f0] sm:$0xff] }
 0x26e   :  { %4186 = vmatmul.mubr.bf16.vlgmr.msra.gmra.mrb[12].mxu0 %v6378_v35  ;;  %v5448_v31 = vcombine.high %v897_v22, %v901_v23 }
 0x26f   :  { %4350 = vmatmul.mubr.bf16.vlgmr.msra.gmra.mrb[12].mxu1 %v6378_v35  ;;  %4195 = vmatpush1.bf16.msra.mxu0 %v5391_v28  ;;  %v5409_v35 = vcombine.low %v858_v41, %v862_v42  ;;  %v5439_v28 = vcombine.low %v889_v9, %v893_v10  ;;  %v5447_v41 = vcombine.low %v897_v22, %v901_v23  ;;  %v938_v9 = vld [vmem:[#allocation7 + $0x718] sm:$0xff] }
 0x270   :  { %4226 = vmatprep.mubr.bf16.mxu0 %v6384_v53  ;;  %4359 = vmatpush1.bf16.msra.mxu1 %v5393_v32  ;;  %v5450_v32 = vcombine.high %v898_v24, %v902_v27  ;;  %v5449_v42 = vcombine.low %v898_v24, %v902_v27  ;;  %v942_v10 = vld [vmem:[#allocation7 + $0x738] sm:$0xff] }
 0x271   :  { %4390 = vmatprep.mubr.bf16.mxu1 %v6384_v53  ;;  %4196 = vmatprep.subr.bf16.mxu0 %v5400_v36  ;;  %v5415_v53 = vcombine.low %v865_v47, %v869_v48  ;;  %v905_v36 = vld [vmem:[#allocation7 + $0x610] sm:$0xff]  ;;  %v914_v47 = vld [vmem:[#allocation7 + $0x658] sm:$0xff]  ;;  %v5489_v27 = vcombine.low %v938_v9, %v942_v10 }
 0x272   :  { %4360 = vmatprep.subr.bf16.mxu1 %v5402_v39  ;;  %v910_v39 = vld [vmem:[#allocation7 + $0x638] sm:$0xff]  ;;  %v5455_v52 = vcombine.low %v905_v36, %v909_v37 }
 0x273   :  { %4197 = vmatpush1.bf16.msra.mxu0 %v5399_v0  ;;  %v5456_v0 = vcombine.high %v905_v36, %v909_v37  ;;  %v918_v48 = vld [vmem:[#allocation7 + $0x678] sm:$0xff]  ;;  %v5457_v49 = vcombine.low %v906_v38, %v910_v39 }
 0x274   :  { %4361 = vmatpush1.bf16.msra.mxu1 %v5401_v44  ;;  %4198 = vmatprep.subr.bf16.mxu0 %v5408_v45  ;;  %v5458_v44 = vcombine.high %v906_v38, %v910_v39  ;;  %v913_v45 = vld [vmem:[#allocation7 + $0x650] sm:$0xff]  ;;  %v5465_v58 = vcombine.low %v914_v47, %v918_v48  ;;  %v946_v22 = vld [vmem:[#allocation7 + $0x758] sm:$0xff] }
 0x275   :  { %4362 = vmatprep.subr.bf16.mxu1 %v5410_v46  ;;  %v917_v46 = vld [vmem:[#allocation7 + $0x670] sm:$0xff]  ;;  %v950_v23 = vld [vmem:[#allocation7 + $0x778] sm:$0xff] }
 0x276   :  { %v5463_v56 = vcombine.low %v913_v45, %v917_v46  ;;  %v954_v36 = vld [vmem:[#allocation7 + $0x798] sm:$0xff]  ;;  %v5497_v39 = vcombine.low %v946_v22, %v950_v23 }
 0x277   :  { %4199 = vmatpush1.bf16.msra.mxu0 %v5407_v50  ;;  %v5464_v50 = vcombine.high %v913_v45, %v917_v46  ;;  %v958_v37 = vld [vmem:[#allocation7 + $0x7b8] sm:$0xff] }
 0x278   :  { %4363 = vmatpush1.bf16.msra.mxu1 %v5409_v35  ;;  %4200 = vmatprep.subr.bf16.mxu0 %v5416_v54  ;;  %v5466_v35 = vcombine.high %v914_v47, %v918_v48  ;;  %v921_v54 = vld [vmem:[#allocation7 + $0x690] sm:$0xff]  ;;  %v962_v45 = vld [vmem:[#allocation7 + $0x7d8] sm:$0xff]  ;;  %v5505_v48 = vcombine.low %v954_v36, %v958_v37 }
 0x279   :  { %4364 = vmatprep.subr.bf16.mxu1 %v5418_v15  ;;  %v925_v15 = vld [vmem:[#allocation7 + $0x6b0] sm:$0xff]  ;;  %v966_v46 = vld [vmem:[#allocation7 + $0x7f8] sm:$0xff] }
 0x27a   :  { %v5471_v57 = vcombine.low %v921_v54, %v925_v15 }
 0x27b   :  { %4201 = vmatpush1.bf16.msra.mxu0 %v5415_v53  ;;  %v5472_v53 = vcombine.high %v921_v54, %v925_v15  ;;  %v970_v54 = vld [vmem:[#allocation7 + $0x818] sm:$0xff] }
 0x27c   :  { %4365 = vmatpush1.bf16.msra.mxu1 %v5417_v59  ;;  %4202 = vmatprep.subr.bf16.mxu0 %v5424_v60  ;;  %v5474_v59 = vcombine.high %v922_v55, %v926_v40  ;;  %v929_v60 = vld [vmem:[#allocation7 + $0x6d0] sm:$0xff]  ;;  %v974_v15 = vld [vmem:[#allocation7 + $0x838] sm:$0xff]  ;;  %v5513_v40 = vcombine.low %v962_v45, %v966_v46 }
 0x27d   :  { %4366 = vmatprep.subr.bf16.mxu1 %v5426_v61  ;;  %v933_v61 = vld [vmem:[#allocation7 + $0x6f0] sm:$0xff] }
 0x27e   :  { %v5479_v12 = vcombine.low %v929_v60, %v933_v61 }
 0x27f   :  { %4203 = vmatpush1.bf16.msra.mxu0 %v5423_v4  ;;  %v5480_v4 = vcombine.high %v929_v60, %v933_v61  ;;  %v978_v61 = vld [vmem:[#allocation7 + $0x858] sm:$0xff] }
 0x280   :  { %4367 = vmatpush1.bf16.msra.mxu1 %v5425_v5  ;;  %4204 = vmatprep.subr.bf16.mxu0 %v5432_v34  ;;  %v5482_v5 = vcombine.high %v930_v62, %v934_v1  ;;  %v937_v34 = vld [vmem:[#allocation7 + $0x710] sm:$0xff]  ;;  %v982_v62 = vld [vmem:[#allocation7 + $0x878] sm:$0xff]  ;;  %v5521_v1 = vcombine.low %v970_v54, %v974_v15 }
 0x281   :  { %4368 = vmatprep.subr.bf16.mxu1 %v5434_v7  ;;  %v941_v7 = vld [vmem:[#allocation7 + $0x730] sm:$0xff] }
 0x282   :  { %v5487_v24 = vcombine.low %v937_v34, %v941_v7 }
 0x283   :  { %4205 = vmatpush1.bf16.msra.mxu0 %v5431_v33  ;;  %v5488_v33 = vcombine.high %v937_v34, %v941_v7  ;;  %v986_v34 = vld [vmem:[#allocation7 + $0x898] sm:$0xff] }
 0x284   :  { %4369 = vmatpush1.bf16.msra.mxu1 %v5433_v6  ;;  %4206 = vmatprep.subr.bf16.mxu0 %v5440_v19  ;;  %v5490_v6 = vcombine.high %v938_v9, %v942_v10  ;;  %v945_v19 = vld [vmem:[#allocation7 + $0x750] sm:$0xff]  ;;  %v990_v7 = vld [vmem:[#allocation7 + $0x8b8] sm:$0xff]  ;;  %v5529_v10 = vcombine.low %v978_v61, %v982_v62 }
 0x285   :  { %4370 = vmatprep.subr.bf16.mxu1 %v5442_v21  ;;  %v949_v21 = vld [vmem:[#allocation7 + $0x770] sm:$0xff] }
 0x286   :  { %v5495_v38 = vcombine.low %v945_v19, %v949_v21 }
 0x287   :  { %4207 = vmatpush1.bf16.msra.mxu0 %v5439_v28  ;;  %v5496_v28 = vcombine.high %v945_v19, %v949_v21  ;;  %v994_v19 = vld [vmem:[#allocation7 + $0x8d8] sm:$0xff] }
 0x288   :  { %4371 = vmatpush1.bf16.msra.mxu1 %v5441_v29  ;;  %4208 = vmatprep.subr.bf16.mxu0 %v5448_v31  ;;  %v5498_v29 = vcombine.high %v946_v22, %v950_v23  ;;  %v953_v31 = vld [vmem:[#allocation7 + $0x790] sm:$0xff]  ;;  %v998_v21 = vld [vmem:[#allocation7 + $0x8f8] sm:$0xff] }
 0x289   :  { %4372 = vmatprep.subr.bf16.mxu1 %v5450_v32  ;;  %v957_v32 = vld [vmem:[#allocation7 + $0x7b0] sm:$0xff] }
 0x28a   :  { %v5503_v47 = vcombine.low %v953_v31, %v957_v32 }
 0x28b   :  { %4209 = vmatpush1.bf16.msra.mxu0 %v5447_v41  ;;  %v5504_v41 = vcombine.high %v953_v31, %v957_v32  ;;  %v1006_v31 = vld [vmem:[#allocation7 + $0x938] sm:$0xff]  ;;  %v5545_v32 = vcombine.low %v994_v19, %v998_v21 }
 0x28c   :  { %4373 = vmatpush1.bf16.msra.mxu1 %v5449_v42  ;;  %4210 = vmatprep.subr.bf16.mxu0 %v5456_v0  ;;  %v5506_v42 = vcombine.high %v954_v36, %v958_v37  ;;  %v961_v0 = vld [vmem:[#allocation7 + $0x7d0] sm:$0xff] }
 0x28d   :  { %4374 = vmatprep.subr.bf16.mxu1 %v5458_v44  ;;  %v965_v44 = vld [vmem:[#allocation7 + $0x7f0] sm:$0xff] }
 0x28e   :  { %v5511_v55 = vcombine.low %v961_v0, %v965_v44 }
 0x28f   :  { %4211 = vmatpush1.bf16.msra.mxu0 %v5455_v52  ;;  %v5512_v52 = vcombine.high %v961_v0, %v965_v44 }
 0x290   :  { %4375 = vmatpush1.bf16.msra.mxu1 %v5457_v49  ;;  %4212 = vmatprep.subr.bf16.mxu0 %v5464_v50  ;;  %v5514_v49 = vcombine.high %v962_v45, %v966_v46  ;;  %v969_v50 = vld [vmem:[#allocation7 + $0x810] sm:$0xff] }
 0x291   :  { %4376 = vmatprep.subr.bf16.mxu1 %v5466_v35  ;;  %v973_v35 = vld [vmem:[#allocation7 + $0x830] sm:$0xff] }
 0x292   :  { %v5519_v60 = vcombine.low %v969_v50, %v973_v35 }
 0x293   :  { %4213 = vmatpush1.bf16.msra.mxu0 %v5463_v56  ;;  %v5520_v56 = vcombine.high %v969_v50, %v973_v35 }
 0x294   :  { %4377 = vmatpush1.bf16.msra.mxu1 %v5465_v58  ;;  %4214 = vmatprep.subr.bf16.mxu0 %v5472_v53  ;;  %v5522_v58 = vcombine.high %v970_v54, %v974_v15  ;;  %v977_v53 = vld [vmem:[#allocation7 + $0x850] sm:$0xff] }
 0x295   :  { %4378 = vmatprep.subr.bf16.mxu1 %v5474_v59  ;;  %v981_v59 = vld [vmem:[#allocation7 + $0x870] sm:$0xff] }
 0x296   :  { %v5527_v9 = vcombine.low %v977_v53, %v981_v59 }
 0x297   :  { %4215 = vmatpush1.bf16.msra.mxu0 %v5471_v57  ;;  %v5528_v57 = vcombine.high %v977_v53, %v981_v59 }
 0x298   :  { %4379 = vmatpush1.bf16.msra.mxu1 %v5473_v3  ;;  %4216 = vmatprep.subr.bf16.mxu0 %v5480_v4  ;;  %v985_v3 = vld [vmem:[#allocation7 + $0x890] sm:$0xff] }
 0x299   :  { %4380 = vmatprep.subr.bf16.mxu1 %v5482_v5  ;;  %v989_v4 = vld [vmem:[#allocation7 + $0x8b0] sm:$0xff]  ;;  %v5530_v5 = vcombine.high %v978_v61, %v982_v62 }
 0x29a   :  { %v5535_v22 = vcombine.low %v985_v3, %v989_v4  ;;  %v1033_v62 = vld [vmem:[#allocation7 + $0xa10] sm:$0xff] }
 0x29b   :  { %4217 = vmatpush1.bf16.msra.mxu0 %v5479_v12  ;;  %v5536_v12 = vcombine.high %v985_v3, %v989_v4  ;;  %v1038_v3 = vld [vmem:[#allocation7 + $0xa38] sm:$0xff] }
 0x29c   :  { %4381 = vmatpush1.bf16.msra.mxu1 %v5481_v18  ;;  %4218 = vmatprep.subr.bf16.mxu0 %v5488_v33  ;;  %v5538_v18 = vcombine.high %v986_v34, %v990_v7  ;;  %v993_v33 = vld [vmem:[#allocation7 + $0x8d0] sm:$0xff] }
 0x29d   :  { %4382 = vmatprep.subr.bf16.mxu1 %v5490_v6  ;;  %v997_v6 = vld [vmem:[#allocation7 + $0x8f0] sm:$0xff] }
 0x29e   :  { %v5544_v23 = vcombine.high %v993_v33, %v997_v6 }
 0x29f   :  { %4219 = vmatpush1.bf16.msra.mxu0 %v5487_v24  ;;  %v5546_v24 = vcombine.high %v994_v19, %v998_v21 }
 0x2a0   :  { %4383 = vmatpush1.bf16.msra.mxu1 %v5489_v27  ;;  %4220 = vmatprep.subr.bf16.mxu0 %v5496_v28  ;;  %v1001_v27 = vld [vmem:[#allocation7 + $0x910] sm:$0xff] }
 0x2a1   :  { %4384 = vmatprep.subr.bf16.mxu1 %v5498_v29  ;;  %v1005_v28 = vld [vmem:[#allocation7 + $0x930] sm:$0xff]  ;;  %v1002_v29 = vld [vmem:[#allocation7 + $0x918] sm:$0xff] }
 0x2a2   :  { %v5552_v36 = vcombine.high %v1001_v27, %v1005_v28  ;;  %v5554_v37 = vcombine.high %v1002_v29, %v1006_v31  ;;  %v5551_v0 = vcombine.low %v1001_v27, %v1005_v28  ;;  %v5553_v44 = vcombine.low %v1002_v29, %v1006_v31 }
 0x2a3   :  { %4221 = vmatpush1.bf16.msra.mxu0 %v5495_v38  ;;  %v1009_v38 = vld [vmem:[#allocation7 + $0x950] sm:$0xff] }
 0x2a4   :  { %4385 = vmatpush1.bf16.msra.mxu1 %v5497_v39  ;;  %4222 = vmatprep.subr.bf16.mxu0 %v5504_v41  ;;  %v1013_v39 = vld [vmem:[#allocation7 + $0x970] sm:$0xff]  ;;  %v1010_v41 = vld [vmem:[#allocation7 + $0x958] sm:$0xff] }
 0x2a5   :  { %4386 = vmatprep.subr.bf16.mxu1 %v5506_v42  ;;  %v1014_v42 = vld [vmem:[#allocation7 + $0x978] sm:$0xff]  ;;  %v5560_v45 = vcombine.high %v1009_v38, %v1013_v39  ;;  %v5559_v50 = vcombine.low %v1009_v38, %v1013_v39 }
 0x2a6   :  { %v5562_v46 = vcombine.high %v1010_v41, %v1014_v42  ;;  %v5561_v35 = vcombine.low %v1010_v41, %v1014_v42 }
 0x2a7   :  { %4223 = vmatpush1.bf16.msra.mxu0 %v5503_v47  ;;  %v1017_v47 = vld [vmem:[#allocation7 + $0x990] sm:$0xff] }
 0x2a8   :  { %4387 = vmatpush1.bf16.msra.mxu1 %v5505_v48  ;;  %4224 = vmatprep.subr.bf16.mxu0 %v5512_v52  ;;  %v1021_v48 = vld [vmem:[#allocation7 + $0x9b0] sm:$0xff]  ;;  %v1018_v52 = vld [vmem:[#allocation7 + $0x998] sm:$0xff] }
 0x2a9   :  { %4388 = vmatprep.subr.bf16.mxu1 %v5514_v49  ;;  %v1022_v49 = vld [vmem:[#allocation7 + $0x9b8] sm:$0xff]  ;;  %v5568_v54 = vcombine.high %v1017_v47, %v1021_v48  ;;  %v5567_v53 = vcombine.low %v1017_v47, %v1021_v48 }
 0x2aa   :  { %v5570_v15 = vcombine.high %v1018_v52, %v1022_v49  ;;  %v5569_v59 = vcombine.low %v1018_v52, %v1022_v49 }
 0x2ab   :  { %4225 = vmatpush1.bf16.msra.mxu0 %v5511_v55  ;;  %v1025_v55 = vld [vmem:[#allocation7 + $0x9d0] sm:$0xff] }
 0x2ac   :  { %4389 = vmatpush1.bf16.msra.mxu1 %v5513_v40  ;;  %4235 = vmatprep.subr.bf16.mxu0 %v5520_v56  ;;  %v1029_v40 = vld [vmem:[#allocation7 + $0x9f0] sm:$0xff]  ;;  %v1026_v56 = vld [vmem:[#allocation7 + $0x9d8] sm:$0xff] }
 0x2ad   :  { %4399 = vmatprep.subr.bf16.mxu1 %v5522_v58  ;;  %v1030_v58 = vld [vmem:[#allocation7 + $0x9f8] sm:$0xff]  ;;  %v5575_v4 = vcombine.low %v1025_v55, %v1029_v40 }
 0x2ae   :  { %4227 = vmatmul.mubr.bf16.vlgmr.msra.gmra.mrb[12].mxu0 %v6406_v17  ;;  %v5578_v61 = vcombine.high %v1026_v56, %v1030_v58 }
 0x2af   :  { %4391 = vmatmul.mubr.bf16.vlgmr.msra.gmra.mrb[12].mxu1 %v6406_v17  ;;  %4236 = vmatpush1.bf16.msra.mxu0 %v5519_v60  ;;  %v5537_v17 = vcombine.low %v986_v34, %v990_v7  ;;  %v5576_v60 = vcombine.high %v1025_v55, %v1029_v40 }
 0x2b0   :  { %4267 = vmatprep.mubr.bf16.mxu0 %v6408_v26  ;;  %4400 = vmatpush1.bf16.msra.mxu1 %v5521_v1  ;;  %v1037_v1 = vld [vmem:[#allocation7 + $0xa30] sm:$0xff] }
 0x2b1   :  { %4431 = vmatprep.mubr.bf16.mxu1 %v6408_v26  ;;  %4237 = vmatprep.subr.bf16.mxu0 %v5528_v57  ;;  %v5543_v26 = vcombine.low %v993_v33, %v997_v6  ;;  %v1034_v57 = vld [vmem:[#allocation7 + $0xa18] sm:$0xff]  ;;  %v5584_v34 = vcombine.high %v1033_v62, %v1037_v1  ;;  %v5583_v33 = vcombine.low %v1033_v62, %v1037_v1 }
 0x2b2   :  { %4401 = vmatprep.subr.bf16.mxu1 %v5530_v5  ;;  %v5577_v5 = vcombine.low %v1026_v56, %v1030_v58  ;;  %v5586_v7 = vcombine.high %v1034_v57, %v1038_v3  ;;  %v5585_v6 = vcombine.low %v1034_v57, %v1038_v3 }
 0x2b3   :  { %4238 = vmatpush1.bf16.msra.mxu0 %v5527_v9  ;;  %v1041_v9 = vld [vmem:[#allocation7 + $0xa50] sm:$0xff] }
 0x2b4   :  { %4402 = vmatpush1.bf16.msra.mxu1 %v5529_v10  ;;  %4239 = vmatprep.subr.bf16.mxu0 %v5536_v12  ;;  %v1045_v10 = vld [vmem:[#allocation7 + $0xa70] sm:$0xff]  ;;  %v1042_v12 = vld [vmem:[#allocation7 + $0xa58] sm:$0xff] }
 0x2b5   :  { %4403 = vmatprep.subr.bf16.mxu1 %v5538_v18  ;;  %v1046_v18 = vld [vmem:[#allocation7 + $0xa78] sm:$0xff]  ;;  %v5592_v19 = vcombine.high %v1041_v9, %v1045_v10  ;;  %v5591_v27 = vcombine.low %v1041_v9, %v1045_v10 }
 0x2b6   :  { %v5594_v21 = vcombine.high %v1042_v12, %v1046_v18  ;;  %v5593_v28 = vcombine.low %v1042_v12, %v1046_v18 }
 0x2b7   :  { %4240 = vmatpush1.bf16.msra.mxu0 %v5535_v22  ;;  %v1049_v22 = vld [vmem:[#allocation7 + $0xa90] sm:$0xff] }
 0x2b8   :  { %4404 = vmatpush1.bf16.msra.mxu1 %v5537_v17  ;;  %4241 = vmatprep.subr.bf16.mxu0 %v5544_v23  ;;  %v1053_v17 = vld [vmem:[#allocation7 + $0xab0] sm:$0xff]  ;;  %v1050_v23 = vld [vmem:[#allocation7 + $0xa98] sm:$0xff] }
 0x2b9   :  { %4405 = vmatprep.subr.bf16.mxu1 %v5546_v24  ;;  %v1054_v24 = vld [vmem:[#allocation7 + $0xab8] sm:$0xff]  ;;  %v5600_v29 = vcombine.high %v1049_v22, %v1053_v17  ;;  %v5599_v38 = vcombine.low %v1049_v22, %v1053_v17 }
 0x2ba   :  { %v5602_v31 = vcombine.high %v1050_v23, %v1054_v24  ;;  %v5601_v39 = vcombine.low %v1050_v23, %v1054_v24 }
 0x2bb   :  { %4242 = vmatpush1.bf16.msra.mxu0 %v5543_v26  ;;  %v1057_v26 = vld [vmem:[#allocation7 + $0xad0] sm:$0xff] }
 0x2bc   :  { %4406 = vmatpush1.bf16.msra.mxu1 %v5545_v32  ;;  %4243 = vmatprep.subr.bf16.mxu0 %v5552_v36  ;;  %v1061_v32 = vld [vmem:[#allocation7 + $0xaf0] sm:$0xff]  ;;  %v1058_v36 = vld [vmem:[#allocation7 + $0xad8] sm:$0xff] }
 0x2bd   :  { %4407 = vmatprep.subr.bf16.mxu1 %v5554_v37  ;;  %v1062_v37 = vld [vmem:[#allocation7 + $0xaf8] sm:$0xff]  ;;  %v5608_v41 = vcombine.high %v1057_v26, %v1061_v32  ;;  %v5607_v47 = vcombine.low %v1057_v26, %v1061_v32 }
 0x2be   :  { %v5610_v42 = vcombine.high %v1058_v36, %v1062_v37  ;;  %v5609_v48 = vcombine.low %v1058_v36, %v1062_v37  ;;  %v1110_v26 = vld [vmem:[#allocation7 + $0xc78] sm:$0xff]  ;;  %v1113_v37 = vld [vmem:[#allocation7 + $0xc90] sm:$0xff] }
 0x2bf   :  { %4244 = vmatpush1.bf16.msra.mxu0 %v5551_v0  ;;  %v1065_v0 = vld [vmem:[#allocation7 + $0xb10] sm:$0xff] }
 0x2c0   :  { %4408 = vmatpush1.bf16.msra.mxu1 %v5553_v44  ;;  %4245 = vmatprep.subr.bf16.mxu0 %v5560_v45  ;;  %v1069_v44 = vld [vmem:[#allocation7 + $0xb30] sm:$0xff]  ;;  %v1066_v45 = vld [vmem:[#allocation7 + $0xb18] sm:$0xff] }
 0x2c1   :  { %4409 = vmatprep.subr.bf16.mxu1 %v5562_v46  ;;  %v1070_v46 = vld [vmem:[#allocation7 + $0xb38] sm:$0xff]  ;;  %v5616_v52 = vcombine.high %v1065_v0, %v1069_v44  ;;  %v5615_v55 = vcombine.low %v1065_v0, %v1069_v44 }
 0x2c2   :  { %v5618_v49 = vcombine.high %v1066_v45, %v1070_v46  ;;  %v5617_v40 = vcombine.low %v1066_v45, %v1070_v46 }
 0x2c3   :  { %4246 = vmatpush1.bf16.msra.mxu0 %v5559_v50  ;;  %v1073_v50 = vld [vmem:[#allocation7 + $0xb50] sm:$0xff] }
 0x2c4   :  { %4410 = vmatpush1.bf16.msra.mxu1 %v5561_v35  ;;  %4247 = vmatprep.subr.bf16.mxu0 %v5568_v54  ;;  %v1077_v35 = vld [vmem:[#allocation7 + $0xb70] sm:$0xff]  ;;  %v1074_v54 = vld [vmem:[#allocation7 + $0xb58] sm:$0xff] }
 0x2c5   :  { %4411 = vmatprep.subr.bf16.mxu1 %v5570_v15  ;;  %v1078_v15 = vld [vmem:[#allocation7 + $0xb78] sm:$0xff]  ;;  %v5624_v56 = vcombine.high %v1073_v50, %v1077_v35  ;;  %v5623_v62 = vcombine.low %v1073_v50, %v1077_v35 }
 0x2c6   :  { %v5626_v58 = vcombine.high %v1074_v54, %v1078_v15  ;;  %v5625_v1 = vcombine.low %v1074_v54, %v1078_v15  ;;  %v1129_v15 = vld [vmem:[#allocation7 + $0xd10] sm:$0xff] }
 0x2c7   :  { %4248 = vmatpush1.bf16.msra.mxu0 %v5567_v53  ;;  %v1081_v53 = vld [vmem:[#allocation7 + $0xb90] sm:$0xff] }
 0x2c8   :  { %4412 = vmatpush1.bf16.msra.mxu1 %v5569_v59  ;;  %4249 = vmatprep.subr.bf16.mxu0 %v5576_v60  ;;  %v1085_v59 = vld [vmem:[#allocation7 + $0xbb0] sm:$0xff]  ;;  %v1082_v60 = vld [vmem:[#allocation7 + $0xb98] sm:$0xff] }
 0x2c9   :  { %4413 = vmatprep.subr.bf16.mxu1 %v5578_v61  ;;  %v1086_v61 = vld [vmem:[#allocation7 + $0xbb8] sm:$0xff]  ;;  %v5632_v57 = vcombine.high %v1081_v53, %v1085_v59  ;;  %v5631_v9 = vcombine.low %v1081_v53, %v1085_v59 }
 0x2ca   :  { %v5634_v3 = vcombine.high %v1082_v60, %v1086_v61  ;;  %v5633_v10 = vcombine.low %v1082_v60, %v1086_v61  ;;  %v1137_v60 = vld [vmem:[#allocation7 + $0xd50] sm:$0xff] }
 0x2cb   :  { %4250 = vmatpush1.bf16.msra.mxu0 %v5575_v4  ;;  %v1089_v4 = vld [vmem:[#allocation7 + $0xbd0] sm:$0xff] }
 0x2cc   :  { %4414 = vmatpush1.bf16.msra.mxu1 %v5577_v5  ;;  %4251 = vmatprep.subr.bf16.mxu0 %v5584_v34  ;;  %v1093_v5 = vld [vmem:[#allocation7 + $0xbf0] sm:$0xff]  ;;  %v1090_v34 = vld [vmem:[#allocation7 + $0xbd8] sm:$0xff] }
 0x2cd   :  { %4415 = vmatprep.subr.bf16.mxu1 %v5586_v7  ;;  %v1094_v7 = vld [vmem:[#allocation7 + $0xbf8] sm:$0xff]  ;;  %v5640_v12 = vcombine.high %v1089_v4, %v1093_v5  ;;  %v5639_v22 = vcombine.low %v1089_v4, %v1093_v5  ;;  %v1141_v61 = vld [vmem:[#allocation7 + $0xd70] sm:$0xff] }
 0x2ce   :  { %v5642_v18 = vcombine.high %v1090_v34, %v1094_v7  ;;  %v5641_v17 = vcombine.low %v1090_v34, %v1094_v7  ;;  %v5688_v4 = vcombine.high %v1137_v60, %v1141_v61  ;;  %v1145_v34 = vld [vmem:[#allocation7 + $0xd90] sm:$0xff] }
 0x2cf   :  { %4252 = vmatpush1.bf16.msra.mxu0 %v5583_v33  ;;  %v1097_v33 = vld [vmem:[#allocation7 + $0xc10] sm:$0xff] }
 0x2d0   :  { %4416 = vmatpush1.bf16.msra.mxu1 %v5585_v6  ;;  %4253 = vmatprep.subr.bf16.mxu0 %v5592_v19  ;;  %v1101_v6 = vld [vmem:[#allocation7 + $0xc30] sm:$0xff]  ;;  %v1098_v19 = vld [vmem:[#allocation7 + $0xc18] sm:$0xff] }
 0x2d1   :  { %4417 = vmatprep.subr.bf16.mxu1 %v5594_v21  ;;  %v1102_v21 = vld [vmem:[#allocation7 + $0xc38] sm:$0xff]  ;;  %v5648_v23 = vcombine.high %v1097_v33, %v1101_v6  ;;  %v1149_v7 = vld [vmem:[#allocation7 + $0xdb0] sm:$0xff] }
 0x2d2   :  { %v5650_v24 = vcombine.high %v1098_v19, %v1102_v21  ;;  %v5649_v32 = vcombine.low %v1098_v19, %v1102_v21 }
 0x2d3   :  { %4254 = vmatpush1.bf16.msra.mxu0 %v5591_v27  ;;  %v1105_v27 = vld [vmem:[#allocation7 + $0xc50] sm:$0xff] }
 0x2d4   :  { %4418 = vmatpush1.bf16.msra.mxu1 %v5593_v28  ;;  %4255 = vmatprep.subr.bf16.mxu0 %v5600_v29  ;;  %v1109_v28 = vld [vmem:[#allocation7 + $0xc70] sm:$0xff]  ;;  %v5647_v29 = vcombine.low %v1097_v33, %v1101_v6  ;;  %v5696_v33 = vcombine.high %v1145_v34, %v1149_v7 }
 0x2d5   :  { %4419 = vmatprep.subr.bf16.mxu1 %v5602_v31  ;;  %v1106_v31 = vld [vmem:[#allocation7 + $0xc58] sm:$0xff]  ;;  %v5656_v36 = vcombine.high %v1105_v27, %v1109_v28  ;;  %v5655_v0 = vcombine.low %v1105_v27, %v1109_v28 }
 0x2d6   :  { %v5657_v44 = vcombine.low %v1106_v31, %v1110_v26  ;;  %v1154_v27 = vld [vmem:[#allocation7 + $0xdd8] sm:$0xff] }
 0x2d7   :  { %4256 = vmatpush1.bf16.msra.mxu0 %v5599_v38  ;;  %v1117_v38 = vld [vmem:[#allocation7 + $0xcb0] sm:$0xff]  ;;  %v1158_v28 = vld [vmem:[#allocation7 + $0xdf8] sm:$0xff] }
 0x2d8   :  { %4420 = vmatpush1.bf16.msra.mxu1 %v5601_v39  ;;  %4257 = vmatprep.subr.bf16.mxu0 %v5608_v41  ;;  %v5658_v39 = vcombine.high %v1106_v31, %v1110_v26  ;;  %v1114_v41 = vld [vmem:[#allocation7 + $0xc98] sm:$0xff]  ;;  %v5664_v45 = vcombine.high %v1113_v37, %v1117_v38  ;;  %v5663_v50 = vcombine.low %v1113_v37, %v1117_v38 }
 0x2d9   :  { %4421 = vmatprep.subr.bf16.mxu1 %v5610_v42  ;;  %v1118_v42 = vld [vmem:[#allocation7 + $0xcb8] sm:$0xff]  ;;  %v5695_v26 = vcombine.low %v1145_v34, %v1149_v7 }
 0x2da   :  { %v5666_v46 = vcombine.high %v1114_v41, %v1118_v42 }
 0x2db   :  { %4258 = vmatpush1.bf16.msra.mxu0 %v5607_v47  ;;  %v1121_v47 = vld [vmem:[#allocation7 + $0xcd0] sm:$0xff] }
 0x2dc   :  { %4422 = vmatpush1.bf16.msra.mxu1 %v5609_v48  ;;  %4259 = vmatprep.subr.bf16.mxu0 %v5616_v52  ;;  %v1125_v48 = vld [vmem:[#allocation7 + $0xcf0] sm:$0xff]  ;;  %v1122_v52 = vld [vmem:[#allocation7 + $0xcd8] sm:$0xff] }
 0x2dd   :  { %4423 = vmatprep.subr.bf16.mxu1 %v5618_v49  ;;  %v1126_v49 = vld [vmem:[#allocation7 + $0xcf8] sm:$0xff]  ;;  %v5672_v35 = vcombine.high %v1121_v47, %v1125_v48 }
 0x2de   :  { %v5674_v54 = vcombine.high %v1122_v52, %v1126_v49 }
 0x2df   :  { %4260 = vmatpush1.bf16.msra.mxu0 %v5615_v55  ;;  %v1133_v55 = vld [vmem:[#allocation7 + $0xd30] sm:$0xff] }
 0x2e0   :  { %4424 = vmatpush1.bf16.msra.mxu1 %v5617_v40  ;;  %4261 = vmatprep.subr.bf16.mxu0 %v5624_v56  ;;  %v1130_v40 = vld [vmem:[#allocation7 + $0xd18] sm:$0xff]  ;;  %v5680_v53 = vcombine.high %v1129_v15, %v1133_v55 }
 0x2e1   :  { %4425 = vmatprep.subr.bf16.mxu1 %v5626_v58  ;;  %v1134_v56 = vld [vmem:[#allocation7 + $0xd38] sm:$0xff]  ;;  %v5673_v58 = vcombine.low %v1122_v52, %v1126_v49  ;;  %v1169_v52 = vld [vmem:[#allocation7 + $0xe50] sm:$0xff] }
 0x2e2   :  { %v5682_v59 = vcombine.high %v1130_v40, %v1134_v56  ;;  %v1173_v49 = vld [vmem:[#allocation7 + $0xe70] sm:$0xff] }
 0x2e3   :  { %4262 = vmatpush1.bf16.msra.mxu0 %v5623_v62  ;;  %v1138_v62 = vld [vmem:[#allocation7 + $0xd58] sm:$0xff] }
 0x2e4   :  { %4426 = vmatpush1.bf16.msra.mxu1 %v5625_v1  ;;  %4263 = vmatprep.subr.bf16.mxu0 %v5632_v57  ;;  %v1142_v1 = vld [vmem:[#allocation7 + $0xd78] sm:$0xff]  ;;  %v5679_v57 = vcombine.low %v1129_v15, %v1133_v55  ;;  %v5720_v15 = vcombine.high %v1169_v52, %v1173_v49 }
 0x2e5   :  { %4427 = vmatprep.subr.bf16.mxu1 %v5634_v3  ;;  %v5681_v3 = vcombine.low %v1130_v40, %v1134_v56  ;;  %v5690_v5 = vcombine.high %v1138_v62, %v1142_v1  ;;  %v1177_v40 = vld [vmem:[#allocation7 + $0xe90] sm:$0xff] }
 0x2e6   :  { %v1181_v56 = vld [vmem:[#allocation7 + $0xeb0] sm:$0xff] }
 0x2e7   :  { %4264 = vmatpush1.bf16.msra.mxu0 %v5631_v9  ;;  %v1146_v9 = vld [vmem:[#allocation7 + $0xd98] sm:$0xff] }
 0x2e8   :  { %4428 = vmatpush1.bf16.msra.mxu1 %v5633_v10  ;;  %4265 = vmatprep.subr.bf16.mxu0 %v5640_v12  ;;  %v1150_v10 = vld [vmem:[#allocation7 + $0xdb8] sm:$0xff]  ;;  %v5687_v12 = vcombine.low %v1137_v60, %v1141_v61  ;;  %v5728_v60 = vcombine.high %v1177_v40, %v1181_v56 }
 0x2e9   :  { %4429 = vmatprep.subr.bf16.mxu1 %v5642_v18  ;;  %v5689_v18 = vcombine.low %v1138_v62, %v1142_v1  ;;  %v5698_v21 = vcombine.high %v1146_v9, %v1150_v10  ;;  %v5697_v37 = vcombine.low %v1146_v9, %v1150_v10  ;;  %v1185_v62 = vld [vmem:[#allocation7 + $0xed0] sm:$0xff] }
 0x2ea   :  { %v1189_v1 = vld [vmem:[#allocation7 + $0xef0] sm:$0xff] }
 0x2eb   :  { %4266 = vmatpush1.bf16.msra.mxu0 %v5639_v22  ;;  %v1153_v22 = vld [vmem:[#allocation7 + $0xdd0] sm:$0xff]  ;;  %v5736_v34 = vcombine.high %v1185_v62, %v1189_v1 }
 0x2ec   :  { %4430 = vmatpush1.bf16.msra.mxu1 %v5641_v17  ;;  %4276 = vmatprep.subr.bf16.mxu0 %v5648_v23  ;;  %v1157_v17 = vld [vmem:[#allocation7 + $0xdf0] sm:$0xff] }
 0x2ed   :  { %4440 = vmatprep.subr.bf16.mxu1 %v5650_v24  ;;  %v5704_v38 = vcombine.high %v1153_v22, %v1157_v17  ;;  %v1193_v9 = vld [vmem:[#allocation7 + $0xf10] sm:$0xff] }
 0x2ee   :  { %4268 = vmatmul.mubr.bf16.vlgmr.msra.gmra.mrb[12].mxu0 %v6424_v63  ;;  %v1197_v10 = vld [vmem:[#allocation7 + $0xf30] sm:$0xff] }
 0x2ef   :  { %4432 = vmatmul.mubr.bf16.vlgmr.msra.gmra.mrb[12].mxu1 %v6424_v63  ;;  %4277 = vmatpush1.bf16.msra.mxu0 %v5647_v29  ;;  %v5665_v63 = vcombine.low %v1114_v41, %v1118_v42  ;;  %v1161_v41 = vld [vmem:[#allocation7 + $0xe10] sm:$0xff] }
 0x2f0   :  { %4308 = vmatprep.mubr.bf16.mxu0 %v6426_v8  ;;  %4441 = vmatpush1.bf16.msra.mxu1 %v5649_v32  ;;  %v1165_v42 = vld [vmem:[#allocation7 + $0xe30] sm:$0xff] }
 0x2f1   :  { %4472 = vmatprep.mubr.bf16.mxu1 %v6426_v8  ;;  %4278 = vmatprep.subr.bf16.mxu0 %v5656_v36  ;;  %v5671_v8 = vcombine.low %v1121_v47, %v1125_v48  ;;  %v5712_v47 = vcombine.high %v1161_v41, %v1165_v42 }
 0x2f2   :  { %4442 = vmatprep.subr.bf16.mxu1 %v5658_v39  ;;  %v5706_v39 = vcombine.high %v1154_v27, %v1158_v28 }
 0x2f3   :  { %4279 = vmatpush1.bf16.msra.mxu0 %v5655_v0  ;;  %v1162_v0 = vld [vmem:[#allocation7 + $0xe18] sm:$0xff] }
 0x2f4   :  { %4443 = vmatpush1.bf16.msra.mxu1 %v5657_v44  ;;  %4280 = vmatprep.subr.bf16.mxu0 %v5664_v45  ;;  %v1166_v44 = vld [vmem:[#allocation7 + $0xe38] sm:$0xff]  ;;  %v5703_v45 = vcombine.low %v1153_v22, %v1157_v17  ;;  %v5744_v22 = vcombine.high %v1193_v9, %v1197_v10 }
 0x2f5   :  { %4444 = vmatprep.subr.bf16.mxu1 %v5666_v46  ;;  %v5705_v46 = vcombine.low %v1154_v27, %v1158_v28  ;;  %v5714_v48 = vcombine.high %v1162_v0, %v1166_v44  ;;  %v1201_v27 = vld [vmem:[#allocation7 + $0xf50] sm:$0xff] }
 0x2f6   :  { %v1205_v28 = vld [vmem:[#allocation7 + $0xf70] sm:$0xff] }
 0x2f7   :  { %4281 = vmatpush1.bf16.msra.mxu0 %v5663_v50  ;;  %v1170_v50 = vld [vmem:[#allocation7 + $0xe58] sm:$0xff] }
 0x2f8   :  { %4445 = vmatpush1.bf16.msra.mxu1 %v5665_v63  ;;  %4282 = vmatprep.subr.bf16.mxu0 %v5672_v35  ;;  %v1174_v63 = vld [vmem:[#allocation7 + $0xe78] sm:$0xff]  ;;  %v5711_v35 = vcombine.low %v1161_v41, %v1165_v42 }
 0x2f9   :  { %4446 = vmatprep.subr.bf16.mxu1 %v5674_v54  ;;  %v5713_v54 = vcombine.low %v1162_v0, %v1166_v44  ;;  %v5722_v55 = vcombine.high %v1170_v50, %v1174_v63  ;;  %v1210_v41 = vld [vmem:[#allocation7 + $0xf98] sm:$0xff]  ;;  %v6462_v0 = vld [vmem:[#allocation8] sm:$0xff]  ;;  %v5751_v44 = vcombine.low %v1201_v27, %v1205_v28 }
 0x2fa   :  { %v1214_v42 = vld [vmem:[#allocation7 + $0xfb8] sm:$0xff] }
 0x2fb   :  { %4283 = vmatpush1.bf16.msra.mxu0 %v5671_v8  ;;  %v1178_v8 = vld [vmem:[#allocation7 + $0xe98] sm:$0xff] }
 0x2fc   :  { %4447 = vmatpush1.bf16.msra.mxu1 %v5673_v58  ;;  %4284 = vmatprep.subr.bf16.mxu0 %v5680_v53  ;;  %v1182_v58 = vld [vmem:[#allocation7 + $0xeb8] sm:$0xff]  ;;  %v5719_v53 = vcombine.low %v1169_v52, %v1173_v49  ;;  %v1221_v52 = vld [vmem:[#allocation7 + $0xff0] sm:$0xff]  ;;  %v1232_v49 = vrot.slane %v6462_v0, %v177_v16 }
 0x2fd   :  { %4448 = vmatprep.subr.bf16.mxu1 %v5682_v59  ;;  %v5721_v59 = vcombine.low %v1170_v50, %v1174_v63  ;;  %v5730_v61 = vcombine.high %v1178_v8, %v1182_v58  ;;  %v1218_v50 = vld [vmem:[#allocation7 + $0xfd8] sm:$0xff] }
 0x2fe   :  { %v1222_v63 = vld [vmem:[#allocation7 + $0xff8] sm:$0xff] }
 0x2ff   :  { %4285 = vmatpush1.bf16.msra.mxu0 %v5679_v57  ;;  %v1186_v57 = vld [vmem:[#allocation7 + $0xed8] sm:$0xff] }
 0x300   :  { %4449 = vmatpush1.bf16.msra.mxu1 %v5681_v3  ;;  %4286 = vmatprep.subr.bf16.mxu0 %v5688_v4  ;;  %v1190_v3 = vld [vmem:[#allocation7 + $0xef8] sm:$0xff]  ;;  %v5727_v4 = vcombine.low %v1177_v40, %v1181_v56  ;;  %v5770_v40 = vcombine.high %v1218_v50, %v1222_v63 }
 0x301   :  { %v6454_v6 = vpop.f32.mrb[8].mxu0  ;;  %v6456_v19 = vpop.f32.mrb[8].mxu1  ;;  %4450 = vmatprep.subr.bf16.mxu1 %v5690_v5  ;;  %v5729_v5 = vcombine.low %v1178_v8, %v1182_v58  ;;  %v5738_v7 = vcombine.high %v1186_v57, %v1190_v3  ;;  %v5769_v58 = vcombine.low %v1218_v50, %v1222_v63  ;;  %v6027_v50 = vld [vmem:[#allocation10 + $0x180] sm:$0xff]   ;;  %v6028_v63 = vld [vmem:[#allocation10 + $0x148] sm:$0xff]  }
 0x302   :  { %v6458_v23 = vpop.f32.mrb[9].mxu0  ;;  %v6460_v24 = vpop.f32.mrb[9].mxu1 }
 0x303   :  { %v3986_v29 = vpop.f32.mrb[10].mxu0  ;;  %v4150_v31 = vpop.f32.mrb[10].mxu1  ;;  %4287 = vmatpush1.bf16.msra.mxu0 %v5687_v12  ;;  %v1194_v12 = vld [vmem:[#allocation7 + $0xf18] sm:$0xff]  ;;  %v5925_v56 = vadd.f32 %v6458_v23, %v1232_v49 }
 0x304   :  { %4451 = vmatpush1.bf16.msra.mxu1 %v5689_v18  ;;  %v3987_v32 = vpop.f32.mrb[11].mxu0  ;;  %v4151_v36 = vpop.f32.mrb[11].mxu1  ;;  %4288 = vmatprep.subr.bf16.mxu0 %v5696_v33  ;;  %v1198_v18 = vld [vmem:[#allocation7 + $0xf38] sm:$0xff]  ;;  %v5735_v33 = vcombine.low %v1185_v62, %v1189_v1  ;;  %v5995_v62 = vld [vmem:[#allocation10 + $0x80] sm:$0xff]   ;;  %v5996_v1 = vld [vmem:[#allocation10 + $0x48] sm:$0xff]  }
 0x305   :  { %4452 = vmatprep.subr.bf16.mxu1 %v5698_v21  ;;  %v5737_v21 = vcombine.low %v1186_v57, %v1190_v3  ;;  %v5746_v17 = vcombine.high %v1194_v12, %v1198_v18  ;;  %v1202_v29 = vld [vmem:[#allocation7 + $0xf58] sm:$0xff]  ;;  %v5745_v32 = vcombine.low %v1194_v12, %v1198_v18  ;;  %v5752_v36 = vcombine.high %v1201_v27, %v1205_v28  ;;  %v5998_v3 = vld [vmem:[#allocation10 + $0x8] sm:$0xff]   ;;  %v6005_v12 = vld [vmem:[#allocation10 + $0xd8] sm:$0xff]  }
 0x306   :  { %v1206_v31 = vld [vmem:[#allocation7 + $0xf78] sm:$0xff]  ;;  %v6007_v18 = vld [vmem:[#allocation10 + $0x98] sm:$0xff]   ;;  %v6012_v27 = vld [vmem:[#allocation10 + $0x68] sm:$0xff]  }
 0x307   :  { %4289 = vmatpush1.bf16.msra.mxu0 %v5695_v26  ;;  %v5743_v26 = vcombine.low %v1193_v9, %v1197_v10  ;;  %v6003_v9 = vld [vmem:[#allocation10 + $0x90] sm:$0xff]   ;;  %v6004_v10 = vld [vmem:[#allocation10 + $0x58] sm:$0xff]   ;;  %v6013_v28 = vld [vmem:[#allocation10 + $0xe8] sm:$0xff]  }
 0x308   :  { %4453 = vmatpush1.bf16.msra.mxu1 %v5697_v37  ;;  %4290 = vmatprep.subr.bf16.mxu0 %v5704_v38  ;;  %v5754_v37 = vcombine.high %v1202_v29, %v1206_v31  ;;  %v1209_v38 = vld [vmem:[#allocation7 + $0xf90] sm:$0xff] }
 0x309   :  { %4454 = vmatprep.subr.bf16.mxu1 %v5706_v39  ;;  %v1213_v39 = vld [vmem:[#allocation7 + $0xfb0] sm:$0xff] }
 0x30b   :  { %4291 = vmatpush1.bf16.msra.mxu0 %v5703_v45  ;;  %v5753_v45 = vcombine.low %v1202_v29, %v1206_v31  ;;  %v6014_v29 = vld [vmem:[#allocation10 + $0x28] sm:$0xff]   ;;  %v1228_v31 = vrot.slane %v6462_v0, %v173_v14 }
 0x30c   :  { %4455 = vmatpush1.bf16.msra.mxu1 %v5705_v46  ;;  %4292 = vmatprep.subr.bf16.mxu0 %v5712_v47  ;;  %v5760_v46 = vcombine.high %v1209_v38, %v1213_v39  ;;  %v5762_v47 = vcombine.high %v1210_v41, %v1214_v42 }
 0x30d   :  { %4456 = vmatprep.subr.bf16.mxu1 %v5714_v48  ;;  %v1217_v48 = vld [vmem:[#allocation7 + $0xfd0] sm:$0xff] }
 0x30e   :  { %v5767_v16 = vcombine.low %v1217_v48, %v1221_v52 }
 0x30f   :  { %4293 = vmatpush1.bf16.msra.mxu0 %v5711_v35  ;;  %v1240_v35 = vrot.slane %v6462_v0, %v185_v20  ;;  %v5993_v20 = vld [vmem:[#allocation10 + $0xc0] sm:$0xff]  }
 0x310   :  { %4457 = vmatpush1.bf16.msra.mxu1 %v5713_v54  ;;  %4294 = vmatprep.subr.bf16.mxu0 %v5720_v15  ;;  %v5759_v54 = vcombine.low %v1209_v38, %v1213_v39  ;;  %v5761_v15 = vcombine.low %v1210_v41, %v1214_v42  ;;  %v6018_v38 = vld [vmem:[#allocation10 + $0x30] sm:$0xff]   ;;  %v5924_v39 = vadd.f32 %v6454_v6, %v1228_v31  ;;  %v6020_v42 = vld [vmem:[#allocation10 + $0x78] sm:$0xff]   ;;  %v6026_v6 = vld [vmem:[#allocation10 + $0x100] sm:$0xff]  }
 0x311   :  { %4458 = vmatprep.subr.bf16.mxu1 %v5722_v55  ;;  %v5768_v55 = vcombine.high %v1217_v48, %v1221_v52  ;;  %v5927_v8 = vadd.f32 %v6460_v24, %v1240_v35  ;;  %v5997_v24 = vld [vmem:[#allocation10 + $0xc8] sm:$0xff]   ;;  %v6019_v41 = vld [vmem:[#allocation10 + $0xb0] sm:$0xff]   ;;  %v6025_v52 = vld [vmem:[#allocation10 + $0x1c0] sm:$0xff]  }
 0x312   :  { %v6029_v35 = vld [vmem:[#allocation10 + $0x1c8] sm:$0xff]  }
 0x313   :  { %4295 = vmatpush1.bf16.msra.mxu0 %v5719_v53  ;;  %v5992_v53 = vld [vmem:[#allocation10 + $0x40] sm:$0xff]  }
 0x314   :  { %4459 = vmatpush1.bf16.msra.mxu1 %v5721_v59  ;;  %4296 = vmatprep.subr.bf16.mxu0 %v5728_v60  ;;  %v4482_v59 = vmax.f32 %v5925_v56, 0.0  ;;  %v4484_v60 = vmax.f32 %v5927_v8, 0.0  ;;  %v6034_v56 = vld [vmem:[#allocation10 + $0x110] sm:$0xff]  }
 0x315   :  { %4460 = vmatprep.subr.bf16.mxu1 %v5730_v61  ;;  %v5994_v61 = vld [vmem:[#allocation10] sm:$0xff]   ;;  %v6035_v8 = vld [vmem:[#allocation10 + $0x190] sm:$0xff]  }
 0x316   :  { %v4490_v23 = vpack.c.bf16 %v4482_v59, %v4482_v59  ;;  %v4492_v57 = vpack.c.bf16 %v4484_v60, %v4484_v60  ;;  %v6040_v59 = vld [vmem:[#allocation10 + $0x160] sm:$0xff]  }
 0x317   :  { %4297 = vmatpush1.bf16.msra.mxu0 %v5727_v4  ;;  %v5999_v4 = vld [vmem:[#allocation10 + $0x88] sm:$0xff]   ;;  %v6041_v60 = vld [vmem:[#allocation10 + $0x1e0] sm:$0xff]  }
 0x318   :  { %4461 = vmatpush1.bf16.msra.mxu1 %v5729_v5  ;;  %4298 = vmatprep.subr.bf16.mxu0 %v5736_v34  ;;  %v6000_v5 = vld [vmem:[#allocation10 + $0x50] sm:$0xff]  }
 0x319   :  { %4462 = vmatprep.subr.bf16.mxu1 %v5738_v7  ;;  %v6001_v34 = vld [vmem:[#allocation10 + $0xd0] sm:$0xff]  }
 0x31a   :  { %v6002_v7 = vld [vmem:[#allocation10 + $0x10] sm:$0xff]  }
 0x31b   :  { %4299 = vmatpush1.bf16.msra.mxu0 %v5735_v33  ;;  %v6008_v33 = vld [vmem:[#allocation10 + $0x60] sm:$0xff]  }
 0x31c   :  { %4463 = vmatpush1.bf16.msra.mxu1 %v5737_v21  ;;  %4300 = vmatprep.subr.bf16.mxu0 %v5744_v22  ;;  %v6009_v21 = vld [vmem:[#allocation10 + $0xe0] sm:$0xff]  }
 0x31d   :  { %4464 = vmatprep.subr.bf16.mxu1 %v5746_v17  ;;  %v6010_v22 = vld [vmem:[#allocation10 + $0x20] sm:$0xff]  }
 0x31e   :  { %v6011_v17 = vld [vmem:[#allocation10 + $0xa0] sm:$0xff]  }
 0x31f   :  { %4301 = vmatpush1.bf16.msra.mxu0 %v5743_v26  ;;  %v6015_v26 = vld [vmem:[#allocation10 + $0xa8] sm:$0xff]  }
 0x320   :  { %4465 = vmatpush1.bf16.msra.mxu1 %v5745_v32  ;;  %4302 = vmatprep.subr.bf16.mxu0 %v5752_v36  ;;  %v6016_v32 = vld [vmem:[#allocation10 + $0x70] sm:$0xff]   ;;  %v1236_v36 = vrot.slane %v6462_v0, %v181_v30  ;;  %v6023_v30 = vld [vmem:[#allocation10 + $0xb8] sm:$0xff]  }
 0x321   :  { %4466 = vmatprep.subr.bf16.mxu1 %v5754_v37  ;;  %v6017_v37 = vld [vmem:[#allocation10 + $0xf0] sm:$0xff]  }
 0x322   :  { %v5926_v14 = vadd.f32 %v6456_v19, %v1236_v36 }
 0x323   :  { %4303 = vmatpush1.bf16.msra.mxu0 %v5751_v44  ;;  %v6021_v44 = vld [vmem:[#allocation10 + $0xf8] sm:$0xff]  }
 0x324   :  { %4467 = vmatpush1.bf16.msra.mxu1 %v5753_v45  ;;  %4304 = vmatprep.subr.bf16.mxu0 %v5760_v46  ;;  %v6022_v45 = vld [vmem:[#allocation10 + $0x38] sm:$0xff]   ;;  %v4481_v46 = vmax.f32 %v5924_v39, 0.0  ;;  %v4483_v48 = vmax.f32 %v5926_v14, 0.0 }
 0x325   :  { %4468 = vmatprep.subr.bf16.mxu1 %v5762_v47  ;;  %v6024_v47 = vld [vmem:[#allocation10 + $0x140] sm:$0xff]  }
 0x326   :  { %v4489_v49 = vpack.c.bf16 %v4481_v46, %v4481_v46  ;;  %v4491_v19 = vpack.c.bf16 %v4483_v48, %v4483_v48 }
 0x327   :  { %4305 = vmatpush1.bf16.msra.mxu0 %v5759_v54  ;;  %v6030_v54 = vld [vmem:[#allocation10 + $0x108] sm:$0xff]  }
 0x328   :  { %4469 = vmatpush1.bf16.msra.mxu1 %v5761_v15  ;;  %4306 = vmatprep.subr.bf16.mxu0 %v5768_v55  ;;  %v6031_v15 = vld [vmem:[#allocation10 + $0x188] sm:$0xff]   ;;  %v6032_v55 = vld [vmem:[#allocation10 + $0x150] sm:$0xff]  }
 0x329   :  { %4470 = vmatprep.subr.bf16.mxu1 %v5770_v40  ;;  %v6033_v40 = vld [vmem:[#allocation10 + $0x1d0] sm:$0xff]  }
 0x32b   :  { %4307 = vmatpush1.bf16.msra.mxu0 %v5767_v16  ;;  %v6036_v16 = vld [vmem:[#allocation10 + $0x158] sm:$0xff]  }
 0x32c   :  { %4471 = vmatpush1.bf16.msra.mxu1 %v5769_v58  ;;  %5836 = vmatprep.subr.bf16.mxu0 %v5992_v53  ;;  %v6037_v58 = vld [vmem:[#allocation10 + $0x1d8] sm:$0xff]  }
 0x32d   :  { %5858 = vmatprep.subr.bf16.mxu1 %v5993_v20  ;;  %v6038_v53 = vld [vmem:[#allocation10 + $0x118] sm:$0xff]  }
 0x32e   :  { %4309 = vmatmul.mubr.bf16.vlgmr.msra.gmra.mrb[12].mxu0 %v6436_v51  ;;  %v6039_v20 = vld [vmem:[#allocation10 + $0x198] sm:$0xff]  }
 0x32f   :  { %4473 = vmatmul.mubr.bf16.vlgmr.msra.gmra.mrb[12].mxu1 %v6436_v51  ;;  %5837 = vmatpush3.bf16.msra.mxu0 %v5994_v61  ;;  %v6006_v51 = vld [vmem:[#allocation10 + $0x18] sm:$0xff]   ;;  %v6042_v61 = vld [vmem:[#allocation10 + $0x120] sm:$0xff]  }
 0x330   :  { %5048 = vmatprep.mubr.bf16.mxu0 %v4490_v23  ;;  %5859 = vmatpush3.bf16.msra.mxu1 %v5995_v62  ;;  %v6043_v62 = vld [vmem:[#allocation10 + $0x1a0] sm:$0xff]   ;;  %v6045_v23 = vld [vmem:[#allocation10 + $0x1e8] sm:$0xff]  }
 0x331   :  { %5088 = vmatprep.mubr.bf16.mxu1 %v4492_v57  ;;  %5838 = vmatprep.subr.bf16.mxu0 %v5996_v1  ;;  %v6044_v1 = vld [vmem:[#allocation10 + $0x168] sm:$0xff]  }
 0x332   :  { %5860 = vmatprep.subr.bf16.mxu1 %v5997_v24  ;;  %v6046_v24 = vld [vmem:[#allocation10 + $0x128] sm:$0xff]  }
 0x333   :  { %5839 = vmatpush3.bf16.msra.mxu0 %v5998_v3  ;;  %v6047_v57 = vld [vmem:[#allocation10 + $0x1a8] sm:$0xff]   ;;  %v6048_v3 = vld [vmem:[#allocation10 + $0x170] sm:$0xff]  }
 0x334   :  { %5861 = vmatpush3.bf16.msra.mxu1 %v5999_v4  ;;  %5840 = vmatprep.subr.bf16.mxu0 %v6000_v5  ;;  %v6049_v4 = vld [vmem:[#allocation10 + $0x1f0] sm:$0xff]  }
 0x335   :  { %5862 = vmatprep.subr.bf16.mxu1 %v6001_v34  ;;  %v6050_v5 = vld [vmem:[#allocation10 + $0x130] sm:$0xff]  }
 0x336   :  { %v6051_v34 = vld [vmem:[#allocation10 + $0x1b0] sm:$0xff]  }
 0x337   :  { %5841 = vmatpush3.bf16.msra.mxu0 %v6002_v7  ;;  %v6052_v7 = vld [vmem:[#allocation10 + $0x178] sm:$0xff]  }
 0x338   :  { %5863 = vmatpush3.bf16.msra.mxu1 %v6003_v9  ;;  %5842 = vmatprep.subr.bf16.mxu0 %v6004_v10  ;;  %v6053_v9 = vld [vmem:[#allocation10 + $0x1f8] sm:$0xff]  }
 0x339   :  { %5864 = vmatprep.subr.bf16.mxu1 %v6005_v12  ;;  %v6054_v10 = vld [vmem:[#allocation10 + $0x138] sm:$0xff]  }
 0x33a   :  { %v6055_v12 = vld [vmem:[#allocation10 + $0x1b8] sm:$0xff]  }
 0x33b   :  { %5843 = vmatpush3.bf16.msra.mxu0 %v6006_v51  ;;  %v1244_v51 = vrot.slane %v6462_v0, %v189_v11 }
 0x33c   :  { %5865 = vmatpush3.bf16.msra.mxu1 %v6007_v18  ;;  %5844 = vmatprep.subr.bf16.mxu0 %v6008_v33  ;;  %v1252_v18 = vrot.slane %v6462_v0, %v197_v2  ;;  %v1248_v33 = vrot.slane %v6462_v0, %v193_v43 }
 0x33d   :  { %5866 = vmatprep.subr.bf16.mxu1 %v6009_v21  ;;  %v1256_v21 = vrot.slane %v6462_v0, %v201_v25 }
 0x33f   :  { %5845 = vmatpush3.bf16.msra.mxu0 %v6010_v22 }
 0x340   :  { %5867 = vmatpush3.bf16.msra.mxu1 %v6011_v17  ;;  %5846 = vmatprep.subr.bf16.mxu0 %v6012_v27 }
 0x341   :  { %5868 = vmatprep.subr.bf16.mxu1 %v6013_v28 }
 0x343   :  { %5847 = vmatpush3.bf16.msra.mxu0 %v6014_v29 }
 0x344   :  { %5869 = vmatpush3.bf16.msra.mxu1 %v6015_v26  ;;  %5848 = vmatprep.subr.bf16.mxu0 %v6016_v32 }
 0x345   :  { %5870 = vmatprep.subr.bf16.mxu1 %v6017_v37 }
 0x347   :  { %5849 = vmatpush3.bf16.msra.mxu0 %v6018_v38 }
 0x348   :  { %5871 = vmatpush3.bf16.msra.mxu1 %v6019_v41  ;;  %5850 = vmatprep.subr.bf16.mxu0 %v6020_v42 }
 0x349   :  { %5872 = vmatprep.subr.bf16.mxu1 %v6021_v44 }
 0x34b   :  { %5851 = vmatpush3.bf16.msra.mxu0 %v6022_v45  ;;  %v5771_v45 = vld [vmem:[#allocation11] ss:$0 sm:$0xff] }
 0x34c   :  { %5873 = vmatpush3.bf16.msra.mxu1 %v6023_v30  ;;  %5880 = vmatprep.subr.bf16.mxu0 %v6024_v47 }
 0x34d   :  { %5902 = vmatprep.subr.bf16.mxu1 %v6025_v52 }
 0x34e   :  { %5049 = vmatmul.mubr.bf16.vlgmr.msra.gmra.mrb[16].mxu0 %v4489_v49 }
 0x34f   :  { %5089 = vmatmul.mubr.bf16.vlgmr.msra.gmra.mrb[16].mxu1 %v4491_v19  ;;  %5881 = vmatpush3.bf16.msra.mxu0 %v6026_v6 }
 0x350   :  { %5903 = vmatpush3.bf16.msra.mxu1 %v6027_v50  ;;  %5882 = vmatprep.subr.bf16.mxu0 %v6028_v63 }
 0x351   :  { %5904 = vmatprep.subr.bf16.mxu1 %v6029_v35 }
 0x353   :  { %5883 = vmatpush3.bf16.msra.mxu0 %v6030_v54 }
 0x354   :  { %5905 = vmatpush3.bf16.msra.mxu1 %v6031_v15  ;;  %5884 = vmatprep.subr.bf16.mxu0 %v6032_v55 }
 0x355   :  { %5906 = vmatprep.subr.bf16.mxu1 %v6033_v40 }
 0x357   :  { %5885 = vmatpush3.bf16.msra.mxu0 %v6034_v56 }
 0x358   :  { %5907 = vmatpush3.bf16.msra.mxu1 %v6035_v8  ;;  %5886 = vmatprep.subr.bf16.mxu0 %v6036_v16 }
 0x359   :  { %5908 = vmatprep.subr.bf16.mxu1 %v6037_v58 }
 0x35b   :  { %5887 = vmatpush3.bf16.msra.mxu0 %v6038_v53 }
 0x35c   :  { %5909 = vmatpush3.bf16.msra.mxu1 %v6039_v20  ;;  %5888 = vmatprep.subr.bf16.mxu0 %v6040_v59 }
 0x35d   :  { %5910 = vmatprep.subr.bf16.mxu1 %v6041_v60 }
 0x35f   :  { %5889 = vmatpush3.bf16.msra.mxu0 %v6042_v61 }
 0x360   :  { %5911 = vmatpush3.bf16.msra.mxu1 %v6043_v62  ;;  %5890 = vmatprep.subr.bf16.mxu0 %v6044_v1 }
 0x361   :  { %5912 = vmatprep.subr.bf16.mxu1 %v6045_v23 }
 0x363   :  { %5891 = vmatpush3.bf16.msra.mxu0 %v6046_v24 }
 0x364   :  { %5913 = vmatpush3.bf16.msra.mxu1 %v6047_v57  ;;  %5892 = vmatprep.subr.bf16.mxu0 %v6048_v3 }
 0x365   :  { %5914 = vmatprep.subr.bf16.mxu1 %v6049_v4 }
 0x367   :  { %5893 = vmatpush3.bf16.msra.mxu0 %v6050_v5 }
 0x368   :  { %5915 = vmatpush3.bf16.msra.mxu1 %v6051_v34  ;;  %5894 = vmatprep.subr.bf16.mxu0 %v6052_v7 }
 0x369   :  { %5916 = vmatprep.subr.bf16.mxu1 %v6053_v9 }
 0x36b   :  { %5895 = vmatpush3.bf16.msra.mxu0 %v6054_v10 }
 0x36c   :  { %5917 = vmatpush3.bf16.msra.mxu1 %v6055_v12 }
 0x401   :  { %v4310_v22 = vpop.f32.mrb[12].mxu0 }
 0x402   :  { %v5928_v17 = vadd.f32 %v4310_v22, %v1244_v51  ;;  %v4474_v27 = vpop.f32.mrb[12].mxu1  ;;  %v4312_v28 = vpop.f32.mrb[13].mxu0 }
 0x403   :  { %v5930_v29 = vadd.f32 %v4474_v27, %v1252_v18  ;;  %v5929_v31 = vadd.f32 %v4312_v28, %v1248_v33  ;;  %v4476_v26 = vpop.f32.mrb[13].mxu1  ;;  %v4314_v11 = vpop.f32.mrb[14].mxu0 }
 0x404   :  { %v4485_v32 = vmax.f32 %v5928_v17, 0.0  ;;  %v5931_v36 = vadd.f32 %v4476_v26, %v1256_v21  ;;  %v4478_v37 = vpop.f32.mrb[14].mxu1  ;;  %v4315_v2 = vpop.f32.mrb[15].mxu0 }
 0x405   :  { %v4487_v38 = vmax.f32 %v5930_v29, 0.0  ;;  %v4486_v39 = vmax.f32 %v5929_v31, 0.0  ;;  %v4479_v41 = vpop.f32.mrb[15].mxu1 }
 0x406   :  { %v4488_v43 = vmax.f32 %v5931_v36, 0.0  ;;  %v4493_v13 = vpack.c.bf16 %v4485_v32, %v4485_v32 }
 0x407   :  { %v4494_v42 = vpack.c.bf16 %v4486_v39, %v4486_v39  ;;  %v4495_v25 = vpack.c.bf16 %v4487_v38, %v4487_v38 }
 0x408   :  { %v4496_v14 = vpack.c.bf16 %v4488_v43, %v4488_v43 }
 0x409   :  { %5128 = vmatprep.mubr.bf16.mxu0 %v4494_v42 }
 0x40a   :  { %5168 = vmatprep.mubr.bf16.mxu1 %v4496_v14  ;;  %5129 = vmatmul.mubr.bf16.vlgmr.msra.gmra.mrb[20].mxu0 %v4493_v13 }
 0x40b   :  { %5169 = vmatmul.mubr.bf16.vlgmr.msra.gmra.mrb[20].mxu1 %v4495_v25 }
 0x421   :  { %v5852_v0 = vpop.f32.mrb[16].mxu0 }
 0x422   :  { %v5874_v44 = vpop.f32.mrb[16].mxu1  ;;  %v5853_v46 = vpop.f32.mrb[17].mxu0 }
 0x423   :  { %v5854_v30 = vadd.f32 %v5853_v46, %v5852_v0  ;;  %v5875_v47 = vpop.f32.mrb[17].mxu1  ;;  %v5855_v48 = vpop.f32.mrb[18].mxu0 }
 0x424   :  { %v5876_v52 = vadd.f32 %v5875_v47, %v5874_v44  ;;  %v5877_v6 = vpop.f32.mrb[18].mxu1  ;;  %v5856_v49 = vpop.f32.mrb[19].mxu0 }
 0x425   :  { %v5051_v50 = vadd.f32 %v5854_v30, %v5771_v45  ;;  %v5878_v63 = vpop.f32.mrb[19].mxu1 }
 0x427   :  { %v5091_v19 = vadd.f32 %v5876_v52, %v5051_v50 }
 0x4dd   :  { %v5896_v35 = vpop.f32.mrb[20].mxu0 }
 0x4de   :  { %v5918_v54 = vpop.f32.mrb[20].mxu1  ;;  %v5897_v15 = vpop.f32.mrb[21].mxu0 }
 0x4df   :  { %v5898_v55 = vadd.f32 %v5897_v15, %v5896_v35  ;;  %v5919_v40 = vpop.f32.mrb[21].mxu1  ;;  %v5899_v56 = vpop.f32.mrb[22].mxu0 }
 0x4e0   :  { %v5920_v8 = vadd.f32 %v5919_v40, %v5918_v54  ;;  %v5921_v16 = vpop.f32.mrb[22].mxu1  ;;  %v5900_v58 = vpop.f32.mrb[23].mxu0 }
 0x4e1   :  { %v5131_v53 = vadd.f32 %v5898_v55, %v5091_v19  ;;  %v5922_v20 = vpop.f32.mrb[23].mxu1 }
 0x4e3   :  { %v5171_v59 = vadd.f32 %v5920_v8, %v5131_v53 }
 0x4e5   :  { %5176 = vst [vmem:[#allocation13] sm:$0xff] %v5171_v59 }
 0x4e6   :  { %6200 = shalt.err (!%p6197_p10)
}
 0x4e7   :  { %s6201_s29 = scalar_lea.hbm %s6513_s7, 128 }
 0x4e8   :  { %p6202_p11 = scmp.ne.s32.totalorder %s6513_s7, %s6201_s29  ;;  %p6205_p12 = scmp.lt.u32.totalorder %s6201_s29, %s6513_s7 }
 0x4ea   :  { %p6207_p13 = pnand %p6205_p12, %p6202_p11 }
 0x4ec   :  { %6210 = shalt.err (!%p6207_p13)
}
 0x4ed   :  { %5186 = dma.vmem_to_hbm [thread:$0]  %s5184_s24, 128, %s6513_s7, [#allocation4]  }
 0x4ee   :  { %6219 = dma.done.wait [#allocation4], 128  }
 0x4ef   :  { %6220 = vsyncadd [#allocation4], 4294967168 }
 0x4f0   :  { %5190 = vsyncpa [#allocation3], 1 }
 0x4f1   :  { %5191 = vsyncpa [#allocation6], 1 }
 0x4f2   :  { %5192 = vsyncpa [#allocation9], 1 }
 0x4f3   :  { %5193 = vsyncpa [#allocation12], 1 }
 0x4f4   :  { %5194 = vsyncpa [#allocation4], 1 }

// kernel: _dqn_forward_impl.1
= control target key start
LH: loop header
LB: loop body
LE: loop exit
PB: predicated region body
PF: predicated region fallthrough
CT: control target
= control target key end

     0   :  { %12 = vsyncpa [#allocation3], 0  ;;  %s6506_s0 = inlined_call_operand.vmem [shape: bf16[8,128], index: 0, kind: input, shape index: {}]   ;;  %s6507_s1 = inlined_call_operand.hbm [shape: bf16[128,1024], index: 1, kind: input, shape index: {}]   ;;  %s6508_s2 = inlined_call_operand.hbm [shape: f32[1,1024], index: 2, kind: input, shape index: {}]   ;;  %s6509_s3 = inlined_call_operand.hbm [shape: bf16[1024,1024], index: 3, kind: input, shape index: {}]   ;;  %s6510_s4 = inlined_call_operand.hbm [shape: f32[1,1024], index: 4, kind: input, shape index: {}]   ;;  %s6511_s5 = inlined_call_operand.hbm [shape: bf16[1024,128], index: 5, kind: input, shape index: {}]   ;;  %s6512_s6 = inlined_call_operand.hbm [shape: f32[1,128], index: 6, kind: input, shape index: {}]   ;;  %s6513_s7 = inlined_call_operand.hbm [shape: f32[8,128], index: 7, kind: output, shape index: {}]  }
   0x1   :  { %13 = vsyncpa [#allocation6], 0 }
   0x2   :  { %14 = vsyncpa [#allocation9], 0 }
   0x3   :  { %15 = vsyncpa [#allocation12], 0 }
   0x4   :  { %16 = vsyncpa [#allocation4], 0  ;;  %s6221_s24 = smov [#allocation5]   ;;  %s6222_s26 = smov [#allocation8]  }
   0x5   :  { %s37_s25 = sshll.u32 %s6221_s24, 4  ;;  %s59_s27 = sshll.u32 %s6222_s26, 4  ;;  %s38_s25 = int_to_ptr.vmem [resolvable:$true] %s37_s25  ;;  %s60_s27 = int_to_ptr.vmem [resolvable:$true] %s59_s27 }
   0x6   :  { %s6057_s30 = scalar_lea.hbm %s6508_s2, 128 }
   0x7   :  { %p6058_p0 = scmp.ne.s32.totalorder %s6508_s2, %s6057_s30  ;;  %p6061_p1 = scmp.lt.u32.totalorder %s6057_s30, %s6508_s2 }
   0x9   :  { %p6063_p2 = pnand %p6061_p1, %p6058_p0 }
   0xb   :  { %6066 = shalt.err (!%p6063_p2)
}
   0xc   :  { %s6067_s12 = scalar_lea.vmem %s38_s25, 128  ;;  %p6072_p4 = scmp.lt.s32.totalorder %s38_s25, %s38_s25 }
   0xd   :  { %p6068_p3 = scmp.ne.s32.totalorder %s38_s25, %s6067_s12  ;;  %p6073_p5 = scmp.lt.s32.totalorder %s6067_s12, %s6067_s12 }
   0xf   :  { %p6074_p6 = por %p6073_p5, %p6072_p4 }
  0x11   :  { %p6075_p7 = pnand %p6074_p6, %p6068_p3 }
  0x13   :  { %6078 = shalt.err (!%p6075_p7)
}
  0x14   :  { %40 = dma.hbm_to_vmem [thread:$0]  %s6508_s2, 128, %s38_s25, [#allocation6]  }
  0x15   :  { %s6079_s17 = scalar_lea.hbm %s6510_s4, 128 }
  0x16   :  { %p6080_p8 = scmp.ne.s32.totalorder %s6510_s4, %s6079_s17  ;;  %p6083_p9 = scmp.lt.u32.totalorder %s6079_s17, %s6510_s4 }
  0x18   :  { %p6085_p10 = pnand %p6083_p9, %p6080_p8 }
  0x1a   :  { %6088 = shalt.err (!%p6085_p10)
}
  0x1b   :  { %s6089_s22 = scalar_lea.vmem %s60_s27, 128  ;;  %p6094_p12 = scmp.lt.s32.totalorder %s60_s27, %s60_s27 }
  0x1c   :  { %p6090_p11 = scmp.ne.s32.totalorder %s60_s27, %s6089_s22  ;;  %p6095_p13 = scmp.lt.s32.totalorder %s6089_s22, %s6089_s22 }
  0x1e   :  { %p6096_p0 = por %p6095_p13, %p6094_p12 }
  0x20   :  { %p6097_p1 = pnand %p6096_p0, %p6090_p11 }
  0x22   :  { %6100 = shalt.err (!%p6097_p1)
}
  0x23   :  { %62 = dma.hbm_to_vmem [thread:$0]  %s6510_s4, 128, %s60_s27, [#allocation9]  }
  0x24   :  { %s6223_s24 = smov [#allocation2]   ;;  %s6101_s29 = scalar_lea.hbm %s6507_s1, 8192 }
  0x25   :  { %s24_s25 = sshll.u32 %s6223_s24, 4  ;;  %p6102_p2 = scmp.ne.s32.totalorder %s6507_s1, %s6101_s29  ;;  %s25_s25 = int_to_ptr.vmem [resolvable:$true] %s24_s25 }
  0x26   :  { %p6105_p3 = scmp.lt.u32.totalorder %s6101_s29, %s6507_s1 }
  0x28   :  { %p6107_p4 = pnand %p6105_p3, %p6102_p2 }
  0x2a   :  { %6110 = shalt.err (!%p6107_p4)
}
  0x2b   :  { %s6111_s11 = scalar_lea.vmem %s25_s25, 8192  ;;  %p6116_p6 = scmp.lt.s32.totalorder %s25_s25, %s25_s25 }
  0x2c   :  { %p6112_p5 = scmp.ne.s32.totalorder %s25_s25, %s6111_s11  ;;  %p6117_p7 = scmp.lt.s32.totalorder %s6111_s11, %s6111_s11 }
  0x2e   :  { %p6118_p8 = por %p6117_p7, %p6116_p6 }
  0x30   :  { %p6119_p9 = pnand %p6118_p8, %p6112_p5 }
  0x32   :  { %6122 = shalt.err (!%p6119_p9)
}
  0x33   :  { %s6224_s4 = smov 512   ;;  %s6225_s27 = smov 32  }
  0x34   :  { %30 = dma.hbm_to_vmem [thread:$0]  %s6507_s1, 8192, %s25_s25, [#allocation3], %s6224_s4, %s6224_s4, %s6225_s27  }
  0x35   :  { %s6226_s14 = smov [#allocation7]   ;;  %s6227_s16 = smov [#allocation10]  }
  0x36   :  { %s46_s15 = sshll.u32 %s6226_s14, 4  ;;  %s68_s17 = sshll.u32 %s6227_s16, 4  ;;  %s47_s15 = int_to_ptr.vmem [resolvable:$true] %s46_s15  ;;  %s69_s17 = int_to_ptr.vmem [resolvable:$true] %s68_s17 }
  0x37   :  { %s6123_s20 = scalar_lea.hbm %s6509_s3, 65536 }
  0x38   :  { %p6124_p10 = scmp.ne.s32.totalorder %s6509_s3, %s6123_s20  ;;  %p6127_p11 = scmp.lt.u32.totalorder %s6123_s20, %s6509_s3 }
  0x3a   :  { %p6129_p12 = pnand %p6127_p11, %p6124_p10 }
  0x3c   :  { %6132 = shalt.err (!%p6129_p12)
}
  0x3d   :  { %s6133_s1 = scalar_lea.vmem %s47_s15, 65536  ;;  %p6138_p0 = scmp.lt.s32.totalorder %s47_s15, %s47_s15 }
  0x3e   :  { %p6134_p13 = scmp.ne.s32.totalorder %s47_s15, %s6133_s1  ;;  %p6139_p1 = scmp.lt.s32.totalorder %s6133_s1, %s6133_s1 }
  0x40   :  { %p6140_p2 = por %p6139_p1, %p6138_p0 }
  0x42   :  { %p6141_p3 = pnand %p6140_p2, %p6134_p13 }
  0x44   :  { %6144 = shalt.err (!%p6141_p3)
}
  0x45   :  { %52 = dma.hbm_to_vmem [thread:$0]  %s6509_s3, 65536, %s47_s15, [#allocation6], %s6224_s4, %s6224_s4, %s6225_s27  }
  0x46   :  { %s6145_s29 = scalar_lea.hbm %s6511_s5, 8192 }
  0x47   :  { %p6146_p4 = scmp.ne.s32.totalorder %s6511_s5, %s6145_s29  ;;  %p6149_p5 = scmp.lt.u32.totalorder %s6145_s29, %s6511_s5 }
  0x49   :  { %p6151_p6 = pnand %p6149_p5, %p6146_p4 }
  0x4b   :  { %6154 = shalt.err (!%p6151_p6)
}
  0x4c   :  { %s6155_s11 = scalar_lea.vmem %s69_s17, 8192  ;;  %p6160_p8 = scmp.lt.s32.totalorder %s69_s17, %s69_s17 }
  0x4d   :  { %p6156_p7 = scmp.ne.s32.totalorder %s69_s17, %s6155_s11  ;;  %p6161_p9 = scmp.lt.s32.totalorder %s6155_s11, %s6155_s11 }
  0x4f   :  { %p6162_p10 = por %p6161_p9, %p6160_p8 }
  0x51   :  { %p6163_p11 = pnand %p6162_p10, %p6156_p7 }
  0x53   :  { %6166 = shalt.err (!%p6163_p11)
}
  0x54   :  { %s6228_s3 = smov 64   ;;  %s6229_s4 = smov 4  }
  0x55   :  { %74 = dma.hbm_to_vmem [thread:$0]  %s6511_s5, 8192, %s69_s17, [#allocation9], %s6228_s3, %s6228_s3, %s6229_s4  }
  0x56   :  { %s6230_s13 = smov [#allocation11]   ;;  %s6167_s18 = scalar_lea.hbm %s6512_s6, 16 }
  0x57   :  { %s81_s14 = sshll.u32 %s6230_s13, 4  ;;  %p6168_p12 = scmp.ne.s32.totalorder %s6512_s6, %s6167_s18  ;;  %s82_s14 = int_to_ptr.vmem [resolvable:$true] %s81_s14 }
  0x58   :  { %p6171_p13 = scmp.lt.u32.totalorder %s6167_s18, %s6512_s6 }
  0x5a   :  { %p6173_p0 = pnand %p6171_p13, %p6168_p12 }
  0x5c   :  { %6176 = shalt.err (!%p6173_p0)
}
  0x5d   :  { %s6177_s2 = scalar_lea.vmem %s82_s14, 16  ;;  %s6181_s5 = scalar_lea.vmem %s82_s14, 32 }
  0x5e   :  { %p6178_p1 = scmp.ne.s32.totalorder %s82_s14, %s6177_s2  ;;  %p6182_p2 = scmp.lt.s32.totalorder %s82_s14, %s82_s14 }
  0x5f   :  { %p6183_p3 = scmp.lt.s32.totalorder %s6181_s5, %s6177_s2 }
  0x61   :  { %p6184_p4 = por %p6183_p3, %p6182_p2 }
  0x63   :  { %p6185_p5 = pnand %p6184_p4, %p6178_p1 }
  0x65   :  { %6188 = shalt.err (!%p6185_p5)
}
  0x66   :  { %84 = dma.hbm_to_vmem [thread:$0]  %s6512_s6, 16, %s82_s14, [#allocation12]  }
  0x67   :  { %6211 = dma.done.wait [#allocation3], 8192  }
  0x68   :  { %6212 = vsyncadd [#allocation3], 4294959104 }
  0x69   :  { %6213 = dma.done.wait [#allocation6], 65664  }
  0x6a   :  { %6214 = vsyncadd [#allocation6], 4294901632 }
  0x6b   :  { %6215 = dma.done.wait [#allocation9], 8320  }
  0x6c   :  { %6216 = vsyncadd [#allocation9], 4294958976 }
  0x6d   :  { %6217 = dma.done.wait [#allocation12], 16  }
  0x6e   :  { %6218 = vsyncadd [#allocation12], 4294967280  ;;  %v6231_v0 = vmov 0   ;;  %v105_v1 = vld [vmem:[#allocation2] sm:$0xff]  ;;  %v106_v14 = vld [vmem:[#allocation2 + $0x8] sm:$0xff] }
  0x6f   :  { %563 = vmatprep.mubr.bf16.mxu0 %v6231_v0  ;;  %604 = vmatprep.mubr.bf16.mxu1 %v6231_v0  ;;  %v109_v2 = vld [vmem:[#allocation2 + $0x20] sm:$0xff]  ;;  %v110_v15 = vld [vmem:[#allocation2 + $0x28] sm:$0xff]  ;;  %v107_v58 = vld [vmem:[#allocation2 + $0x10] sm:$0xff] }
  0x70   :  { %v113_v3 = vld [vmem:[#allocation2 + $0x40] sm:$0xff]  ;;  %v5196_v4 = vcombine.high %v105_v1, %v109_v2  ;;  %v5195_v5 = vcombine.low %v105_v1, %v109_v2  ;;  %v114_v16 = vld [vmem:[#allocation2 + $0x48] sm:$0xff]  ;;  %v5198_v18 = vcombine.high %v106_v14, %v110_v15  ;;  %v5197_v19 = vcombine.low %v106_v14, %v110_v15  ;;  %v111_v59 = vld [vmem:[#allocation2 + $0x30] sm:$0xff] }
  0x71   :  { %v117_v6 = vld [vmem:[#allocation2 + $0x60] sm:$0xff]  ;;  %v118_v17 = vld [vmem:[#allocation2 + $0x68] sm:$0xff]  ;;  %v5200_v1 = vcombine.high %v107_v58, %v111_v59 }
  0x72   :  { %v5204_v7 = vcombine.high %v113_v3, %v117_v6  ;;  %v121_v8 = vld [vmem:[#allocation2 + $0x80] sm:$0xff]  ;;  %531 = vmatprep.subr.bf16.mxu0 %v5196_v4  ;;  %v5203_v10 = vcombine.low %v113_v3, %v117_v6  ;;  %v5206_v20 = vcombine.high %v114_v16, %v118_v17  ;;  %v122_v22 = vld [vmem:[#allocation2 + $0x88] sm:$0xff]  ;;  %572 = vmatprep.subr.bf16.mxu1 %v5198_v18  ;;  %v115_v3 = vld [vmem:[#allocation2 + $0x50] sm:$0xff] }
  0x73   :  { %v125_v9 = vld [vmem:[#allocation2 + $0xa0] sm:$0xff]  ;;  %532 = vmatpush1.bf16.msra.mxu0 %v5195_v5  ;;  %v126_v23 = vld [vmem:[#allocation2 + $0xa8] sm:$0xff]  ;;  %573 = vmatpush1.bf16.msra.mxu1 %v5197_v19  ;;  %v5205_v27 = vcombine.low %v114_v16, %v118_v17  ;;  %v119_v4 = vld [vmem:[#allocation2 + $0x70] sm:$0xff] }
  0x74   :  { %533 = vmatprep.subr.bf16.mxu0 %v5204_v7  ;;  %v5212_v11 = vcombine.high %v121_v8, %v125_v9  ;;  %v129_v12 = vld [vmem:[#allocation2 + $0xc0] sm:$0xff]  ;;  %v5211_v21 = vcombine.low %v121_v8, %v125_v9  ;;  %574 = vmatprep.subr.bf16.mxu1 %v5206_v20  ;;  %v5214_v28 = vcombine.high %v122_v22, %v126_v23  ;;  %v130_v30 = vld [vmem:[#allocation2 + $0xc8] sm:$0xff]  ;;  %v108_v8 = vld [vmem:[#allocation2 + $0x18] sm:$0xff] }
  0x75   :  { %v133_v13 = vld [vmem:[#allocation2 + $0xe0] sm:$0xff]  ;;  %v134_v31 = vld [vmem:[#allocation2 + $0xe8] sm:$0xff]  ;;  %v5213_v35 = vcombine.low %v122_v22, %v126_v23  ;;  %v5199_v7 = vcombine.low %v107_v58, %v111_v59  ;;  %v112_v9 = vld [vmem:[#allocation2 + $0x38] sm:$0xff]  ;;  %v5207_v15 = vcombine.low %v115_v3, %v119_v4 }
  0x76   :  { %v5220_v24 = vcombine.high %v129_v12, %v133_v13  ;;  %v137_v25 = vld [vmem:[#allocation2 + $0x100] sm:$0xff]  ;;  %v5219_v29 = vcombine.low %v129_v12, %v133_v13  ;;  %v5222_v36 = vcombine.high %v130_v30, %v134_v31  ;;  %v138_v38 = vld [vmem:[#allocation2 + $0x108] sm:$0xff]  ;;  %v5221_v43 = vcombine.low %v130_v30, %v134_v31  ;;  %v123_v12 = vld [vmem:[#allocation2 + $0x90] sm:$0xff] }
  0x77   :  { %534 = vmatpush1.bf16.msra.mxu0 %v5203_v10  ;;  %v141_v26 = vld [vmem:[#allocation2 + $0x120] sm:$0xff]  ;;  %575 = vmatpush1.bf16.msra.mxu1 %v5205_v27  ;;  %v142_v39 = vld [vmem:[#allocation2 + $0x128] sm:$0xff]  ;;  %v5208_v10 = vcombine.high %v115_v3, %v119_v4  ;;  %v127_v13 = vld [vmem:[#allocation2 + $0xb0] sm:$0xff]  ;;  %v5202_v14 = vcombine.high %v108_v8, %v112_v9 }
  0x78   :  { %535 = vmatprep.subr.bf16.mxu0 %v5212_v11  ;;  %v5228_v32 = vcombine.high %v137_v25, %v141_v26  ;;  %v145_v33 = vld [vmem:[#allocation2 + $0x140] sm:$0xff]  ;;  %576 = vmatprep.subr.bf16.mxu1 %v5214_v28  ;;  %v5227_v37 = vcombine.low %v137_v25, %v141_v26  ;;  %v5230_v44 = vcombine.high %v138_v38, %v142_v39  ;;  %v146_v46 = vld [vmem:[#allocation2 + $0x148] sm:$0xff]  ;;  %v116_v16 = vld [vmem:[#allocation2 + $0x58] sm:$0xff] }
  0x79   :  { %v149_v34 = vld [vmem:[#allocation2 + $0x160] sm:$0xff]  ;;  %v150_v47 = vld [vmem:[#allocation2 + $0x168] sm:$0xff]  ;;  %v5229_v51 = vcombine.low %v138_v38, %v142_v39  ;;  %v120_v17 = vld [vmem:[#allocation2 + $0x78] sm:$0xff]  ;;  %v5216_v18 = vcombine.high %v123_v12, %v127_v13  ;;  %v5215_v23 = vcombine.low %v123_v12, %v127_v13 }
  0x7a   :  { %v5236_v40 = vcombine.high %v145_v33, %v149_v34  ;;  %v153_v41 = vld [vmem:[#allocation2 + $0x180] sm:$0xff]  ;;  %v5235_v45 = vcombine.low %v145_v33, %v149_v34  ;;  %v5238_v52 = vcombine.high %v146_v46, %v150_v47  ;;  %v154_v54 = vld [vmem:[#allocation2 + $0x188] sm:$0xff]  ;;  %v5237_v57 = vcombine.low %v146_v46, %v150_v47  ;;  %v131_v19 = vld [vmem:[#allocation2 + $0xd0] sm:$0xff] }
  0x7b   :  { %536 = vmatpush1.bf16.msra.mxu0 %v5211_v21  ;;  %v157_v42 = vld [vmem:[#allocation2 + $0x1a0] sm:$0xff]  ;;  %577 = vmatpush1.bf16.msra.mxu1 %v5213_v35  ;;  %v158_v55 = vld [vmem:[#allocation2 + $0x1a8] sm:$0xff]  ;;  %v135_v20 = vld [vmem:[#allocation2 + $0xf0] sm:$0xff]  ;;  %v5201_v21 = vcombine.low %v108_v8, %v112_v9  ;;  %v5210_v22 = vcombine.high %v116_v16, %v120_v17 }
  0x7c   :  { %537 = vmatprep.subr.bf16.mxu0 %v5220_v24  ;;  %578 = vmatprep.subr.bf16.mxu1 %v5222_v36  ;;  %v5244_v48 = vcombine.high %v153_v41, %v157_v42  ;;  %v161_v49 = vld [vmem:[#allocation2 + $0x1c0] sm:$0xff]  ;;  %v5243_v53 = vcombine.low %v153_v41, %v157_v42  ;;  %v5246_v60 = vcombine.high %v154_v54, %v158_v55  ;;  %v162_v62 = vld [vmem:[#allocation2 + $0x1c8] sm:$0xff]  ;;  %v139_v24 = vld [vmem:[#allocation2 + $0x110] sm:$0xff] }
  0x7d   :  { %v165_v50 = vld [vmem:[#allocation2 + $0x1e0] sm:$0xff]  ;;  %v166_v63 = vld [vmem:[#allocation2 + $0x1e8] sm:$0xff]  ;;  %v5245_v2 = vcombine.low %v154_v54, %v158_v55  ;;  %v143_v25 = vld [vmem:[#allocation2 + $0x130] sm:$0xff]  ;;  %v5224_v28 = vcombine.high %v131_v19, %v135_v20  ;;  %v5223_v33 = vcombine.low %v131_v19, %v135_v20 }
  0x7e   :  { %v5252_v56 = vcombine.high %v161_v49, %v165_v50  ;;  %v5251_v61 = vcombine.low %v161_v49, %v165_v50  ;;  %v5254_v5 = vcombine.high %v162_v62, %v166_v63  ;;  %v6350_v6 = vld [vmem:[%s6506_s0] sm:$0xf]  ;;  %v5253_v11 = vcombine.low %v162_v62, %v166_v63  ;;  %v124_v26 = vld [vmem:[#allocation2 + $0x98] sm:$0xff]  ;;  %v147_v34 = vld [vmem:[#allocation2 + $0x150] sm:$0xff]  ;;  %s6232_s0 = smov [#allocation13]  }
  0x7f   :  { %538 = vmatpush1.bf16.msra.mxu0 %v5219_v29  ;;  %579 = vmatpush1.bf16.msra.mxu1 %v5221_v43  ;;  %v128_v27 = vld [vmem:[#allocation2 + $0xb8] sm:$0xff]  ;;  %v5209_v29 = vcombine.low %v116_v16, %v120_v17  ;;  %v151_v35 = vld [vmem:[#allocation2 + $0x170] sm:$0xff]  ;;  %v5232_v36 = vcombine.high %v139_v24, %v143_v25  ;;  %v5231_v41 = vcombine.low %v139_v24, %v143_v25  ;;  %v715_v58 = vld [vmem:[#allocation7 + $0x20] sm:$0xff]  ;;  %s5183_s24 = sshll.u32 %s6232_s0, 4  ;;  %s5184_s24 = int_to_ptr.vmem [resolvable:$true] %s5183_s24 }
  0x80   :  { %539 = vmatprep.subr.bf16.mxu0 %v5228_v32  ;;  %580 = vmatprep.subr.bf16.mxu1 %v5230_v44  ;;  %v132_v30 = vld [vmem:[#allocation2 + $0xd8] sm:$0xff]  ;;  %v5218_v32 = vcombine.high %v124_v26, %v128_v27  ;;  %v155_v42 = vld [vmem:[#allocation2 + $0x190] sm:$0xff]  ;;  %v723_v3 = vld [vmem:[#allocation7 + $0x60] sm:$0xff]  ;;  %s6189_s25 = scalar_lea.vmem %s5184_s24, 128  ;;  %p6194_p7 = scmp.lt.s32.totalorder %s5184_s24, %s5184_s24 }
  0x81   :  { %v136_v31 = vld [vmem:[#allocation2 + $0xf8] sm:$0xff]  ;;  %v159_v43 = vld [vmem:[#allocation2 + $0x1b0] sm:$0xff]  ;;  %v731_v12 = vld [vmem:[#allocation7 + $0xa0] sm:$0xff]  ;;  %p6190_p6 = scmp.ne.s32.totalorder %s5184_s24, %s6189_s25  ;;  %p6195_p8 = scmp.lt.s32.totalorder %s6189_s25, %s6189_s25 }
  0x82   :  { %v140_v38 = vld [vmem:[#allocation2 + $0x118] sm:$0xff]  ;;  %v5225_v44 = vcombine.low %v132_v30, %v136_v31  ;;  %v163_v49 = vld [vmem:[#allocation2 + $0x1d0] sm:$0xff]  ;;  %v735_v19 = vld [vmem:[#allocation7 + $0xc0] sm:$0xff] }
  0x83   :  { %540 = vmatpush1.bf16.msra.mxu0 %v5227_v37  ;;  %581 = vmatpush1.bf16.msra.mxu1 %v5229_v51  ;;  %v5217_v37 = vcombine.low %v124_v26, %v128_v27  ;;  %v144_v39 = vld [vmem:[#allocation2 + $0x138] sm:$0xff]  ;;  %v167_v50 = vld [vmem:[#allocation2 + $0x1f0] sm:$0xff]  ;;  %v5248_v51 = vcombine.high %v155_v42, %v159_v43  ;;  %v739_v20 = vld [vmem:[#allocation7 + $0xe0] sm:$0xff]  ;;  %p6196_p9 = por %p6195_p8, %p6194_p7 }
  0x84   :  { %541 = vmatprep.subr.bf16.mxu0 %v5236_v40  ;;  %582 = vmatprep.subr.bf16.mxu1 %v5238_v52  ;;  %v5226_v40 = vcombine.high %v132_v30, %v136_v31  ;;  %v152_v46 = vld [vmem:[#allocation2 + $0x178] sm:$0xff]  ;;  %v5234_v47 = vcombine.high %v140_v38, %v144_v39  ;;  %v5233_v52 = vcombine.low %v140_v38, %v144_v39  ;;  %v716_v8 = vld [vmem:[#allocation7 + $0x28] sm:$0xff]  ;;  %v743_v27 = vld [vmem:[#allocation7 + $0x100] sm:$0xff] }
  0x85   :  { %v160_v54 = vld [vmem:[#allocation2 + $0x1b8] sm:$0xff]  ;;  %v5256_v59 = vcombine.high %v163_v49, %v167_v50  ;;  %v724_v16 = vld [vmem:[#allocation7 + $0x68] sm:$0xff]  ;;  %p6197_p10 = pnand %p6196_p9, %p6190_p6 }
  0x86   :  { %v168_v62 = vld [vmem:[#allocation2 + $0x1f8] sm:$0xff]  ;;  %v732_v24 = vld [vmem:[#allocation7 + $0xa8] sm:$0xff] }
  0x87   :  { %542 = vmatpush1.bf16.msra.mxu0 %v5235_v45  ;;  %583 = vmatpush1.bf16.msra.mxu1 %v5237_v57  ;;  %v148_v45 = vld [vmem:[#allocation2 + $0x158] sm:$0xff]  ;;  %v711_v57 = vld [vmem:[#allocation7] sm:$0xff]  ;;  %v736_v31 = vld [vmem:[#allocation7 + $0xc8] sm:$0xff] }
  0x88   :  { %543 = vmatprep.subr.bf16.mxu0 %v5244_v48  ;;  %584 = vmatprep.subr.bf16.mxu1 %v5246_v60  ;;  %v5239_v48 = vcombine.low %v147_v34, %v151_v35  ;;  %v5242_v55 = vcombine.high %v148_v45, %v152_v46  ;;  %v5241_v60 = vcombine.low %v148_v45, %v152_v46  ;;  %v744_v39 = vld [vmem:[#allocation7 + $0x108] sm:$0xff] }
  0x89   :  { %v5260_v4 = vcombine.high %v711_v57, %v715_v58 }
  0x8b   :  { %544 = vmatpush1.bf16.msra.mxu0 %v5243_v53  ;;  %585 = vmatpush1.bf16.msra.mxu1 %v5245_v2  ;;  %v156_v53 = vld [vmem:[#allocation2 + $0x198] sm:$0xff]  ;;  %v719_v2 = vld [vmem:[#allocation7 + $0x40] sm:$0xff] }
  0x8c   :  { %545 = vmatprep.subr.bf16.mxu0 %v5252_v56  ;;  %586 = vmatprep.subr.bf16.mxu1 %v5254_v5  ;;  %v5247_v56 = vcombine.low %v155_v42, %v159_v43  ;;  %v5250_v63 = vcombine.high %v156_v53, %v160_v54  ;;  %v5249_v5 = vcombine.low %v156_v53, %v160_v54  ;;  %v759_v42 = vld [vmem:[#allocation7 + $0x180] sm:$0xff] }
  0x8d   :  { %v5268_v13 = vcombine.high %v719_v2, %v723_v3  ;;  %v763_v43 = vld [vmem:[#allocation7 + $0x1a0] sm:$0xff] }
  0x8e   :  { %v5307_v54 = vcombine.low %v759_v42, %v763_v43 }
  0x8f   :  { %546 = vmatpush1.bf16.msra.mxu0 %v5251_v61  ;;  %587 = vmatpush1.bf16.msra.mxu1 %v5253_v11  ;;  %v164_v61 = vld [vmem:[#allocation2 + $0x1d8] sm:$0xff]  ;;  %v727_v11 = vld [vmem:[#allocation7 + $0x80] sm:$0xff] }
  0x90   :  { %613 = vmatprep.subr.bf16.mxu0 %v5200_v1  ;;  %654 = vmatprep.subr.bf16.mxu1 %v5202_v14  ;;  %v5255_v1 = vcombine.low %v163_v49, %v167_v50  ;;  %v5258_v9 = vcombine.high %v164_v61, %v168_v62  ;;  %v5257_v14 = vcombine.low %v164_v61, %v168_v62 }
  0x91   :  { %v5275_v26 = vcombine.low %v727_v11, %v731_v12  ;;  %v5308_v49 = vcombine.high %v759_v42, %v763_v43 }
  0x92   :  { %564 = vmatmul.mubr.bf16.vlgmr.msra.gmra.mrb[0].mxu0 %v6350_v6  ;;  %605 = vmatmul.mubr.bf16.vlgmr.msra.gmra.mrb[0].mxu1 %v6350_v6 }
  0x93   :  { %614 = vmatpush1.bf16.msra.mxu0 %v5199_v7  ;;  %645 = vmatprep.mubr.bf16.mxu0 %v6231_v0  ;;  %v712_v7 = vld [vmem:[#allocation7 + $0x8] sm:$0xff] }
  0x94   :  { %615 = vmatprep.subr.bf16.mxu0 %v5208_v10  ;;  %655 = vmatpush1.bf16.msra.mxu1 %v5201_v21  ;;  %v5259_v10 = vcombine.low %v711_v57, %v715_v58  ;;  %v5262_v17 = vcombine.high %v712_v7, %v716_v8  ;;  %v5276_v21 = vcombine.high %v727_v11, %v731_v12 }
  0x95   :  { %686 = vmatprep.mubr.bf16.mxu1 %v6231_v0  ;;  %656 = vmatprep.subr.bf16.mxu1 %v5210_v22  ;;  %v5240_v0 = vcombine.high %v147_v34, %v151_v35  ;;  %v5261_v22 = vcombine.low %v712_v7, %v716_v8  ;;  %v5283_v34 = vcombine.low %v735_v19, %v739_v20  ;;  %v751_v35 = vld [vmem:[#allocation7 + $0x140] sm:$0xff] }
  0x97   :  { %616 = vmatpush1.bf16.msra.mxu0 %v5207_v15  ;;  %v720_v15 = vld [vmem:[#allocation7 + $0x48] sm:$0xff] }
  0x98   :  { %617 = vmatprep.subr.bf16.mxu0 %v5216_v18  ;;  %657 = vmatpush1.bf16.msra.mxu1 %v5209_v29  ;;  %v5267_v18 = vcombine.low %v719_v2, %v723_v3  ;;  %v5270_v25 = vcombine.high %v720_v15, %v724_v16  ;;  %v5284_v29 = vcombine.high %v735_v19, %v739_v20 }
  0x99   :  { %658 = vmatprep.subr.bf16.mxu1 %v5218_v32  ;;  %v5269_v30 = vcombine.low %v720_v15, %v724_v16  ;;  %v740_v32 = vld [vmem:[#allocation7 + $0xe8] sm:$0xff] }
  0x9b   :  { %618 = vmatpush1.bf16.msra.mxu0 %v5215_v23  ;;  %v728_v23 = vld [vmem:[#allocation7 + $0x88] sm:$0xff] }
  0x9c   :  { %619 = vmatprep.subr.bf16.mxu0 %v5224_v28  ;;  %659 = vmatpush1.bf16.msra.mxu1 %v5217_v37  ;;  %v747_v28 = vld [vmem:[#allocation7 + $0x120] sm:$0xff]  ;;  %v5277_v38 = vcombine.low %v728_v23, %v732_v24 }
  0x9d   :  { %660 = vmatprep.subr.bf16.mxu1 %v5226_v40  ;;  %v5292_v37 = vcombine.high %v743_v27, %v747_v28  ;;  %v748_v40 = vld [vmem:[#allocation7 + $0x128] sm:$0xff] }
  0x9e   :  { %v5294_v45 = vcombine.high %v744_v39, %v748_v40  ;;  %v5293_v50 = vcombine.low %v744_v39, %v748_v40 }
  0x9f   :  { %620 = vmatpush1.bf16.msra.mxu0 %v5223_v33  ;;  %v5278_v33 = vcombine.high %v728_v23, %v732_v24 }
  0xa0   :  { %621 = vmatprep.subr.bf16.mxu0 %v5232_v36  ;;  %661 = vmatpush1.bf16.msra.mxu1 %v5225_v44  ;;  %v755_v36 = vld [vmem:[#allocation7 + $0x160] sm:$0xff]  ;;  %v5285_v44 = vcombine.low %v736_v31, %v740_v32 }
  0xa1   :  { %662 = vmatprep.subr.bf16.mxu1 %v5234_v47  ;;  %v5299_v46 = vcombine.low %v751_v35, %v755_v36  ;;  %v752_v47 = vld [vmem:[#allocation7 + $0x148] sm:$0xff] }
  0xa3   :  { %622 = vmatpush1.bf16.msra.mxu0 %v5231_v41  ;;  %v5291_v41 = vcombine.low %v743_v27, %v747_v28 }
  0xa4   :  { %623 = vmatprep.subr.bf16.mxu0 %v5240_v0  ;;  %663 = vmatpush1.bf16.msra.mxu1 %v5233_v52  ;;  %v5300_v0 = vcombine.high %v751_v35, %v755_v36  ;;  %v771_v52 = vld [vmem:[#allocation7 + $0x1e0] sm:$0xff] }
  0xa5   :  { %664 = vmatprep.subr.bf16.mxu1 %v5242_v55  ;;  %v760_v55 = vld [vmem:[#allocation7 + $0x188] sm:$0xff] }
  0xa7   :  { %624 = vmatpush1.bf16.msra.mxu0 %v5239_v48  ;;  %v756_v48 = vld [vmem:[#allocation7 + $0x168] sm:$0xff] }
  0xa8   :  { %625 = vmatprep.subr.bf16.mxu0 %v5248_v51  ;;  %665 = vmatpush1.bf16.msra.mxu1 %v5241_v60  ;;  %v767_v51 = vld [vmem:[#allocation7 + $0x1c0] sm:$0xff]  ;;  %v5302_v53 = vcombine.high %v752_v47, %v756_v48  ;;  %v5301_v58 = vcombine.low %v752_v47, %v756_v48  ;;  %v816_v47 = vld [vmem:[#allocation7 + $0x348] sm:$0xff] }
  0xa9   :  { %666 = vmatprep.subr.bf16.mxu1 %v5250_v63  ;;  %v5316_v57 = vcombine.high %v767_v51, %v771_v52  ;;  %v779_v60 = vld [vmem:[#allocation7 + $0x220] sm:$0xff]  ;;  %v5315_v62 = vcombine.low %v767_v51, %v771_v52  ;;  %v768_v63 = vld [vmem:[#allocation7 + $0x1c8] sm:$0xff] }
  0xaa   :  { %v820_v48 = vld [vmem:[#allocation7 + $0x368] sm:$0xff]  ;;  %v831_v52 = vld [vmem:[#allocation7 + $0x3c0] sm:$0xff] }
  0xab   :  { %626 = vmatpush1.bf16.msra.mxu0 %v5247_v56  ;;  %v764_v56 = vld [vmem:[#allocation7 + $0x1a8] sm:$0xff]  ;;  %v5366_v51 = vcombine.high %v816_v47, %v820_v48 }
  0xac   :  { %627 = vmatprep.subr.bf16.mxu0 %v5256_v59  ;;  %667 = vmatpush1.bf16.msra.mxu1 %v5249_v5  ;;  %v775_v59 = vld [vmem:[#allocation7 + $0x200] sm:$0xff]  ;;  %v5310_v61 = vcombine.high %v760_v55, %v764_v56  ;;  %v5309_v3 = vcombine.low %v760_v55, %v764_v56  ;;  %v824_v55 = vld [vmem:[#allocation7 + $0x388] sm:$0xff] }
  0xad   :  { %668 = vmatprep.subr.bf16.mxu1 %v5258_v9  ;;  %v5324_v2 = vcombine.high %v775_v59, %v779_v60  ;;  %v787_v5 = vld [vmem:[#allocation7 + $0x260] sm:$0xff]  ;;  %v5323_v8 = vcombine.low %v775_v59, %v779_v60  ;;  %v776_v9 = vld [vmem:[#allocation7 + $0x208] sm:$0xff] }
  0xae   :  { %v828_v56 = vld [vmem:[#allocation7 + $0x3a8] sm:$0xff]  ;;  %v839_v60 = vld [vmem:[#allocation7 + $0x400] sm:$0xff] }
  0xaf   :  { %628 = vmatpush1.bf16.msra.mxu0 %v5255_v1  ;;  %v772_v1 = vld [vmem:[#allocation7 + $0x1e8] sm:$0xff]  ;;  %v5374_v59 = vcombine.high %v824_v55, %v828_v56 }
  0xb0   :  { %3825 = vmatprep.subr.bf16.mxu0 %v5260_v4  ;;  %669 = vmatpush1.bf16.msra.mxu1 %v5257_v14  ;;  %v783_v4 = vld [vmem:[#allocation7 + $0x240] sm:$0xff]  ;;  %v5318_v7 = vcombine.high %v768_v63, %v772_v1  ;;  %v5317_v12 = vcombine.low %v768_v63, %v772_v1  ;;  %v832_v1 = vld [vmem:[#allocation7 + $0x3c8] sm:$0xff] }
  0xb1   :  { %3989 = vmatprep.subr.bf16.mxu1 %v5262_v17  ;;  %v5332_v11 = vcombine.high %v783_v4, %v787_v5  ;;  %v795_v14 = vld [vmem:[#allocation7 + $0x2a0] sm:$0xff]  ;;  %v5331_v16 = vcombine.low %v783_v4, %v787_v5  ;;  %v784_v17 = vld [vmem:[#allocation7 + $0x248] sm:$0xff] }
  0xb2   :  { %646 = vmatmul.mubr.bf16.vlgmr.msra.gmra.mrb[4].mxu0 %v6350_v6 }
  0xb3   :  { %3826 = vmatpush1.bf16.msra.mxu0 %v5259_v10  ;;  %687 = vmatmul.mubr.bf16.vlgmr.msra.gmra.mrb[4].mxu1 %v6350_v6  ;;  %v5286_v6 = vcombine.high %v736_v31, %v740_v32  ;;  %v780_v10 = vld [vmem:[#allocation7 + $0x228] sm:$0xff] }
  0xb4   :  { %3827 = vmatprep.subr.bf16.mxu0 %v5268_v13  ;;  %3990 = vmatpush1.bf16.msra.mxu1 %v5261_v22  ;;  %v791_v13 = vld [vmem:[#allocation7 + $0x280] sm:$0xff]  ;;  %v5326_v15 = vcombine.high %v776_v9, %v780_v10  ;;  %v5325_v20 = vcombine.low %v776_v9, %v780_v10 }
  0xb5   :  { %3991 = vmatprep.subr.bf16.mxu1 %v5270_v25  ;;  %v5340_v19 = vcombine.high %v791_v13, %v795_v14  ;;  %v803_v22 = vld [vmem:[#allocation7 + $0x2e0] sm:$0xff]  ;;  %v5339_v24 = vcombine.low %v791_v13, %v795_v14  ;;  %v792_v25 = vld [vmem:[#allocation7 + $0x288] sm:$0xff] }
  0xb7   :  { %3828 = vmatpush1.bf16.msra.mxu0 %v5267_v18  ;;  %v788_v18 = vld [vmem:[#allocation7 + $0x268] sm:$0xff] }
  0xb8   :  { %3829 = vmatprep.subr.bf16.mxu0 %v5276_v21  ;;  %3992 = vmatpush1.bf16.msra.mxu1 %v5269_v30  ;;  %v799_v21 = vld [vmem:[#allocation7 + $0x2c0] sm:$0xff]  ;;  %v5334_v23 = vcombine.high %v784_v17, %v788_v18  ;;  %v5333_v28 = vcombine.low %v784_v17, %v788_v18 }
  0xb9   :  { %3993 = vmatprep.subr.bf16.mxu1 %v5278_v33  ;;  %v5348_v27 = vcombine.high %v799_v21, %v803_v22  ;;  %v811_v30 = vld [vmem:[#allocation7 + $0x320] sm:$0xff]  ;;  %v5347_v32 = vcombine.low %v799_v21, %v803_v22  ;;  %v800_v33 = vld [vmem:[#allocation7 + $0x2c8] sm:$0xff] }
  0xbb   :  { %3830 = vmatpush1.bf16.msra.mxu0 %v5275_v26  ;;  %v796_v26 = vld [vmem:[#allocation7 + $0x2a8] sm:$0xff] }
  0xbc   :  { %3831 = vmatprep.subr.bf16.mxu0 %v5284_v29  ;;  %3994 = vmatpush1.bf16.msra.mxu1 %v5277_v38  ;;  %v807_v29 = vld [vmem:[#allocation7 + $0x300] sm:$0xff]  ;;  %v5342_v31 = vcombine.high %v792_v25, %v796_v26  ;;  %v5341_v36 = vcombine.low %v792_v25, %v796_v26 }
  0xbd   :  { %3995 = vmatprep.subr.bf16.mxu1 %v5286_v6  ;;  %v5356_v35 = vcombine.high %v807_v29, %v811_v30  ;;  %v819_v38 = vld [vmem:[#allocation7 + $0x360] sm:$0xff]  ;;  %v5355_v40 = vcombine.low %v807_v29, %v811_v30  ;;  %v808_v6 = vld [vmem:[#allocation7 + $0x308] sm:$0xff] }
  0xbe   :  { %v851_v29 = vld [vmem:[#allocation7 + $0x460] sm:$0xff]  ;;  %v848_v30 = vld [vmem:[#allocation7 + $0x448] sm:$0xff] }
  0xbf   :  { %3832 = vmatpush1.bf16.msra.mxu0 %v5283_v34  ;;  %v804_v34 = vld [vmem:[#allocation7 + $0x2e8] sm:$0xff] }
  0xc0   :  { %3833 = vmatprep.subr.bf16.mxu0 %v5292_v37  ;;  %3996 = vmatpush1.bf16.msra.mxu1 %v5285_v44  ;;  %v815_v37 = vld [vmem:[#allocation7 + $0x340] sm:$0xff]  ;;  %v5350_v39 = vcombine.high %v800_v33, %v804_v34  ;;  %v5349_v43 = vcombine.low %v800_v33, %v804_v34 }
  0xc1   :  { %3997 = vmatprep.subr.bf16.mxu1 %v5294_v45  ;;  %v5364_v42 = vcombine.high %v815_v37, %v819_v38  ;;  %v823_v44 = vld [vmem:[#allocation7 + $0x380] sm:$0xff] }
  0xc2   :  { %v827_v45 = vld [vmem:[#allocation7 + $0x3a0] sm:$0xff] }
  0xc3   :  { %3834 = vmatpush1.bf16.msra.mxu0 %v5291_v41  ;;  %v812_v41 = vld [vmem:[#allocation7 + $0x328] sm:$0xff] }
  0xc4   :  { %3835 = vmatprep.subr.bf16.mxu0 %v5300_v0  ;;  %3998 = vmatpush1.bf16.msra.mxu1 %v5293_v50  ;;  %v5358_v0 = vcombine.high %v808_v6, %v812_v41  ;;  %v5357_v50 = vcombine.low %v808_v6, %v812_v41  ;;  %v856_v6 = vld [vmem:[#allocation7 + $0x488] sm:$0xff] }
  0xc5   :  { %3999 = vmatprep.subr.bf16.mxu1 %v5302_v53  ;;  %v835_v53 = vld [vmem:[#allocation7 + $0x3e0] sm:$0xff]  ;;  %v860_v41 = vld [vmem:[#allocation7 + $0x4a8] sm:$0xff] }
  0xc6   :  { %v5379_v63 = vcombine.low %v831_v52, %v835_v53 }
  0xc7   :  { %3836 = vmatpush1.bf16.msra.mxu0 %v5299_v46  ;;  %v5363_v46 = vcombine.low %v815_v37, %v819_v38  ;;  %v855_v38 = vld [vmem:[#allocation7 + $0x480] sm:$0xff] }
  0xc8   :  { %3837 = vmatprep.subr.bf16.mxu0 %v5308_v49  ;;  %4000 = vmatpush1.bf16.msra.mxu1 %v5301_v58  ;;  %v5372_v49 = vcombine.high %v823_v44, %v827_v45  ;;  %v5365_v58 = vcombine.low %v816_v47, %v820_v48  ;;  %v5406_v48 = vcombine.high %v856_v6, %v860_v41 }
  0xc9   :  { %4001 = vmatprep.subr.bf16.mxu1 %v5310_v61  ;;  %v843_v61 = vld [vmem:[#allocation7 + $0x420] sm:$0xff] }
  0xca   :  { %v5387_v4 = vcombine.low %v839_v60, %v843_v61  ;;  %v5388_v5 = vcombine.high %v839_v60, %v843_v61  ;;  %v872_v60 = vld [vmem:[#allocation7 + $0x508] sm:$0xff] }
  0xcb   :  { %3838 = vmatpush1.bf16.msra.mxu0 %v5307_v54  ;;  %v5371_v54 = vcombine.low %v823_v44, %v827_v45  ;;  %v876_v61 = vld [vmem:[#allocation7 + $0x528] sm:$0xff] }
  0xcc   :  { %3839 = vmatprep.subr.bf16.mxu0 %v5316_v57  ;;  %4002 = vmatpush1.bf16.msra.mxu1 %v5309_v3  ;;  %v5380_v57 = vcombine.high %v831_v52, %v835_v53  ;;  %v844_v3 = vld [vmem:[#allocation7 + $0x428] sm:$0xff] }
  0xcd   :  { %4003 = vmatprep.subr.bf16.mxu1 %v5318_v7  ;;  %v868_v52 = vld [vmem:[#allocation7 + $0x4e8] sm:$0xff] }
  0xcf   :  { %3840 = vmatpush1.bf16.msra.mxu0 %v5315_v62  ;;  %v840_v62 = vld [vmem:[#allocation7 + $0x408] sm:$0xff] }
  0xd0   :  { %3841 = vmatprep.subr.bf16.mxu0 %v5324_v2  ;;  %4004 = vmatpush1.bf16.msra.mxu1 %v5317_v12  ;;  %v836_v2 = vld [vmem:[#allocation7 + $0x3e8] sm:$0xff]  ;;  %v5389_v7 = vcombine.low %v840_v62, %v844_v3  ;;  %v171_v12 = vlaneseq }
  0xd1   :  { %4005 = vmatprep.subr.bf16.mxu1 %v5326_v15  ;;  %v5382_v9 = vcombine.high %v832_v1, %v836_v2  ;;  %v5381_v10 = vcombine.low %v832_v1, %v836_v2  ;;  %v6361_v15 = vld [vmem:[#allocation5] sm:$0xff]  ;;  %v5422_v2 = vcombine.high %v872_v60, %v876_v61 }
  0xd2   :  { %v6358_v13 = vshrl.u32 %v171_v12, 7  ;;  %v887_v12 = vld [vmem:[#allocation7 + $0x580] sm:$0xff] }
  0xd3   :  { %3842 = vmatpush1.bf16.msra.mxu0 %v5323_v8  ;;  %v5373_v8 = vcombine.low %v824_v55, %v828_v56  ;;  %v5405_v55 = vcombine.low %v856_v6, %v860_v41 }
  0xd4   :  { %3843 = vmatprep.subr.bf16.mxu0 %v5332_v11  ;;  %4006 = vmatpush1.bf16.msra.mxu1 %v5325_v20  ;;  %v5390_v11 = vcombine.high %v840_v62, %v844_v3  ;;  %v173_v14 = vsub.s32 0, %v6358_v13  ;;  %v185_v20 = vsub.s32 3, %v6358_v13  ;;  %v879_v3 = vld [vmem:[#allocation7 + $0x540] sm:$0xff] }
  0xd5   :  { %4007 = vmatprep.subr.bf16.mxu1 %v5334_v23 }
  0xd6   :  { %v174_v17 = vrot.slane %v6361_v15, %v173_v14 }
  0xd7   :  { %3844 = vmatpush1.bf16.msra.mxu0 %v5331_v16  ;;  %v177_v16 = vsub.s32 1, %v6358_v13 }
  0xd8   :  { %3845 = vmatprep.subr.bf16.mxu0 %v5340_v19  ;;  %4008 = vmatpush1.bf16.msra.mxu1 %v5333_v28 }
  0xd9   :  { %4009 = vmatprep.subr.bf16.mxu1 %v5342_v31  ;;  %v178_v18 = vrot.slane %v6361_v15, %v177_v16  ;;  %v852_v31 = vld [vmem:[#allocation7 + $0x468] sm:$0xff] }
  0xda   :  { %v5398_v37 = vcombine.high %v848_v30, %v852_v31  ;;  %v5397_v45 = vcombine.low %v848_v30, %v852_v31 }
  0xdb   :  { %3846 = vmatpush1.bf16.msra.mxu0 %v5339_v24 }
  0xdc   :  { %3847 = vmatprep.subr.bf16.mxu0 %v5348_v27  ;;  %4010 = vmatpush1.bf16.msra.mxu1 %v5341_v36  ;;  %v847_v27 = vld [vmem:[#allocation7 + $0x440] sm:$0xff] }
  0xdd   :  { %4011 = vmatprep.subr.bf16.mxu1 %v5350_v39  ;;  %v5396_v36 = vcombine.high %v847_v27, %v851_v29  ;;  %v5395_v44 = vcombine.low %v847_v27, %v851_v29  ;;  %v896_v27 = vld [vmem:[#allocation7 + $0x5c8] sm:$0xff] }
  0xdf   :  { %3848 = vmatpush1.bf16.msra.mxu0 %v5347_v32  ;;  %v186_v32 = vrot.slane %v6361_v15, %v185_v20 }
  0xe0   :  { %3849 = vmatprep.subr.bf16.mxu0 %v5356_v35  ;;  %4012 = vmatpush1.bf16.msra.mxu1 %v5349_v43 }
  0xe1   :  { %4013 = vmatprep.subr.bf16.mxu1 %v5358_v0 }
  0xe3   :  { %3850 = vmatpush1.bf16.msra.mxu0 %v5355_v40  ;;  %v859_v40 = vld [vmem:[#allocation7 + $0x4a0] sm:$0xff] }
  0xe4   :  { %3851 = vmatprep.subr.bf16.mxu0 %v5364_v42  ;;  %4014 = vmatpush1.bf16.msra.mxu1 %v5357_v50  ;;  %v5404_v47 = vcombine.high %v855_v38, %v859_v40  ;;  %v867_v50 = vld [vmem:[#allocation7 + $0x4e0] sm:$0xff] }
  0xe5   :  { %4015 = vmatprep.subr.bf16.mxu1 %v5366_v51  ;;  %v864_v51 = vld [vmem:[#allocation7 + $0x4c8] sm:$0xff] }
  0xe7   :  { %3852 = vmatpush1.bf16.msra.mxu0 %v5363_v46 }
  0xe8   :  { %3853 = vmatprep.subr.bf16.mxu0 %v5372_v49  ;;  %4016 = vmatpush1.bf16.msra.mxu1 %v5365_v58  ;;  %v863_v49 = vld [vmem:[#allocation7 + $0x4c0] sm:$0xff] }
  0xe9   :  { %4017 = vmatprep.subr.bf16.mxu1 %v5374_v59  ;;  %v5412_v56 = vcombine.high %v863_v49, %v867_v50  ;;  %v871_v58 = vld [vmem:[#allocation7 + $0x500] sm:$0xff]  ;;  %v5411_v62 = vcombine.low %v863_v49, %v867_v50  ;;  %v916_v49 = vld [vmem:[#allocation7 + $0x668] sm:$0xff] }
  0xea   :  { %v875_v59 = vld [vmem:[#allocation7 + $0x520] sm:$0xff] }
  0xeb   :  { %3854 = vmatpush1.bf16.msra.mxu0 %v5371_v54  ;;  %v5403_v54 = vcombine.low %v855_v38, %v859_v40  ;;  %v5420_v1 = vcombine.high %v871_v58, %v875_v59  ;;  %v904_v38 = vld [vmem:[#allocation7 + $0x608] sm:$0xff] }
  0xec   :  { %3855 = vmatprep.subr.bf16.mxu0 %v5380_v57  ;;  %4018 = vmatpush1.bf16.msra.mxu1 %v5373_v8  ;;  %v5414_v57 = vcombine.high %v864_v51, %v868_v52  ;;  %v5419_v8 = vcombine.low %v871_v58, %v875_v59  ;;  %v923_v58 = vld [vmem:[#allocation7 + $0x6a0] sm:$0xff]  ;;  %v920_v59 = vld [vmem:[#allocation7 + $0x688] sm:$0xff] }
  0xed   :  { %4019 = vmatprep.subr.bf16.mxu1 %v5382_v9  ;;  %v5421_v9 = vcombine.low %v872_v60, %v876_v61  ;;  %v924_v60 = vld [vmem:[#allocation7 + $0x6a8] sm:$0xff] }
  0xef   :  { %3856 = vmatpush1.bf16.msra.mxu0 %v5379_v63  ;;  %v5413_v63 = vcombine.low %v864_v51, %v868_v52 }
  0xf0   :  { %3866 = vmatprep.subr.bf16.mxu0 %v5388_v5  ;;  %4020 = vmatpush1.bf16.msra.mxu1 %v5381_v10  ;;  %v880_v5 = vld [vmem:[#allocation7 + $0x548] sm:$0xff] }
  0xf1   :  { %4030 = vmatprep.subr.bf16.mxu1 %v5390_v11 }
 0x165   :  { %v565_v19 = vpop.f32.mrb[0].mxu0  ;;  %v6376_v34 = vpop.f32.mrb[0].mxu1 }
 0x166   :  { %v566_v21 = vadd.f32 %v565_v19, %v174_v17  ;;  %v567_v22 = vpop.f32.mrb[1].mxu0  ;;  %v608_v39 = vpop.f32.mrb[1].mxu1  ;;  %v891_v17 = vld [vmem:[#allocation7 + $0x5a0] sm:$0xff]  ;;  %v892_v19 = vld [vmem:[#allocation7 + $0x5a8] sm:$0xff] }
 0x167   :  { %v568_v23 = vadd.f32 %v567_v22, %v178_v18  ;;  %v569_v24 = vpop.f32.mrb[2].mxu0  ;;  %v609_v42 = vadd.f32 %v608_v39, %v186_v32  ;;  %v610_v43 = vpop.f32.mrb[2].mxu1  ;;  %v888_v18 = vld [vmem:[#allocation7 + $0x588] sm:$0xff]  ;;  %v5435_v29 = vcombine.low %v887_v12, %v891_v17 }
 0x168   :  { %v695_v25 = vmax.f32 %v566_v21, 0.0  ;;  %v570_v26 = vpop.f32.mrb[3].mxu0  ;;  %v611_v0 = vpop.f32.mrb[3].mxu1  ;;  %v5438_v24 = vcombine.high %v888_v18, %v892_v19  ;;  %v5437_v30 = vcombine.low %v888_v18, %v892_v19  ;;  %v908_v39 = vld [vmem:[#allocation7 + $0x628] sm:$0xff]  ;;  %v939_v18 = vld [vmem:[#allocation7 + $0x720] sm:$0xff] }
 0x169   :  { %v696_v28 = vmax.f32 %v568_v23, 0.0  ;;  %v698_v46 = vmax.f32 %v609_v42, 0.0  ;;  %v5436_v23 = vcombine.high %v887_v12, %v891_v17  ;;  %v899_v26 = vld [vmem:[#allocation7 + $0x5e0] sm:$0xff]  ;;  %v5453_v51 = vcombine.low %v904_v38, %v908_v39  ;;  %v936_v19 = vld [vmem:[#allocation7 + $0x708] sm:$0xff] }
 0x16a   :  { %v6378_v35 = vpack.c.bf16 %v695_v25, %v695_v25  ;;  %v895_v25 = vld [vmem:[#allocation7 + $0x5c0] sm:$0xff] }
 0x16b   :  { %v6374_v33 = vpack.c.bf16 %v696_v28, %v696_v28  ;;  %v6384_v53 = vpack.c.bf16 %v698_v46, %v698_v46  ;;  %v900_v28 = vld [vmem:[#allocation7 + $0x5e8] sm:$0xff]  ;;  %v5444_v31 = vcombine.high %v895_v25, %v899_v26  ;;  %v5443_v41 = vcombine.low %v895_v25, %v899_v26  ;;  %v935_v17 = vld [vmem:[#allocation7 + $0x700] sm:$0xff] }
 0x16c   :  { %v5446_v32 = vcombine.high %v896_v27, %v900_v28  ;;  %v5445_v42 = vcombine.low %v896_v27, %v900_v28  ;;  %v943_v26 = vld [vmem:[#allocation7 + $0x740] sm:$0xff]  ;;  %v944_v28 = vld [vmem:[#allocation7 + $0x748] sm:$0xff] }
 0x16d   :  { %3857 = vmatprep.mubr.bf16.mxu0 %v6374_v33  ;;  %4021 = vmatprep.mubr.bf16.mxu1 %v6374_v33  ;;  %v947_v27 = vld [vmem:[#allocation7 + $0x760] sm:$0xff] }
 0x16e   :  { %3858 = vmatmul.mubr.bf16.vlgmr.msra.gmra.mrb[8].mxu0 %v6378_v35  ;;  %4022 = vmatmul.mubr.bf16.vlgmr.msra.gmra.mrb[8].mxu1 %v6378_v35 }
 0x16f   :  { %3867 = vmatpush1.bf16.msra.mxu0 %v5387_v4  ;;  %4031 = vmatpush1.bf16.msra.mxu1 %v5389_v7  ;;  %v883_v4 = vld [vmem:[#allocation7 + $0x560] sm:$0xff]  ;;  %v884_v7 = vld [vmem:[#allocation7 + $0x568] sm:$0xff] }
 0x170   :  { %3868 = vmatprep.subr.bf16.mxu0 %v5396_v36  ;;  %4032 = vmatprep.subr.bf16.mxu1 %v5398_v37  ;;  %v5428_v10 = vcombine.high %v879_v3, %v883_v4  ;;  %v5430_v11 = vcombine.high %v880_v5, %v884_v7  ;;  %v5427_v21 = vcombine.low %v879_v3, %v883_v4  ;;  %v903_v36 = vld [vmem:[#allocation7 + $0x600] sm:$0xff] }
 0x171   :  { %3898 = vmatprep.mubr.bf16.mxu0 %v6384_v53  ;;  %4062 = vmatprep.mubr.bf16.mxu1 %v6384_v53  ;;  %v5429_v22 = vcombine.low %v880_v5, %v884_v7  ;;  %v907_v37 = vld [vmem:[#allocation7 + $0x620] sm:$0xff]  ;;  %v5470_v3 = vcombine.high %v920_v59, %v924_v60  ;;  %v928_v7 = vld [vmem:[#allocation7 + $0x6c8] sm:$0xff] }
 0x172   :  { %v5452_v0 = vcombine.high %v903_v36, %v907_v37  ;;  %v5451_v50 = vcombine.low %v903_v36, %v907_v37  ;;  %v927_v4 = vld [vmem:[#allocation7 + $0x6c0] sm:$0xff]  ;;  %v5492_v36 = vcombine.high %v943_v26, %v947_v27 }
 0x173   :  { %3869 = vmatpush1.bf16.msra.mxu0 %v5395_v44  ;;  %4033 = vmatpush1.bf16.msra.mxu1 %v5397_v45  ;;  %v5454_v44 = vcombine.high %v904_v38, %v908_v39  ;;  %v911_v45 = vld [vmem:[#allocation7 + $0x640] sm:$0xff] }
 0x174   :  { %3870 = vmatprep.subr.bf16.mxu0 %v5404_v47  ;;  %4034 = vmatprep.subr.bf16.mxu1 %v5406_v48  ;;  %v915_v47 = vld [vmem:[#allocation7 + $0x660] sm:$0xff]  ;;  %v912_v48 = vld [vmem:[#allocation7 + $0x648] sm:$0xff] }
 0x175   :  { %v931_v5 = vld [vmem:[#allocation7 + $0x6e0] sm:$0xff] }
 0x176   :  { %v951_v38 = vld [vmem:[#allocation7 + $0x780] sm:$0xff] }
 0x177   :  { %3871 = vmatpush1.bf16.msra.mxu0 %v5403_v54  ;;  %4035 = vmatpush1.bf16.msra.mxu1 %v5405_v55  ;;  %v5460_v54 = vcombine.high %v911_v45, %v915_v47  ;;  %v5462_v55 = vcombine.high %v912_v48, %v916_v49  ;;  %v955_v39 = vld [vmem:[#allocation7 + $0x7a0] sm:$0xff] }
 0x178   :  { %3872 = vmatprep.subr.bf16.mxu0 %v5412_v56  ;;  %4036 = vmatprep.subr.bf16.mxu1 %v5414_v57  ;;  %v919_v56 = vld [vmem:[#allocation7 + $0x680] sm:$0xff] }
 0x17b   :  { %3873 = vmatpush1.bf16.msra.mxu0 %v5411_v62  ;;  %4037 = vmatpush1.bf16.msra.mxu1 %v5413_v63  ;;  %v5459_v63 = vcombine.low %v911_v45, %v915_v47 }
 0x17c   :  { %3874 = vmatprep.subr.bf16.mxu0 %v5420_v1  ;;  %4038 = vmatprep.subr.bf16.mxu1 %v5422_v2  ;;  %v5461_v1 = vcombine.low %v912_v48, %v916_v49  ;;  %v5468_v2 = vcombine.high %v919_v56, %v923_v58  ;;  %v959_v48 = vld [vmem:[#allocation7 + $0x7c0] sm:$0xff] }
 0x17d   :  { %v963_v49 = vld [vmem:[#allocation7 + $0x7e0] sm:$0xff] }
 0x17f   :  { %3875 = vmatpush1.bf16.msra.mxu0 %v5419_v8  ;;  %4039 = vmatpush1.bf16.msra.mxu1 %v5421_v9  ;;  %v932_v8 = vld [vmem:[#allocation7 + $0x6e8] sm:$0xff]  ;;  %v5467_v9 = vcombine.low %v919_v56, %v923_v58  ;;  %v5499_v56 = vcombine.low %v951_v38, %v955_v39 }
 0x180   :  { %3876 = vmatprep.subr.bf16.mxu0 %v5428_v10  ;;  %4040 = vmatprep.subr.bf16.mxu1 %v5430_v11  ;;  %v5469_v10 = vcombine.low %v920_v59, %v924_v60  ;;  %v5476_v11 = vcombine.high %v927_v4, %v931_v5  ;;  %v5478_v12 = vcombine.high %v928_v7, %v932_v8 }
 0x181   :  { %v5508_v59 = vcombine.high %v959_v48, %v963_v49 }
 0x183   :  { %3877 = vmatpush1.bf16.msra.mxu0 %v5427_v21  ;;  %4041 = vmatpush1.bf16.msra.mxu1 %v5429_v22  ;;  %v940_v21 = vld [vmem:[#allocation7 + $0x728] sm:$0xff]  ;;  %v5475_v22 = vcombine.low %v927_v4, %v931_v5  ;;  %v5507_v4 = vcombine.low %v959_v48, %v963_v49 }
 0x184   :  { %3878 = vmatprep.subr.bf16.mxu0 %v5436_v23  ;;  %4042 = vmatprep.subr.bf16.mxu1 %v5438_v24  ;;  %v5477_v23 = vcombine.low %v928_v7, %v932_v8  ;;  %v5484_v24 = vcombine.high %v935_v17, %v939_v18  ;;  %v5486_v25 = vcombine.high %v936_v19, %v940_v21  ;;  %v975_v8 = vld [vmem:[#allocation7 + $0x840] sm:$0xff] }
 0x185   :  { %v6388_v40 = vpop.f32.mrb[4].mxu0 }
 0x186   :  { %v6390_v6 = vpop.f32.mrb[5].mxu0  ;;  %v6392_v52 = vpop.f32.mrb[4].mxu1 }
 0x187   :  { %3879 = vmatpush1.bf16.msra.mxu0 %v5435_v29  ;;  %4043 = vmatpush1.bf16.msra.mxu1 %v5437_v30  ;;  %v651_v43 = vpop.f32.mrb[6].mxu0  ;;  %v6394_v57 = vpop.f32.mrb[5].mxu1  ;;  %v948_v29 = vld [vmem:[#allocation7 + $0x768] sm:$0xff]  ;;  %v181_v30 = vsub.s32 2, %v6358_v13 }
 0x188   :  { %3880 = vmatprep.subr.bf16.mxu0 %v5444_v31  ;;  %4044 = vmatprep.subr.bf16.mxu1 %v5446_v32  ;;  %v652_v46 = vpop.f32.mrb[7].mxu0  ;;  %v692_v61 = vpop.f32.mrb[6].mxu1  ;;  %v5483_v31 = vcombine.low %v935_v17, %v939_v18  ;;  %v5485_v32 = vcombine.low %v936_v19, %v940_v21  ;;  %v5494_v37 = vcombine.high %v944_v28, %v948_v29  ;;  %v193_v43 = vsub.s32 5, %v6358_v13 }
 0x189   :  { %v693_v62 = vpop.f32.mrb[7].mxu1  ;;  %v5493_v45 = vcombine.low %v944_v28, %v948_v29  ;;  %v5500_v46 = vcombine.high %v951_v38, %v955_v39  ;;  %v967_v61 = vld [vmem:[#allocation7 + $0x800] sm:$0xff]  ;;  %v996_v38 = vld [vmem:[#allocation7 + $0x8e8] sm:$0xff] }
 0x18a   :  { %v971_v62 = vld [vmem:[#allocation7 + $0x820] sm:$0xff] }
 0x18b   :  { %3881 = vmatpush1.bf16.msra.mxu0 %v5443_v41  ;;  %4045 = vmatpush1.bf16.msra.mxu1 %v5445_v42  ;;  %v952_v41 = vld [vmem:[#allocation7 + $0x788] sm:$0xff]  ;;  %v5515_v18 = vcombine.low %v967_v61, %v971_v62 }
 0x18c   :  { %3882 = vmatprep.subr.bf16.mxu0 %v5452_v0  ;;  %4046 = vmatprep.subr.bf16.mxu1 %v5454_v44  ;;  %v956_v42 = vld [vmem:[#allocation7 + $0x7a8] sm:$0xff]  ;;  %v182_v0 = vrot.slane %v6361_v15, %v181_v30  ;;  %v5491_v44 = vcombine.low %v943_v26, %v947_v27 }
 0x18d   :  { %v5502_v47 = vcombine.high %v952_v41, %v956_v42  ;;  %v5501_v58 = vcombine.low %v952_v41, %v956_v42 }
 0x18f   :  { %3883 = vmatpush1.bf16.msra.mxu0 %v5451_v50  ;;  %4047 = vmatpush1.bf16.msra.mxu1 %v5453_v51  ;;  %v960_v50 = vld [vmem:[#allocation7 + $0x7c8] sm:$0xff] }
 0x190   :  { %3884 = vmatprep.subr.bf16.mxu0 %v5460_v54  ;;  %4048 = vmatprep.subr.bf16.mxu1 %v5462_v55  ;;  %v964_v51 = vld [vmem:[#allocation7 + $0x7e8] sm:$0xff]  ;;  %v194_v54 = vrot.slane %v6361_v15, %v193_v43  ;;  %v607_v55 = vadd.f32 %v6376_v34, %v182_v0  ;;  %v5516_v34 = vcombine.high %v967_v61, %v971_v62 }
 0x191   :  { %v5510_v60 = vcombine.high %v960_v50, %v964_v51  ;;  %v5509_v5 = vcombine.low %v960_v50, %v964_v51 }
 0x193   :  { %3885 = vmatpush1.bf16.msra.mxu0 %v5459_v63  ;;  %4049 = vmatpush1.bf16.msra.mxu1 %v5461_v1  ;;  %v968_v63 = vld [vmem:[#allocation7 + $0x808] sm:$0xff] }
 0x194   :  { %3886 = vmatprep.subr.bf16.mxu0 %v5468_v2  ;;  %4050 = vmatprep.subr.bf16.mxu1 %v5470_v3  ;;  %v972_v1 = vld [vmem:[#allocation7 + $0x828] sm:$0xff]  ;;  %v650_v2 = vadd.f32 %v6390_v6, %v194_v54  ;;  %v697_v3 = vmax.f32 %v607_v55, 0.0  ;;  %v1007_v54 = vld [vmem:[#allocation7 + $0x940] sm:$0xff] }
 0x195   :  { %v5518_v7 = vcombine.high %v968_v63, %v972_v1  ;;  %v5517_v6 = vcombine.low %v968_v63, %v972_v1  ;;  %v1011_v55 = vld [vmem:[#allocation7 + $0x960] sm:$0xff] }
 0x196   :  { %v6406_v17 = vpack.c.bf16 %v697_v3, %v697_v3  ;;  %v5556_v61 = vcombine.high %v1007_v54, %v1011_v55  ;;  %v1015_v63 = vld [vmem:[#allocation7 + $0x980] sm:$0xff]  ;;  %v1020_v3 = vld [vmem:[#allocation7 + $0x9a8] sm:$0xff] }
 0x197   :  { %3887 = vmatpush1.bf16.msra.mxu0 %v5467_v9  ;;  %4051 = vmatpush1.bf16.msra.mxu1 %v5469_v10  ;;  %v979_v9 = vld [vmem:[#allocation7 + $0x860] sm:$0xff]  ;;  %v976_v10 = vld [vmem:[#allocation7 + $0x848] sm:$0xff] }
 0x198   :  { %3888 = vmatprep.subr.bf16.mxu0 %v5476_v11  ;;  %4052 = vmatprep.subr.bf16.mxu1 %v5478_v12  ;;  %v980_v11 = vld [vmem:[#allocation7 + $0x868] sm:$0xff]  ;;  %v700_v12 = vmax.f32 %v650_v2, 0.0  ;;  %v5524_v19 = vcombine.high %v975_v8, %v979_v9  ;;  %v5523_v27 = vcombine.low %v975_v8, %v979_v9  ;;  %v1019_v1 = vld [vmem:[#allocation7 + $0x9a0] sm:$0xff] }
 0x199   :  { %v5526_v21 = vcombine.high %v976_v10, %v980_v11  ;;  %v5525_v28 = vcombine.low %v976_v10, %v980_v11  ;;  %v1016_v2 = vld [vmem:[#allocation7 + $0x988] sm:$0xff]  ;;  %v1023_v8 = vld [vmem:[#allocation7 + $0x9c0] sm:$0xff] }
 0x19a   :  { %v6408_v26 = vpack.c.bf16 %v700_v12, %v700_v12  ;;  %v1027_v9 = vld [vmem:[#allocation7 + $0x9e0] sm:$0xff]  ;;  %v1024_v10 = vld [vmem:[#allocation7 + $0x9c8] sm:$0xff]  ;;  %v5563_v12 = vcombine.low %v1015_v63, %v1019_v1 }
 0x19b   :  { %3889 = vmatpush1.bf16.msra.mxu0 %v5475_v22  ;;  %4053 = vmatpush1.bf16.msra.mxu1 %v5477_v23  ;;  %v983_v22 = vld [vmem:[#allocation7 + $0x880] sm:$0xff]  ;;  %v1028_v11 = vld [vmem:[#allocation7 + $0x9e8] sm:$0xff] }
 0x19c   :  { %3890 = vmatprep.subr.bf16.mxu0 %v5484_v24  ;;  %4054 = vmatprep.subr.bf16.mxu1 %v5486_v25  ;;  %v987_v23 = vld [vmem:[#allocation7 + $0x8a0] sm:$0xff]  ;;  %v984_v24 = vld [vmem:[#allocation7 + $0x888] sm:$0xff] }
 0x19d   :  { %v988_v25 = vld [vmem:[#allocation7 + $0x8a8] sm:$0xff]  ;;  %v5532_v29 = vcombine.high %v983_v22, %v987_v23  ;;  %v5531_v39 = vcombine.low %v983_v22, %v987_v23  ;;  %v1035_v22 = vld [vmem:[#allocation7 + $0xa20] sm:$0xff] }
 0x19e   :  { %v5533_v41 = vcombine.low %v984_v24, %v988_v25  ;;  %v1032_v23 = vld [vmem:[#allocation7 + $0xa08] sm:$0xff] }
 0x19f   :  { %3891 = vmatpush1.bf16.msra.mxu0 %v5483_v31  ;;  %4055 = vmatpush1.bf16.msra.mxu1 %v5485_v32  ;;  %v5534_v31 = vcombine.high %v984_v24, %v988_v25  ;;  %v991_v32 = vld [vmem:[#allocation7 + $0x8c0] sm:$0xff]  ;;  %v1036_v24 = vld [vmem:[#allocation7 + $0xa28] sm:$0xff]  ;;  %v5571_v25 = vcombine.low %v1023_v8, %v1027_v9 }
 0x1a0   :  { %3892 = vmatprep.subr.bf16.mxu0 %v5492_v36  ;;  %4056 = vmatprep.subr.bf16.mxu1 %v5494_v37  ;;  %v995_v36 = vld [vmem:[#allocation7 + $0x8e0] sm:$0xff]  ;;  %v992_v37 = vld [vmem:[#allocation7 + $0x8c8] sm:$0xff] }
 0x1a1   :  { %v5540_v42 = vcombine.high %v991_v32, %v995_v36  ;;  %v5542_v0 = vcombine.high %v992_v37, %v996_v38  ;;  %v5539_v48 = vcombine.low %v991_v32, %v995_v36  ;;  %v5541_v49 = vcombine.low %v992_v37, %v996_v38  ;;  %v1043_v32 = vld [vmem:[#allocation7 + $0xa60] sm:$0xff]  ;;  %v1040_v36 = vld [vmem:[#allocation7 + $0xa48] sm:$0xff] }
 0x1a2   :  { %v1044_v37 = vld [vmem:[#allocation7 + $0xa68] sm:$0xff] }
 0x1a3   :  { %3893 = vmatpush1.bf16.msra.mxu0 %v5491_v44  ;;  %4057 = vmatpush1.bf16.msra.mxu1 %v5493_v45  ;;  %v999_v44 = vld [vmem:[#allocation7 + $0x900] sm:$0xff] }
 0x1a4   :  { %3894 = vmatprep.subr.bf16.mxu0 %v5500_v46  ;;  %4058 = vmatprep.subr.bf16.mxu1 %v5502_v47  ;;  %v1003_v45 = vld [vmem:[#allocation7 + $0x920] sm:$0xff]  ;;  %v1000_v46 = vld [vmem:[#allocation7 + $0x908] sm:$0xff] }
 0x1a5   :  { %v1004_v47 = vld [vmem:[#allocation7 + $0x928] sm:$0xff]  ;;  %v5548_v50 = vcombine.high %v999_v44, %v1003_v45 }
 0x1a6   :  { %v5550_v51 = vcombine.high %v1000_v46, %v1004_v47 }
 0x1a7   :  { %3895 = vmatpush1.bf16.msra.mxu0 %v5499_v56  ;;  %4059 = vmatpush1.bf16.msra.mxu1 %v5501_v58  ;;  %v1008_v56 = vld [vmem:[#allocation7 + $0x948] sm:$0xff] }
 0x1a8   :  { %3896 = vmatprep.subr.bf16.mxu0 %v5508_v59  ;;  %4060 = vmatprep.subr.bf16.mxu1 %v5510_v60  ;;  %v1012_v58 = vld [vmem:[#allocation7 + $0x968] sm:$0xff]  ;;  %v5547_v59 = vcombine.low %v999_v44, %v1003_v45  ;;  %v5549_v60 = vcombine.low %v1000_v46, %v1004_v47  ;;  %v1051_v44 = vld [vmem:[#allocation7 + $0xaa0] sm:$0xff] }
 0x1a9   :  { %v5558_v62 = vcombine.high %v1008_v56, %v1012_v58  ;;  %v1048_v45 = vld [vmem:[#allocation7 + $0xa88] sm:$0xff] }
 0x1aa   :  { %v1052_v46 = vld [vmem:[#allocation7 + $0xaa8] sm:$0xff] }
 0x1ab   :  { %3897 = vmatpush1.bf16.msra.mxu0 %v5507_v4  ;;  %4061 = vmatpush1.bf16.msra.mxu1 %v5509_v5  ;;  %v5555_v4 = vcombine.low %v1007_v54, %v1011_v55  ;;  %v5557_v5 = vcombine.low %v1008_v56, %v1012_v58  ;;  %v1059_v54 = vld [vmem:[#allocation7 + $0xae0] sm:$0xff]  ;;  %v1056_v55 = vld [vmem:[#allocation7 + $0xac8] sm:$0xff] }
 0x1ac   :  { %3907 = vmatprep.subr.bf16.mxu0 %v5516_v34  ;;  %4071 = vmatprep.subr.bf16.mxu1 %v5518_v7  ;;  %v5564_v34 = vcombine.high %v1015_v63, %v1019_v1  ;;  %v5566_v7 = vcombine.high %v1016_v2, %v1020_v3  ;;  %v1060_v56 = vld [vmem:[#allocation7 + $0xae8] sm:$0xff]  ;;  %v1067_v63 = vld [vmem:[#allocation7 + $0xb20] sm:$0xff] }
 0x1ad   :  { %v1064_v1 = vld [vmem:[#allocation7 + $0xb08] sm:$0xff] }
 0x1ae   :  { %3899 = vmatmul.mubr.bf16.vlgmr.msra.gmra.mrb[8].mxu0 %v6406_v17  ;;  %4063 = vmatmul.mubr.bf16.vlgmr.msra.gmra.mrb[8].mxu1 %v6406_v17 }
 0x1af   :  { %3908 = vmatpush1.bf16.msra.mxu0 %v5515_v18  ;;  %4072 = vmatpush1.bf16.msra.mxu1 %v5517_v6  ;;  %v5565_v18 = vcombine.low %v1016_v2, %v1020_v3  ;;  %v5572_v6 = vcombine.high %v1023_v8, %v1027_v9  ;;  %v1068_v2 = vld [vmem:[#allocation7 + $0xb28] sm:$0xff]  ;;  %v1075_v8 = vld [vmem:[#allocation7 + $0xb60] sm:$0xff] }
 0x1b0   :  { %3909 = vmatprep.subr.bf16.mxu0 %v5524_v19  ;;  %4073 = vmatprep.subr.bf16.mxu1 %v5526_v21  ;;  %v5574_v19 = vcombine.high %v1024_v10, %v1028_v11  ;;  %v1031_v21 = vld [vmem:[#allocation7 + $0xa00] sm:$0xff]  ;;  %v1072_v9 = vld [vmem:[#allocation7 + $0xb48] sm:$0xff] }
 0x1b1   :  { %3939 = vmatprep.mubr.bf16.mxu0 %v6408_v26  ;;  %4103 = vmatprep.mubr.bf16.mxu1 %v6408_v26  ;;  %v5579_v38 = vcombine.low %v1031_v21, %v1035_v22 }
 0x1b3   :  { %3910 = vmatpush1.bf16.msra.mxu0 %v5523_v27  ;;  %4074 = vmatpush1.bf16.msra.mxu1 %v5525_v28  ;;  %v5573_v27 = vcombine.low %v1024_v10, %v1028_v11  ;;  %v5580_v28 = vcombine.high %v1031_v21, %v1035_v22  ;;  %v1076_v10 = vld [vmem:[#allocation7 + $0xb68] sm:$0xff]  ;;  %v189_v11 = vsub.s32 4, %v6358_v13  ;;  %v1079_v21 = vld [vmem:[#allocation7 + $0xb80] sm:$0xff] }
 0x1b4   :  { %3911 = vmatprep.subr.bf16.mxu0 %v5532_v29  ;;  %4075 = vmatprep.subr.bf16.mxu1 %v5534_v31  ;;  %v5582_v29 = vcombine.high %v1032_v23, %v1036_v24  ;;  %v1039_v31 = vld [vmem:[#allocation7 + $0xa40] sm:$0xff] }
 0x1b5   :  { %v5587_v47 = vcombine.low %v1039_v31, %v1043_v32  ;;  %v1083_v22 = vld [vmem:[#allocation7 + $0xba0] sm:$0xff] }
 0x1b7   :  { %3912 = vmatpush1.bf16.msra.mxu0 %v5531_v39  ;;  %4076 = vmatpush1.bf16.msra.mxu1 %v5533_v41  ;;  %v5581_v39 = vcombine.low %v1032_v23, %v1036_v24  ;;  %v5588_v41 = vcombine.high %v1039_v31, %v1043_v32  ;;  %v1080_v23 = vld [vmem:[#allocation7 + $0xb88] sm:$0xff]  ;;  %v5628_v31 = vcombine.high %v1079_v21, %v1083_v22 }
 0x1b8   :  { %3913 = vmatprep.subr.bf16.mxu0 %v5540_v42  ;;  %4077 = vmatprep.subr.bf16.mxu1 %v5542_v0  ;;  %v5590_v42 = vcombine.high %v1040_v36, %v1044_v37  ;;  %v1047_v0 = vld [vmem:[#allocation7 + $0xa80] sm:$0xff]  ;;  %v1084_v24 = vld [vmem:[#allocation7 + $0xba8] sm:$0xff] }
 0x1b9   :  { %v5595_v58 = vcombine.low %v1047_v0, %v1051_v44  ;;  %v5630_v32 = vcombine.high %v1080_v23, %v1084_v24 }
 0x1bb   :  { %3914 = vmatpush1.bf16.msra.mxu0 %v5539_v48  ;;  %4078 = vmatpush1.bf16.msra.mxu1 %v5541_v49  ;;  %v5589_v48 = vcombine.low %v1040_v36, %v1044_v37  ;;  %v5596_v49 = vcombine.high %v1047_v0, %v1051_v44  ;;  %v1087_v36 = vld [vmem:[#allocation7 + $0xbc0] sm:$0xff]  ;;  %v5627_v0 = vcombine.low %v1079_v21, %v1083_v22  ;;  %v1120_v21 = vld [vmem:[#allocation7 + $0xcc8] sm:$0xff] }
 0x1bc   :  { %3915 = vmatprep.subr.bf16.mxu0 %v5548_v50  ;;  %4079 = vmatprep.subr.bf16.mxu1 %v5550_v51  ;;  %v5598_v50 = vcombine.high %v1048_v45, %v1052_v46  ;;  %v1055_v51 = vld [vmem:[#allocation7 + $0xac0] sm:$0xff]  ;;  %v5629_v44 = vcombine.low %v1080_v23, %v1084_v24  ;;  %v1124_v22 = vld [vmem:[#allocation7 + $0xce8] sm:$0xff] }
 0x1bd   :  { %v5603_v3 = vcombine.low %v1055_v51, %v1059_v54  ;;  %v1091_v37 = vld [vmem:[#allocation7 + $0xbe0] sm:$0xff] }
 0x1bf   :  { %3916 = vmatpush1.bf16.msra.mxu0 %v5547_v59  ;;  %4080 = vmatpush1.bf16.msra.mxu1 %v5549_v60  ;;  %v5597_v59 = vcombine.low %v1048_v45, %v1052_v46  ;;  %v5604_v60 = vcombine.high %v1055_v51, %v1059_v54  ;;  %v5636_v45 = vcombine.high %v1087_v36, %v1091_v37 }
 0x1c0   :  { %3917 = vmatprep.subr.bf16.mxu0 %v5556_v61  ;;  %4081 = vmatprep.subr.bf16.mxu1 %v5558_v62  ;;  %v5606_v61 = vcombine.high %v1056_v55, %v1060_v56  ;;  %v1063_v62 = vld [vmem:[#allocation7 + $0xb00] sm:$0xff] }
 0x1c3   :  { %3918 = vmatpush1.bf16.msra.mxu0 %v5555_v4  ;;  %4082 = vmatpush1.bf16.msra.mxu1 %v5557_v5  ;;  %v5605_v4 = vcombine.low %v1056_v55, %v1060_v56  ;;  %v5612_v5 = vcombine.high %v1063_v62, %v1067_v63 }
 0x1c4   :  { %3919 = vmatprep.subr.bf16.mxu0 %v5564_v34  ;;  %4083 = vmatprep.subr.bf16.mxu1 %v5566_v7  ;;  %v5614_v34 = vcombine.high %v1064_v1, %v1068_v2  ;;  %v1071_v7 = vld [vmem:[#allocation7 + $0xb40] sm:$0xff] }
 0x1c7   :  { %3920 = vmatpush1.bf16.msra.mxu0 %v5563_v12  ;;  %4084 = vmatpush1.bf16.msra.mxu1 %v5565_v18  ;;  %v5611_v12 = vcombine.low %v1063_v62, %v1067_v63  ;;  %v5613_v18 = vcombine.low %v1064_v1, %v1068_v2 }
 0x1c8   :  { %3921 = vmatprep.subr.bf16.mxu0 %v5572_v6  ;;  %4085 = vmatprep.subr.bf16.mxu1 %v5574_v19  ;;  %v5620_v6 = vcombine.high %v1071_v7, %v1075_v8  ;;  %v5622_v19 = vcombine.high %v1072_v9, %v1076_v10 }
 0x1cb   :  { %3922 = vmatpush1.bf16.msra.mxu0 %v5571_v25  ;;  %4086 = vmatpush1.bf16.msra.mxu1 %v5573_v27  ;;  %v201_v25 = vsub.s32 7, %v6358_v13  ;;  %v190_v27 = vrot.slane %v6361_v15, %v189_v11 }
 0x1cc   :  { %3923 = vmatprep.subr.bf16.mxu0 %v5580_v28  ;;  %4087 = vmatprep.subr.bf16.mxu1 %v5582_v29  ;;  %v5619_v28 = vcombine.low %v1071_v7, %v1075_v8  ;;  %v5621_v29 = vcombine.low %v1072_v9, %v1076_v10  ;;  %v1116_v7 = vld [vmem:[#allocation7 + $0xca8] sm:$0xff] }
 0x1cf   :  { %3924 = vmatpush1.bf16.msra.mxu0 %v5579_v38  ;;  %4088 = vmatpush1.bf16.msra.mxu1 %v5581_v39  ;;  %v1088_v38 = vld [vmem:[#allocation7 + $0xbc8] sm:$0xff] }
 0x1d0   :  { %3925 = vmatprep.subr.bf16.mxu0 %v5588_v41  ;;  %4089 = vmatprep.subr.bf16.mxu1 %v5590_v42  ;;  %v1092_v39 = vld [vmem:[#allocation7 + $0xbe8] sm:$0xff]  ;;  %v202_v41 = vrot.slane %v6361_v15, %v201_v25  ;;  %v648_v42 = vadd.f32 %v6388_v40, %v190_v27  ;;  %v5635_v15 = vcombine.low %v1087_v36, %v1091_v37 }
 0x1d1   :  { %v5638_v46 = vcombine.high %v1088_v38, %v1092_v39  ;;  %v5637_v55 = vcombine.low %v1088_v38, %v1092_v39  ;;  %v1132_v36 = vld [vmem:[#allocation7 + $0xd28] sm:$0xff]  ;;  %v5669_v38 = vcombine.low %v1120_v21, %v1124_v22 }
 0x1d2   :  { %v691_v51 = vadd.f32 %v6394_v57, %v202_v41  ;;  %v699_v54 = vmax.f32 %v648_v42, 0.0  ;;  %v1135_v42 = vld [vmem:[#allocation7 + $0xd40] sm:$0xff] }
 0x1d3   :  { %3926 = vmatpush1.bf16.msra.mxu0 %v5587_v47  ;;  %4090 = vmatpush1.bf16.msra.mxu1 %v5589_v48  ;;  %v1095_v47 = vld [vmem:[#allocation7 + $0xc00] sm:$0xff] }
 0x1d4   :  { %3927 = vmatprep.subr.bf16.mxu0 %v5596_v49  ;;  %4091 = vmatprep.subr.bf16.mxu1 %v5598_v50  ;;  %v1099_v48 = vld [vmem:[#allocation7 + $0xc20] sm:$0xff]  ;;  %v1096_v49 = vld [vmem:[#allocation7 + $0xc08] sm:$0xff]  ;;  %v702_v62 = vmax.f32 %v691_v51, 0.0  ;;  %v6424_v63 = vpack.c.bf16 %v699_v54, %v699_v54 }
 0x1d5   :  { %v1100_v50 = vld [vmem:[#allocation7 + $0xc28] sm:$0xff]  ;;  %v5644_v40 = vcombine.high %v1095_v47, %v1099_v48  ;;  %v5643_v1 = vcombine.low %v1095_v47, %v1099_v48  ;;  %v1147_v51 = vld [vmem:[#allocation7 + $0xda0] sm:$0xff] }
 0x1d6   :  { %v5646_v56 = vcombine.high %v1096_v49, %v1100_v50  ;;  %v5645_v57 = vcombine.low %v1096_v49, %v1100_v50  ;;  %v6426_v8 = vpack.c.bf16 %v702_v62, %v702_v62  ;;  %v1143_v50 = vld [vmem:[#allocation7 + $0xd80] sm:$0xff]  ;;  %v1144_v54 = vld [vmem:[#allocation7 + $0xd88] sm:$0xff] }
 0x1d7   :  { %3928 = vmatpush1.bf16.msra.mxu0 %v5595_v58  ;;  %4092 = vmatpush1.bf16.msra.mxu1 %v5597_v59  ;;  %v1103_v58 = vld [vmem:[#allocation7 + $0xc40] sm:$0xff]  ;;  %v1156_v62 = vld [vmem:[#allocation7 + $0xde8] sm:$0xff] }
 0x1d8   :  { %3929 = vmatprep.subr.bf16.mxu0 %v5604_v60  ;;  %4093 = vmatprep.subr.bf16.mxu1 %v5606_v61  ;;  %v1107_v59 = vld [vmem:[#allocation7 + $0xc60] sm:$0xff]  ;;  %v1104_v60 = vld [vmem:[#allocation7 + $0xc48] sm:$0xff] }
 0x1d9   :  { %v1108_v61 = vld [vmem:[#allocation7 + $0xc68] sm:$0xff]  ;;  %v5652_v2 = vcombine.high %v1103_v58, %v1107_v59  ;;  %v5651_v9 = vcombine.low %v1103_v58, %v1107_v59  ;;  %v1151_v59 = vld [vmem:[#allocation7 + $0xdc0] sm:$0xff] }
 0x1da   :  { %v5653_v10 = vcombine.low %v1104_v60, %v1108_v61 }
 0x1db   :  { %3930 = vmatpush1.bf16.msra.mxu0 %v5603_v3  ;;  %4094 = vmatpush1.bf16.msra.mxu1 %v5605_v4  ;;  %v5654_v3 = vcombine.high %v1104_v60, %v1108_v61  ;;  %v1111_v4 = vld [vmem:[#allocation7 + $0xc80] sm:$0xff]  ;;  %v1152_v61 = vld [vmem:[#allocation7 + $0xdc8] sm:$0xff] }
 0x1dc   :  { %3931 = vmatprep.subr.bf16.mxu0 %v5612_v5  ;;  %4095 = vmatprep.subr.bf16.mxu1 %v5614_v34  ;;  %v1115_v5 = vld [vmem:[#allocation7 + $0xca0] sm:$0xff]  ;;  %v1112_v34 = vld [vmem:[#allocation7 + $0xc88] sm:$0xff] }
 0x1dd   :  { %v5659_v23 = vcombine.low %v1111_v4, %v1115_v5  ;;  %v5661_v24 = vcombine.low %v1112_v34, %v1116_v7  ;;  %v1155_v60 = vld [vmem:[#allocation7 + $0xde0] sm:$0xff] }
 0x1df   :  { %3932 = vmatpush1.bf16.msra.mxu0 %v5611_v12  ;;  %4096 = vmatpush1.bf16.msra.mxu1 %v5613_v18  ;;  %v5660_v12 = vcombine.high %v1111_v4, %v1115_v5  ;;  %v5662_v18 = vcombine.high %v1112_v34, %v1116_v7  ;;  %v1159_v4 = vld [vmem:[#allocation7 + $0xe00] sm:$0xff]  ;;  %v1160_v34 = vld [vmem:[#allocation7 + $0xe08] sm:$0xff] }
 0x1e0   :  { %3933 = vmatprep.subr.bf16.mxu0 %v5620_v6  ;;  %4097 = vmatprep.subr.bf16.mxu1 %v5622_v19  ;;  %v1119_v6 = vld [vmem:[#allocation7 + $0xcc0] sm:$0xff]  ;;  %v1164_v7 = vld [vmem:[#allocation7 + $0xe28] sm:$0xff] }
 0x1e1   :  { %v1123_v19 = vld [vmem:[#allocation7 + $0xce0] sm:$0xff] }
 0x1e2   :  { %v5668_v27 = vcombine.high %v1119_v6, %v1123_v19  ;;  %v5667_v37 = vcombine.low %v1119_v6, %v1123_v19  ;;  %v1163_v5 = vld [vmem:[#allocation7 + $0xe20] sm:$0xff] }
 0x1e3   :  { %3934 = vmatpush1.bf16.msra.mxu0 %v5619_v28  ;;  %4098 = vmatpush1.bf16.msra.mxu1 %v5621_v29  ;;  %v5670_v28 = vcombine.high %v1120_v21, %v1124_v22  ;;  %v1127_v29 = vld [vmem:[#allocation7 + $0xd00] sm:$0xff]  ;;  %v1168_v21 = vld [vmem:[#allocation7 + $0xe48] sm:$0xff] }
 0x1e4   :  { %3935 = vmatprep.subr.bf16.mxu0 %v5628_v31  ;;  %4099 = vmatprep.subr.bf16.mxu1 %v5630_v32  ;;  %v1131_v31 = vld [vmem:[#allocation7 + $0xd20] sm:$0xff]  ;;  %v1128_v32 = vld [vmem:[#allocation7 + $0xd08] sm:$0xff] }
 0x1e5   :  { %v5676_v39 = vcombine.high %v1127_v29, %v1131_v31  ;;  %v5678_v41 = vcombine.high %v1128_v32, %v1132_v36  ;;  %v5677_v47 = vcombine.low %v1128_v32, %v1132_v36  ;;  %v1167_v6 = vld [vmem:[#allocation7 + $0xe40] sm:$0xff]  ;;  %v1172_v22 = vld [vmem:[#allocation7 + $0xe68] sm:$0xff] }
 0x1e6   :  { %v1171_v19 = vld [vmem:[#allocation7 + $0xe60] sm:$0xff]  ;;  %v1176_v32 = vld [vmem:[#allocation7 + $0xe88] sm:$0xff] }
 0x1e7   :  { %3936 = vmatpush1.bf16.msra.mxu0 %v5627_v0  ;;  %4100 = vmatpush1.bf16.msra.mxu1 %v5629_v44  ;;  %v1139_v0 = vld [vmem:[#allocation7 + $0xd60] sm:$0xff]  ;;  %v1136_v44 = vld [vmem:[#allocation7 + $0xd48] sm:$0xff] }
 0x1e8   :  { %3937 = vmatprep.subr.bf16.mxu0 %v5636_v45  ;;  %4101 = vmatprep.subr.bf16.mxu1 %v5638_v46  ;;  %v1140_v45 = vld [vmem:[#allocation7 + $0xd68] sm:$0xff]  ;;  %v5675_v46 = vcombine.low %v1127_v29, %v1131_v31  ;;  %v5684_v48 = vcombine.high %v1135_v42, %v1139_v0  ;;  %v1175_v29 = vld [vmem:[#allocation7 + $0xe80] sm:$0xff] }
 0x1e9   :  { %v5686_v49 = vcombine.high %v1136_v44, %v1140_v45  ;;  %v1179_v31 = vld [vmem:[#allocation7 + $0xea0] sm:$0xff]  ;;  %v1180_v36 = vld [vmem:[#allocation7 + $0xea8] sm:$0xff] }
 0x1eb   :  { %3938 = vmatpush1.bf16.msra.mxu0 %v5635_v15  ;;  %4102 = vmatpush1.bf16.msra.mxu1 %v5637_v55  ;;  %v1148_v15 = vld [vmem:[#allocation7 + $0xda8] sm:$0xff]  ;;  %v5683_v55 = vcombine.low %v1135_v42, %v1139_v0  ;;  %v1183_v42 = vld [vmem:[#allocation7 + $0xec0] sm:$0xff] }
 0x1ec   :  { %3948 = vmatprep.subr.bf16.mxu0 %v5644_v40  ;;  %4112 = vmatprep.subr.bf16.mxu1 %v5646_v56  ;;  %v5685_v40 = vcombine.low %v1136_v44, %v1140_v45  ;;  %v5692_v56 = vcombine.high %v1143_v50, %v1147_v51  ;;  %v5694_v58 = vcombine.high %v1144_v54, %v1148_v15  ;;  %v1187_v0 = vld [vmem:[#allocation7 + $0xee0] sm:$0xff]  ;;  %v1184_v44 = vld [vmem:[#allocation7 + $0xec8] sm:$0xff] }
 0x1ed   :  { %v1188_v45 = vld [vmem:[#allocation7 + $0xee8] sm:$0xff] }
 0x1ee   :  { %3940 = vmatmul.mubr.bf16.vlgmr.msra.gmra.mrb[8].mxu0 %v6424_v63  ;;  %4104 = vmatmul.mubr.bf16.vlgmr.msra.gmra.mrb[8].mxu1 %v6424_v63 }
 0x1ef   :  { %3949 = vmatpush1.bf16.msra.mxu0 %v5643_v1  ;;  %4113 = vmatpush1.bf16.msra.mxu1 %v5645_v57  ;;  %v5691_v1 = vcombine.low %v1143_v50, %v1147_v51  ;;  %v5693_v57 = vcombine.low %v1144_v54, %v1148_v15  ;;  %v1191_v50 = vld [vmem:[#allocation7 + $0xf00] sm:$0xff]  ;;  %v1192_v54 = vld [vmem:[#allocation7 + $0xf08] sm:$0xff] }
 0x1f0   :  { %3950 = vmatprep.subr.bf16.mxu0 %v5652_v2  ;;  %4114 = vmatprep.subr.bf16.mxu1 %v5654_v3  ;;  %v5700_v2 = vcombine.high %v1151_v59, %v1155_v60  ;;  %v5702_v3 = vcombine.high %v1152_v61, %v1156_v62  ;;  %v1195_v51 = vld [vmem:[#allocation7 + $0xf20] sm:$0xff]  ;;  %v1196_v15 = vld [vmem:[#allocation7 + $0xf28] sm:$0xff] }
 0x1f1   :  { %3980 = vmatprep.mubr.bf16.mxu0 %v6426_v8  ;;  %4144 = vmatprep.mubr.bf16.mxu1 %v6426_v8 }
 0x1f3   :  { %3951 = vmatpush1.bf16.msra.mxu0 %v5651_v9  ;;  %4115 = vmatpush1.bf16.msra.mxu1 %v5653_v10  ;;  %v5699_v9 = vcombine.low %v1151_v59, %v1155_v60  ;;  %v5701_v10 = vcombine.low %v1152_v61, %v1156_v62  ;;  %v1199_v59 = vld [vmem:[#allocation7 + $0xf40] sm:$0xff]  ;;  %v1200_v61 = vld [vmem:[#allocation7 + $0xf48] sm:$0xff] }
 0x1f4   :  { %3952 = vmatprep.subr.bf16.mxu0 %v5660_v12  ;;  %4116 = vmatprep.subr.bf16.mxu1 %v5662_v18  ;;  %v5708_v12 = vcombine.high %v1159_v4, %v1163_v5  ;;  %v5710_v18 = vcombine.high %v1160_v34, %v1164_v7  ;;  %v1203_v60 = vld [vmem:[#allocation7 + $0xf60] sm:$0xff]  ;;  %v1204_v62 = vld [vmem:[#allocation7 + $0xf68] sm:$0xff] }
 0x1f7   :  { %3953 = vmatpush1.bf16.msra.mxu0 %v5659_v23  ;;  %4117 = vmatpush1.bf16.msra.mxu1 %v5661_v24  ;;  %v5707_v23 = vcombine.low %v1159_v4, %v1163_v5  ;;  %v5709_v24 = vcombine.low %v1160_v34, %v1164_v7  ;;  %v5750_v4 = vcombine.high %v1200_v61, %v1204_v62  ;;  %v1207_v5 = vld [vmem:[#allocation7 + $0xf80] sm:$0xff]  ;;  %v1208_v7 = vld [vmem:[#allocation7 + $0xf88] sm:$0xff] }
 0x1f8   :  { %3954 = vmatprep.subr.bf16.mxu0 %v5668_v27  ;;  %4118 = vmatprep.subr.bf16.mxu1 %v5670_v28  ;;  %v5716_v27 = vcombine.high %v1167_v6, %v1171_v19  ;;  %v5718_v28 = vcombine.high %v1168_v21, %v1172_v22  ;;  %v1211_v34 = vld [vmem:[#allocation7 + $0xfa0] sm:$0xff] }
 0x1fb   :  { %3955 = vmatpush1.bf16.msra.mxu0 %v5667_v37  ;;  %4119 = vmatpush1.bf16.msra.mxu1 %v5669_v38  ;;  %v5715_v37 = vcombine.low %v1167_v6, %v1171_v19  ;;  %v5717_v38 = vcombine.low %v1168_v21, %v1172_v22  ;;  %v5756_v19 = vcombine.high %v1207_v5, %v1211_v34  ;;  %v1215_v22 = vld [vmem:[#allocation7 + $0xfc0] sm:$0xff] }
 0x1fc   :  { %3956 = vmatprep.subr.bf16.mxu0 %v5676_v39  ;;  %4120 = vmatprep.subr.bf16.mxu1 %v5678_v41  ;;  %v5724_v39 = vcombine.high %v1175_v29, %v1179_v31  ;;  %v5726_v41 = vcombine.high %v1176_v32, %v1180_v36 }
 0x1ff   :  { %3957 = vmatpush1.bf16.msra.mxu0 %v5675_v46  ;;  %4121 = vmatpush1.bf16.msra.mxu1 %v5677_v47  ;;  %v5723_v46 = vcombine.low %v1175_v29, %v1179_v31  ;;  %v5725_v47 = vcombine.low %v1176_v32, %v1180_v36 }
 0x200   :  { %3958 = vmatprep.subr.bf16.mxu0 %v5684_v48  ;;  %4122 = vmatprep.subr.bf16.mxu1 %v5686_v49  ;;  %v5732_v48 = vcombine.high %v1183_v42, %v1187_v0  ;;  %v5734_v49 = vcombine.high %v1184_v44, %v1188_v45 }
 0x203   :  { %3959 = vmatpush1.bf16.msra.mxu0 %v5683_v55  ;;  %4123 = vmatpush1.bf16.msra.mxu1 %v5685_v40  ;;  %v5731_v55 = vcombine.low %v1183_v42, %v1187_v0  ;;  %v5733_v40 = vcombine.low %v1184_v44, %v1188_v45 }
 0x204   :  { %3960 = vmatprep.subr.bf16.mxu0 %v5692_v56  ;;  %4124 = vmatprep.subr.bf16.mxu1 %v5694_v58  ;;  %v5740_v56 = vcombine.high %v1191_v50, %v1195_v51  ;;  %v5742_v58 = vcombine.high %v1192_v54, %v1196_v15 }
 0x207   :  { %3961 = vmatpush1.bf16.msra.mxu0 %v5691_v1  ;;  %4125 = vmatpush1.bf16.msra.mxu1 %v5693_v57  ;;  %v5739_v1 = vcombine.low %v1191_v50, %v1195_v51  ;;  %v5741_v57 = vcombine.low %v1192_v54, %v1196_v15 }
 0x208   :  { %3962 = vmatprep.subr.bf16.mxu0 %v5700_v2  ;;  %4126 = vmatprep.subr.bf16.mxu1 %v5702_v3  ;;  %v197_v2 = vsub.s32 6, %v6358_v13  ;;  %v5748_v3 = vcombine.high %v1199_v59, %v1203_v60 }
 0x20b   :  { %3963 = vmatpush1.bf16.msra.mxu0 %v5699_v9  ;;  %4127 = vmatpush1.bf16.msra.mxu1 %v5701_v10  ;;  %v1212_v9 = vld [vmem:[#allocation7 + $0xfa8] sm:$0xff]  ;;  %v5747_v10 = vcombine.low %v1199_v59, %v1203_v60  ;;  %v734_v59 = vld [vmem:[#allocation7 + $0xb8] sm:$0xff] }
 0x20c   :  { %3964 = vmatprep.subr.bf16.mxu0 %v5708_v12  ;;  %4128 = vmatprep.subr.bf16.mxu1 %v5710_v18  ;;  %v5749_v12 = vcombine.low %v1200_v61, %v1204_v62  ;;  %v6056_v18 = vld [vmem:[#allocation5] sm:$0xff]  ;;  %v5758_v21 = vcombine.high %v1208_v7, %v1212_v9  ;;  %v5757_v29 = vcombine.low %v1208_v7, %v1212_v9 }
 0x20d   :  { %v198_v6 = vrot.slane %v6056_v18, %v197_v2  ;;  %v749_v18 = vld [vmem:[#allocation7 + $0x130] sm:$0xff] }
 0x20f   :  { %3965 = vmatpush1.bf16.msra.mxu0 %v5707_v23  ;;  %4129 = vmatpush1.bf16.msra.mxu1 %v5709_v24  ;;  %v1219_v23 = vld [vmem:[#allocation7 + $0xfe0] sm:$0xff]  ;;  %v1216_v24 = vld [vmem:[#allocation7 + $0xfc8] sm:$0xff]  ;;  %v689_v31 = vadd.f32 %v6392_v52, %v198_v6  ;;  %v722_v52 = vld [vmem:[#allocation7 + $0x58] sm:$0xff] }
 0x210   :  { %3966 = vmatprep.subr.bf16.mxu0 %v5716_v27  ;;  %4130 = vmatprep.subr.bf16.mxu1 %v5718_v28  ;;  %v1220_v27 = vld [vmem:[#allocation7 + $0xfe8] sm:$0xff]  ;;  %v5755_v28 = vcombine.low %v1207_v5, %v1211_v34  ;;  %v5764_v32 = vcombine.high %v1215_v22, %v1219_v23  ;;  %v5763_v42 = vcombine.low %v1215_v22, %v1219_v23  ;;  %v742_v5 = vld [vmem:[#allocation7 + $0xf8] sm:$0xff] }
 0x211   :  { %v5766_v36 = vcombine.high %v1216_v24, %v1220_v27  ;;  %v5765_v0 = vcombine.low %v1216_v24, %v1220_v27  ;;  %v701_v44 = vmax.f32 %v689_v31, 0.0  ;;  %v750_v6 = vld [vmem:[#allocation7 + $0x138] sm:$0xff]  ;;  %v753_v24 = vld [vmem:[#allocation7 + $0x150] sm:$0xff] }
 0x212   :  { %v757_v27 = vld [vmem:[#allocation7 + $0x170] sm:$0xff] }
 0x213   :  { %3967 = vmatpush1.bf16.msra.mxu0 %v5715_v37  ;;  %4131 = vmatpush1.bf16.msra.mxu1 %v5717_v38  ;;  %v713_v37 = vld [vmem:[#allocation7 + $0x10] sm:$0xff]  ;;  %v6436_v51 = vpack.c.bf16 %v701_v44, %v701_v44 }
 0x214   :  { %3968 = vmatprep.subr.bf16.mxu0 %v5724_v39  ;;  %4132 = vmatprep.subr.bf16.mxu1 %v5726_v41  ;;  %v717_v38 = vld [vmem:[#allocation7 + $0x30] sm:$0xff]  ;;  %v714_v39 = vld [vmem:[#allocation7 + $0x18] sm:$0xff] }
 0x215   :  { %v718_v41 = vld [vmem:[#allocation7 + $0x38] sm:$0xff]  ;;  %v5264_v45 = vcombine.high %v713_v37, %v717_v38  ;;  %v5263_v50 = vcombine.low %v713_v37, %v717_v38  ;;  %v761_v38 = vld [vmem:[#allocation7 + $0x190] sm:$0xff] }
 0x216   :  { %v5265_v54 = vcombine.low %v714_v39, %v718_v41 }
 0x217   :  { %3969 = vmatpush1.bf16.msra.mxu0 %v5723_v46  ;;  %4133 = vmatpush1.bf16.msra.mxu1 %v5725_v47  ;;  %v5266_v46 = vcombine.high %v714_v39, %v718_v41  ;;  %v721_v47 = vld [vmem:[#allocation7 + $0x50] sm:$0xff]  ;;  %v762_v41 = vld [vmem:[#allocation7 + $0x198] sm:$0xff] }
 0x218   :  { %3970 = vmatprep.subr.bf16.mxu0 %v5732_v48  ;;  %4134 = vmatprep.subr.bf16.mxu1 %v5734_v49  ;;  %v725_v48 = vld [vmem:[#allocation7 + $0x70] sm:$0xff]  ;;  %v726_v49 = vld [vmem:[#allocation7 + $0x78] sm:$0xff] }
 0x219   :  { %v5272_v15 = vcombine.high %v721_v47, %v725_v48  ;;  %v5271_v60 = vcombine.low %v721_v47, %v725_v48  ;;  %v5273_v61 = vcombine.low %v722_v52, %v726_v49  ;;  %v765_v39 = vld [vmem:[#allocation7 + $0x1b0] sm:$0xff] }
 0x21a   :  { %v769_v47 = vld [vmem:[#allocation7 + $0x1d0] sm:$0xff] }
 0x21b   :  { %3971 = vmatpush1.bf16.msra.mxu0 %v5731_v55  ;;  %4135 = vmatpush1.bf16.msra.mxu1 %v5733_v40  ;;  %v5274_v55 = vcombine.high %v722_v52, %v726_v49  ;;  %v729_v40 = vld [vmem:[#allocation7 + $0x90] sm:$0xff]  ;;  %v770_v52 = vld [vmem:[#allocation7 + $0x1d8] sm:$0xff] }
 0x21c   :  { %3972 = vmatprep.subr.bf16.mxu0 %v5740_v56  ;;  %4136 = vmatprep.subr.bf16.mxu1 %v5742_v58  ;;  %v733_v56 = vld [vmem:[#allocation7 + $0xb0] sm:$0xff]  ;;  %v730_v58 = vld [vmem:[#allocation7 + $0x98] sm:$0xff] }
 0x21d   :  { %v5280_v62 = vcombine.high %v729_v40, %v733_v56  ;;  %v5279_v34 = vcombine.low %v729_v40, %v733_v56  ;;  %v5281_v7 = vcombine.low %v730_v58, %v734_v59  ;;  %v773_v48 = vld [vmem:[#allocation7 + $0x1f0] sm:$0xff]  ;;  %v774_v49 = vld [vmem:[#allocation7 + $0x1f8] sm:$0xff] }
 0x21e   :  { %v777_v40 = vld [vmem:[#allocation7 + $0x210] sm:$0xff] }
 0x21f   :  { %3973 = vmatpush1.bf16.msra.mxu0 %v5739_v1  ;;  %4137 = vmatpush1.bf16.msra.mxu1 %v5741_v57  ;;  %v5282_v1 = vcombine.high %v730_v58, %v734_v59  ;;  %v737_v57 = vld [vmem:[#allocation7 + $0xd0] sm:$0xff]  ;;  %v778_v58 = vld [vmem:[#allocation7 + $0x218] sm:$0xff] }
 0x220   :  { %3974 = vmatprep.subr.bf16.mxu0 %v5748_v3  ;;  %4138 = vmatprep.subr.bf16.mxu1 %v5750_v4  ;;  %v741_v3 = vld [vmem:[#allocation7 + $0xf0] sm:$0xff]  ;;  %v738_v4 = vld [vmem:[#allocation7 + $0xd8] sm:$0xff] }
 0x221   :  { %v5288_v9 = vcombine.high %v737_v57, %v741_v3  ;;  %v781_v56 = vld [vmem:[#allocation7 + $0x230] sm:$0xff]  ;;  %v782_v59 = vld [vmem:[#allocation7 + $0x238] sm:$0xff] }
 0x223   :  { %3975 = vmatpush1.bf16.msra.mxu0 %v5747_v10  ;;  %4139 = vmatpush1.bf16.msra.mxu1 %v5749_v12  ;;  %v5290_v10 = vcombine.high %v738_v4, %v742_v5  ;;  %v745_v12 = vld [vmem:[#allocation7 + $0x110] sm:$0xff] }
 0x224   :  { %3976 = vmatprep.subr.bf16.mxu0 %v5756_v19  ;;  %4140 = vmatprep.subr.bf16.mxu1 %v5758_v21  ;;  %v5287_v19 = vcombine.low %v737_v57, %v741_v3  ;;  %v5289_v21 = vcombine.low %v738_v4, %v742_v5  ;;  %v5296_v22 = vcombine.high %v745_v12, %v749_v18  ;;  %v785_v57 = vld [vmem:[#allocation7 + $0x250] sm:$0xff]  ;;  %v786_v4 = vld [vmem:[#allocation7 + $0x258] sm:$0xff] }
 0x225   :  { %v5295_v31 = vcombine.low %v745_v12, %v749_v18  ;;  %v789_v3 = vld [vmem:[#allocation7 + $0x270] sm:$0xff]  ;;  %v790_v5 = vld [vmem:[#allocation7 + $0x278] sm:$0xff] }
 0x226   :  { %v793_v12 = vld [vmem:[#allocation7 + $0x290] sm:$0xff] }
 0x227   :  { %3977 = vmatpush1.bf16.msra.mxu0 %v5755_v28  ;;  %4141 = vmatpush1.bf16.msra.mxu1 %v5757_v29  ;;  %v754_v28 = vld [vmem:[#allocation7 + $0x158] sm:$0xff]  ;;  %v797_v18 = vld [vmem:[#allocation7 + $0x2b0] sm:$0xff] }
 0x228   :  { %3978 = vmatprep.subr.bf16.mxu0 %v5764_v32  ;;  %4142 = vmatprep.subr.bf16.mxu1 %v5766_v36  ;;  %v758_v29 = vld [vmem:[#allocation7 + $0x178] sm:$0xff]  ;;  %v5304_v36 = vcombine.high %v753_v24, %v757_v27 }
 0x229   :  { %v5306_v37 = vcombine.high %v754_v28, %v758_v29  ;;  %v5305_v44 = vcombine.low %v754_v28, %v758_v29  ;;  %v802_v28 = vld [vmem:[#allocation7 + $0x2d8] sm:$0xff] }
 0x22a   :  { %v806_v29 = vld [vmem:[#allocation7 + $0x2f8] sm:$0xff] }
 0x22b   :  { %3979 = vmatpush1.bf16.msra.mxu0 %v5763_v42  ;;  %4143 = vmatpush1.bf16.msra.mxu1 %v5765_v0  ;;  %v766_v42 = vld [vmem:[#allocation7 + $0x1b8] sm:$0xff]  ;;  %v5303_v0 = vcombine.low %v753_v24, %v757_v27  ;;  %v801_v24 = vld [vmem:[#allocation7 + $0x2d0] sm:$0xff] }
 0x22c   :  { %4153 = vmatprep.subr.bf16.mxu0 %v5264_v45  ;;  %4317 = vmatprep.subr.bf16.mxu1 %v5266_v46  ;;  %v5312_v45 = vcombine.high %v761_v38, %v765_v39  ;;  %v5314_v46 = vcombine.high %v762_v41, %v766_v42  ;;  %v805_v27 = vld [vmem:[#allocation7 + $0x2f0] sm:$0xff] }
 0x22e   :  { %3981 = vmatmul.mubr.bf16.vlgmr.msra.gmra.mrb[8].mxu0 %v6436_v51  ;;  %4145 = vmatmul.mubr.bf16.vlgmr.msra.gmra.mrb[8].mxu1 %v6436_v51 }
 0x22f   :  { %4154 = vmatpush1.bf16.msra.mxu0 %v5263_v50  ;;  %4185 = vmatprep.mubr.bf16.mxu0 %v6374_v33  ;;  %v5311_v50 = vcombine.low %v761_v38, %v765_v39  ;;  %v809_v38 = vld [vmem:[#allocation7 + $0x310] sm:$0xff] }
 0x230   :  { %4318 = vmatpush1.bf16.msra.mxu1 %v5265_v54  ;;  %4349 = vmatprep.mubr.bf16.mxu1 %v6374_v33  ;;  %v746_v33 = vld [vmem:[#allocation7 + $0x118] sm:$0xff]  ;;  %v5313_v54 = vcombine.low %v762_v41, %v766_v42  ;;  %v813_v39 = vld [vmem:[#allocation7 + $0x330] sm:$0xff] }
 0x231   :  { %4155 = vmatprep.subr.bf16.mxu0 %v5272_v15  ;;  %4319 = vmatprep.subr.bf16.mxu1 %v5274_v55  ;;  %v5298_v23 = vcombine.high %v746_v33, %v750_v6  ;;  %v5297_v32 = vcombine.low %v746_v33, %v750_v6  ;;  %v5320_v15 = vcombine.high %v769_v47, %v773_v48  ;;  %v794_v33 = vld [vmem:[#allocation7 + $0x298] sm:$0xff] }
 0x232   :  { %v5322_v55 = vcombine.high %v770_v52, %v774_v49  ;;  %v798_v6 = vld [vmem:[#allocation7 + $0x2b8] sm:$0xff] }
 0x233   :  { %4156 = vmatpush1.bf16.msra.mxu0 %v5271_v60  ;;  %v5319_v60 = vcombine.low %v769_v47, %v773_v48  ;;  %v810_v41 = vld [vmem:[#allocation7 + $0x318] sm:$0xff]  ;;  %v817_v47 = vld [vmem:[#allocation7 + $0x350] sm:$0xff] }
 0x234   :  { %4320 = vmatpush1.bf16.msra.mxu1 %v5273_v61  ;;  %4157 = vmatprep.subr.bf16.mxu0 %v5280_v62  ;;  %v5321_v61 = vcombine.low %v770_v52, %v774_v49  ;;  %v5328_v62 = vcombine.high %v777_v40, %v781_v56  ;;  %v814_v42 = vld [vmem:[#allocation7 + $0x338] sm:$0xff]  ;;  %v821_v48 = vld [vmem:[#allocation7 + $0x370] sm:$0xff] }
 0x235   :  { %4321 = vmatprep.subr.bf16.mxu1 %v5282_v1  ;;  %v5330_v1 = vcombine.high %v778_v58, %v782_v59  ;;  %v818_v52 = vld [vmem:[#allocation7 + $0x358] sm:$0xff] }
 0x236   :  { %v822_v49 = vld [vmem:[#allocation7 + $0x378] sm:$0xff] }
 0x237   :  { %4158 = vmatpush1.bf16.msra.mxu0 %v5279_v34  ;;  %v5327_v34 = vcombine.low %v777_v40, %v781_v56  ;;  %v825_v40 = vld [vmem:[#allocation7 + $0x390] sm:$0xff] }
 0x238   :  { %4322 = vmatpush1.bf16.msra.mxu1 %v5281_v7  ;;  %4159 = vmatprep.subr.bf16.mxu0 %v5288_v9  ;;  %v5329_v7 = vcombine.low %v778_v58, %v782_v59  ;;  %v5336_v9 = vcombine.high %v785_v57, %v789_v3  ;;  %v829_v56 = vld [vmem:[#allocation7 + $0x3b0] sm:$0xff]  ;;  %v826_v58 = vld [vmem:[#allocation7 + $0x398] sm:$0xff] }
 0x239   :  { %4323 = vmatprep.subr.bf16.mxu1 %v5290_v10  ;;  %v5338_v10 = vcombine.high %v786_v4, %v790_v5  ;;  %v830_v59 = vld [vmem:[#allocation7 + $0x3b8] sm:$0xff] }
 0x23b   :  { %4160 = vmatpush1.bf16.msra.mxu0 %v5287_v19  ;;  %v5335_v19 = vcombine.low %v785_v57, %v789_v3  ;;  %v833_v57 = vld [vmem:[#allocation7 + $0x3d0] sm:$0xff] }
 0x23c   :  { %4324 = vmatpush1.bf16.msra.mxu1 %v5289_v21  ;;  %4161 = vmatprep.subr.bf16.mxu0 %v5296_v22  ;;  %v5337_v21 = vcombine.low %v786_v4, %v790_v5  ;;  %v5344_v22 = vcombine.high %v793_v12, %v797_v18  ;;  %v837_v3 = vld [vmem:[#allocation7 + $0x3f0] sm:$0xff]  ;;  %v834_v4 = vld [vmem:[#allocation7 + $0x3d8] sm:$0xff] }
 0x23d   :  { %4325 = vmatprep.subr.bf16.mxu1 %v5298_v23  ;;  %v5346_v23 = vcombine.high %v794_v33, %v798_v6  ;;  %v838_v5 = vld [vmem:[#allocation7 + $0x3f8] sm:$0xff] }
 0x23f   :  { %4162 = vmatpush1.bf16.msra.mxu0 %v5295_v31  ;;  %v5343_v31 = vcombine.low %v793_v12, %v797_v18  ;;  %v841_v12 = vld [vmem:[#allocation7 + $0x410] sm:$0xff] }
 0x240   :  { %4326 = vmatpush1.bf16.msra.mxu1 %v5297_v32  ;;  %4163 = vmatprep.subr.bf16.mxu0 %v5304_v36  ;;  %v5345_v32 = vcombine.low %v794_v33, %v798_v6  ;;  %v5352_v36 = vcombine.high %v801_v24, %v805_v27  ;;  %v845_v18 = vld [vmem:[#allocation7 + $0x430] sm:$0xff]  ;;  %v842_v33 = vld [vmem:[#allocation7 + $0x418] sm:$0xff] }
 0x241   :  { %4327 = vmatprep.subr.bf16.mxu1 %v5306_v37  ;;  %v5354_v37 = vcombine.high %v802_v28, %v806_v29  ;;  %v846_v6 = vld [vmem:[#allocation7 + $0x438] sm:$0xff] }
 0x243   :  { %4164 = vmatpush1.bf16.msra.mxu0 %v5303_v0  ;;  %v5351_v0 = vcombine.low %v801_v24, %v805_v27  ;;  %v849_v24 = vld [vmem:[#allocation7 + $0x450] sm:$0xff] }
 0x244   :  { %4328 = vmatpush1.bf16.msra.mxu1 %v5305_v44  ;;  %4165 = vmatprep.subr.bf16.mxu0 %v5312_v45  ;;  %v5353_v44 = vcombine.low %v802_v28, %v806_v29  ;;  %v5360_v45 = vcombine.high %v809_v38, %v813_v39  ;;  %v853_v27 = vld [vmem:[#allocation7 + $0x470] sm:$0xff]  ;;  %v5391_v28 = vcombine.low %v841_v12, %v845_v18  ;;  %v850_v29 = vld [vmem:[#allocation7 + $0x458] sm:$0xff] }
 0x245   :  { %4329 = vmatprep.subr.bf16.mxu1 %v5314_v46  ;;  %v5362_v46 = vcombine.high %v810_v41, %v814_v42 }
 0x247   :  { %4166 = vmatpush1.bf16.msra.mxu0 %v5311_v50  ;;  %v5359_v50 = vcombine.low %v809_v38, %v813_v39  ;;  %v861_v38 = vld [vmem:[#allocation7 + $0x4b0] sm:$0xff] }
 0x248   :  { %4330 = vmatpush1.bf16.msra.mxu1 %v5313_v54  ;;  %4167 = vmatprep.subr.bf16.mxu0 %v5320_v15  ;;  %v5361_v54 = vcombine.low %v810_v41, %v814_v42  ;;  %v5368_v15 = vcombine.high %v817_v47, %v821_v48  ;;  %v858_v41 = vld [vmem:[#allocation7 + $0x498] sm:$0xff] }
 0x249   :  { %4331 = vmatprep.subr.bf16.mxu1 %v5322_v55  ;;  %v5370_v55 = vcombine.high %v818_v52, %v822_v49  ;;  %v862_v42 = vld [vmem:[#allocation7 + $0x4b8] sm:$0xff] }
 0x24b   :  { %4168 = vmatpush1.bf16.msra.mxu0 %v5319_v60  ;;  %v5367_v60 = vcombine.low %v817_v47, %v821_v48  ;;  %v865_v47 = vld [vmem:[#allocation7 + $0x4d0] sm:$0xff] }
 0x24c   :  { %4332 = vmatpush1.bf16.msra.mxu1 %v5321_v61  ;;  %4169 = vmatprep.subr.bf16.mxu0 %v5328_v62  ;;  %v5369_v61 = vcombine.low %v818_v52, %v822_v49  ;;  %v5376_v62 = vcombine.high %v825_v40, %v829_v56  ;;  %v869_v48 = vld [vmem:[#allocation7 + $0x4f0] sm:$0xff]  ;;  %v866_v52 = vld [vmem:[#allocation7 + $0x4d8] sm:$0xff] }
 0x24d   :  { %4333 = vmatprep.subr.bf16.mxu1 %v5330_v1  ;;  %v5378_v1 = vcombine.high %v826_v58, %v830_v59  ;;  %v870_v49 = vld [vmem:[#allocation7 + $0x4f8] sm:$0xff] }
 0x24f   :  { %4170 = vmatpush1.bf16.msra.mxu0 %v5327_v34  ;;  %v5375_v34 = vcombine.low %v825_v40, %v829_v56  ;;  %v877_v40 = vld [vmem:[#allocation7 + $0x530] sm:$0xff]  ;;  %v874_v56 = vld [vmem:[#allocation7 + $0x518] sm:$0xff] }
 0x250   :  { %4334 = vmatpush1.bf16.msra.mxu1 %v5329_v7  ;;  %4171 = vmatprep.subr.bf16.mxu0 %v5336_v9  ;;  %v5377_v7 = vcombine.low %v826_v58, %v830_v59  ;;  %v5384_v9 = vcombine.high %v833_v57, %v837_v3  ;;  %v878_v58 = vld [vmem:[#allocation7 + $0x538] sm:$0xff]  ;;  %v5417_v59 = vcombine.low %v866_v52, %v870_v49 }
 0x251   :  { %4335 = vmatprep.subr.bf16.mxu1 %v5338_v10  ;;  %v5386_v10 = vcombine.high %v834_v4, %v838_v5 }
 0x253   :  { %4172 = vmatpush1.bf16.msra.mxu0 %v5335_v19  ;;  %v5383_v19 = vcombine.low %v833_v57, %v837_v3  ;;  %v882_v57 = vld [vmem:[#allocation7 + $0x558] sm:$0xff] }
 0x254   :  { %4336 = vmatpush1.bf16.msra.mxu1 %v5337_v21  ;;  %4173 = vmatprep.subr.bf16.mxu0 %v5344_v22  ;;  %v5385_v21 = vcombine.low %v834_v4, %v838_v5  ;;  %v5392_v22 = vcombine.high %v841_v12, %v845_v18  ;;  %v886_v3 = vld [vmem:[#allocation7 + $0x578] sm:$0xff]  ;;  %v5425_v5 = vcombine.low %v874_v56, %v878_v58 }
 0x255   :  { %4337 = vmatprep.subr.bf16.mxu1 %v5346_v23  ;;  %v5394_v23 = vcombine.high %v842_v33, %v846_v6  ;;  %v890_v12 = vld [vmem:[#allocation7 + $0x598] sm:$0xff] }
 0x256   :  { %v894_v18 = vld [vmem:[#allocation7 + $0x5b8] sm:$0xff] }
 0x257   :  { %4174 = vmatpush1.bf16.msra.mxu0 %v5343_v31  ;;  %v854_v31 = vld [vmem:[#allocation7 + $0x478] sm:$0xff] }
 0x258   :  { %4338 = vmatpush1.bf16.msra.mxu1 %v5345_v32  ;;  %4175 = vmatprep.subr.bf16.mxu0 %v5352_v36  ;;  %v5393_v32 = vcombine.low %v842_v33, %v846_v6  ;;  %v5400_v36 = vcombine.high %v849_v24, %v853_v27  ;;  %v5402_v39 = vcombine.high %v850_v29, %v854_v31 }
 0x259   :  { %4339 = vmatprep.subr.bf16.mxu1 %v5354_v37  ;;  %v857_v37 = vld [vmem:[#allocation7 + $0x490] sm:$0xff]  ;;  %v5433_v6 = vcombine.low %v882_v57, %v886_v3 }
 0x25b   :  { %4176 = vmatpush1.bf16.msra.mxu0 %v5351_v0  ;;  %v5399_v0 = vcombine.low %v849_v24, %v853_v27  ;;  %v898_v24 = vld [vmem:[#allocation7 + $0x5d8] sm:$0xff] }
 0x25c   :  { %4340 = vmatpush1.bf16.msra.mxu1 %v5353_v44  ;;  %4177 = vmatprep.subr.bf16.mxu0 %v5360_v45  ;;  %v5401_v44 = vcombine.low %v850_v29, %v854_v31  ;;  %v5408_v45 = vcombine.high %v857_v37, %v861_v38  ;;  %v902_v27 = vld [vmem:[#allocation7 + $0x5f8] sm:$0xff]  ;;  %v5441_v29 = vcombine.low %v890_v12, %v894_v18 }
 0x25d   :  { %4341 = vmatprep.subr.bf16.mxu1 %v5362_v46  ;;  %v5410_v46 = vcombine.high %v858_v41, %v862_v42 }
 0x25f   :  { %4178 = vmatpush1.bf16.msra.mxu0 %v5359_v50  ;;  %v5407_v50 = vcombine.low %v857_v37, %v861_v38  ;;  %v909_v37 = vld [vmem:[#allocation7 + $0x630] sm:$0xff]  ;;  %v906_v38 = vld [vmem:[#allocation7 + $0x618] sm:$0xff] }
 0x260   :  { %4342 = vmatpush1.bf16.msra.mxu1 %v5361_v54  ;;  %4179 = vmatprep.subr.bf16.mxu0 %v5368_v15  ;;  %v5416_v54 = vcombine.high %v865_v47, %v869_v48  ;;  %v5418_v15 = vcombine.high %v866_v52, %v870_v49 }
 0x261   :  { %4343 = vmatprep.subr.bf16.mxu1 %v5370_v55  ;;  %v873_v55 = vld [vmem:[#allocation7 + $0x510] sm:$0xff] }
 0x262   :  { %v5423_v4 = vcombine.low %v873_v55, %v877_v40 }
 0x263   :  { %4180 = vmatpush1.bf16.msra.mxu0 %v5367_v60  ;;  %v5424_v60 = vcombine.high %v873_v55, %v877_v40  ;;  %v922_v55 = vld [vmem:[#allocation7 + $0x698] sm:$0xff] }
 0x264   :  { %4344 = vmatpush1.bf16.msra.mxu1 %v5369_v61  ;;  %4181 = vmatprep.subr.bf16.mxu0 %v5376_v62  ;;  %v5426_v61 = vcombine.high %v874_v56, %v878_v58  ;;  %v881_v62 = vld [vmem:[#allocation7 + $0x550] sm:$0xff]  ;;  %v926_v40 = vld [vmem:[#allocation7 + $0x6b8] sm:$0xff] }
 0x265   :  { %4345 = vmatprep.subr.bf16.mxu1 %v5378_v1  ;;  %v885_v1 = vld [vmem:[#allocation7 + $0x570] sm:$0xff] }
 0x266   :  { %v5431_v33 = vcombine.low %v881_v62, %v885_v1 }
 0x267   :  { %4182 = vmatpush1.bf16.msra.mxu0 %v5375_v34  ;;  %v5432_v34 = vcombine.high %v881_v62, %v885_v1  ;;  %v930_v62 = vld [vmem:[#allocation7 + $0x6d8] sm:$0xff] }
 0x268   :  { %4346 = vmatpush1.bf16.msra.mxu1 %v5377_v7  ;;  %4183 = vmatprep.subr.bf16.mxu0 %v5384_v9  ;;  %v5434_v7 = vcombine.high %v882_v57, %v886_v3  ;;  %v889_v9 = vld [vmem:[#allocation7 + $0x590] sm:$0xff]  ;;  %v934_v1 = vld [vmem:[#allocation7 + $0x6f8] sm:$0xff]  ;;  %v5473_v3 = vcombine.low %v922_v55, %v926_v40 }
 0x269   :  { %4347 = vmatprep.subr.bf16.mxu1 %v5386_v10  ;;  %v893_v10 = vld [vmem:[#allocation7 + $0x5b0] sm:$0xff] }
 0x26b   :  { %4184 = vmatpush1.bf16.msra.mxu0 %v5383_v19  ;;  %v5440_v19 = vcombine.high %v889_v9, %v893_v10 }
 0x26c   :  { %4348 = vmatpush1.bf16.msra.mxu1 %v5385_v21  ;;  %4194 = vmatprep.subr.bf16.mxu0 %v5392_v22  ;;  %v5442_v21 = vcombine.high %v890_v12, %v894_v18  ;;  %v897_v22 = vld [vmem:[#allocation7 + $0x5d0] sm:$0xff]  ;;  %v5481_v18 = vcombine.low %v930_v62, %v934_v1 }
 0x26d   :  { %4358 = vmatprep.subr.bf16.mxu1 %v5394_v23  ;;  %v901_v23 = vld [vmem:[#allocation7 + $0x5f0] sm:$0xff] }
 0x26e   :  { %4186 = vmatmul.mubr.bf16.vlgmr.msra.gmra.mrb[12].mxu0 %v6378_v35  ;;  %v5448_v31 = vcombine.high %v897_v22, %v901_v23 }
 0x26f   :  { %4350 = vmatmul.mubr.bf16.vlgmr.msra.gmra.mrb[12].mxu1 %v6378_v35  ;;  %4195 = vmatpush1.bf16.msra.mxu0 %v5391_v28  ;;  %v5409_v35 = vcombine.low %v858_v41, %v862_v42  ;;  %v5439_v28 = vcombine.low %v889_v9, %v893_v10  ;;  %v5447_v41 = vcombine.low %v897_v22, %v901_v23  ;;  %v938_v9 = vld [vmem:[#allocation7 + $0x718] sm:$0xff] }
 0x270   :  { %4226 = vmatprep.mubr.bf16.mxu0 %v6384_v53  ;;  %4359 = vmatpush1.bf16.msra.mxu1 %v5393_v32  ;;  %v5450_v32 = vcombine.high %v898_v24, %v902_v27  ;;  %v5449_v42 = vcombine.low %v898_v24, %v902_v27  ;;  %v942_v10 = vld [vmem:[#allocation7 + $0x738] sm:$0xff] }
 0x271   :  { %4390 = vmatprep.mubr.bf16.mxu1 %v6384_v53  ;;  %4196 = vmatprep.subr.bf16.mxu0 %v5400_v36  ;;  %v5415_v53 = vcombine.low %v865_v47, %v869_v48  ;;  %v905_v36 = vld [vmem:[#allocation7 + $0x610] sm:$0xff]  ;;  %v914_v47 = vld [vmem:[#allocation7 + $0x658] sm:$0xff]  ;;  %v5489_v27 = vcombine.low %v938_v9, %v942_v10 }
 0x272   :  { %4360 = vmatprep.subr.bf16.mxu1 %v5402_v39  ;;  %v910_v39 = vld [vmem:[#allocation7 + $0x638] sm:$0xff]  ;;  %v5455_v52 = vcombine.low %v905_v36, %v909_v37 }
 0x273   :  { %4197 = vmatpush1.bf16.msra.mxu0 %v5399_v0  ;;  %v5456_v0 = vcombine.high %v905_v36, %v909_v37  ;;  %v918_v48 = vld [vmem:[#allocation7 + $0x678] sm:$0xff]  ;;  %v5457_v49 = vcombine.low %v906_v38, %v910_v39 }
 0x274   :  { %4361 = vmatpush1.bf16.msra.mxu1 %v5401_v44  ;;  %4198 = vmatprep.subr.bf16.mxu0 %v5408_v45  ;;  %v5458_v44 = vcombine.high %v906_v38, %v910_v39  ;;  %v913_v45 = vld [vmem:[#allocation7 + $0x650] sm:$0xff]  ;;  %v5465_v58 = vcombine.low %v914_v47, %v918_v48  ;;  %v946_v22 = vld [vmem:[#allocation7 + $0x758] sm:$0xff] }
 0x275   :  { %4362 = vmatprep.subr.bf16.mxu1 %v5410_v46  ;;  %v917_v46 = vld [vmem:[#allocation7 + $0x670] sm:$0xff]  ;;  %v950_v23 = vld [vmem:[#allocation7 + $0x778] sm:$0xff] }
 0x276   :  { %v5463_v56 = vcombine.low %v913_v45, %v917_v46  ;;  %v954_v36 = vld [vmem:[#allocation7 + $0x798] sm:$0xff]  ;;  %v5497_v39 = vcombine.low %v946_v22, %v950_v23 }
 0x277   :  { %4199 = vmatpush1.bf16.msra.mxu0 %v5407_v50  ;;  %v5464_v50 = vcombine.high %v913_v45, %v917_v46  ;;  %v958_v37 = vld [vmem:[#allocation7 + $0x7b8] sm:$0xff] }
 0x278   :  { %4363 = vmatpush1.bf16.msra.mxu1 %v5409_v35  ;;  %4200 = vmatprep.subr.bf16.mxu0 %v5416_v54  ;;  %v5466_v35 = vcombine.high %v914_v47, %v918_v48  ;;  %v921_v54 = vld [vmem:[#allocation7 + $0x690] sm:$0xff]  ;;  %v962_v45 = vld [vmem:[#allocation7 + $0x7d8] sm:$0xff]  ;;  %v5505_v48 = vcombine.low %v954_v36, %v958_v37 }
 0x279   :  { %4364 = vmatprep.subr.bf16.mxu1 %v5418_v15  ;;  %v925_v15 = vld [vmem:[#allocation7 + $0x6b0] sm:$0xff]  ;;  %v966_v46 = vld [vmem:[#allocation7 + $0x7f8] sm:$0xff] }
 0x27a   :  { %v5471_v57 = vcombine.low %v921_v54, %v925_v15 }
 0x27b   :  { %4201 = vmatpush1.bf16.msra.mxu0 %v5415_v53  ;;  %v5472_v53 = vcombine.high %v921_v54, %v925_v15  ;;  %v970_v54 = vld [vmem:[#allocation7 + $0x818] sm:$0xff] }
 0x27c   :  { %4365 = vmatpush1.bf16.msra.mxu1 %v5417_v59  ;;  %4202 = vmatprep.subr.bf16.mxu0 %v5424_v60  ;;  %v5474_v59 = vcombine.high %v922_v55, %v926_v40  ;;  %v929_v60 = vld [vmem:[#allocation7 + $0x6d0] sm:$0xff]  ;;  %v974_v15 = vld [vmem:[#allocation7 + $0x838] sm:$0xff]  ;;  %v5513_v40 = vcombine.low %v962_v45, %v966_v46 }
 0x27d   :  { %4366 = vmatprep.subr.bf16.mxu1 %v5426_v61  ;;  %v933_v61 = vld [vmem:[#allocation7 + $0x6f0] sm:$0xff] }
 0x27e   :  { %v5479_v12 = vcombine.low %v929_v60, %v933_v61 }
 0x27f   :  { %4203 = vmatpush1.bf16.msra.mxu0 %v5423_v4  ;;  %v5480_v4 = vcombine.high %v929_v60, %v933_v61  ;;  %v978_v61 = vld [vmem:[#allocation7 + $0x858] sm:$0xff] }
 0x280   :  { %4367 = vmatpush1.bf16.msra.mxu1 %v5425_v5  ;;  %4204 = vmatprep.subr.bf16.mxu0 %v5432_v34  ;;  %v5482_v5 = vcombine.high %v930_v62, %v934_v1  ;;  %v937_v34 = vld [vmem:[#allocation7 + $0x710] sm:$0xff]  ;;  %v982_v62 = vld [vmem:[#allocation7 + $0x878] sm:$0xff]  ;;  %v5521_v1 = vcombine.low %v970_v54, %v974_v15 }
 0x281   :  { %4368 = vmatprep.subr.bf16.mxu1 %v5434_v7  ;;  %v941_v7 = vld [vmem:[#allocation7 + $0x730] sm:$0xff] }
 0x282   :  { %v5487_v24 = vcombine.low %v937_v34, %v941_v7 }
 0x283   :  { %4205 = vmatpush1.bf16.msra.mxu0 %v5431_v33  ;;  %v5488_v33 = vcombine.high %v937_v34, %v941_v7  ;;  %v986_v34 = vld [vmem:[#allocation7 + $0x898] sm:$0xff] }
 0x284   :  { %4369 = vmatpush1.bf16.msra.mxu1 %v5433_v6  ;;  %4206 = vmatprep.subr.bf16.mxu0 %v5440_v19  ;;  %v5490_v6 = vcombine.high %v938_v9, %v942_v10  ;;  %v945_v19 = vld [vmem:[#allocation7 + $0x750] sm:$0xff]  ;;  %v990_v7 = vld [vmem:[#allocation7 + $0x8b8] sm:$0xff]  ;;  %v5529_v10 = vcombine.low %v978_v61, %v982_v62 }
 0x285   :  { %4370 = vmatprep.subr.bf16.mxu1 %v5442_v21  ;;  %v949_v21 = vld [vmem:[#allocation7 + $0x770] sm:$0xff] }
 0x286   :  { %v5495_v38 = vcombine.low %v945_v19, %v949_v21 }
 0x287   :  { %4207 = vmatpush1.bf16.msra.mxu0 %v5439_v28  ;;  %v5496_v28 = vcombine.high %v945_v19, %v949_v21  ;;  %v994_v19 = vld [vmem:[#allocation7 + $0x8d8] sm:$0xff] }
 0x288   :  { %4371 = vmatpush1.bf16.msra.mxu1 %v5441_v29  ;;  %4208 = vmatprep.subr.bf16.mxu0 %v5448_v31  ;;  %v5498_v29 = vcombine.high %v946_v22, %v950_v23  ;;  %v953_v31 = vld [vmem:[#allocation7 + $0x790] sm:$0xff]  ;;  %v998_v21 = vld [vmem:[#allocation7 + $0x8f8] sm:$0xff] }
 0x289   :  { %4372 = vmatprep.subr.bf16.mxu1 %v5450_v32  ;;  %v957_v32 = vld [vmem:[#allocation7 + $0x7b0] sm:$0xff] }
 0x28a   :  { %v5503_v47 = vcombine.low %v953_v31, %v957_v32 }
 0x28b   :  { %4209 = vmatpush1.bf16.msra.mxu0 %v5447_v41  ;;  %v5504_v41 = vcombine.high %v953_v31, %v957_v32  ;;  %v1006_v31 = vld [vmem:[#allocation7 + $0x938] sm:$0xff]  ;;  %v5545_v32 = vcombine.low %v994_v19, %v998_v21 }
 0x28c   :  { %4373 = vmatpush1.bf16.msra.mxu1 %v5449_v42  ;;  %4210 = vmatprep.subr.bf16.mxu0 %v5456_v0  ;;  %v5506_v42 = vcombine.high %v954_v36, %v958_v37  ;;  %v961_v0 = vld [vmem:[#allocation7 + $0x7d0] sm:$0xff] }
 0x28d   :  { %4374 = vmatprep.subr.bf16.mxu1 %v5458_v44  ;;  %v965_v44 = vld [vmem:[#allocation7 + $0x7f0] sm:$0xff] }
 0x28e   :  { %v5511_v55 = vcombine.low %v961_v0, %v965_v44 }
 0x28f   :  { %4211 = vmatpush1.bf16.msra.mxu0 %v5455_v52  ;;  %v5512_v52 = vcombine.high %v961_v0, %v965_v44 }
 0x290   :  { %4375 = vmatpush1.bf16.msra.mxu1 %v5457_v49  ;;  %4212 = vmatprep.subr.bf16.mxu0 %v5464_v50  ;;  %v5514_v49 = vcombine.high %v962_v45, %v966_v46  ;;  %v969_v50 = vld [vmem:[#allocation7 + $0x810] sm:$0xff] }
 0x291   :  { %4376 = vmatprep.subr.bf16.mxu1 %v5466_v35  ;;  %v973_v35 = vld [vmem:[#allocation7 + $0x830] sm:$0xff] }
 0x292   :  { %v5519_v60 = vcombine.low %v969_v50, %v973_v35 }
 0x293   :  { %4213 = vmatpush1.bf16.msra.mxu0 %v5463_v56  ;;  %v5520_v56 = vcombine.high %v969_v50, %v973_v35 }
 0x294   :  { %4377 = vmatpush1.bf16.msra.mxu1 %v5465_v58  ;;  %4214 = vmatprep.subr.bf16.mxu0 %v5472_v53  ;;  %v5522_v58 = vcombine.high %v970_v54, %v974_v15  ;;  %v977_v53 = vld [vmem:[#allocation7 + $0x850] sm:$0xff] }
 0x295   :  { %4378 = vmatprep.subr.bf16.mxu1 %v5474_v59  ;;  %v981_v59 = vld [vmem:[#allocation7 + $0x870] sm:$0xff] }
 0x296   :  { %v5527_v9 = vcombine.low %v977_v53, %v981_v59 }
 0x297   :  { %4215 = vmatpush1.bf16.msra.mxu0 %v5471_v57  ;;  %v5528_v57 = vcombine.high %v977_v53, %v981_v59 }
 0x298   :  { %4379 = vmatpush1.bf16.msra.mxu1 %v5473_v3  ;;  %4216 = vmatprep.subr.bf16.mxu0 %v5480_v4  ;;  %v985_v3 = vld [vmem:[#allocation7 + $0x890] sm:$0xff] }
 0x299   :  { %4380 = vmatprep.subr.bf16.mxu1 %v5482_v5  ;;  %v989_v4 = vld [vmem:[#allocation7 + $0x8b0] sm:$0xff]  ;;  %v5530_v5 = vcombine.high %v978_v61, %v982_v62 }
 0x29a   :  { %v5535_v22 = vcombine.low %v985_v3, %v989_v4  ;;  %v1033_v62 = vld [vmem:[#allocation7 + $0xa10] sm:$0xff] }
 0x29b   :  { %4217 = vmatpush1.bf16.msra.mxu0 %v5479_v12  ;;  %v5536_v12 = vcombine.high %v985_v3, %v989_v4  ;;  %v1038_v3 = vld [vmem:[#allocation7 + $0xa38] sm:$0xff] }
 0x29c   :  { %4381 = vmatpush1.bf16.msra.mxu1 %v5481_v18  ;;  %4218 = vmatprep.subr.bf16.mxu0 %v5488_v33  ;;  %v5538_v18 = vcombine.high %v986_v34, %v990_v7  ;;  %v993_v33 = vld [vmem:[#allocation7 + $0x8d0] sm:$0xff] }
 0x29d   :  { %4382 = vmatprep.subr.bf16.mxu1 %v5490_v6  ;;  %v997_v6 = vld [vmem:[#allocation7 + $0x8f0] sm:$0xff] }
 0x29e   :  { %v5544_v23 = vcombine.high %v993_v33, %v997_v6 }
 0x29f   :  { %4219 = vmatpush1.bf16.msra.mxu0 %v5487_v24  ;;  %v5546_v24 = vcombine.high %v994_v19, %v998_v21 }
 0x2a0   :  { %4383 = vmatpush1.bf16.msra.mxu1 %v5489_v27  ;;  %4220 = vmatprep.subr.bf16.mxu0 %v5496_v28  ;;  %v1001_v27 = vld [vmem:[#allocation7 + $0x910] sm:$0xff] }
 0x2a1   :  { %4384 = vmatprep.subr.bf16.mxu1 %v5498_v29  ;;  %v1005_v28 = vld [vmem:[#allocation7 + $0x930] sm:$0xff]  ;;  %v1002_v29 = vld [vmem:[#allocation7 + $0x918] sm:$0xff] }
 0x2a2   :  { %v5552_v36 = vcombine.high %v1001_v27, %v1005_v28  ;;  %v5554_v37 = vcombine.high %v1002_v29, %v1006_v31  ;;  %v5551_v0 = vcombine.low %v1001_v27, %v1005_v28  ;;  %v5553_v44 = vcombine.low %v1002_v29, %v1006_v31 }
 0x2a3   :  { %4221 = vmatpush1.bf16.msra.mxu0 %v5495_v38  ;;  %v1009_v38 = vld [vmem:[#allocation7 + $0x950] sm:$0xff] }
 0x2a4   :  { %4385 = vmatpush1.bf16.msra.mxu1 %v5497_v39  ;;  %4222 = vmatprep.subr.bf16.mxu0 %v5504_v41  ;;  %v1013_v39 = vld [vmem:[#allocation7 + $0x970] sm:$0xff]  ;;  %v1010_v41 = vld [vmem:[#allocation7 + $0x958] sm:$0xff] }
 0x2a5   :  { %4386 = vmatprep.subr.bf16.mxu1 %v5506_v42  ;;  %v1014_v42 = vld [vmem:[#allocation7 + $0x978] sm:$0xff]  ;;  %v5560_v45 = vcombine.high %v1009_v38, %v1013_v39  ;;  %v5559_v50 = vcombine.low %v1009_v38, %v1013_v39 }
 0x2a6   :  { %v5562_v46 = vcombine.high %v1010_v41, %v1014_v42  ;;  %v5561_v35 = vcombine.low %v1010_v41, %v1014_v42 }
 0x2a7   :  { %4223 = vmatpush1.bf16.msra.mxu0 %v5503_v47  ;;  %v1017_v47 = vld [vmem:[#allocation7 + $0x990] sm:$0xff] }
 0x2a8   :  { %4387 = vmatpush1.bf16.msra.mxu1 %v5505_v48  ;;  %4224 = vmatprep.subr.bf16.mxu0 %v5512_v52  ;;  %v1021_v48 = vld [vmem:[#allocation7 + $0x9b0] sm:$0xff]  ;;  %v1018_v52 = vld [vmem:[#allocation7 + $0x998] sm:$0xff] }
 0x2a9   :  { %4388 = vmatprep.subr.bf16.mxu1 %v5514_v49  ;;  %v1022_v49 = vld [vmem:[#allocation7 + $0x9b8] sm:$0xff]  ;;  %v5568_v54 = vcombine.high %v1017_v47, %v1021_v48  ;;  %v5567_v53 = vcombine.low %v1017_v47, %v1021_v48 }
 0x2aa   :  { %v5570_v15 = vcombine.high %v1018_v52, %v1022_v49  ;;  %v5569_v59 = vcombine.low %v1018_v52, %v1022_v49 }
 0x2ab   :  { %4225 = vmatpush1.bf16.msra.mxu0 %v5511_v55  ;;  %v1025_v55 = vld [vmem:[#allocation7 + $0x9d0] sm:$0xff] }
 0x2ac   :  { %4389 = vmatpush1.bf16.msra.mxu1 %v5513_v40  ;;  %4235 = vmatprep.subr.bf16.mxu0 %v5520_v56  ;;  %v1029_v40 = vld [vmem:[#allocation7 + $0x9f0] sm:$0xff]  ;;  %v1026_v56 = vld [vmem:[#allocation7 + $0x9d8] sm:$0xff] }
 0x2ad   :  { %4399 = vmatprep.subr.bf16.mxu1 %v5522_v58  ;;  %v1030_v58 = vld [vmem:[#allocation7 + $0x9f8] sm:$0xff]  ;;  %v5575_v4 = vcombine.low %v1025_v55, %v1029_v40 }
 0x2ae   :  { %4227 = vmatmul.mubr.bf16.vlgmr.msra.gmra.mrb[12].mxu0 %v6406_v17  ;;  %v5578_v61 = vcombine.high %v1026_v56, %v1030_v58 }
 0x2af   :  { %4391 = vmatmul.mubr.bf16.vlgmr.msra.gmra.mrb[12].mxu1 %v6406_v17  ;;  %4236 = vmatpush1.bf16.msra.mxu0 %v5519_v60  ;;  %v5537_v17 = vcombine.low %v986_v34, %v990_v7  ;;  %v5576_v60 = vcombine.high %v1025_v55, %v1029_v40 }
 0x2b0   :  { %4267 = vmatprep.mubr.bf16.mxu0 %v6408_v26  ;;  %4400 = vmatpush1.bf16.msra.mxu1 %v5521_v1  ;;  %v1037_v1 = vld [vmem:[#allocation7 + $0xa30] sm:$0xff] }
 0x2b1   :  { %4431 = vmatprep.mubr.bf16.mxu1 %v6408_v26  ;;  %4237 = vmatprep.subr.bf16.mxu0 %v5528_v57  ;;  %v5543_v26 = vcombine.low %v993_v33, %v997_v6  ;;  %v1034_v57 = vld [vmem:[#allocation7 + $0xa18] sm:$0xff]  ;;  %v5584_v34 = vcombine.high %v1033_v62, %v1037_v1  ;;  %v5583_v33 = vcombine.low %v1033_v62, %v1037_v1 }
 0x2b2   :  { %4401 = vmatprep.subr.bf16.mxu1 %v5530_v5  ;;  %v5577_v5 = vcombine.low %v1026_v56, %v1030_v58  ;;  %v5586_v7 = vcombine.high %v1034_v57, %v1038_v3  ;;  %v5585_v6 = vcombine.low %v1034_v57, %v1038_v3 }
 0x2b3   :  { %4238 = vmatpush1.bf16.msra.mxu0 %v5527_v9  ;;  %v1041_v9 = vld [vmem:[#allocation7 + $0xa50] sm:$0xff] }
 0x2b4   :  { %4402 = vmatpush1.bf16.msra.mxu1 %v5529_v10  ;;  %4239 = vmatprep.subr.bf16.mxu0 %v5536_v12  ;;  %v1045_v10 = vld [vmem:[#allocation7 + $0xa70] sm:$0xff]  ;;  %v1042_v12 = vld [vmem:[#allocation7 + $0xa58] sm:$0xff] }
 0x2b5   :  { %4403 = vmatprep.subr.bf16.mxu1 %v5538_v18  ;;  %v1046_v18 = vld [vmem:[#allocation7 + $0xa78] sm:$0xff]  ;;  %v5592_v19 = vcombine.high %v1041_v9, %v1045_v10  ;;  %v5591_v27 = vcombine.low %v1041_v9, %v1045_v10 }
 0x2b6   :  { %v5594_v21 = vcombine.high %v1042_v12, %v1046_v18  ;;  %v5593_v28 = vcombine.low %v1042_v12, %v1046_v18 }
 0x2b7   :  { %4240 = vmatpush1.bf16.msra.mxu0 %v5535_v22  ;;  %v1049_v22 = vld [vmem:[#allocation7 + $0xa90] sm:$0xff] }
 0x2b8   :  { %4404 = vmatpush1.bf16.msra.mxu1 %v5537_v17  ;;  %4241 = vmatprep.subr.bf16.mxu0 %v5544_v23  ;;  %v1053_v17 = vld [vmem:[#allocation7 + $0xab0] sm:$0xff]  ;;  %v1050_v23 = vld [vmem:[#allocation7 + $0xa98] sm:$0xff] }
 0x2b9   :  { %4405 = vmatprep.subr.bf16.mxu1 %v5546_v24  ;;  %v1054_v24 = vld [vmem:[#allocation7 + $0xab8] sm:$0xff]  ;;  %v5600_v29 = vcombine.high %v1049_v22, %v1053_v17  ;;  %v5599_v38 = vcombine.low %v1049_v22, %v1053_v17 }
 0x2ba   :  { %v5602_v31 = vcombine.high %v1050_v23, %v1054_v24  ;;  %v5601_v39 = vcombine.low %v1050_v23, %v1054_v24 }
 0x2bb   :  { %4242 = vmatpush1.bf16.msra.mxu0 %v5543_v26  ;;  %v1057_v26 = vld [vmem:[#allocation7 + $0xad0] sm:$0xff] }
 0x2bc   :  { %4406 = vmatpush1.bf16.msra.mxu1 %v5545_v32  ;;  %4243 = vmatprep.subr.bf16.mxu0 %v5552_v36  ;;  %v1061_v32 = vld [vmem:[#allocation7 + $0xaf0] sm:$0xff]  ;;  %v1058_v36 = vld [vmem:[#allocation7 + $0xad8] sm:$0xff] }
 0x2bd   :  { %4407 = vmatprep.subr.bf16.mxu1 %v5554_v37  ;;  %v1062_v37 = vld [vmem:[#allocation7 + $0xaf8] sm:$0xff]  ;;  %v5608_v41 = vcombine.high %v1057_v26, %v1061_v32  ;;  %v5607_v47 = vcombine.low %v1057_v26, %v1061_v32 }
 0x2be   :  { %v5610_v42 = vcombine.high %v1058_v36, %v1062_v37  ;;  %v5609_v48 = vcombine.low %v1058_v36, %v1062_v37  ;;  %v1110_v26 = vld [vmem:[#allocation7 + $0xc78] sm:$0xff]  ;;  %v1113_v37 = vld [vmem:[#allocation7 + $0xc90] sm:$0xff] }
 0x2bf   :  { %4244 = vmatpush1.bf16.msra.mxu0 %v5551_v0  ;;  %v1065_v0 = vld [vmem:[#allocation7 + $0xb10] sm:$0xff] }
 0x2c0   :  { %4408 = vmatpush1.bf16.msra.mxu1 %v5553_v44  ;;  %4245 = vmatprep.subr.bf16.mxu0 %v5560_v45  ;;  %v1069_v44 = vld [vmem:[#allocation7 + $0xb30] sm:$0xff]  ;;  %v1066_v45 = vld [vmem:[#allocation7 + $0xb18] sm:$0xff] }
 0x2c1   :  { %4409 = vmatprep.subr.bf16.mxu1 %v5562_v46  ;;  %v1070_v46 = vld [vmem:[#allocation7 + $0xb38] sm:$0xff]  ;;  %v5616_v52 = vcombine.high %v1065_v0, %v1069_v44  ;;  %v5615_v55 = vcombine.low %v1065_v0, %v1069_v44 }
 0x2c2   :  { %v5618_v49 = vcombine.high %v1066_v45, %v1070_v46  ;;  %v5617_v40 = vcombine.low %v1066_v45, %v1070_v46 }
 0x2c3   :  { %4246 = vmatpush1.bf16.msra.mxu0 %v5559_v50  ;;  %v1073_v50 = vld [vmem:[#allocation7 + $0xb50] sm:$0xff] }
 0x2c4   :  { %4410 = vmatpush1.bf16.msra.mxu1 %v5561_v35  ;;  %4247 = vmatprep.subr.bf16.mxu0 %v5568_v54  ;;  %v1077_v35 = vld [vmem:[#allocation7 + $0xb70] sm:$0xff]  ;;  %v1074_v54 = vld [vmem:[#allocation7 + $0xb58] sm:$0xff] }
 0x2c5   :  { %4411 = vmatprep.subr.bf16.mxu1 %v5570_v15  ;;  %v1078_v15 = vld [vmem:[#allocation7 + $0xb78] sm:$0xff]  ;;  %v5624_v56 = vcombine.high %v1073_v50, %v1077_v35  ;;  %v5623_v62 = vcombine.low %v1073_v50, %v1077_v35 }
 0x2c6   :  { %v5626_v58 = vcombine.high %v1074_v54, %v1078_v15  ;;  %v5625_v1 = vcombine.low %v1074_v54, %v1078_v15  ;;  %v1129_v15 = vld [vmem:[#allocation7 + $0xd10] sm:$0xff] }
 0x2c7   :  { %4248 = vmatpush1.bf16.msra.mxu0 %v5567_v53  ;;  %v1081_v53 = vld [vmem:[#allocation7 + $0xb90] sm:$0xff] }
 0x2c8   :  { %4412 = vmatpush1.bf16.msra.mxu1 %v5569_v59  ;;  %4249 = vmatprep.subr.bf16.mxu0 %v5576_v60  ;;  %v1085_v59 = vld [vmem:[#allocation7 + $0xbb0] sm:$0xff]  ;;  %v1082_v60 = vld [vmem:[#allocation7 + $0xb98] sm:$0xff] }
 0x2c9   :  { %4413 = vmatprep.subr.bf16.mxu1 %v5578_v61  ;;  %v1086_v61 = vld [vmem:[#allocation7 + $0xbb8] sm:$0xff]  ;;  %v5632_v57 = vcombine.high %v1081_v53, %v1085_v59  ;;  %v5631_v9 = vcombine.low %v1081_v53, %v1085_v59 }
 0x2ca   :  { %v5634_v3 = vcombine.high %v1082_v60, %v1086_v61  ;;  %v5633_v10 = vcombine.low %v1082_v60, %v1086_v61  ;;  %v1137_v60 = vld [vmem:[#allocation7 + $0xd50] sm:$0xff] }
 0x2cb   :  { %4250 = vmatpush1.bf16.msra.mxu0 %v5575_v4  ;;  %v1089_v4 = vld [vmem:[#allocation7 + $0xbd0] sm:$0xff] }
 0x2cc   :  { %4414 = vmatpush1.bf16.msra.mxu1 %v5577_v5  ;;  %4251 = vmatprep.subr.bf16.mxu0 %v5584_v34  ;;  %v1093_v5 = vld [vmem:[#allocation7 + $0xbf0] sm:$0xff]  ;;  %v1090_v34 = vld [vmem:[#allocation7 + $0xbd8] sm:$0xff] }
 0x2cd   :  { %4415 = vmatprep.subr.bf16.mxu1 %v5586_v7  ;;  %v1094_v7 = vld [vmem:[#allocation7 + $0xbf8] sm:$0xff]  ;;  %v5640_v12 = vcombine.high %v1089_v4, %v1093_v5  ;;  %v5639_v22 = vcombine.low %v1089_v4, %v1093_v5  ;;  %v1141_v61 = vld [vmem:[#allocation7 + $0xd70] sm:$0xff] }
 0x2ce   :  { %v5642_v18 = vcombine.high %v1090_v34, %v1094_v7  ;;  %v5641_v17 = vcombine.low %v1090_v34, %v1094_v7  ;;  %v5688_v4 = vcombine.high %v1137_v60, %v1141_v61  ;;  %v1145_v34 = vld [vmem:[#allocation7 + $0xd90] sm:$0xff] }
 0x2cf   :  { %4252 = vmatpush1.bf16.msra.mxu0 %v5583_v33  ;;  %v1097_v33 = vld [vmem:[#allocation7 + $0xc10] sm:$0xff] }
 0x2d0   :  { %4416 = vmatpush1.bf16.msra.mxu1 %v5585_v6  ;;  %4253 = vmatprep.subr.bf16.mxu0 %v5592_v19  ;;  %v1101_v6 = vld [vmem:[#allocation7 + $0xc30] sm:$0xff]  ;;  %v1098_v19 = vld [vmem:[#allocation7 + $0xc18] sm:$0xff] }
 0x2d1   :  { %4417 = vmatprep.subr.bf16.mxu1 %v5594_v21  ;;  %v1102_v21 = vld [vmem:[#allocation7 + $0xc38] sm:$0xff]  ;;  %v5648_v23 = vcombine.high %v1097_v33, %v1101_v6  ;;  %v1149_v7 = vld [vmem:[#allocation7 + $0xdb0] sm:$0xff] }
 0x2d2   :  { %v5650_v24 = vcombine.high %v1098_v19, %v1102_v21  ;;  %v5649_v32 = vcombine.low %v1098_v19, %v1102_v21 }
 0x2d3   :  { %4254 = vmatpush1.bf16.msra.mxu0 %v5591_v27  ;;  %v1105_v27 = vld [vmem:[#allocation7 + $0xc50] sm:$0xff] }
 0x2d4   :  { %4418 = vmatpush1.bf16.msra.mxu1 %v5593_v28  ;;  %4255 = vmatprep.subr.bf16.mxu0 %v5600_v29  ;;  %v1109_v28 = vld [vmem:[#allocation7 + $0xc70] sm:$0xff]  ;;  %v5647_v29 = vcombine.low %v1097_v33, %v1101_v6  ;;  %v5696_v33 = vcombine.high %v1145_v34, %v1149_v7 }
 0x2d5   :  { %4419 = vmatprep.subr.bf16.mxu1 %v5602_v31  ;;  %v1106_v31 = vld [vmem:[#allocation7 + $0xc58] sm:$0xff]  ;;  %v5656_v36 = vcombine.high %v1105_v27, %v1109_v28  ;;  %v5655_v0 = vcombine.low %v1105_v27, %v1109_v28 }
 0x2d6   :  { %v5657_v44 = vcombine.low %v1106_v31, %v1110_v26  ;;  %v1154_v27 = vld [vmem:[#allocation7 + $0xdd8] sm:$0xff] }
 0x2d7   :  { %4256 = vmatpush1.bf16.msra.mxu0 %v5599_v38  ;;  %v1117_v38 = vld [vmem:[#allocation7 + $0xcb0] sm:$0xff]  ;;  %v1158_v28 = vld [vmem:[#allocation7 + $0xdf8] sm:$0xff] }
 0x2d8   :  { %4420 = vmatpush1.bf16.msra.mxu1 %v5601_v39  ;;  %4257 = vmatprep.subr.bf16.mxu0 %v5608_v41  ;;  %v5658_v39 = vcombine.high %v1106_v31, %v1110_v26  ;;  %v1114_v41 = vld [vmem:[#allocation7 + $0xc98] sm:$0xff]  ;;  %v5664_v45 = vcombine.high %v1113_v37, %v1117_v38  ;;  %v5663_v50 = vcombine.low %v1113_v37, %v1117_v38 }
 0x2d9   :  { %4421 = vmatprep.subr.bf16.mxu1 %v5610_v42  ;;  %v1118_v42 = vld [vmem:[#allocation7 + $0xcb8] sm:$0xff]  ;;  %v5695_v26 = vcombine.low %v1145_v34, %v1149_v7 }
 0x2da   :  { %v5666_v46 = vcombine.high %v1114_v41, %v1118_v42 }
 0x2db   :  { %4258 = vmatpush1.bf16.msra.mxu0 %v5607_v47  ;;  %v1121_v47 = vld [vmem:[#allocation7 + $0xcd0] sm:$0xff] }
 0x2dc   :  { %4422 = vmatpush1.bf16.msra.mxu1 %v5609_v48  ;;  %4259 = vmatprep.subr.bf16.mxu0 %v5616_v52  ;;  %v1125_v48 = vld [vmem:[#allocation7 + $0xcf0] sm:$0xff]  ;;  %v1122_v52 = vld [vmem:[#allocation7 + $0xcd8] sm:$0xff] }
 0x2dd   :  { %4423 = vmatprep.subr.bf16.mxu1 %v5618_v49  ;;  %v1126_v49 = vld [vmem:[#allocation7 + $0xcf8] sm:$0xff]  ;;  %v5672_v35 = vcombine.high %v1121_v47, %v1125_v48 }
 0x2de   :  { %v5674_v54 = vcombine.high %v1122_v52, %v1126_v49 }
 0x2df   :  { %4260 = vmatpush1.bf16.msra.mxu0 %v5615_v55  ;;  %v1133_v55 = vld [vmem:[#allocation7 + $0xd30] sm:$0xff] }
 0x2e0   :  { %4424 = vmatpush1.bf16.msra.mxu1 %v5617_v40  ;;  %4261 = vmatprep.subr.bf16.mxu0 %v5624_v56  ;;  %v1130_v40 = vld [vmem:[#allocation7 + $0xd18] sm:$0xff]  ;;  %v5680_v53 = vcombine.high %v1129_v15, %v1133_v55 }
 0x2e1   :  { %4425 = vmatprep.subr.bf16.mxu1 %v5626_v58  ;;  %v1134_v56 = vld [vmem:[#allocation7 + $0xd38] sm:$0xff]  ;;  %v5673_v58 = vcombine.low %v1122_v52, %v1126_v49  ;;  %v1169_v52 = vld [vmem:[#allocation7 + $0xe50] sm:$0xff] }
 0x2e2   :  { %v5682_v59 = vcombine.high %v1130_v40, %v1134_v56  ;;  %v1173_v49 = vld [vmem:[#allocation7 + $0xe70] sm:$0xff] }
 0x2e3   :  { %4262 = vmatpush1.bf16.msra.mxu0 %v5623_v62  ;;  %v1138_v62 = vld [vmem:[#allocation7 + $0xd58] sm:$0xff] }
 0x2e4   :  { %4426 = vmatpush1.bf16.msra.mxu1 %v5625_v1  ;;  %4263 = vmatprep.subr.bf16.mxu0 %v5632_v57  ;;  %v1142_v1 = vld [vmem:[#allocation7 + $0xd78] sm:$0xff]  ;;  %v5679_v57 = vcombine.low %v1129_v15, %v1133_v55  ;;  %v5720_v15 = vcombine.high %v1169_v52, %v1173_v49 }
 0x2e5   :  { %4427 = vmatprep.subr.bf16.mxu1 %v5634_v3  ;;  %v5681_v3 = vcombine.low %v1130_v40, %v1134_v56  ;;  %v5690_v5 = vcombine.high %v1138_v62, %v1142_v1  ;;  %v1177_v40 = vld [vmem:[#allocation7 + $0xe90] sm:$0xff] }
 0x2e6   :  { %v1181_v56 = vld [vmem:[#allocation7 + $0xeb0] sm:$0xff] }
 0x2e7   :  { %4264 = vmatpush1.bf16.msra.mxu0 %v5631_v9  ;;  %v1146_v9 = vld [vmem:[#allocation7 + $0xd98] sm:$0xff] }
 0x2e8   :  { %4428 = vmatpush1.bf16.msra.mxu1 %v5633_v10  ;;  %4265 = vmatprep.subr.bf16.mxu0 %v5640_v12  ;;  %v1150_v10 = vld [vmem:[#allocation7 + $0xdb8] sm:$0xff]  ;;  %v5687_v12 = vcombine.low %v1137_v60, %v1141_v61  ;;  %v5728_v60 = vcombine.high %v1177_v40, %v1181_v56 }
 0x2e9   :  { %4429 = vmatprep.subr.bf16.mxu1 %v5642_v18  ;;  %v5689_v18 = vcombine.low %v1138_v62, %v1142_v1  ;;  %v5698_v21 = vcombine.high %v1146_v9, %v1150_v10  ;;  %v5697_v37 = vcombine.low %v1146_v9, %v1150_v10  ;;  %v1185_v62 = vld [vmem:[#allocation7 + $0xed0] sm:$0xff] }
 0x2ea   :  { %v1189_v1 = vld [vmem:[#allocation7 + $0xef0] sm:$0xff] }
 0x2eb   :  { %4266 = vmatpush1.bf16.msra.mxu0 %v5639_v22  ;;  %v1153_v22 = vld [vmem:[#allocation7 + $0xdd0] sm:$0xff]  ;;  %v5736_v34 = vcombine.high %v1185_v62, %v1189_v1 }
 0x2ec   :  { %4430 = vmatpush1.bf16.msra.mxu1 %v5641_v17  ;;  %4276 = vmatprep.subr.bf16.mxu0 %v5648_v23  ;;  %v1157_v17 = vld [vmem:[#allocation7 + $0xdf0] sm:$0xff] }
 0x2ed   :  { %4440 = vmatprep.subr.bf16.mxu1 %v5650_v24  ;;  %v5704_v38 = vcombine.high %v1153_v22, %v1157_v17  ;;  %v1193_v9 = vld [vmem:[#allocation7 + $0xf10] sm:$0xff] }
 0x2ee   :  { %4268 = vmatmul.mubr.bf16.vlgmr.msra.gmra.mrb[12].mxu0 %v6424_v63  ;;  %v1197_v10 = vld [vmem:[#allocation7 + $0xf30] sm:$0xff] }
 0x2ef   :  { %4432 = vmatmul.mubr.bf16.vlgmr.msra.gmra.mrb[12].mxu1 %v6424_v63  ;;  %4277 = vmatpush1.bf16.msra.mxu0 %v5647_v29  ;;  %v5665_v63 = vcombine.low %v1114_v41, %v1118_v42  ;;  %v1161_v41 = vld [vmem:[#allocation7 + $0xe10] sm:$0xff] }
 0x2f0   :  { %4308 = vmatprep.mubr.bf16.mxu0 %v6426_v8  ;;  %4441 = vmatpush1.bf16.msra.mxu1 %v5649_v32  ;;  %v1165_v42 = vld [vmem:[#allocation7 + $0xe30] sm:$0xff] }
 0x2f1   :  { %4472 = vmatprep.mubr.bf16.mxu1 %v6426_v8  ;;  %4278 = vmatprep.subr.bf16.mxu0 %v5656_v36  ;;  %v5671_v8 = vcombine.low %v1121_v47, %v1125_v48  ;;  %v5712_v47 = vcombine.high %v1161_v41, %v1165_v42 }
 0x2f2   :  { %4442 = vmatprep.subr.bf16.mxu1 %v5658_v39  ;;  %v5706_v39 = vcombine.high %v1154_v27, %v1158_v28 }
 0x2f3   :  { %4279 = vmatpush1.bf16.msra.mxu0 %v5655_v0  ;;  %v1162_v0 = vld [vmem:[#allocation7 + $0xe18] sm:$0xff] }
 0x2f4   :  { %4443 = vmatpush1.bf16.msra.mxu1 %v5657_v44  ;;  %4280 = vmatprep.subr.bf16.mxu0 %v5664_v45  ;;  %v1166_v44 = vld [vmem:[#allocation7 + $0xe38] sm:$0xff]  ;;  %v5703_v45 = vcombine.low %v1153_v22, %v1157_v17  ;;  %v5744_v22 = vcombine.high %v1193_v9, %v1197_v10 }
 0x2f5   :  { %4444 = vmatprep.subr.bf16.mxu1 %v5666_v46  ;;  %v5705_v46 = vcombine.low %v1154_v27, %v1158_v28  ;;  %v5714_v48 = vcombine.high %v1162_v0, %v1166_v44  ;;  %v1201_v27 = vld [vmem:[#allocation7 + $0xf50] sm:$0xff] }
 0x2f6   :  { %v1205_v28 = vld [vmem:[#allocation7 + $0xf70] sm:$0xff] }
 0x2f7   :  { %4281 = vmatpush1.bf16.msra.mxu0 %v5663_v50  ;;  %v1170_v50 = vld [vmem:[#allocation7 + $0xe58] sm:$0xff] }
 0x2f8   :  { %4445 = vmatpush1.bf16.msra.mxu1 %v5665_v63  ;;  %4282 = vmatprep.subr.bf16.mxu0 %v5672_v35  ;;  %v1174_v63 = vld [vmem:[#allocation7 + $0xe78] sm:$0xff]  ;;  %v5711_v35 = vcombine.low %v1161_v41, %v1165_v42 }
 0x2f9   :  { %4446 = vmatprep.subr.bf16.mxu1 %v5674_v54  ;;  %v5713_v54 = vcombine.low %v1162_v0, %v1166_v44  ;;  %v5722_v55 = vcombine.high %v1170_v50, %v1174_v63  ;;  %v1210_v41 = vld [vmem:[#allocation7 + $0xf98] sm:$0xff]  ;;  %v6462_v0 = vld [vmem:[#allocation8] sm:$0xff]  ;;  %v5751_v44 = vcombine.low %v1201_v27, %v1205_v28 }
 0x2fa   :  { %v1214_v42 = vld [vmem:[#allocation7 + $0xfb8] sm:$0xff] }
 0x2fb   :  { %4283 = vmatpush1.bf16.msra.mxu0 %v5671_v8  ;;  %v1178_v8 = vld [vmem:[#allocation7 + $0xe98] sm:$0xff] }
 0x2fc   :  { %4447 = vmatpush1.bf16.msra.mxu1 %v5673_v58  ;;  %4284 = vmatprep.subr.bf16.mxu0 %v5680_v53  ;;  %v1182_v58 = vld [vmem:[#allocation7 + $0xeb8] sm:$0xff]  ;;  %v5719_v53 = vcombine.low %v1169_v52, %v1173_v49  ;;  %v1221_v52 = vld [vmem:[#allocation7 + $0xff0] sm:$0xff]  ;;  %v1232_v49 = vrot.slane %v6462_v0, %v177_v16 }
 0x2fd   :  { %4448 = vmatprep.subr.bf16.mxu1 %v5682_v59  ;;  %v5721_v59 = vcombine.low %v1170_v50, %v1174_v63  ;;  %v5730_v61 = vcombine.high %v1178_v8, %v1182_v58  ;;  %v1218_v50 = vld [vmem:[#allocation7 + $0xfd8] sm:$0xff] }
 0x2fe   :  { %v1222_v63 = vld [vmem:[#allocation7 + $0xff8] sm:$0xff] }
 0x2ff   :  { %4285 = vmatpush1.bf16.msra.mxu0 %v5679_v57  ;;  %v1186_v57 = vld [vmem:[#allocation7 + $0xed8] sm:$0xff] }
 0x300   :  { %4449 = vmatpush1.bf16.msra.mxu1 %v5681_v3  ;;  %4286 = vmatprep.subr.bf16.mxu0 %v5688_v4  ;;  %v1190_v3 = vld [vmem:[#allocation7 + $0xef8] sm:$0xff]  ;;  %v5727_v4 = vcombine.low %v1177_v40, %v1181_v56  ;;  %v5770_v40 = vcombine.high %v1218_v50, %v1222_v63 }
 0x301   :  { %v6454_v6 = vpop.f32.mrb[8].mxu0  ;;  %v6456_v19 = vpop.f32.mrb[8].mxu1  ;;  %4450 = vmatprep.subr.bf16.mxu1 %v5690_v5  ;;  %v5729_v5 = vcombine.low %v1178_v8, %v1182_v58  ;;  %v5738_v7 = vcombine.high %v1186_v57, %v1190_v3  ;;  %v5769_v58 = vcombine.low %v1218_v50, %v1222_v63  ;;  %v6027_v50 = vld [vmem:[#allocation10 + $0x180] sm:$0xff]   ;;  %v6028_v63 = vld [vmem:[#allocation10 + $0x148] sm:$0xff]  }
 0x302   :  { %v6458_v23 = vpop.f32.mrb[9].mxu0  ;;  %v6460_v24 = vpop.f32.mrb[9].mxu1 }
 0x303   :  { %v3986_v29 = vpop.f32.mrb[10].mxu0  ;;  %v4150_v31 = vpop.f32.mrb[10].mxu1  ;;  %4287 = vmatpush1.bf16.msra.mxu0 %v5687_v12  ;;  %v1194_v12 = vld [vmem:[#allocation7 + $0xf18] sm:$0xff]  ;;  %v5925_v56 = vadd.f32 %v6458_v23, %v1232_v49 }
 0x304   :  { %4451 = vmatpush1.bf16.msra.mxu1 %v5689_v18  ;;  %v3987_v32 = vpop.f32.mrb[11].mxu0  ;;  %v4151_v36 = vpop.f32.mrb[11].mxu1  ;;  %4288 = vmatprep.subr.bf16.mxu0 %v5696_v33  ;;  %v1198_v18 = vld [vmem:[#allocation7 + $0xf38] sm:$0xff]  ;;  %v5735_v33 = vcombine.low %v1185_v62, %v1189_v1  ;;  %v5995_v62 = vld [vmem:[#allocation10 + $0x80] sm:$0xff]   ;;  %v5996_v1 = vld [vmem:[#allocation10 + $0x48] sm:$0xff]  }
 0x305   :  { %4452 = vmatprep.subr.bf16.mxu1 %v5698_v21  ;;  %v5737_v21 = vcombine.low %v1186_v57, %v1190_v3  ;;  %v5746_v17 = vcombine.high %v1194_v12, %v1198_v18  ;;  %v1202_v29 = vld [vmem:[#allocation7 + $0xf58] sm:$0xff]  ;;  %v5745_v32 = vcombine.low %v1194_v12, %v1198_v18  ;;  %v5752_v36 = vcombine.high %v1201_v27, %v1205_v28  ;;  %v5998_v3 = vld [vmem:[#allocation10 + $0x8] sm:$0xff]   ;;  %v6005_v12 = vld [vmem:[#allocation10 + $0xd8] sm:$0xff]  }
 0x306   :  { %v1206_v31 = vld [vmem:[#allocation7 + $0xf78] sm:$0xff]  ;;  %v6007_v18 = vld [vmem:[#allocation10 + $0x98] sm:$0xff]   ;;  %v6012_v27 = vld [vmem:[#allocation10 + $0x68] sm:$0xff]  }
 0x307   :  { %4289 = vmatpush1.bf16.msra.mxu0 %v5695_v26  ;;  %v5743_v26 = vcombine.low %v1193_v9, %v1197_v10  ;;  %v6003_v9 = vld [vmem:[#allocation10 + $0x90] sm:$0xff]   ;;  %v6004_v10 = vld [vmem:[#allocation10 + $0x58] sm:$0xff]   ;;  %v6013_v28 = vld [vmem:[#allocation10 + $0xe8] sm:$0xff]  }
 0x308   :  { %4453 = vmatpush1.bf16.msra.mxu1 %v5697_v37  ;;  %4290 = vmatprep.subr.bf16.mxu0 %v5704_v38  ;;  %v5754_v37 = vcombine.high %v1202_v29, %v1206_v31  ;;  %v1209_v38 = vld [vmem:[#allocation7 + $0xf90] sm:$0xff] }
 0x309   :  { %4454 = vmatprep.subr.bf16.mxu1 %v5706_v39  ;;  %v1213_v39 = vld [vmem:[#allocation7 + $0xfb0] sm:$0xff] }
 0x30b   :  { %4291 = vmatpush1.bf16.msra.mxu0 %v5703_v45  ;;  %v5753_v45 = vcombine.low %v1202_v29, %v1206_v31  ;;  %v6014_v29 = vld [vmem:[#allocation10 + $0x28] sm:$0xff]   ;;  %v1228_v31 = vrot.slane %v6462_v0, %v173_v14 }
 0x30c   :  { %4455 = vmatpush1.bf16.msra.mxu1 %v5705_v46  ;;  %4292 = vmatprep.subr.bf16.mxu0 %v5712_v47  ;;  %v5760_v46 = vcombine.high %v1209_v38, %v1213_v39  ;;  %v5762_v47 = vcombine.high %v1210_v41, %v1214_v42 }
 0x30d   :  { %4456 = vmatprep.subr.bf16.mxu1 %v5714_v48  ;;  %v1217_v48 = vld [vmem:[#allocation7 + $0xfd0] sm:$0xff] }
 0x30e   :  { %v5767_v16 = vcombine.low %v1217_v48, %v1221_v52 }
 0x30f   :  { %4293 = vmatpush1.bf16.msra.mxu0 %v5711_v35  ;;  %v1240_v35 = vrot.slane %v6462_v0, %v185_v20  ;;  %v5993_v20 = vld [vmem:[#allocation10 + $0xc0] sm:$0xff]  }
 0x310   :  { %4457 = vmatpush1.bf16.msra.mxu1 %v5713_v54  ;;  %4294 = vmatprep.subr.bf16.mxu0 %v5720_v15  ;;  %v5759_v54 = vcombine.low %v1209_v38, %v1213_v39  ;;  %v5761_v15 = vcombine.low %v1210_v41, %v1214_v42  ;;  %v6018_v38 = vld [vmem:[#allocation10 + $0x30] sm:$0xff]   ;;  %v5924_v39 = vadd.f32 %v6454_v6, %v1228_v31  ;;  %v6020_v42 = vld [vmem:[#allocation10 + $0x78] sm:$0xff]   ;;  %v6026_v6 = vld [vmem:[#allocation10 + $0x100] sm:$0xff]  }
 0x311   :  { %4458 = vmatprep.subr.bf16.mxu1 %v5722_v55  ;;  %v5768_v55 = vcombine.high %v1217_v48, %v1221_v52  ;;  %v5927_v8 = vadd.f32 %v6460_v24, %v1240_v35  ;;  %v5997_v24 = vld [vmem:[#allocation10 + $0xc8] sm:$0xff]   ;;  %v6019_v41 = vld [vmem:[#allocation10 + $0xb0] sm:$0xff]   ;;  %v6025_v52 = vld [vmem:[#allocation10 + $0x1c0] sm:$0xff]  }
 0x312   :  { %v6029_v35 = vld [vmem:[#allocation10 + $0x1c8] sm:$0xff]  }
 0x313   :  { %4295 = vmatpush1.bf16.msra.mxu0 %v5719_v53  ;;  %v5992_v53 = vld [vmem:[#allocation10 + $0x40] sm:$0xff]  }
 0x314   :  { %4459 = vmatpush1.bf16.msra.mxu1 %v5721_v59  ;;  %4296 = vmatprep.subr.bf16.mxu0 %v5728_v60  ;;  %v4482_v59 = vmax.f32 %v5925_v56, 0.0  ;;  %v4484_v60 = vmax.f32 %v5927_v8, 0.0  ;;  %v6034_v56 = vld [vmem:[#allocation10 + $0x110] sm:$0xff]  }
 0x315   :  { %4460 = vmatprep.subr.bf16.mxu1 %v5730_v61  ;;  %v5994_v61 = vld [vmem:[#allocation10] sm:$0xff]   ;;  %v6035_v8 = vld [vmem:[#allocation10 + $0x190] sm:$0xff]  }
 0x316   :  { %v4490_v23 = vpack.c.bf16 %v4482_v59, %v4482_v59  ;;  %v4492_v57 = vpack.c.bf16 %v4484_v60, %v4484_v60  ;;  %v6040_v59 = vld [vmem:[#allocation10 + $0x160] sm:$0xff]  }
 0x317   :  { %4297 = vmatpush1.bf16.msra.mxu0 %v5727_v4  ;;  %v5999_v4 = vld [vmem:[#allocation10 + $0x88] sm:$0xff]   ;;  %v6041_v60 = vld [vmem:[#allocation10 + $0x1e0] sm:$0xff]  }
 0x318   :  { %4461 = vmatpush1.bf16.msra.mxu1 %v5729_v5  ;;  %4298 = vmatprep.subr.bf16.mxu0 %v5736_v34  ;;  %v6000_v5 = vld [vmem:[#allocation10 + $0x50] sm:$0xff]  }
 0x319   :  { %4462 = vmatprep.subr.bf16.mxu1 %v5738_v7  ;;  %v6001_v34 = vld [vmem:[#allocation10 + $0xd0] sm:$0xff]  }
 0x31a   :  { %v6002_v7 = vld [vmem:[#allocation10 + $0x10] sm:$0xff]  }
 0x31b   :  { %4299 = vmatpush1.bf16.msra.mxu0 %v5735_v33  ;;  %v6008_v33 = vld [vmem:[#allocation10 + $0x60] sm:$0xff]  }
 0x31c   :  { %4463 = vmatpush1.bf16.msra.mxu1 %v5737_v21  ;;  %4300 = vmatprep.subr.bf16.mxu0 %v5744_v22  ;;  %v6009_v21 = vld [vmem:[#allocation10 + $0xe0] sm:$0xff]  }
 0x31d   :  { %4464 = vmatprep.subr.bf16.mxu1 %v5746_v17  ;;  %v6010_v22 = vld [vmem:[#allocation10 + $0x20] sm:$0xff]  }
 0x31e   :  { %v6011_v17 = vld [vmem:[#allocation10 + $0xa0] sm:$0xff]  }
 0x31f   :  { %4301 = vmatpush1.bf16.msra.mxu0 %v5743_v26  ;;  %v6015_v26 = vld [vmem:[#allocation10 + $0xa8] sm:$0xff]  }
 0x320   :  { %4465 = vmatpush1.bf16.msra.mxu1 %v5745_v32  ;;  %4302 = vmatprep.subr.bf16.mxu0 %v5752_v36  ;;  %v6016_v32 = vld [vmem:[#allocation10 + $0x70] sm:$0xff]   ;;  %v1236_v36 = vrot.slane %v6462_v0, %v181_v30  ;;  %v6023_v30 = vld [vmem:[#allocation10 + $0xb8] sm:$0xff]  }
 0x321   :  { %4466 = vmatprep.subr.bf16.mxu1 %v5754_v37  ;;  %v6017_v37 = vld [vmem:[#allocation10 + $0xf0] sm:$0xff]  }
 0x322   :  { %v5926_v14 = vadd.f32 %v6456_v19, %v1236_v36 }
 0x323   :  { %4303 = vmatpush1.bf16.msra.mxu0 %v5751_v44  ;;  %v6021_v44 = vld [vmem:[#allocation10 + $0xf8] sm:$0xff]  }
 0x324   :  { %4467 = vmatpush1.bf16.msra.mxu1 %v5753_v45  ;;  %4304 = vmatprep.subr.bf16.mxu0 %v5760_v46  ;;  %v6022_v45 = vld [vmem:[#allocation10 + $0x38] sm:$0xff]   ;;  %v4481_v46 = vmax.f32 %v5924_v39, 0.0  ;;  %v4483_v48 = vmax.f32 %v5926_v14, 0.0 }
 0x325   :  { %4468 = vmatprep.subr.bf16.mxu1 %v5762_v47  ;;  %v6024_v47 = vld [vmem:[#allocation10 + $0x140] sm:$0xff]  }
 0x326   :  { %v4489_v49 = vpack.c.bf16 %v4481_v46, %v4481_v46  ;;  %v4491_v19 = vpack.c.bf16 %v4483_v48, %v4483_v48 }
 0x327   :  { %4305 = vmatpush1.bf16.msra.mxu0 %v5759_v54  ;;  %v6030_v54 = vld [vmem:[#allocation10 + $0x108] sm:$0xff]  }
 0x328   :  { %4469 = vmatpush1.bf16.msra.mxu1 %v5761_v15  ;;  %4306 = vmatprep.subr.bf16.mxu0 %v5768_v55  ;;  %v6031_v15 = vld [vmem:[#allocation10 + $0x188] sm:$0xff]   ;;  %v6032_v55 = vld [vmem:[#allocation10 + $0x150] sm:$0xff]  }
 0x329   :  { %4470 = vmatprep.subr.bf16.mxu1 %v5770_v40  ;;  %v6033_v40 = vld [vmem:[#allocation10 + $0x1d0] sm:$0xff]  }
 0x32b   :  { %4307 = vmatpush1.bf16.msra.mxu0 %v5767_v16  ;;  %v6036_v16 = vld [vmem:[#allocation10 + $0x158] sm:$0xff]  }
 0x32c   :  { %4471 = vmatpush1.bf16.msra.mxu1 %v5769_v58  ;;  %5836 = vmatprep.subr.bf16.mxu0 %v5992_v53  ;;  %v6037_v58 = vld [vmem:[#allocation10 + $0x1d8] sm:$0xff]  }
 0x32d   :  { %5858 = vmatprep.subr.bf16.mxu1 %v5993_v20  ;;  %v6038_v53 = vld [vmem:[#allocation10 + $0x118] sm:$0xff]  }
 0x32e   :  { %4309 = vmatmul.mubr.bf16.vlgmr.msra.gmra.mrb[12].mxu0 %v6436_v51  ;;  %v6039_v20 = vld [vmem:[#allocation10 + $0x198] sm:$0xff]  }
 0x32f   :  { %4473 = vmatmul.mubr.bf16.vlgmr.msra.gmra.mrb[12].mxu1 %v6436_v51  ;;  %5837 = vmatpush3.bf16.msra.mxu0 %v5994_v61  ;;  %v6006_v51 = vld [vmem:[#allocation10 + $0x18] sm:$0xff]   ;;  %v6042_v61 = vld [vmem:[#allocation10 + $0x120] sm:$0xff]  }
 0x330   :  { %5048 = vmatprep.mubr.bf16.mxu0 %v4490_v23  ;;  %5859 = vmatpush3.bf16.msra.mxu1 %v5995_v62  ;;  %v6043_v62 = vld [vmem:[#allocation10 + $0x1a0] sm:$0xff]   ;;  %v6045_v23 = vld [vmem:[#allocation10 + $0x1e8] sm:$0xff]  }
 0x331   :  { %5088 = vmatprep.mubr.bf16.mxu1 %v4492_v57  ;;  %5838 = vmatprep.subr.bf16.mxu0 %v5996_v1  ;;  %v6044_v1 = vld [vmem:[#allocation10 + $0x168] sm:$0xff]  }
 0x332   :  { %5860 = vmatprep.subr.bf16.mxu1 %v5997_v24  ;;  %v6046_v24 = vld [vmem:[#allocation10 + $0x128] sm:$0xff]  }
 0x333   :  { %5839 = vmatpush3.bf16.msra.mxu0 %v5998_v3  ;;  %v6047_v57 = vld [vmem:[#allocation10 + $0x1a8] sm:$0xff]   ;;  %v6048_v3 = vld [vmem:[#allocation10 + $0x170] sm:$0xff]  }
 0x334   :  { %5861 = vmatpush3.bf16.msra.mxu1 %v5999_v4  ;;  %5840 = vmatprep.subr.bf16.mxu0 %v6000_v5  ;;  %v6049_v4 = vld [vmem:[#allocation10 + $0x1f0] sm:$0xff]  }
 0x335   :  { %5862 = vmatprep.subr.bf16.mxu1 %v6001_v34  ;;  %v6050_v5 = vld [vmem:[#allocation10 + $0x130] sm:$0xff]  }
 0x336   :  { %v6051_v34 = vld [vmem:[#allocation10 + $0x1b0] sm:$0xff]  }
 0x337   :  { %5841 = vmatpush3.bf16.msra.mxu0 %v6002_v7  ;;  %v6052_v7 = vld [vmem:[#allocation10 + $0x178] sm:$0xff]  }
 0x338   :  { %5863 = vmatpush3.bf16.msra.mxu1 %v6003_v9  ;;  %5842 = vmatprep.subr.bf16.mxu0 %v6004_v10  ;;  %v6053_v9 = vld [vmem:[#allocation10 + $0x1f8] sm:$0xff]  }
 0x339   :  { %5864 = vmatprep.subr.bf16.mxu1 %v6005_v12  ;;  %v6054_v10 = vld [vmem:[#allocation10 + $0x138] sm:$0xff]  }
 0x33a   :  { %v6055_v12 = vld [vmem:[#allocation10 + $0x1b8] sm:$0xff]  }
 0x33b   :  { %5843 = vmatpush3.bf16.msra.mxu0 %v6006_v51  ;;  %v1244_v51 = vrot.slane %v6462_v0, %v189_v11 }
 0x33c   :  { %5865 = vmatpush3.bf16.msra.mxu1 %v6007_v18  ;;  %5844 = vmatprep.subr.bf16.mxu0 %v6008_v33  ;;  %v1252_v18 = vrot.slane %v6462_v0, %v197_v2  ;;  %v1248_v33 = vrot.slane %v6462_v0, %v193_v43 }
 0x33d   :  { %5866 = vmatprep.subr.bf16.mxu1 %v6009_v21  ;;  %v1256_v21 = vrot.slane %v6462_v0, %v201_v25 }
 0x33f   :  { %5845 = vmatpush3.bf16.msra.mxu0 %v6010_v22 }
 0x340   :  { %5867 = vmatpush3.bf16.msra.mxu1 %v6011_v17  ;;  %5846 = vmatprep.subr.bf16.mxu0 %v6012_v27 }
 0x341   :  { %5868 = vmatprep.subr.bf16.mxu1 %v6013_v28 }
 0x343   :  { %5847 = vmatpush3.bf16.msra.mxu0 %v6014_v29 }
 0x344   :  { %5869 = vmatpush3.bf16.msra.mxu1 %v6015_v26  ;;  %5848 = vmatprep.subr.bf16.mxu0 %v6016_v32 }
 0x345   :  { %5870 = vmatprep.subr.bf16.mxu1 %v6017_v37 }
 0x347   :  { %5849 = vmatpush3.bf16.msra.mxu0 %v6018_v38 }
 0x348   :  { %5871 = vmatpush3.bf16.msra.mxu1 %v6019_v41  ;;  %5850 = vmatprep.subr.bf16.mxu0 %v6020_v42 }
 0x349   :  { %5872 = vmatprep.subr.bf16.mxu1 %v6021_v44 }
 0x34b   :  { %5851 = vmatpush3.bf16.msra.mxu0 %v6022_v45  ;;  %v5771_v45 = vld [vmem:[#allocation11] ss:$0 sm:$0xff] }
 0x34c   :  { %5873 = vmatpush3.bf16.msra.mxu1 %v6023_v30  ;;  %5880 = vmatprep.subr.bf16.mxu0 %v6024_v47 }
 0x34d   :  { %5902 = vmatprep.subr.bf16.mxu1 %v6025_v52 }
 0x34e   :  { %5049 = vmatmul.mubr.bf16.vlgmr.msra.gmra.mrb[16].mxu0 %v4489_v49 }
 0x34f   :  { %5089 = vmatmul.mubr.bf16.vlgmr.msra.gmra.mrb[16].mxu1 %v4491_v19  ;;  %5881 = vmatpush3.bf16.msra.mxu0 %v6026_v6 }
 0x350   :  { %5903 = vmatpush3.bf16.msra.mxu1 %v6027_v50  ;;  %5882 = vmatprep.subr.bf16.mxu0 %v6028_v63 }
 0x351   :  { %5904 = vmatprep.subr.bf16.mxu1 %v6029_v35 }
 0x353   :  { %5883 = vmatpush3.bf16.msra.mxu0 %v6030_v54 }
 0x354   :  { %5905 = vmatpush3.bf16.msra.mxu1 %v6031_v15  ;;  %5884 = vmatprep.subr.bf16.mxu0 %v6032_v55 }
 0x355   :  { %5906 = vmatprep.subr.bf16.mxu1 %v6033_v40 }
 0x357   :  { %5885 = vmatpush3.bf16.msra.mxu0 %v6034_v56 }
 0x358   :  { %5907 = vmatpush3.bf16.msra.mxu1 %v6035_v8  ;;  %5886 = vmatprep.subr.bf16.mxu0 %v6036_v16 }
 0x359   :  { %5908 = vmatprep.subr.bf16.mxu1 %v6037_v58 }
 0x35b   :  { %5887 = vmatpush3.bf16.msra.mxu0 %v6038_v53 }
 0x35c   :  { %5909 = vmatpush3.bf16.msra.mxu1 %v6039_v20  ;;  %5888 = vmatprep.subr.bf16.mxu0 %v6040_v59 }
 0x35d   :  { %5910 = vmatprep.subr.bf16.mxu1 %v6041_v60 }
 0x35f   :  { %5889 = vmatpush3.bf16.msra.mxu0 %v6042_v61 }
 0x360   :  { %5911 = vmatpush3.bf16.msra.mxu1 %v6043_v62  ;;  %5890 = vmatprep.subr.bf16.mxu0 %v6044_v1 }
 0x361   :  { %5912 = vmatprep.subr.bf16.mxu1 %v6045_v23 }
 0x363   :  { %5891 = vmatpush3.bf16.msra.mxu0 %v6046_v24 }
 0x364   :  { %5913 = vmatpush3.bf16.msra.mxu1 %v6047_v57  ;;  %5892 = vmatprep.subr.bf16.mxu0 %v6048_v3 }
 0x365   :  { %5914 = vmatprep.subr.bf16.mxu1 %v6049_v4 }
 0x367   :  { %5893 = vmatpush3.bf16.msra.mxu0 %v6050_v5 }
 0x368   :  { %5915 = vmatpush3.bf16.msra.mxu1 %v6051_v34  ;;  %5894 = vmatprep.subr.bf16.mxu0 %v6052_v7 }
 0x369   :  { %5916 = vmatprep.subr.bf16.mxu1 %v6053_v9 }
 0x36b   :  { %5895 = vmatpush3.bf16.msra.mxu0 %v6054_v10 }
 0x36c   :  { %5917 = vmatpush3.bf16.msra.mxu1 %v6055_v12 }
 0x401   :  { %v4310_v22 = vpop.f32.mrb[12].mxu0 }
 0x402   :  { %v5928_v17 = vadd.f32 %v4310_v22, %v1244_v51  ;;  %v4474_v27 = vpop.f32.mrb[12].mxu1  ;;  %v4312_v28 = vpop.f32.mrb[13].mxu0 }
 0x403   :  { %v5930_v29 = vadd.f32 %v4474_v27, %v1252_v18  ;;  %v5929_v31 = vadd.f32 %v4312_v28, %v1248_v33  ;;  %v4476_v26 = vpop.f32.mrb[13].mxu1  ;;  %v4314_v11 = vpop.f32.mrb[14].mxu0 }
 0x404   :  { %v4485_v32 = vmax.f32 %v5928_v17, 0.0  ;;  %v5931_v36 = vadd.f32 %v4476_v26, %v1256_v21  ;;  %v4478_v37 = vpop.f32.mrb[14].mxu1  ;;  %v4315_v2 = vpop.f32.mrb[15].mxu0 }
 0x405   :  { %v4487_v38 = vmax.f32 %v5930_v29, 0.0  ;;  %v4486_v39 = vmax.f32 %v5929_v31, 0.0  ;;  %v4479_v41 = vpop.f32.mrb[15].mxu1 }
 0x406   :  { %v4488_v43 = vmax.f32 %v5931_v36, 0.0  ;;  %v4493_v13 = vpack.c.bf16 %v4485_v32, %v4485_v32 }
 0x407   :  { %v4494_v42 = vpack.c.bf16 %v4486_v39, %v4486_v39  ;;  %v4495_v25 = vpack.c.bf16 %v4487_v38, %v4487_v38 }
 0x408   :  { %v4496_v14 = vpack.c.bf16 %v4488_v43, %v4488_v43 }
 0x409   :  { %5128 = vmatprep.mubr.bf16.mxu0 %v4494_v42 }
 0x40a   :  { %5168 = vmatprep.mubr.bf16.mxu1 %v4496_v14  ;;  %5129 = vmatmul.mubr.bf16.vlgmr.msra.gmra.mrb[20].mxu0 %v4493_v13 }
 0x40b   :  { %5169 = vmatmul.mubr.bf16.vlgmr.msra.gmra.mrb[20].mxu1 %v4495_v25 }
 0x421   :  { %v5852_v0 = vpop.f32.mrb[16].mxu0 }
 0x422   :  { %v5874_v44 = vpop.f32.mrb[16].mxu1  ;;  %v5853_v46 = vpop.f32.mrb[17].mxu0 }
 0x423   :  { %v5854_v30 = vadd.f32 %v5853_v46, %v5852_v0  ;;  %v5875_v47 = vpop.f32.mrb[17].mxu1  ;;  %v5855_v48 = vpop.f32.mrb[18].mxu0 }
 0x424   :  { %v5876_v52 = vadd.f32 %v5875_v47, %v5874_v44  ;;  %v5877_v6 = vpop.f32.mrb[18].mxu1  ;;  %v5856_v49 = vpop.f32.mrb[19].mxu0 }
 0x425   :  { %v5051_v50 = vadd.f32 %v5854_v30, %v5771_v45  ;;  %v5878_v63 = vpop.f32.mrb[19].mxu1 }
 0x427   :  { %v5091_v19 = vadd.f32 %v5876_v52, %v5051_v50 }
 0x4dd   :  { %v5896_v35 = vpop.f32.mrb[20].mxu0 }
 0x4de   :  { %v5918_v54 = vpop.f32.mrb[20].mxu1  ;;  %v5897_v15 = vpop.f32.mrb[21].mxu0 }
 0x4df   :  { %v5898_v55 = vadd.f32 %v5897_v15, %v5896_v35  ;;  %v5919_v40 = vpop.f32.mrb[21].mxu1  ;;  %v5899_v56 = vpop.f32.mrb[22].mxu0 }
 0x4e0   :  { %v5920_v8 = vadd.f32 %v5919_v40, %v5918_v54  ;;  %v5921_v16 = vpop.f32.mrb[22].mxu1  ;;  %v5900_v58 = vpop.f32.mrb[23].mxu0 }
 0x4e1   :  { %v5131_v53 = vadd.f32 %v5898_v55, %v5091_v19  ;;  %v5922_v20 = vpop.f32.mrb[23].mxu1 }
 0x4e3   :  { %v5171_v59 = vadd.f32 %v5920_v8, %v5131_v53 }
 0x4e5   :  { %5176 = vst [vmem:[#allocation13] sm:$0xff] %v5171_v59 }
 0x4e6   :  { %6200 = shalt.err (!%p6197_p10)
}
 0x4e7   :  { %s6201_s29 = scalar_lea.hbm %s6513_s7, 128 }
 0x4e8   :  { %p6202_p11 = scmp.ne.s32.totalorder %s6513_s7, %s6201_s29  ;;  %p6205_p12 = scmp.lt.u32.totalorder %s6201_s29, %s6513_s7 }
 0x4ea   :  { %p6207_p13 = pnand %p6205_p12, %p6202_p11 }
 0x4ec   :  { %6210 = shalt.err (!%p6207_p13)
}
 0x4ed   :  { %5186 = dma.vmem_to_hbm [thread:$0]  %s5184_s24, 128, %s6513_s7, [#allocation4]  }
 0x4ee   :  { %6219 = dma.done.wait [#allocation4], 128  }
 0x4ef   :  { %6220 = vsyncadd [#allocation4], 4294967168 }
 0x4f0   :  { %5190 = vsyncpa [#allocation3], 1 }
 0x4f1   :  { %5191 = vsyncpa [#allocation6], 1 }
 0x4f2   :  { %5192 = vsyncpa [#allocation9], 1 }
 0x4f3   :  { %5193 = vsyncpa [#allocation12], 1 }
 0x4f4   :  { %5194 = vsyncpa [#allocation4], 1 }

</bundles_post_ra>
